<compile_context>
chip_gen: v5e
topology: v5e:2x2
jax: 0.10.0
libtpu: 0.0.40
codegen_flags: <defaults>
</compile_context>

<pallas_src>
import math

import jax
import jax.numpy as jnp
from jax import lax
from jax.experimental import pallas as pl
from jax.experimental.pallas import tpu as pltpu

# ---------------- small config consistent with the module ----------------
IMG = 32
PATCH = 8
IN_CHANS = 3
EMBED_DIM = 32
DEPTH = 4
NUM_HEADS = 4
MLP_RATIO = 4
NUM_CLASSES = 10
SELECT_LOC = [3, 4]           # 1-indexed block locations (like select_loc=[7..12])
SELECT_MODEL_ID = [0, 1]
GRID_H = IMG // PATCH
NUM_PATCHES = GRID_H * GRID_H
SEQ_LEN = NUM_PATCHES + 1     # +1 cls token (global_pool='token')
PATCH_DIM = IN_CHANS * PATCH * PATCH
HEAD_DIM = EMBED_DIM // NUM_HEADS
MLP_HIDDEN = int(MLP_RATIO * EMBED_DIM)
SEL_HIDDEN = EMBED_DIM // 4   # SelectiveModule hidden_channels = embed_dim // 4
NUM_SEL_LOCS = len(SELECT_LOC)
NUM_SEL_MODULES = len(set(SELECT_MODEL_ID))
HEAD_PAD = 128                # lane-dense classifier output width

_LN_EPS_ENC = 1e-5    # nn.TransformerEncoderLayer / SelectiveModule LayerNorm default
_LN_EPS_FINAL = 1e-6  # norm_layer = partial(nn.LayerNorm, eps=1e-6)
_NEG_INF = -1e9


# ---------------- in-kernel math helpers ----------------
def _layernorm(x, w, b, eps):
    mu = jnp.mean(x, axis=-1, keepdims=True)
    var = jnp.mean(jnp.square(x - mu), axis=-1, keepdims=True)
    return (x - mu) * lax.rsqrt(var + eps) * w + b


def _gelu(x):
    # tanh-approximate GELU: transcendental goes to the EUP slot instead of
    # ~10 VALU ops per element (max |diff| vs exact erf GELU < 1e-3).
    c = math.sqrt(2.0 / math.pi)
    return 0.5 * x * (1.0 + jnp.tanh(c * (x + 0.044715 * x * x * x)))


def _softmax(x):
    m = jnp.max(x, axis=-1, keepdims=True)
    e = jnp.exp(x - m)
    return e / jnp.sum(e, axis=-1, keepdims=True)


def _const_spec(arr):
    nd = arr.ndim
    return pl.BlockSpec(arr.shape, lambda b, _nd=nd: (0,) * _nd)


# ---------------- fused whole-model kernel (one batch element per grid step) ----------------
def _fused_forward_kernel(xp_ref, postok_ref, patchw_ref,
                          qw_ref, kw_ref, vw_ref, qb_ref, kb_ref, vb_ref, ow_ref,
                          w1_ref, w2_ref, bvec_ref,
                          selw1_ref, selw2d_ref, selvec_ref,
                          headw_ref, headvec_ref,
                          logits_ref, sel_ref):
    f32 = jnp.float32
    C = EMBED_DIM

    # Patch embed + cls token + positional embedding in ONE matmul:
    # xp row 0 is an all-zero "patch" (cls slot), postok row 0 = cls_token + pos[0],
    # postok rows 1.. = pos[1:] + patch_bias.  -> x: (SEQ_LEN, C)
    x = jnp.dot(xp_ref[...], patchw_ref[...], preferred_element_type=f32) + postok_ref[...]

    scale = 1.0 / math.sqrt(HEAD_DIM)
    for layer in range(DEPTH):                       # static unroll of the depth loop
        loc = layer + 1
        vec = bvec_ref[layer]                        # (7, 128) packed small params
        ln1_w, ln1_b = vec[0:1, :C], vec[1:2, :C]
        b_o = vec[2:3, :C]
        ln2_w, ln2_b = vec[3:4, :C], vec[4:5, :C]
        b_2 = vec[5:6, :C]
        b_1 = vec[6:7, :MLP_HIDDEN]

        # ---- SelectiveModule (inference argmin path) fused in front of its block ----
        if loc in SELECT_LOC:
            sidx = SELECT_LOC.index(loc)
            mid = SELECT_MODEL_ID[sidx]
            svec = selvec_ref[mid]                   # (4, 128) packed small params
            sn = _layernorm(x, svec[0:1, :C], svec[1:2, :C], _LN_EPS_ENC)
            sh = _gelu(jnp.dot(sn, selw1_ref[mid], preferred_element_type=f32)
                       + svec[2:3, :SEL_HIDDEN])     # (L, SEL_HIDDEN)
            # argmin(LogSoftmax(logits)) == 1  <=>  logits[:,1] - logits[:,0] < 0
            # (LogSoftmax is a per-row monotone shift). Computed row-oriented (1, L)
            # so it feeds the key-padding bias without any in-kernel transpose.
            diff_row = lax.dot_general(selw2d_ref[mid], sh, (((1,), (1,)), ((), ())),
                                       preferred_element_type=f32) + svec[3:4, 0:1]
            keep_row = diff_row < 0.0                # version=0: selector.bool()
            sel_ref[sidx:sidx + 1, :] = keep_row.astype(jnp.int32)
            # TODO(synk): reference forward() raises NotImplementedError; we assume
            # src_key_padding_mask = ~selector (kept tokens attend, masked keys get
            # a -1e9 additive bias).
            mask_bias = jnp.where(keep_row, 0.0, _NEG_INF).astype(f32)   # (1, L)
        else:
            mask_bias = None                         # no zero-bias DMA / adds here

        # ---- x = x + self_attn(norm1(x))  (pre-norm TransformerEncoderLayer) ----
        xn = _layernorm(x, ln1_w, ln1_b, _LN_EPS_ENC)
        attn = None
        for h in range(NUM_HEADS):                   # static unroll; per-head weights,
            q = jnp.dot(xn, qw_ref[layer, h], preferred_element_type=f32) + qb_ref[layer, h]
            k = jnp.dot(xn, kw_ref[layer, h], preferred_element_type=f32) + kb_ref[layer, h]
            v = jnp.dot(xn, vw_ref[layer, h], preferred_element_type=f32) + vb_ref[layer, h]
            s = lax.dot_general(q, k, (((1,), (1,)), ((), ())),
                                preferred_element_type=f32) * scale     # (L, L)
            if mask_bias is not None:
                s = s + mask_bias
            p = _softmax(s)
            oh = jnp.dot(jnp.dot(p, v, preferred_element_type=f32),
                         ow_ref[layer, h], preferred_element_type=f32)  # (L, C)
            attn = oh if attn is None else attn + oh  # head concat folded into w_o split
        x = x + attn + b_o

        # ---- x = x + mlp(norm2(x)) ----
        xn2 = _layernorm(x, ln2_w, ln2_b, _LN_EPS_ENC)
        hid = _gelu(jnp.dot(xn2, w1_ref[layer], preferred_element_type=f32) + b_1)
        x = x + jnp.dot(hid, w2_ref[layer], preferred_element_type=f32) + b_2

    # ---- final norm on the cls token + classifier head (lane-dense, 128 wide) ----
    hv = headvec_ref[...]                            # (3, 128): norm_w, norm_b, head_b
    cls = _layernorm(x[0:1, :], hv[0:1, :C], hv[1:2, :C], _LN_EPS_FINAL)
    logits_ref[...] = jnp.dot(cls, headw_ref[...], preferred_element_type=f32) + hv[2:3, :]


# ---------------- deterministic parameter init (PyTorch-like layout) ----------------
def init_params(key):
    keys = iter(jax.random.split(key, 256))

    def nrm(shape, scale=0.02):
        return (scale * jax.random.normal(next(keys), shape)).astype(jnp.float32)

    C = EMBED_DIM
    params = {
        'patch_w': nrm((PATCH_DIM, C)),
        'patch_b': jnp.zeros((1, C), jnp.float32),
        'cls_token': nrm((1, 1, C)),
        'pos_embed': nrm((1, SEQ_LEN, C)),
        'norm_w': jnp.ones((1, C), jnp.float32),
        'norm_b': jnp.zeros((1, C), jnp.float32),
        'head_w': nrm((C, NUM_CLASSES)),
        'head_b': jnp.zeros((1, NUM_CLASSES), jnp.float32),
        'blocks': [],
        'selective': [],
    }
    for _ in range(DEPTH):
        params['blocks'].append({
            'ln1_w': jnp.ones((1, C), jnp.float32), 'ln1_b': jnp.zeros((1, C), jnp.float32),
            'w_qkv': nrm((C, 3 * C)), 'b_qkv': jnp.zeros((1, 3 * C), jnp.float32),
            'w_o': nrm((C, C)), 'b_o': jnp.zeros((1, C), jnp.float32),
            'ln2_w': jnp.ones((1, C), jnp.float32), 'ln2_b': jnp.zeros((1, C), jnp.float32),
            'w_1': nrm((C, MLP_HIDDEN)), 'b_1': jnp.zeros((1, MLP_HIDDEN), jnp.float32),
            'w_2': nrm((MLP_HIDDEN, C)), 'b_2': jnp.zeros((1, C), jnp.float32),
        })
    for _ in range(NUM_SEL_MODULES):
        params['selective'].append({
            'ln_w': jnp.ones((1, C), jnp.float32), 'ln_b': jnp.zeros((1, C), jnp.float32),
            'w_1': nrm((C, SEL_HIDDEN)), 'b_1': jnp.zeros((1, SEL_HIDDEN), jnp.float32),
            'w_2': nrm((SEL_HIDDEN, 2)), 'b_2': jnp.zeros((1, 2), jnp.float32),
        })
    return params


# ---------------- one-time repack into kernel-friendly operands ----------------
def _pad_lane(v, width=128):
    v = jnp.asarray(v, jnp.float32).reshape(1, -1)
    return jnp.pad(v, ((0, 0), (0, width - v.shape[1])))


def pack_params(p):
    C, H, Dh = EMBED_DIM, NUM_HEADS, HEAD_DIM
    qw, kw, vw, qb, kb, vb, ow, w1, w2, bvec = [], [], [], [], [], [], [], [], [], []
    for blk in p['blocks']:
        wq, wk, wv = jnp.split(blk['w_qkv'], 3, axis=1)          # (C, C) each
        bq, bk, bv = jnp.split(blk['b_qkv'], 3, axis=1)          # (1, C) each
        qw.append(wq.reshape(C, H, Dh).transpose(1, 0, 2))       # (H, C, Dh)
        kw.append(wk.reshape(C, H, Dh).transpose(1, 0, 2))
        vw.append(wv.reshape(C, H, Dh).transpose(1, 0, 2))
        qb.append(bq.reshape(H, 1, Dh))
        kb.append(bk.reshape(H, 1, Dh))
        vb.append(bv.reshape(H, 1, Dh))
        ow.append(blk['w_o'].reshape(H, Dh, C))                  # fold concat into w_o
        w1.append(blk['w_1'])
        w2.append(blk['w_2'])
        bvec.append(jnp.concatenate([
            _pad_lane(blk['ln1_w']), _pad_lane(blk['ln1_b']), _pad_lane(blk['b_o']),
            _pad_lane(blk['ln2_w']), _pad_lane(blk['ln2_b']), _pad_lane(blk['b_2']),
            _pad_lane(blk['b_1'])], axis=0))                     # (7, 128)
    sw1, sw2d, svec = [], [], []
    for sm in p['selective']:
        sw1.append(sm['w_1'])                                    # (C, SEL_HIDDEN)
        sw2d.append((sm['w_2'][:, 1] - sm['w_2'][:, 0]).reshape(1, SEL_HIDDEN))
        b2d = (sm['b_2'][0, 1] - sm['b_2'][0, 0]).reshape(1, 1)
        svec.append(jnp.concatenate([
            _pad_lane(sm['ln_w']), _pad_lane(sm['ln_b']),
            _pad_lane(sm['b_1']), _pad_lane(b2d)], axis=0))      # (4, 128)
    postok = jnp.concatenate([
        p['cls_token'][0] + p['pos_embed'][0, 0:1, :],           # cls slot (no patch_b)
        p['pos_embed'][0, 1:, :] + p['patch_b']], axis=0)        # (SEQ_LEN, C)
    head_w = jnp.pad(p['head_w'], ((0, 0), (0, HEAD_PAD - NUM_CLASSES)))
    head_vec = jnp.concatenate([_pad_lane(p['norm_w']), _pad_lane(p['norm_b']),
                                _pad_lane(p['head_b'])], axis=0)  # (3, 128)
    return {
        'postok': postok, 'patch_w': p['patch_w'],
        'qw': jnp.stack(qw), 'kw': jnp.stack(kw), 'vw': jnp.stack(vw),
        'qb': jnp.stack(qb), 'kb': jnp.stack(kb), 'vb': jnp.stack(vb),
        'ow': jnp.stack(ow),
        'w1': jnp.stack(w1), 'w2': jnp.stack(w2), 'bvec': jnp.stack(bvec),
        'sel_w1': jnp.stack(sw1), 'sel_w2d': jnp.stack(sw2d), 'sel_vec': jnp.stack(svec),
        'head_w': head_w, 'head_vec': head_vec,
    }


# ---------------- forward ----------------
def forward(packed, x):
    # x: (B, 3, IMG, IMG)  -- NCHW like the PyTorch module
    B = x.shape[0]
    # Patch extraction glue (XLA side): flatten each patch in (c, kh, kw) order to
    # match a Conv2d(embed_dim, in_chans, p, p) weight laid out as (C*p*p, embed_dim).
    xp = x.reshape(B, IN_CHANS, GRID_H, PATCH, GRID_H, PATCH)
    xp = xp.transpose(0, 2, 4, 1, 3, 5).reshape(B, NUM_PATCHES, PATCH_DIM)
    # Prepend an all-zero "patch" for the cls slot so the kernel builds the whole
    # (SEQ_LEN, C) token slab with a single matmul (no in-kernel concat).
    xp = jnp.concatenate([jnp.zeros((B, 1, PATCH_DIM), jnp.float32), xp], axis=1)

    weight_ops = (packed['postok'], packed['patch_w'],
                  packed['qw'], packed['kw'], packed['vw'],
                  packed['qb'], packed['kb'], packed['vb'], packed['ow'],
                  packed['w1'], packed['w2'], packed['bvec'],
                  packed['sel_w1'], packed['sel_w2d'], packed['sel_vec'],
                  packed['head_w'], packed['head_vec'])

    in_specs = [pl.BlockSpec((None, SEQ_LEN, PATCH_DIM), lambda b: (b, 0, 0))]
    in_specs += [_const_spec(w) for w in weight_ops]   # constant index -> single DMA

    out_shape = (jax.ShapeDtypeStruct((B, 1, HEAD_PAD), jnp.float32),
                 jax.ShapeDtypeStruct((B, NUM_SEL_LOCS, SEQ_LEN), jnp.int32))
    out_specs = (pl.BlockSpec((None, 1, HEAD_PAD), lambda b: (b, 0, 0)),
                 pl.BlockSpec((None, NUM_SEL_LOCS, SEQ_LEN), lambda b: (b, 0, 0)))

    logits_pad, sel = pl.pallas_call(
        _fused_forward_kernel,
        grid=(B,),
        in_specs=in_specs,
        out_specs=out_specs,
        out_shape=out_shape,
        compiler_params=pltpu.CompilerParams(
            dimension_semantics=("parallel",)),       # v7x: batch splits across 2 TCs
    )(xp, *weight_ops)

    logits = logits_pad[:, 0, :NUM_CLASSES]           # slice padded lanes in the wrapper
    selectors = [sel[:, i, :].astype(bool) for i in range(NUM_SEL_LOCS)]
    return logits, selectors


if __name__ == "__main__":
    key = jax.random.PRNGKey(0)
    pkey, xkey = jax.random.split(key)
    params = init_params(pkey)
    packed = pack_params(params)
    x = jax.random.normal(xkey, (2, IN_CHANS, IMG, IMG), dtype=jnp.float32)

    fwd = jax.jit(forward)
    logits, selectors = fwd(packed, x)
    jax.block_until_ready(logits)
    for s in selectors:
        jax.block_until_ready(s)

    assert logits.shape == (2, NUM_CLASSES), logits.shape
    assert all(s.shape == (2, SEQ_LEN) for s in selectors)
    print("KERNEL_OK")
</pallas_src>

<mosaic_0001>
module attributes {stable_mosaic.version = 11 : i64} {
  func.func @_fused_forward_kernel(%arg0: i32, %arg1: memref<1x17x192xf32, #tpu.memory_space<vmem>>, %arg2: memref<17x32xf32, #tpu.memory_space<vmem>>, %arg3: memref<192x32xf32, #tpu.memory_space<vmem>>, %arg4: memref<4x4x32x8xf32, #tpu.memory_space<vmem>>, %arg5: memref<4x4x32x8xf32, #tpu.memory_space<vmem>>, %arg6: memref<4x4x32x8xf32, #tpu.memory_space<vmem>>, %arg7: memref<4x4x1x8xf32, #tpu.memory_space<vmem>>, %arg8: memref<4x4x1x8xf32, #tpu.memory_space<vmem>>, %arg9: memref<4x4x1x8xf32, #tpu.memory_space<vmem>>, %arg10: memref<4x4x8x32xf32, #tpu.memory_space<vmem>>, %arg11: memref<4x32x128xf32, #tpu.memory_space<vmem>>, %arg12: memref<4x128x32xf32, #tpu.memory_space<vmem>>, %arg13: memref<4x7x128xf32, #tpu.memory_space<vmem>>, %arg14: memref<2x32x8xf32, #tpu.memory_space<vmem>>, %arg15: memref<2x1x8xf32, #tpu.memory_space<vmem>>, %arg16: memref<2x4x128xf32, #tpu.memory_space<vmem>>, %arg17: memref<32x128xf32, #tpu.memory_space<vmem>>, %arg18: memref<3x128xf32, #tpu.memory_space<vmem>>, %arg19: memref<1x1x128xf32, #tpu.memory_space<vmem>>, %arg20: memref<1x2x17xi32, #tpu.memory_space<vmem>>) attributes {dimension_semantics = [#tpu.dimension_semantics<parallel>], iteration_bounds = array<i64: 2>, scalar_prefetch = 0 : i64, scratch_operands = 0 : i64, tpu.core_type = #tpu.core_type<tc>, window_params = [{transform_indices = @transform_0, window_bounds = array<i64: 1, 17, 192>}, {pipeline_mode = #tpu.pipeline_mode<synchronous>, transform_indices = @transform_1, window_bounds = array<i64: 17, 32>}, {pipeline_mode = #tpu.pipeline_mode<synchronous>, transform_indices = @transform_2, window_bounds = array<i64: 192, 32>}, {pipeline_mode = #tpu.pipeline_mode<synchronous>, transform_indices = @transform_3, window_bounds = array<i64: 4, 4, 32, 8>}, {pipeline_mode = #tpu.pipeline_mode<synchronous>, transform_indices = @transform_4, window_bounds = array<i64: 4, 4, 32, 8>}, {pipeline_mode = #tpu.pipeline_mode<synchronous>, transform_indices = @transform_5, window_bounds = array<i64: 4, 4, 32, 8>}, {pipeline_mode = #tpu.pipeline_mode<synchronous>, transform_indices = @transform_6, window_bounds = array<i64: 4, 4, 1, 8>}, {pipeline_mode = #tpu.pipeline_mode<synchronous>, transform_indices = @transform_7, window_bounds = array<i64: 4, 4, 1, 8>}, {pipeline_mode = #tpu.pipeline_mode<synchronous>, transform_indices = @transform_8, window_bounds = array<i64: 4, 4, 1, 8>}, {pipeline_mode = #tpu.pipeline_mode<synchronous>, transform_indices = @transform_9, window_bounds = array<i64: 4, 4, 8, 32>}, {pipeline_mode = #tpu.pipeline_mode<synchronous>, transform_indices = @transform_10, window_bounds = array<i64: 4, 32, 128>}, {pipeline_mode = #tpu.pipeline_mode<synchronous>, transform_indices = @transform_11, window_bounds = array<i64: 4, 128, 32>}, {pipeline_mode = #tpu.pipeline_mode<synchronous>, transform_indices = @transform_12, window_bounds = array<i64: 4, 7, 128>}, {pipeline_mode = #tpu.pipeline_mode<synchronous>, transform_indices = @transform_13, window_bounds = array<i64: 2, 32, 8>}, {pipeline_mode = #tpu.pipeline_mode<synchronous>, transform_indices = @transform_14, window_bounds = array<i64: 2, 1, 8>}, {pipeline_mode = #tpu.pipeline_mode<synchronous>, transform_indices = @transform_15, window_bounds = array<i64: 2, 4, 128>}, {pipeline_mode = #tpu.pipeline_mode<synchronous>, transform_indices = @transform_16, window_bounds = array<i64: 32, 128>}, {pipeline_mode = #tpu.pipeline_mode<synchronous>, transform_indices = @transform_17, window_bounds = array<i64: 3, 128>}, {transform_indices = @transform_18, window_bounds = array<i64: 1, 1, 128>}, {transform_indices = @transform_19, window_bounds = array<i64: 1, 2, 17>}]} {
    %c0 = arith.constant 0 : index
    %c0_0 = arith.constant 0 : index
    %c0_1 = arith.constant 0 : index
    %0 = vector.load %arg1[%c0, %c0_0, %c0_1] : memref<1x17x192xf32, #tpu.memory_space<vmem>>, vector<1x17x192xf32>
    %1 = vector.shape_cast %0 : vector<1x17x192xf32> to vector<17x192xf32>
    %c0_2 = arith.constant 0 : index
    %c0_3 = arith.constant 0 : index
    %2 = vector.load %arg3[%c0_2, %c0_3] : memref<192x32xf32, #tpu.memory_space<vmem>>, vector<192x32xf32>
    %cst = arith.constant dense<0.000000e+00> : vector<17x32xf32>
    %3 = tpu.matmul %1, %2, %cst {dimension_numbers = #tpu.dot_dimension_numbers<[1], [0], [0], [1], [0, 0, 1, 1], [], []>} : vector<17x192xf32>, vector<192x32xf32>, vector<17x32xf32> -> vector<17x32xf32>
    %c0_4 = arith.constant 0 : index
    %c0_5 = arith.constant 0 : index
    %4 = vector.load %arg2[%c0_4, %c0_5] : memref<17x32xf32, #tpu.memory_space<vmem>>, vector<17x32xf32>
    %5 = arith.addf %3, %4 : vector<17x32xf32>
    %c0_6 = arith.constant 0 : index
    %c0_7 = arith.constant 0 : index
    %c0_8 = arith.constant 0 : index
    %6 = vector.load %arg13[%c0_6, %c0_7, %c0_8] : memref<4x7x128xf32, #tpu.memory_space<vmem>>, vector<1x7x128xf32>
    %7 = vector.shape_cast %6 : vector<1x7x128xf32> to vector<7x128xf32>
    %8 = vector.extract_strided_slice %7 {offsets = [0, 0], sizes = [1, 32], strides = [1, 1]} : vector<7x128xf32> to vector<1x32xf32>
    %9 = vector.extract_strided_slice %7 {offsets = [1, 0], sizes = [1, 32], strides = [1, 1]} : vector<7x128xf32> to vector<1x32xf32>
    %10 = vector.extract_strided_slice %7 {offsets = [2, 0], sizes = [1, 32], strides = [1, 1]} : vector<7x128xf32> to vector<1x32xf32>
    %11 = vector.extract_strided_slice %7 {offsets = [3, 0], sizes = [1, 32], strides = [1, 1]} : vector<7x128xf32> to vector<1x32xf32>
    %12 = vector.extract_strided_slice %7 {offsets = [4, 0], sizes = [1, 32], strides = [1, 1]} : vector<7x128xf32> to vector<1x32xf32>
    %13 = vector.extract_strided_slice %7 {offsets = [5, 0], sizes = [1, 32], strides = [1, 1]} : vector<7x128xf32> to vector<1x32xf32>
    %14 = vector.extract_strided_slice %7 {offsets = [6, 0], sizes = [1, 128], strides = [1, 1]} : vector<7x128xf32> to vector<1x128xf32>
    %cst_9 = arith.constant dense<0.000000e+00> : vector<17xf32>
    %15 = vector.multi_reduction <add>, %5, %cst_9 [1] : vector<17x32xf32> to vector<17xf32>
    %16 = vector.shape_cast %15 : vector<17xf32> to vector<17x1xf32>
    %cst_10 = arith.constant 3.200000e+01 : f32
    %17 = vector.broadcast %cst_10 : f32 to vector<17x1xf32>
    %18 = arith.divf %16, %17 : vector<17x1xf32>
    %19 = vector.broadcast %18 : vector<17x1xf32> to vector<17x32xf32>
    %20 = arith.subf %5, %19 : vector<17x32xf32>
    %21 = arith.mulf %20, %20 : vector<17x32xf32>
    %cst_11 = arith.constant dense<0.000000e+00> : vector<17xf32>
    %22 = vector.multi_reduction <add>, %21, %cst_11 [1] : vector<17x32xf32> to vector<17xf32>
    %23 = vector.shape_cast %22 : vector<17xf32> to vector<17x1xf32>
    %cst_12 = arith.constant 3.200000e+01 : f32
    %24 = vector.broadcast %cst_12 : f32 to vector<17x1xf32>
    %25 = arith.divf %23, %24 : vector<17x1xf32>
    %26 = vector.broadcast %18 : vector<17x1xf32> to vector<17x32xf32>
    %27 = arith.subf %5, %26 : vector<17x32xf32>
    %cst_13 = arith.constant 9.99999974E-6 : f32
    %28 = vector.broadcast %cst_13 : f32 to vector<17x1xf32>
    %29 = arith.addf %25, %28 : vector<17x1xf32>
    %30 = math.rsqrt %29 : vector<17x1xf32>
    %31 = vector.broadcast %30 : vector<17x1xf32> to vector<17x32xf32>
    %32 = arith.mulf %27, %31 : vector<17x32xf32>
    %33 = vector.broadcast %8 : vector<1x32xf32> to vector<17x32xf32>
    %34 = arith.mulf %32, %33 : vector<17x32xf32>
    %35 = vector.broadcast %9 : vector<1x32xf32> to vector<17x32xf32>
    %36 = arith.addf %34, %35 : vector<17x32xf32>
    %c0_14 = arith.constant 0 : index
    %c0_15 = arith.constant 0 : index
    %c0_16 = arith.constant 0 : index
    %c0_17 = arith.constant 0 : index
    %37 = vector.load %arg4[%c0_14, %c0_15, %c0_16, %c0_17] : memref<4x4x32x8xf32, #tpu.memory_space<vmem>>, vector<1x1x32x8xf32>
    %38 = vector.shape_cast %37 : vector<1x1x32x8xf32> to vector<32x8xf32>
    %cst_18 = arith.constant dense<0.000000e+00> : vector<17x8xf32>
    %39 = tpu.matmul %36, %38, %cst_18 {dimension_numbers = #tpu.dot_dimension_numbers<[1], [0], [0], [1], [0, 0, 1, 1], [], []>} : vector<17x32xf32>, vector<32x8xf32>, vector<17x8xf32> -> vector<17x8xf32>
    %c0_19 = arith.constant 0 : index
    %c0_20 = arith.constant 0 : index
    %c0_21 = arith.constant 0 : index
    %c0_22 = arith.constant 0 : index
    %40 = vector.load %arg7[%c0_19, %c0_20, %c0_21, %c0_22] : memref<4x4x1x8xf32, #tpu.memory_space<vmem>>, vector<1x1x1x8xf32>
    %41 = vector.shape_cast %40 : vector<1x1x1x8xf32> to vector<1x8xf32>
    %42 = vector.broadcast %41 : vector<1x8xf32> to vector<17x8xf32>
    %43 = arith.addf %39, %42 : vector<17x8xf32>
    %c0_23 = arith.constant 0 : index
    %c0_24 = arith.constant 0 : index
    %c0_25 = arith.constant 0 : index
    %c0_26 = arith.constant 0 : index
    %44 = vector.load %arg5[%c0_23, %c0_24, %c0_25, %c0_26] : memref<4x4x32x8xf32, #tpu.memory_space<vmem>>, vector<1x1x32x8xf32>
    %45 = vector.shape_cast %44 : vector<1x1x32x8xf32> to vector<32x8xf32>
    %cst_27 = arith.constant dense<0.000000e+00> : vector<17x8xf32>
    %46 = tpu.matmul %36, %45, %cst_27 {dimension_numbers = #tpu.dot_dimension_numbers<[1], [0], [0], [1], [0, 0, 1, 1], [], []>} : vector<17x32xf32>, vector<32x8xf32>, vector<17x8xf32> -> vector<17x8xf32>
    %c0_28 = arith.constant 0 : index
    %c0_29 = arith.constant 0 : index
    %c0_30 = arith.constant 0 : index
    %c0_31 = arith.constant 0 : index
    %47 = vector.load %arg8[%c0_28, %c0_29, %c0_30, %c0_31] : memref<4x4x1x8xf32, #tpu.memory_space<vmem>>, vector<1x1x1x8xf32>
    %48 = vector.shape_cast %47 : vector<1x1x1x8xf32> to vector<1x8xf32>
    %49 = vector.broadcast %48 : vector<1x8xf32> to vector<17x8xf32>
    %50 = arith.addf %46, %49 : vector<17x8xf32>
    %c0_32 = arith.constant 0 : index
    %c0_33 = arith.constant 0 : index
    %c0_34 = arith.constant 0 : index
    %c0_35 = arith.constant 0 : index
    %51 = vector.load %arg6[%c0_32, %c0_33, %c0_34, %c0_35] : memref<4x4x32x8xf32, #tpu.memory_space<vmem>>, vector<1x1x32x8xf32>
    %52 = vector.shape_cast %51 : vector<1x1x32x8xf32> to vector<32x8xf32>
    %cst_36 = arith.constant dense<0.000000e+00> : vector<17x8xf32>
    %53 = tpu.matmul %36, %52, %cst_36 {dimension_numbers = #tpu.dot_dimension_numbers<[1], [0], [0], [1], [0, 0, 1, 1], [], []>} : vector<17x32xf32>, vector<32x8xf32>, vector<17x8xf32> -> vector<17x8xf32>
    %c0_37 = arith.constant 0 : index
    %c0_38 = arith.constant 0 : index
    %c0_39 = arith.constant 0 : index
    %c0_40 = arith.constant 0 : index
    %54 = vector.load %arg9[%c0_37, %c0_38, %c0_39, %c0_40] : memref<4x4x1x8xf32, #tpu.memory_space<vmem>>, vector<1x1x1x8xf32>
    %55 = vector.shape_cast %54 : vector<1x1x1x8xf32> to vector<1x8xf32>
    %56 = vector.broadcast %55 : vector<1x8xf32> to vector<17x8xf32>
    %57 = arith.addf %53, %56 : vector<17x8xf32>
    %cst_41 = arith.constant dense<0.000000e+00> : vector<17x17xf32>
    %58 = tpu.matmul %43, %50, %cst_41 {dimension_numbers = #tpu.dot_dimension_numbers<[1], [1], [0], [0], [0, 0, 1, 0], [], []>} : vector<17x8xf32>, vector<17x8xf32>, vector<17x17xf32> -> vector<17x17xf32>
    %cst_42 = arith.constant 0.353553385 : f32
    %59 = vector.broadcast %cst_42 : f32 to vector<17x17xf32>
    %60 = arith.mulf %58, %59 : vector<17x17xf32>
    %cst_43 = arith.constant dense<0xFF800000> : vector<17xf32>
    %61 = vector.multi_reduction <maximumf>, %60, %cst_43 [1] : vector<17x17xf32> to vector<17xf32>
    %62 = vector.shape_cast %61 : vector<17xf32> to vector<17x1xf32>
    %63 = vector.broadcast %62 : vector<17x1xf32> to vector<17x17xf32>
    %64 = arith.subf %60, %63 : vector<17x17xf32>
    %65 = math.exp %64 : vector<17x17xf32>
    %cst_44 = arith.constant dense<0.000000e+00> : vector<17xf32>
    %66 = vector.multi_reduction <add>, %65, %cst_44 [1] : vector<17x17xf32> to vector<17xf32>
    %67 = vector.shape_cast %66 : vector<17xf32> to vector<17x1xf32>
    %68 = vector.broadcast %67 : vector<17x1xf32> to vector<17x17xf32>
    %69 = arith.divf %65, %68 : vector<17x17xf32>
    %cst_45 = arith.constant dense<0.000000e+00> : vector<17x8xf32>
    %70 = tpu.matmul %69, %57, %cst_45 {dimension_numbers = #tpu.dot_dimension_numbers<[1], [0], [0], [1], [0, 0, 1, 1], [], []>} : vector<17x17xf32>, vector<17x8xf32>, vector<17x8xf32> -> vector<17x8xf32>
    %c0_46 = arith.constant 0 : index
    %c0_47 = arith.constant 0 : index
    %c0_48 = arith.constant 0 : index
    %c0_49 = arith.constant 0 : index
    %71 = vector.load %arg10[%c0_46, %c0_47, %c0_48, %c0_49] : memref<4x4x8x32xf32, #tpu.memory_space<vmem>>, vector<1x1x8x32xf32>
    %72 = vector.shape_cast %71 : vector<1x1x8x32xf32> to vector<8x32xf32>
    %cst_50 = arith.constant dense<0.000000e+00> : vector<17x32xf32>
    %73 = tpu.matmul %70, %72, %cst_50 {dimension_numbers = #tpu.dot_dimension_numbers<[1], [0], [0], [1], [0, 0, 1, 1], [], []>} : vector<17x8xf32>, vector<8x32xf32>, vector<17x32xf32> -> vector<17x32xf32>
    %c0_51 = arith.constant 0 : index
    %c1 = arith.constant 1 : index
    %c0_52 = arith.constant 0 : index
    %c0_53 = arith.constant 0 : index
    %74 = vector.load %arg4[%c0_51, %c1, %c0_52, %c0_53] : memref<4x4x32x8xf32, #tpu.memory_space<vmem>>, vector<1x1x32x8xf32>
    %75 = vector.shape_cast %74 : vector<1x1x32x8xf32> to vector<32x8xf32>
    %cst_54 = arith.constant dense<0.000000e+00> : vector<17x8xf32>
    %76 = tpu.matmul %36, %75, %cst_54 {dimension_numbers = #tpu.dot_dimension_numbers<[1], [0], [0], [1], [0, 0, 1, 1], [], []>} : vector<17x32xf32>, vector<32x8xf32>, vector<17x8xf32> -> vector<17x8xf32>
    %c0_55 = arith.constant 0 : index
    %c1_56 = arith.constant 1 : index
    %c0_57 = arith.constant 0 : index
    %c0_58 = arith.constant 0 : index
    %77 = vector.load %arg7[%c0_55, %c1_56, %c0_57, %c0_58] : memref<4x4x1x8xf32, #tpu.memory_space<vmem>>, vector<1x1x1x8xf32>
    %78 = vector.shape_cast %77 : vector<1x1x1x8xf32> to vector<1x8xf32>
    %79 = vector.broadcast %78 : vector<1x8xf32> to vector<17x8xf32>
    %80 = arith.addf %76, %79 : vector<17x8xf32>
    %c0_59 = arith.constant 0 : index
    %c1_60 = arith.constant 1 : index
    %c0_61 = arith.constant 0 : index
    %c0_62 = arith.constant 0 : index
    %81 = vector.load %arg5[%c0_59, %c1_60, %c0_61, %c0_62] : memref<4x4x32x8xf32, #tpu.memory_space<vmem>>, vector<1x1x32x8xf32>
    %82 = vector.shape_cast %81 : vector<1x1x32x8xf32> to vector<32x8xf32>
    %cst_63 = arith.constant dense<0.000000e+00> : vector<17x8xf32>
    %83 = tpu.matmul %36, %82, %cst_63 {dimension_numbers = #tpu.dot_dimension_numbers<[1], [0], [0], [1], [0, 0, 1, 1], [], []>} : vector<17x32xf32>, vector<32x8xf32>, vector<17x8xf32> -> vector<17x8xf32>
    %c0_64 = arith.constant 0 : index
    %c1_65 = arith.constant 1 : index
    %c0_66 = arith.constant 0 : index
    %c0_67 = arith.constant 0 : index
    %84 = vector.load %arg8[%c0_64, %c1_65, %c0_66, %c0_67] : memref<4x4x1x8xf32, #tpu.memory_space<vmem>>, vector<1x1x1x8xf32>
    %85 = vector.shape_cast %84 : vector<1x1x1x8xf32> to vector<1x8xf32>
    %86 = vector.broadcast %85 : vector<1x8xf32> to vector<17x8xf32>
    %87 = arith.addf %83, %86 : vector<17x8xf32>
    %c0_68 = arith.constant 0 : index
    %c1_69 = arith.constant 1 : index
    %c0_70 = arith.constant 0 : index
    %c0_71 = arith.constant 0 : index
    %88 = vector.load %arg6[%c0_68, %c1_69, %c0_70, %c0_71] : memref<4x4x32x8xf32, #tpu.memory_space<vmem>>, vector<1x1x32x8xf32>
    %89 = vector.shape_cast %88 : vector<1x1x32x8xf32> to vector<32x8xf32>
    %cst_72 = arith.constant dense<0.000000e+00> : vector<17x8xf32>
    %90 = tpu.matmul %36, %89, %cst_72 {dimension_numbers = #tpu.dot_dimension_numbers<[1], [0], [0], [1], [0, 0, 1, 1], [], []>} : vector<17x32xf32>, vector<32x8xf32>, vector<17x8xf32> -> vector<17x8xf32>
    %c0_73 = arith.constant 0 : index
    %c1_74 = arith.constant 1 : index
    %c0_75 = arith.constant 0 : index
    %c0_76 = arith.constant 0 : index
    %91 = vector.load %arg9[%c0_73, %c1_74, %c0_75, %c0_76] : memref<4x4x1x8xf32, #tpu.memory_space<vmem>>, vector<1x1x1x8xf32>
    %92 = vector.shape_cast %91 : vector<1x1x1x8xf32> to vector<1x8xf32>
    %93 = vector.broadcast %92 : vector<1x8xf32> to vector<17x8xf32>
    %94 = arith.addf %90, %93 : vector<17x8xf32>
    %cst_77 = arith.constant dense<0.000000e+00> : vector<17x17xf32>
    %95 = tpu.matmul %80, %87, %cst_77 {dimension_numbers = #tpu.dot_dimension_numbers<[1], [1], [0], [0], [0, 0, 1, 0], [], []>} : vector<17x8xf32>, vector<17x8xf32>, vector<17x17xf32> -> vector<17x17xf32>
    %cst_78 = arith.constant 0.353553385 : f32
    %96 = vector.broadcast %cst_78 : f32 to vector<17x17xf32>
    %97 = arith.mulf %95, %96 : vector<17x17xf32>
    %cst_79 = arith.constant dense<0xFF800000> : vector<17xf32>
    %98 = vector.multi_reduction <maximumf>, %97, %cst_79 [1] : vector<17x17xf32> to vector<17xf32>
    %99 = vector.shape_cast %98 : vector<17xf32> to vector<17x1xf32>
    %100 = vector.broadcast %99 : vector<17x1xf32> to vector<17x17xf32>
    %101 = arith.subf %97, %100 : vector<17x17xf32>
    %102 = math.exp %101 : vector<17x17xf32>
    %cst_80 = arith.constant dense<0.000000e+00> : vector<17xf32>
    %103 = vector.multi_reduction <add>, %102, %cst_80 [1] : vector<17x17xf32> to vector<17xf32>
    %104 = vector.shape_cast %103 : vector<17xf32> to vector<17x1xf32>
    %105 = vector.broadcast %104 : vector<17x1xf32> to vector<17x17xf32>
    %106 = arith.divf %102, %105 : vector<17x17xf32>
    %cst_81 = arith.constant dense<0.000000e+00> : vector<17x8xf32>
    %107 = tpu.matmul %106, %94, %cst_81 {dimension_numbers = #tpu.dot_dimension_numbers<[1], [0], [0], [1], [0, 0, 1, 1], [], []>} : vector<17x17xf32>, vector<17x8xf32>, vector<17x8xf32> -> vector<17x8xf32>
    %c0_82 = arith.constant 0 : index
    %c1_83 = arith.constant 1 : index
    %c0_84 = arith.constant 0 : index
    %c0_85 = arith.constant 0 : index
    %108 = vector.load %arg10[%c0_82, %c1_83, %c0_84, %c0_85] : memref<4x4x8x32xf32, #tpu.memory_space<vmem>>, vector<1x1x8x32xf32>
    %109 = vector.shape_cast %108 : vector<1x1x8x32xf32> to vector<8x32xf32>
    %cst_86 = arith.constant dense<0.000000e+00> : vector<17x32xf32>
    %110 = tpu.matmul %107, %109, %cst_86 {dimension_numbers = #tpu.dot_dimension_numbers<[1], [0], [0], [1], [0, 0, 1, 1], [], []>} : vector<17x8xf32>, vector<8x32xf32>, vector<17x32xf32> -> vector<17x32xf32>
    %111 = arith.addf %73, %110 : vector<17x32xf32>
    %c0_87 = arith.constant 0 : index
    %c2 = arith.constant 2 : index
    %c0_88 = arith.constant 0 : index
    %c0_89 = arith.constant 0 : index
    %112 = vector.load %arg4[%c0_87, %c2, %c0_88, %c0_89] : memref<4x4x32x8xf32, #tpu.memory_space<vmem>>, vector<1x1x32x8xf32>
    %113 = vector.shape_cast %112 : vector<1x1x32x8xf32> to vector<32x8xf32>
    %cst_90 = arith.constant dense<0.000000e+00> : vector<17x8xf32>
    %114 = tpu.matmul %36, %113, %cst_90 {dimension_numbers = #tpu.dot_dimension_numbers<[1], [0], [0], [1], [0, 0, 1, 1], [], []>} : vector<17x32xf32>, vector<32x8xf32>, vector<17x8xf32> -> vector<17x8xf32>
    %c0_91 = arith.constant 0 : index
    %c2_92 = arith.constant 2 : index
    %c0_93 = arith.constant 0 : index
    %c0_94 = arith.constant 0 : index
    %115 = vector.load %arg7[%c0_91, %c2_92, %c0_93, %c0_94] : memref<4x4x1x8xf32, #tpu.memory_space<vmem>>, vector<1x1x1x8xf32>
    %116 = vector.shape_cast %115 : vector<1x1x1x8xf32> to vector<1x8xf32>
    %117 = vector.broadcast %116 : vector<1x8xf32> to vector<17x8xf32>
    %118 = arith.addf %114, %117 : vector<17x8xf32>
    %c0_95 = arith.constant 0 : index
    %c2_96 = arith.constant 2 : index
    %c0_97 = arith.constant 0 : index
    %c0_98 = arith.constant 0 : index
    %119 = vector.load %arg5[%c0_95, %c2_96, %c0_97, %c0_98] : memref<4x4x32x8xf32, #tpu.memory_space<vmem>>, vector<1x1x32x8xf32>
    %120 = vector.shape_cast %119 : vector<1x1x32x8xf32> to vector<32x8xf32>
    %cst_99 = arith.constant dense<0.000000e+00> : vector<17x8xf32>
    %121 = tpu.matmul %36, %120, %cst_99 {dimension_numbers = #tpu.dot_dimension_numbers<[1], [0], [0], [1], [0, 0, 1, 1], [], []>} : vector<17x32xf32>, vector<32x8xf32>, vector<17x8xf32> -> vector<17x8xf32>
    %c0_100 = arith.constant 0 : index
    %c2_101 = arith.constant 2 : index
    %c0_102 = arith.constant 0 : index
    %c0_103 = arith.constant 0 : index
    %122 = vector.load %arg8[%c0_100, %c2_101, %c0_102, %c0_103] : memref<4x4x1x8xf32, #tpu.memory_space<vmem>>, vector<1x1x1x8xf32>
    %123 = vector.shape_cast %122 : vector<1x1x1x8xf32> to vector<1x8xf32>
    %124 = vector.broadcast %123 : vector<1x8xf32> to vector<17x8xf32>
    %125 = arith.addf %121, %124 : vector<17x8xf32>
    %c0_104 = arith.constant 0 : index
    %c2_105 = arith.constant 2 : index
    %c0_106 = arith.constant 0 : index
    %c0_107 = arith.constant 0 : index
    %126 = vector.load %arg6[%c0_104, %c2_105, %c0_106, %c0_107] : memref<4x4x32x8xf32, #tpu.memory_space<vmem>>, vector<1x1x32x8xf32>
    %127 = vector.shape_cast %126 : vector<1x1x32x8xf32> to vector<32x8xf32>
    %cst_108 = arith.constant dense<0.000000e+00> : vector<17x8xf32>
    %128 = tpu.matmul %36, %127, %cst_108 {dimension_numbers = #tpu.dot_dimension_numbers<[1], [0], [0], [1], [0, 0, 1, 1], [], []>} : vector<17x32xf32>, vector<32x8xf32>, vector<17x8xf32> -> vector<17x8xf32>
    %c0_109 = arith.constant 0 : index
    %c2_110 = arith.constant 2 : index
    %c0_111 = arith.constant 0 : index
    %c0_112 = arith.constant 0 : index
    %129 = vector.load %arg9[%c0_109, %c2_110, %c0_111, %c0_112] : memref<4x4x1x8xf32, #tpu.memory_space<vmem>>, vector<1x1x1x8xf32>
    %130 = vector.shape_cast %129 : vector<1x1x1x8xf32> to vector<1x8xf32>
    %131 = vector.broadcast %130 : vector<1x8xf32> to vector<17x8xf32>
    %132 = arith.addf %128, %131 : vector<17x8xf32>
    %cst_113 = arith.constant dense<0.000000e+00> : vector<17x17xf32>
    %133 = tpu.matmul %118, %125, %cst_113 {dimension_numbers = #tpu.dot_dimension_numbers<[1], [1], [0], [0], [0, 0, 1, 0], [], []>} : vector<17x8xf32>, vector<17x8xf32>, vector<17x17xf32> -> vector<17x17xf32>
    %cst_114 = arith.constant 0.353553385 : f32
    %134 = vector.broadcast %cst_114 : f32 to vector<17x17xf32>
    %135 = arith.mulf %133, %134 : vector<17x17xf32>
    %cst_115 = arith.constant dense<0xFF800000> : vector<17xf32>
    %136 = vector.multi_reduction <maximumf>, %135, %cst_115 [1] : vector<17x17xf32> to vector<17xf32>
    %137 = vector.shape_cast %136 : vector<17xf32> to vector<17x1xf32>
    %138 = vector.broadcast %137 : vector<17x1xf32> to vector<17x17xf32>
    %139 = arith.subf %135, %138 : vector<17x17xf32>
    %140 = math.exp %139 : vector<17x17xf32>
    %cst_116 = arith.constant dense<0.000000e+00> : vector<17xf32>
    %141 = vector.multi_reduction <add>, %140, %cst_116 [1] : vector<17x17xf32> to vector<17xf32>
    %142 = vector.shape_cast %141 : vector<17xf32> to vector<17x1xf32>
    %143 = vector.broadcast %142 : vector<17x1xf32> to vector<17x17xf32>
    %144 = arith.divf %140, %143 : vector<17x17xf32>
    %cst_117 = arith.constant dense<0.000000e+00> : vector<17x8xf32>
    %145 = tpu.matmul %144, %132, %cst_117 {dimension_numbers = #tpu.dot_dimension_numbers<[1], [0], [0], [1], [0, 0, 1, 1], [], []>} : vector<17x17xf32>, vector<17x8xf32>, vector<17x8xf32> -> vector<17x8xf32>
    %c0_118 = arith.constant 0 : index
    %c2_119 = arith.constant 2 : index
    %c0_120 = arith.constant 0 : index
    %c0_121 = arith.constant 0 : index
    %146 = vector.load %arg10[%c0_118, %c2_119, %c0_120, %c0_121] : memref<4x4x8x32xf32, #tpu.memory_space<vmem>>, vector<1x1x8x32xf32>
    %147 = vector.shape_cast %146 : vector<1x1x8x32xf32> to vector<8x32xf32>
    %cst_122 = arith.constant dense<0.000000e+00> : vector<17x32xf32>
    %148 = tpu.matmul %145, %147, %cst_122 {dimension_numbers = #tpu.dot_dimension_numbers<[1], [0], [0], [1], [0, 0, 1, 1], [], []>} : vector<17x8xf32>, vector<8x32xf32>, vector<17x32xf32> -> vector<17x32xf32>
    %149 = arith.addf %111, %148 : vector<17x32xf32>
    %c0_123 = arith.constant 0 : index
    %c3 = arith.constant 3 : index
    %c0_124 = arith.constant 0 : index
    %c0_125 = arith.constant 0 : index
    %150 = vector.load %arg4[%c0_123, %c3, %c0_124, %c0_125] : memref<4x4x32x8xf32, #tpu.memory_space<vmem>>, vector<1x1x32x8xf32>
    %151 = vector.shape_cast %150 : vector<1x1x32x8xf32> to vector<32x8xf32>
    %cst_126 = arith.constant dense<0.000000e+00> : vector<17x8xf32>
    %152 = tpu.matmul %36, %151, %cst_126 {dimension_numbers = #tpu.dot_dimension_numbers<[1], [0], [0], [1], [0, 0, 1, 1], [], []>} : vector<17x32xf32>, vector<32x8xf32>, vector<17x8xf32> -> vector<17x8xf32>
    %c0_127 = arith.constant 0 : index
    %c3_128 = arith.constant 3 : index
    %c0_129 = arith.constant 0 : index
    %c0_130 = arith.constant 0 : index
    %153 = vector.load %arg7[%c0_127, %c3_128, %c0_129, %c0_130] : memref<4x4x1x8xf32, #tpu.memory_space<vmem>>, vector<1x1x1x8xf32>
    %154 = vector.shape_cast %153 : vector<1x1x1x8xf32> to vector<1x8xf32>
    %155 = vector.broadcast %154 : vector<1x8xf32> to vector<17x8xf32>
    %156 = arith.addf %152, %155 : vector<17x8xf32>
    %c0_131 = arith.constant 0 : index
    %c3_132 = arith.constant 3 : index
    %c0_133 = arith.constant 0 : index
    %c0_134 = arith.constant 0 : index
    %157 = vector.load %arg5[%c0_131, %c3_132, %c0_133, %c0_134] : memref<4x4x32x8xf32, #tpu.memory_space<vmem>>, vector<1x1x32x8xf32>
    %158 = vector.shape_cast %157 : vector<1x1x32x8xf32> to vector<32x8xf32>
    %cst_135 = arith.constant dense<0.000000e+00> : vector<17x8xf32>
    %159 = tpu.matmul %36, %158, %cst_135 {dimension_numbers = #tpu.dot_dimension_numbers<[1], [0], [0], [1], [0, 0, 1, 1], [], []>} : vector<17x32xf32>, vector<32x8xf32>, vector<17x8xf32> -> vector<17x8xf32>
    %c0_136 = arith.constant 0 : index
    %c3_137 = arith.constant 3 : index
    %c0_138 = arith.constant 0 : index
    %c0_139 = arith.constant 0 : index
    %160 = vector.load %arg8[%c0_136, %c3_137, %c0_138, %c0_139] : memref<4x4x1x8xf32, #tpu.memory_space<vmem>>, vector<1x1x1x8xf32>
    %161 = vector.shape_cast %160 : vector<1x1x1x8xf32> to vector<1x8xf32>
    %162 = vector.broadcast %161 : vector<1x8xf32> to vector<17x8xf32>
    %163 = arith.addf %159, %162 : vector<17x8xf32>
    %c0_140 = arith.constant 0 : index
    %c3_141 = arith.constant 3 : index
    %c0_142 = arith.constant 0 : index
    %c0_143 = arith.constant 0 : index
    %164 = vector.load %arg6[%c0_140, %c3_141, %c0_142, %c0_143] : memref<4x4x32x8xf32, #tpu.memory_space<vmem>>, vector<1x1x32x8xf32>
    %165 = vector.shape_cast %164 : vector<1x1x32x8xf32> to vector<32x8xf32>
    %cst_144 = arith.constant dense<0.000000e+00> : vector<17x8xf32>
    %166 = tpu.matmul %36, %165, %cst_144 {dimension_numbers = #tpu.dot_dimension_numbers<[1], [0], [0], [1], [0, 0, 1, 1], [], []>} : vector<17x32xf32>, vector<32x8xf32>, vector<17x8xf32> -> vector<17x8xf32>
    %c0_145 = arith.constant 0 : index
    %c3_146 = arith.constant 3 : index
    %c0_147 = arith.constant 0 : index
    %c0_148 = arith.constant 0 : index
    %167 = vector.load %arg9[%c0_145, %c3_146, %c0_147, %c0_148] : memref<4x4x1x8xf32, #tpu.memory_space<vmem>>, vector<1x1x1x8xf32>
    %168 = vector.shape_cast %167 : vector<1x1x1x8xf32> to vector<1x8xf32>
    %169 = vector.broadcast %168 : vector<1x8xf32> to vector<17x8xf32>
    %170 = arith.addf %166, %169 : vector<17x8xf32>
    %cst_149 = arith.constant dense<0.000000e+00> : vector<17x17xf32>
    %171 = tpu.matmul %156, %163, %cst_149 {dimension_numbers = #tpu.dot_dimension_numbers<[1], [1], [0], [0], [0, 0, 1, 0], [], []>} : vector<17x8xf32>, vector<17x8xf32>, vector<17x17xf32> -> vector<17x17xf32>
    %cst_150 = arith.constant 0.353553385 : f32
    %172 = vector.broadcast %cst_150 : f32 to vector<17x17xf32>
    %173 = arith.mulf %171, %172 : vector<17x17xf32>
    %cst_151 = arith.constant dense<0xFF800000> : vector<17xf32>
    %174 = vector.multi_reduction <maximumf>, %173, %cst_151 [1] : vector<17x17xf32> to vector<17xf32>
    %175 = vector.shape_cast %174 : vector<17xf32> to vector<17x1xf32>
    %176 = vector.broadcast %175 : vector<17x1xf32> to vector<17x17xf32>
    %177 = arith.subf %173, %176 : vector<17x17xf32>
    %178 = math.exp %177 : vector<17x17xf32>
    %cst_152 = arith.constant dense<0.000000e+00> : vector<17xf32>
    %179 = vector.multi_reduction <add>, %178, %cst_152 [1] : vector<17x17xf32> to vector<17xf32>
    %180 = vector.shape_cast %179 : vector<17xf32> to vector<17x1xf32>
    %181 = vector.broadcast %180 : vector<17x1xf32> to vector<17x17xf32>
    %182 = arith.divf %178, %181 : vector<17x17xf32>
    %cst_153 = arith.constant dense<0.000000e+00> : vector<17x8xf32>
    %183 = tpu.matmul %182, %170, %cst_153 {dimension_numbers = #tpu.dot_dimension_numbers<[1], [0], [0], [1], [0, 0, 1, 1], [], []>} : vector<17x17xf32>, vector<17x8xf32>, vector<17x8xf32> -> vector<17x8xf32>
    %c0_154 = arith.constant 0 : index
    %c3_155 = arith.constant 3 : index
    %c0_156 = arith.constant 0 : index
    %c0_157 = arith.constant 0 : index
    %184 = vector.load %arg10[%c0_154, %c3_155, %c0_156, %c0_157] : memref<4x4x8x32xf32, #tpu.memory_space<vmem>>, vector<1x1x8x32xf32>
    %185 = vector.shape_cast %184 : vector<1x1x8x32xf32> to vector<8x32xf32>
    %cst_158 = arith.constant dense<0.000000e+00> : vector<17x32xf32>
    %186 = tpu.matmul %183, %185, %cst_158 {dimension_numbers = #tpu.dot_dimension_numbers<[1], [0], [0], [1], [0, 0, 1, 1], [], []>} : vector<17x8xf32>, vector<8x32xf32>, vector<17x32xf32> -> vector<17x32xf32>
    %187 = arith.addf %149, %186 : vector<17x32xf32>
    %188 = arith.addf %5, %187 : vector<17x32xf32>
    %189 = vector.broadcast %10 : vector<1x32xf32> to vector<17x32xf32>
    %190 = arith.addf %188, %189 : vector<17x32xf32>
    %cst_159 = arith.constant dense<0.000000e+00> : vector<17xf32>
    %191 = vector.multi_reduction <add>, %190, %cst_159 [1] : vector<17x32xf32> to vector<17xf32>
    %192 = vector.shape_cast %191 : vector<17xf32> to vector<17x1xf32>
    %cst_160 = arith.constant 3.200000e+01 : f32
    %193 = vector.broadcast %cst_160 : f32 to vector<17x1xf32>
    %194 = arith.divf %192, %193 : vector<17x1xf32>
    %195 = vector.broadcast %194 : vector<17x1xf32> to vector<17x32xf32>
    %196 = arith.subf %190, %195 : vector<17x32xf32>
    %197 = arith.mulf %196, %196 : vector<17x32xf32>
    %cst_161 = arith.constant dense<0.000000e+00> : vector<17xf32>
    %198 = vector.multi_reduction <add>, %197, %cst_161 [1] : vector<17x32xf32> to vector<17xf32>
    %199 = vector.shape_cast %198 : vector<17xf32> to vector<17x1xf32>
    %cst_162 = arith.constant 3.200000e+01 : f32
    %200 = vector.broadcast %cst_162 : f32 to vector<17x1xf32>
    %201 = arith.divf %199, %200 : vector<17x1xf32>
    %202 = vector.broadcast %194 : vector<17x1xf32> to vector<17x32xf32>
    %203 = arith.subf %190, %202 : vector<17x32xf32>
    %cst_163 = arith.constant 9.99999974E-6 : f32
    %204 = vector.broadcast %cst_163 : f32 to vector<17x1xf32>
    %205 = arith.addf %201, %204 : vector<17x1xf32>
    %206 = math.rsqrt %205 : vector<17x1xf32>
    %207 = vector.broadcast %206 : vector<17x1xf32> to vector<17x32xf32>
    %208 = arith.mulf %203, %207 : vector<17x32xf32>
    %209 = vector.broadcast %11 : vector<1x32xf32> to vector<17x32xf32>
    %210 = arith.mulf %208, %209 : vector<17x32xf32>
    %211 = vector.broadcast %12 : vector<1x32xf32> to vector<17x32xf32>
    %212 = arith.addf %210, %211 : vector<17x32xf32>
    %c0_164 = arith.constant 0 : index
    %c0_165 = arith.constant 0 : index
    %c0_166 = arith.constant 0 : index
    %213 = vector.load %arg11[%c0_164, %c0_165, %c0_166] : memref<4x32x128xf32, #tpu.memory_space<vmem>>, vector<1x32x128xf32>
    %214 = vector.shape_cast %213 : vector<1x32x128xf32> to vector<32x128xf32>
    %cst_167 = arith.constant dense<0.000000e+00> : vector<17x128xf32>
    %215 = tpu.matmul %212, %214, %cst_167 {dimension_numbers = #tpu.dot_dimension_numbers<[1], [0], [0], [1], [0, 0, 1, 1], [], []>} : vector<17x32xf32>, vector<32x128xf32>, vector<17x128xf32> -> vector<17x128xf32>
    %216 = vector.broadcast %14 : vector<1x128xf32> to vector<17x128xf32>
    %217 = arith.addf %215, %216 : vector<17x128xf32>
    %cst_168 = arith.constant 5.000000e-01 : f32
    %218 = vector.broadcast %cst_168 : f32 to vector<17x128xf32>
    %219 = arith.mulf %218, %217 : vector<17x128xf32>
    %cst_169 = arith.constant 4.471500e-02 : f32
    %220 = vector.broadcast %cst_169 : f32 to vector<17x128xf32>
    %221 = arith.mulf %220, %217 : vector<17x128xf32>
    %222 = arith.mulf %221, %217 : vector<17x128xf32>
    %223 = arith.mulf %222, %217 : vector<17x128xf32>
    %224 = arith.addf %217, %223 : vector<17x128xf32>
    %cst_170 = arith.constant 0.797884583 : f32
    %225 = vector.broadcast %cst_170 : f32 to vector<17x128xf32>
    %226 = arith.mulf %225, %224 : vector<17x128xf32>
    %227 = math.tanh %226 : vector<17x128xf32>
    %cst_171 = arith.constant 1.000000e+00 : f32
    %228 = vector.broadcast %cst_171 : f32 to vector<17x128xf32>
    %229 = arith.addf %228, %227 : vector<17x128xf32>
    %230 = arith.mulf %219, %229 : vector<17x128xf32>
    %c0_172 = arith.constant 0 : index
    %c0_173 = arith.constant 0 : index
    %c0_174 = arith.constant 0 : index
    %231 = vector.load %arg12[%c0_172, %c0_173, %c0_174] : memref<4x128x32xf32, #tpu.memory_space<vmem>>, vector<1x128x32xf32>
    %232 = vector.shape_cast %231 : vector<1x128x32xf32> to vector<128x32xf32>
    %cst_175 = arith.constant dense<0.000000e+00> : vector<17x32xf32>
    %233 = tpu.matmul %230, %232, %cst_175 {dimension_numbers = #tpu.dot_dimension_numbers<[1], [0], [0], [1], [0, 0, 1, 1], [], []>} : vector<17x128xf32>, vector<128x32xf32>, vector<17x32xf32> -> vector<17x32xf32>
    %234 = arith.addf %190, %233 : vector<17x32xf32>
    %235 = vector.broadcast %13 : vector<1x32xf32> to vector<17x32xf32>
    %236 = arith.addf %234, %235 : vector<17x32xf32>
    %c1_176 = arith.constant 1 : index
    %c0_177 = arith.constant 0 : index
    %c0_178 = arith.constant 0 : index
    %237 = vector.load %arg13[%c1_176, %c0_177, %c0_178] : memref<4x7x128xf32, #tpu.memory_space<vmem>>, vector<1x7x128xf32>
    %238 = vector.shape_cast %237 : vector<1x7x128xf32> to vector<7x128xf32>
    %239 = vector.extract_strided_slice %238 {offsets = [0, 0], sizes = [1, 32], strides = [1, 1]} : vector<7x128xf32> to vector<1x32xf32>
    %240 = vector.extract_strided_slice %238 {offsets = [1, 0], sizes = [1, 32], strides = [1, 1]} : vector<7x128xf32> to vector<1x32xf32>
    %241 = vector.extract_strided_slice %238 {offsets = [2, 0], sizes = [1, 32], strides = [1, 1]} : vector<7x128xf32> to vector<1x32xf32>
    %242 = vector.extract_strided_slice %238 {offsets = [3, 0], sizes = [1, 32], strides = [1, 1]} : vector<7x128xf32> to vector<1x32xf32>
    %243 = vector.extract_strided_slice %238 {offsets = [4, 0], sizes = [1, 32], strides = [1, 1]} : vector<7x128xf32> to vector<1x32xf32>
    %244 = vector.extract_strided_slice %238 {offsets = [5, 0], sizes = [1, 32], strides = [1, 1]} : vector<7x128xf32> to vector<1x32xf32>
    %245 = vector.extract_strided_slice %238 {offsets = [6, 0], sizes = [1, 128], strides = [1, 1]} : vector<7x128xf32> to vector<1x128xf32>
    %cst_179 = arith.constant dense<0.000000e+00> : vector<17xf32>
    %246 = vector.multi_reduction <add>, %236, %cst_179 [1] : vector<17x32xf32> to vector<17xf32>
    %247 = vector.shape_cast %246 : vector<17xf32> to vector<17x1xf32>
    %cst_180 = arith.constant 3.200000e+01 : f32
    %248 = vector.broadcast %cst_180 : f32 to vector<17x1xf32>
    %249 = arith.divf %247, %248 : vector<17x1xf32>
    %250 = vector.broadcast %249 : vector<17x1xf32> to vector<17x32xf32>
    %251 = arith.subf %236, %250 : vector<17x32xf32>
    %252 = arith.mulf %251, %251 : vector<17x32xf32>
    %cst_181 = arith.constant dense<0.000000e+00> : vector<17xf32>
    %253 = vector.multi_reduction <add>, %252, %cst_181 [1] : vector<17x32xf32> to vector<17xf32>
    %254 = vector.shape_cast %253 : vector<17xf32> to vector<17x1xf32>
    %cst_182 = arith.constant 3.200000e+01 : f32
    %255 = vector.broadcast %cst_182 : f32 to vector<17x1xf32>
    %256 = arith.divf %254, %255 : vector<17x1xf32>
    %257 = vector.broadcast %249 : vector<17x1xf32> to vector<17x32xf32>
    %258 = arith.subf %236, %257 : vector<17x32xf32>
    %cst_183 = arith.constant 9.99999974E-6 : f32
    %259 = vector.broadcast %cst_183 : f32 to vector<17x1xf32>
    %260 = arith.addf %256, %259 : vector<17x1xf32>
    %261 = math.rsqrt %260 : vector<17x1xf32>
    %262 = vector.broadcast %261 : vector<17x1xf32> to vector<17x32xf32>
    %263 = arith.mulf %258, %262 : vector<17x32xf32>
    %264 = vector.broadcast %239 : vector<1x32xf32> to vector<17x32xf32>
    %265 = arith.mulf %263, %264 : vector<17x32xf32>
    %266 = vector.broadcast %240 : vector<1x32xf32> to vector<17x32xf32>
    %267 = arith.addf %265, %266 : vector<17x32xf32>
    %c1_184 = arith.constant 1 : index
    %c0_185 = arith.constant 0 : index
    %c0_186 = arith.constant 0 : index
    %c0_187 = arith.constant 0 : index
    %268 = vector.load %arg4[%c1_184, %c0_185, %c0_186, %c0_187] : memref<4x4x32x8xf32, #tpu.memory_space<vmem>>, vector<1x1x32x8xf32>
    %269 = vector.shape_cast %268 : vector<1x1x32x8xf32> to vector<32x8xf32>
    %cst_188 = arith.constant dense<0.000000e+00> : vector<17x8xf32>
    %270 = tpu.matmul %267, %269, %cst_188 {dimension_numbers = #tpu.dot_dimension_numbers<[1], [0], [0], [1], [0, 0, 1, 1], [], []>} : vector<17x32xf32>, vector<32x8xf32>, vector<17x8xf32> -> vector<17x8xf32>
    %c1_189 = arith.constant 1 : index
    %c0_190 = arith.constant 0 : index
    %c0_191 = arith.constant 0 : index
    %c0_192 = arith.constant 0 : index
    %271 = vector.load %arg7[%c1_189, %c0_190, %c0_191, %c0_192] : memref<4x4x1x8xf32, #tpu.memory_space<vmem>>, vector<1x1x1x8xf32>
    %272 = vector.shape_cast %271 : vector<1x1x1x8xf32> to vector<1x8xf32>
    %273 = vector.broadcast %272 : vector<1x8xf32> to vector<17x8xf32>
    %274 = arith.addf %270, %273 : vector<17x8xf32>
    %c1_193 = arith.constant 1 : index
    %c0_194 = arith.constant 0 : index
    %c0_195 = arith.constant 0 : index
    %c0_196 = arith.constant 0 : index
    %275 = vector.load %arg5[%c1_193, %c0_194, %c0_195, %c0_196] : memref<4x4x32x8xf32, #tpu.memory_space<vmem>>, vector<1x1x32x8xf32>
    %276 = vector.shape_cast %275 : vector<1x1x32x8xf32> to vector<32x8xf32>
    %cst_197 = arith.constant dense<0.000000e+00> : vector<17x8xf32>
    %277 = tpu.matmul %267, %276, %cst_197 {dimension_numbers = #tpu.dot_dimension_numbers<[1], [0], [0], [1], [0, 0, 1, 1], [], []>} : vector<17x32xf32>, vector<32x8xf32>, vector<17x8xf32> -> vector<17x8xf32>
    %c1_198 = arith.constant 1 : index
    %c0_199 = arith.constant 0 : index
    %c0_200 = arith.constant 0 : index
    %c0_201 = arith.constant 0 : index
    %278 = vector.load %arg8[%c1_198, %c0_199, %c0_200, %c0_201] : memref<4x4x1x8xf32, #tpu.memory_space<vmem>>, vector<1x1x1x8xf32>
    %279 = vector.shape_cast %278 : vector<1x1x1x8xf32> to vector<1x8xf32>
    %280 = vector.broadcast %279 : vector<1x8xf32> to vector<17x8xf32>
    %281 = arith.addf %277, %280 : vector<17x8xf32>
    %c1_202 = arith.constant 1 : index
    %c0_203 = arith.constant 0 : index
    %c0_204 = arith.constant 0 : index
    %c0_205 = arith.constant 0 : index
    %282 = vector.load %arg6[%c1_202, %c0_203, %c0_204, %c0_205] : memref<4x4x32x8xf32, #tpu.memory_space<vmem>>, vector<1x1x32x8xf32>
    %283 = vector.shape_cast %282 : vector<1x1x32x8xf32> to vector<32x8xf32>
    %cst_206 = arith.constant dense<0.000000e+00> : vector<17x8xf32>
    %284 = tpu.matmul %267, %283, %cst_206 {dimension_numbers = #tpu.dot_dimension_numbers<[1], [0], [0], [1], [0, 0, 1, 1], [], []>} : vector<17x32xf32>, vector<32x8xf32>, vector<17x8xf32> -> vector<17x8xf32>
    %c1_207 = arith.constant 1 : index
    %c0_208 = arith.constant 0 : index
    %c0_209 = arith.constant 0 : index
    %c0_210 = arith.constant 0 : index
    %285 = vector.load %arg9[%c1_207, %c0_208, %c0_209, %c0_210] : memref<4x4x1x8xf32, #tpu.memory_space<vmem>>, vector<1x1x1x8xf32>
    %286 = vector.shape_cast %285 : vector<1x1x1x8xf32> to vector<1x8xf32>
    %287 = vector.broadcast %286 : vector<1x8xf32> to vector<17x8xf32>
    %288 = arith.addf %284, %287 : vector<17x8xf32>
    %cst_211 = arith.constant dense<0.000000e+00> : vector<17x17xf32>
    %289 = tpu.matmul %274, %281, %cst_211 {dimension_numbers = #tpu.dot_dimension_numbers<[1], [1], [0], [0], [0, 0, 1, 0], [], []>} : vector<17x8xf32>, vector<17x8xf32>, vector<17x17xf32> -> vector<17x17xf32>
    %cst_212 = arith.constant 0.353553385 : f32
    %290 = vector.broadcast %cst_212 : f32 to vector<17x17xf32>
    %291 = arith.mulf %289, %290 : vector<17x17xf32>
    %cst_213 = arith.constant dense<0xFF800000> : vector<17xf32>
    %292 = vector.multi_reduction <maximumf>, %291, %cst_213 [1] : vector<17x17xf32> to vector<17xf32>
    %293 = vector.shape_cast %292 : vector<17xf32> to vector<17x1xf32>
    %294 = vector.broadcast %293 : vector<17x1xf32> to vector<17x17xf32>
    %295 = arith.subf %291, %294 : vector<17x17xf32>
    %296 = math.exp %295 : vector<17x17xf32>
    %cst_214 = arith.constant dense<0.000000e+00> : vector<17xf32>
    %297 = vector.multi_reduction <add>, %296, %cst_214 [1] : vector<17x17xf32> to vector<17xf32>
    %298 = vector.shape_cast %297 : vector<17xf32> to vector<17x1xf32>
    %299 = vector.broadcast %298 : vector<17x1xf32> to vector<17x17xf32>
    %300 = arith.divf %296, %299 : vector<17x17xf32>
    %cst_215 = arith.constant dense<0.000000e+00> : vector<17x8xf32>
    %301 = tpu.matmul %300, %288, %cst_215 {dimension_numbers = #tpu.dot_dimension_numbers<[1], [0], [0], [1], [0, 0, 1, 1], [], []>} : vector<17x17xf32>, vector<17x8xf32>, vector<17x8xf32> -> vector<17x8xf32>
    %c1_216 = arith.constant 1 : index
    %c0_217 = arith.constant 0 : index
    %c0_218 = arith.constant 0 : index
    %c0_219 = arith.constant 0 : index
    %302 = vector.load %arg10[%c1_216, %c0_217, %c0_218, %c0_219] : memref<4x4x8x32xf32, #tpu.memory_space<vmem>>, vector<1x1x8x32xf32>
    %303 = vector.shape_cast %302 : vector<1x1x8x32xf32> to vector<8x32xf32>
    %cst_220 = arith.constant dense<0.000000e+00> : vector<17x32xf32>
    %304 = tpu.matmul %301, %303, %cst_220 {dimension_numbers = #tpu.dot_dimension_numbers<[1], [0], [0], [1], [0, 0, 1, 1], [], []>} : vector<17x8xf32>, vector<8x32xf32>, vector<17x32xf32> -> vector<17x32xf32>
    %c1_221 = arith.constant 1 : index
    %c1_222 = arith.constant 1 : index
    %c0_223 = arith.constant 0 : index
    %c0_224 = arith.constant 0 : index
    %305 = vector.load %arg4[%c1_221, %c1_222, %c0_223, %c0_224] : memref<4x4x32x8xf32, #tpu.memory_space<vmem>>, vector<1x1x32x8xf32>
    %306 = vector.shape_cast %305 : vector<1x1x32x8xf32> to vector<32x8xf32>
    %cst_225 = arith.constant dense<0.000000e+00> : vector<17x8xf32>
    %307 = tpu.matmul %267, %306, %cst_225 {dimension_numbers = #tpu.dot_dimension_numbers<[1], [0], [0], [1], [0, 0, 1, 1], [], []>} : vector<17x32xf32>, vector<32x8xf32>, vector<17x8xf32> -> vector<17x8xf32>
    %c1_226 = arith.constant 1 : index
    %c1_227 = arith.constant 1 : index
    %c0_228 = arith.constant 0 : index
    %c0_229 = arith.constant 0 : index
    %308 = vector.load %arg7[%c1_226, %c1_227, %c0_228, %c0_229] : memref<4x4x1x8xf32, #tpu.memory_space<vmem>>, vector<1x1x1x8xf32>
    %309 = vector.shape_cast %308 : vector<1x1x1x8xf32> to vector<1x8xf32>
    %310 = vector.broadcast %309 : vector<1x8xf32> to vector<17x8xf32>
    %311 = arith.addf %307, %310 : vector<17x8xf32>
    %c1_230 = arith.constant 1 : index
    %c1_231 = arith.constant 1 : index
    %c0_232 = arith.constant 0 : index
    %c0_233 = arith.constant 0 : index
    %312 = vector.load %arg5[%c1_230, %c1_231, %c0_232, %c0_233] : memref<4x4x32x8xf32, #tpu.memory_space<vmem>>, vector<1x1x32x8xf32>
    %313 = vector.shape_cast %312 : vector<1x1x32x8xf32> to vector<32x8xf32>
    %cst_234 = arith.constant dense<0.000000e+00> : vector<17x8xf32>
    %314 = tpu.matmul %267, %313, %cst_234 {dimension_numbers = #tpu.dot_dimension_numbers<[1], [0], [0], [1], [0, 0, 1, 1], [], []>} : vector<17x32xf32>, vector<32x8xf32>, vector<17x8xf32> -> vector<17x8xf32>
    %c1_235 = arith.constant 1 : index
    %c1_236 = arith.constant 1 : index
    %c0_237 = arith.constant 0 : index
    %c0_238 = arith.constant 0 : index
    %315 = vector.load %arg8[%c1_235, %c1_236, %c0_237, %c0_238] : memref<4x4x1x8xf32, #tpu.memory_space<vmem>>, vector<1x1x1x8xf32>
    %316 = vector.shape_cast %315 : vector<1x1x1x8xf32> to vector<1x8xf32>
    %317 = vector.broadcast %316 : vector<1x8xf32> to vector<17x8xf32>
    %318 = arith.addf %314, %317 : vector<17x8xf32>
    %c1_239 = arith.constant 1 : index
    %c1_240 = arith.constant 1 : index
    %c0_241 = arith.constant 0 : index
    %c0_242 = arith.constant 0 : index
    %319 = vector.load %arg6[%c1_239, %c1_240, %c0_241, %c0_242] : memref<4x4x32x8xf32, #tpu.memory_space<vmem>>, vector<1x1x32x8xf32>
    %320 = vector.shape_cast %319 : vector<1x1x32x8xf32> to vector<32x8xf32>
    %cst_243 = arith.constant dense<0.000000e+00> : vector<17x8xf32>
    %321 = tpu.matmul %267, %320, %cst_243 {dimension_numbers = #tpu.dot_dimension_numbers<[1], [0], [0], [1], [0, 0, 1, 1], [], []>} : vector<17x32xf32>, vector<32x8xf32>, vector<17x8xf32> -> vector<17x8xf32>
    %c1_244 = arith.constant 1 : index
    %c1_245 = arith.constant 1 : index
    %c0_246 = arith.constant 0 : index
    %c0_247 = arith.constant 0 : index
    %322 = vector.load %arg9[%c1_244, %c1_245, %c0_246, %c0_247] : memref<4x4x1x8xf32, #tpu.memory_space<vmem>>, vector<1x1x1x8xf32>
    %323 = vector.shape_cast %322 : vector<1x1x1x8xf32> to vector<1x8xf32>
    %324 = vector.broadcast %323 : vector<1x8xf32> to vector<17x8xf32>
    %325 = arith.addf %321, %324 : vector<17x8xf32>
    %cst_248 = arith.constant dense<0.000000e+00> : vector<17x17xf32>
    %326 = tpu.matmul %311, %318, %cst_248 {dimension_numbers = #tpu.dot_dimension_numbers<[1], [1], [0], [0], [0, 0, 1, 0], [], []>} : vector<17x8xf32>, vector<17x8xf32>, vector<17x17xf32> -> vector<17x17xf32>
    %cst_249 = arith.constant 0.353553385 : f32
    %327 = vector.broadcast %cst_249 : f32 to vector<17x17xf32>
    %328 = arith.mulf %326, %327 : vector<17x17xf32>
    %cst_250 = arith.constant dense<0xFF800000> : vector<17xf32>
    %329 = vector.multi_reduction <maximumf>, %328, %cst_250 [1] : vector<17x17xf32> to vector<17xf32>
    %330 = vector.shape_cast %329 : vector<17xf32> to vector<17x1xf32>
    %331 = vector.broadcast %330 : vector<17x1xf32> to vector<17x17xf32>
    %332 = arith.subf %328, %331 : vector<17x17xf32>
    %333 = math.exp %332 : vector<17x17xf32>
    %cst_251 = arith.constant dense<0.000000e+00> : vector<17xf32>
    %334 = vector.multi_reduction <add>, %333, %cst_251 [1] : vector<17x17xf32> to vector<17xf32>
    %335 = vector.shape_cast %334 : vector<17xf32> to vector<17x1xf32>
    %336 = vector.broadcast %335 : vector<17x1xf32> to vector<17x17xf32>
    %337 = arith.divf %333, %336 : vector<17x17xf32>
    %cst_252 = arith.constant dense<0.000000e+00> : vector<17x8xf32>
    %338 = tpu.matmul %337, %325, %cst_252 {dimension_numbers = #tpu.dot_dimension_numbers<[1], [0], [0], [1], [0, 0, 1, 1], [], []>} : vector<17x17xf32>, vector<17x8xf32>, vector<17x8xf32> -> vector<17x8xf32>
    %c1_253 = arith.constant 1 : index
    %c1_254 = arith.constant 1 : index
    %c0_255 = arith.constant 0 : index
    %c0_256 = arith.constant 0 : index
    %339 = vector.load %arg10[%c1_253, %c1_254, %c0_255, %c0_256] : memref<4x4x8x32xf32, #tpu.memory_space<vmem>>, vector<1x1x8x32xf32>
    %340 = vector.shape_cast %339 : vector<1x1x8x32xf32> to vector<8x32xf32>
    %cst_257 = arith.constant dense<0.000000e+00> : vector<17x32xf32>
    %341 = tpu.matmul %338, %340, %cst_257 {dimension_numbers = #tpu.dot_dimension_numbers<[1], [0], [0], [1], [0, 0, 1, 1], [], []>} : vector<17x8xf32>, vector<8x32xf32>, vector<17x32xf32> -> vector<17x32xf32>
    %342 = arith.addf %304, %341 : vector<17x32xf32>
    %c1_258 = arith.constant 1 : index
    %c2_259 = arith.constant 2 : index
    %c0_260 = arith.constant 0 : index
    %c0_261 = arith.constant 0 : index
    %343 = vector.load %arg4[%c1_258, %c2_259, %c0_260, %c0_261] : memref<4x4x32x8xf32, #tpu.memory_space<vmem>>, vector<1x1x32x8xf32>
    %344 = vector.shape_cast %343 : vector<1x1x32x8xf32> to vector<32x8xf32>
    %cst_262 = arith.constant dense<0.000000e+00> : vector<17x8xf32>
    %345 = tpu.matmul %267, %344, %cst_262 {dimension_numbers = #tpu.dot_dimension_numbers<[1], [0], [0], [1], [0, 0, 1, 1], [], []>} : vector<17x32xf32>, vector<32x8xf32>, vector<17x8xf32> -> vector<17x8xf32>
    %c1_263 = arith.constant 1 : index
    %c2_264 = arith.constant 2 : index
    %c0_265 = arith.constant 0 : index
    %c0_266 = arith.constant 0 : index
    %346 = vector.load %arg7[%c1_263, %c2_264, %c0_265, %c0_266] : memref<4x4x1x8xf32, #tpu.memory_space<vmem>>, vector<1x1x1x8xf32>
    %347 = vector.shape_cast %346 : vector<1x1x1x8xf32> to vector<1x8xf32>
    %348 = vector.broadcast %347 : vector<1x8xf32> to vector<17x8xf32>
    %349 = arith.addf %345, %348 : vector<17x8xf32>
    %c1_267 = arith.constant 1 : index
    %c2_268 = arith.constant 2 : index
    %c0_269 = arith.constant 0 : index
    %c0_270 = arith.constant 0 : index
    %350 = vector.load %arg5[%c1_267, %c2_268, %c0_269, %c0_270] : memref<4x4x32x8xf32, #tpu.memory_space<vmem>>, vector<1x1x32x8xf32>
    %351 = vector.shape_cast %350 : vector<1x1x32x8xf32> to vector<32x8xf32>
    %cst_271 = arith.constant dense<0.000000e+00> : vector<17x8xf32>
    %352 = tpu.matmul %267, %351, %cst_271 {dimension_numbers = #tpu.dot_dimension_numbers<[1], [0], [0], [1], [0, 0, 1, 1], [], []>} : vector<17x32xf32>, vector<32x8xf32>, vector<17x8xf32> -> vector<17x8xf32>
    %c1_272 = arith.constant 1 : index
    %c2_273 = arith.constant 2 : index
    %c0_274 = arith.constant 0 : index
    %c0_275 = arith.constant 0 : index
    %353 = vector.load %arg8[%c1_272, %c2_273, %c0_274, %c0_275] : memref<4x4x1x8xf32, #tpu.memory_space<vmem>>, vector<1x1x1x8xf32>
    %354 = vector.shape_cast %353 : vector<1x1x1x8xf32> to vector<1x8xf32>
    %355 = vector.broadcast %354 : vector<1x8xf32> to vector<17x8xf32>
    %356 = arith.addf %352, %355 : vector<17x8xf32>
    %c1_276 = arith.constant 1 : index
    %c2_277 = arith.constant 2 : index
    %c0_278 = arith.constant 0 : index
    %c0_279 = arith.constant 0 : index
    %357 = vector.load %arg6[%c1_276, %c2_277, %c0_278, %c0_279] : memref<4x4x32x8xf32, #tpu.memory_space<vmem>>, vector<1x1x32x8xf32>
    %358 = vector.shape_cast %357 : vector<1x1x32x8xf32> to vector<32x8xf32>
    %cst_280 = arith.constant dense<0.000000e+00> : vector<17x8xf32>
    %359 = tpu.matmul %267, %358, %cst_280 {dimension_numbers = #tpu.dot_dimension_numbers<[1], [0], [0], [1], [0, 0, 1, 1], [], []>} : vector<17x32xf32>, vector<32x8xf32>, vector<17x8xf32> -> vector<17x8xf32>
    %c1_281 = arith.constant 1 : index
    %c2_282 = arith.constant 2 : index
    %c0_283 = arith.constant 0 : index
    %c0_284 = arith.constant 0 : index
    %360 = vector.load %arg9[%c1_281, %c2_282, %c0_283, %c0_284] : memref<4x4x1x8xf32, #tpu.memory_space<vmem>>, vector<1x1x1x8xf32>
    %361 = vector.shape_cast %360 : vector<1x1x1x8xf32> to vector<1x8xf32>
    %362 = vector.broadcast %361 : vector<1x8xf32> to vector<17x8xf32>
    %363 = arith.addf %359, %362 : vector<17x8xf32>
    %cst_285 = arith.constant dense<0.000000e+00> : vector<17x17xf32>
    %364 = tpu.matmul %349, %356, %cst_285 {dimension_numbers = #tpu.dot_dimension_numbers<[1], [1], [0], [0], [0, 0, 1, 0], [], []>} : vector<17x8xf32>, vector<17x8xf32>, vector<17x17xf32> -> vector<17x17xf32>
    %cst_286 = arith.constant 0.353553385 : f32
    %365 = vector.broadcast %cst_286 : f32 to vector<17x17xf32>
    %366 = arith.mulf %364, %365 : vector<17x17xf32>
    %cst_287 = arith.constant dense<0xFF800000> : vector<17xf32>
    %367 = vector.multi_reduction <maximumf>, %366, %cst_287 [1] : vector<17x17xf32> to vector<17xf32>
    %368 = vector.shape_cast %367 : vector<17xf32> to vector<17x1xf32>
    %369 = vector.broadcast %368 : vector<17x1xf32> to vector<17x17xf32>
    %370 = arith.subf %366, %369 : vector<17x17xf32>
    %371 = math.exp %370 : vector<17x17xf32>
    %cst_288 = arith.constant dense<0.000000e+00> : vector<17xf32>
    %372 = vector.multi_reduction <add>, %371, %cst_288 [1] : vector<17x17xf32> to vector<17xf32>
    %373 = vector.shape_cast %372 : vector<17xf32> to vector<17x1xf32>
    %374 = vector.broadcast %373 : vector<17x1xf32> to vector<17x17xf32>
    %375 = arith.divf %371, %374 : vector<17x17xf32>
    %cst_289 = arith.constant dense<0.000000e+00> : vector<17x8xf32>
    %376 = tpu.matmul %375, %363, %cst_289 {dimension_numbers = #tpu.dot_dimension_numbers<[1], [0], [0], [1], [0, 0, 1, 1], [], []>} : vector<17x17xf32>, vector<17x8xf32>, vector<17x8xf32> -> vector<17x8xf32>
    %c1_290 = arith.constant 1 : index
    %c2_291 = arith.constant 2 : index
    %c0_292 = arith.constant 0 : index
    %c0_293 = arith.constant 0 : index
    %377 = vector.load %arg10[%c1_290, %c2_291, %c0_292, %c0_293] : memref<4x4x8x32xf32, #tpu.memory_space<vmem>>, vector<1x1x8x32xf32>
    %378 = vector.shape_cast %377 : vector<1x1x8x32xf32> to vector<8x32xf32>
    %cst_294 = arith.constant dense<0.000000e+00> : vector<17x32xf32>
    %379 = tpu.matmul %376, %378, %cst_294 {dimension_numbers = #tpu.dot_dimension_numbers<[1], [0], [0], [1], [0, 0, 1, 1], [], []>} : vector<17x8xf32>, vector<8x32xf32>, vector<17x32xf32> -> vector<17x32xf32>
    %380 = arith.addf %342, %379 : vector<17x32xf32>
    %c1_295 = arith.constant 1 : index
    %c3_296 = arith.constant 3 : index
    %c0_297 = arith.constant 0 : index
    %c0_298 = arith.constant 0 : index
    %381 = vector.load %arg4[%c1_295, %c3_296, %c0_297, %c0_298] : memref<4x4x32x8xf32, #tpu.memory_space<vmem>>, vector<1x1x32x8xf32>
    %382 = vector.shape_cast %381 : vector<1x1x32x8xf32> to vector<32x8xf32>
    %cst_299 = arith.constant dense<0.000000e+00> : vector<17x8xf32>
    %383 = tpu.matmul %267, %382, %cst_299 {dimension_numbers = #tpu.dot_dimension_numbers<[1], [0], [0], [1], [0, 0, 1, 1], [], []>} : vector<17x32xf32>, vector<32x8xf32>, vector<17x8xf32> -> vector<17x8xf32>
    %c1_300 = arith.constant 1 : index
    %c3_301 = arith.constant 3 : index
    %c0_302 = arith.constant 0 : index
    %c0_303 = arith.constant 0 : index
    %384 = vector.load %arg7[%c1_300, %c3_301, %c0_302, %c0_303] : memref<4x4x1x8xf32, #tpu.memory_space<vmem>>, vector<1x1x1x8xf32>
    %385 = vector.shape_cast %384 : vector<1x1x1x8xf32> to vector<1x8xf32>
    %386 = vector.broadcast %385 : vector<1x8xf32> to vector<17x8xf32>
    %387 = arith.addf %383, %386 : vector<17x8xf32>
    %c1_304 = arith.constant 1 : index
    %c3_305 = arith.constant 3 : index
    %c0_306 = arith.constant 0 : index
    %c0_307 = arith.constant 0 : index
    %388 = vector.load %arg5[%c1_304, %c3_305, %c0_306, %c0_307] : memref<4x4x32x8xf32, #tpu.memory_space<vmem>>, vector<1x1x32x8xf32>
    %389 = vector.shape_cast %388 : vector<1x1x32x8xf32> to vector<32x8xf32>
    %cst_308 = arith.constant dense<0.000000e+00> : vector<17x8xf32>
    %390 = tpu.matmul %267, %389, %cst_308 {dimension_numbers = #tpu.dot_dimension_numbers<[1], [0], [0], [1], [0, 0, 1, 1], [], []>} : vector<17x32xf32>, vector<32x8xf32>, vector<17x8xf32> -> vector<17x8xf32>
    %c1_309 = arith.constant 1 : index
    %c3_310 = arith.constant 3 : index
    %c0_311 = arith.constant 0 : index
    %c0_312 = arith.constant 0 : index
    %391 = vector.load %arg8[%c1_309, %c3_310, %c0_311, %c0_312] : memref<4x4x1x8xf32, #tpu.memory_space<vmem>>, vector<1x1x1x8xf32>
    %392 = vector.shape_cast %391 : vector<1x1x1x8xf32> to vector<1x8xf32>
    %393 = vector.broadcast %392 : vector<1x8xf32> to vector<17x8xf32>
    %394 = arith.addf %390, %393 : vector<17x8xf32>
    %c1_313 = arith.constant 1 : index
    %c3_314 = arith.constant 3 : index
    %c0_315 = arith.constant 0 : index
    %c0_316 = arith.constant 0 : index
    %395 = vector.load %arg6[%c1_313, %c3_314, %c0_315, %c0_316] : memref<4x4x32x8xf32, #tpu.memory_space<vmem>>, vector<1x1x32x8xf32>
    %396 = vector.shape_cast %395 : vector<1x1x32x8xf32> to vector<32x8xf32>
    %cst_317 = arith.constant dense<0.000000e+00> : vector<17x8xf32>
    %397 = tpu.matmul %267, %396, %cst_317 {dimension_numbers = #tpu.dot_dimension_numbers<[1], [0], [0], [1], [0, 0, 1, 1], [], []>} : vector<17x32xf32>, vector<32x8xf32>, vector<17x8xf32> -> vector<17x8xf32>
    %c1_318 = arith.constant 1 : index
    %c3_319 = arith.constant 3 : index
    %c0_320 = arith.constant 0 : index
    %c0_321 = arith.constant 0 : index
    %398 = vector.load %arg9[%c1_318, %c3_319, %c0_320, %c0_321] : memref<4x4x1x8xf32, #tpu.memory_space<vmem>>, vector<1x1x1x8xf32>
    %399 = vector.shape_cast %398 : vector<1x1x1x8xf32> to vector<1x8xf32>
    %400 = vector.broadcast %399 : vector<1x8xf32> to vector<17x8xf32>
    %401 = arith.addf %397, %400 : vector<17x8xf32>
    %cst_322 = arith.constant dense<0.000000e+00> : vector<17x17xf32>
    %402 = tpu.matmul %387, %394, %cst_322 {dimension_numbers = #tpu.dot_dimension_numbers<[1], [1], [0], [0], [0, 0, 1, 0], [], []>} : vector<17x8xf32>, vector<17x8xf32>, vector<17x17xf32> -> vector<17x17xf32>
    %cst_323 = arith.constant 0.353553385 : f32
    %403 = vector.broadcast %cst_323 : f32 to vector<17x17xf32>
    %404 = arith.mulf %402, %403 : vector<17x17xf32>
    %cst_324 = arith.constant dense<0xFF800000> : vector<17xf32>
    %405 = vector.multi_reduction <maximumf>, %404, %cst_324 [1] : vector<17x17xf32> to vector<17xf32>
    %406 = vector.shape_cast %405 : vector<17xf32> to vector<17x1xf32>
    %407 = vector.broadcast %406 : vector<17x1xf32> to vector<17x17xf32>
    %408 = arith.subf %404, %407 : vector<17x17xf32>
    %409 = math.exp %408 : vector<17x17xf32>
    %cst_325 = arith.constant dense<0.000000e+00> : vector<17xf32>
    %410 = vector.multi_reduction <add>, %409, %cst_325 [1] : vector<17x17xf32> to vector<17xf32>
    %411 = vector.shape_cast %410 : vector<17xf32> to vector<17x1xf32>
    %412 = vector.broadcast %411 : vector<17x1xf32> to vector<17x17xf32>
    %413 = arith.divf %409, %412 : vector<17x17xf32>
    %cst_326 = arith.constant dense<0.000000e+00> : vector<17x8xf32>
    %414 = tpu.matmul %413, %401, %cst_326 {dimension_numbers = #tpu.dot_dimension_numbers<[1], [0], [0], [1], [0, 0, 1, 1], [], []>} : vector<17x17xf32>, vector<17x8xf32>, vector<17x8xf32> -> vector<17x8xf32>
    %c1_327 = arith.constant 1 : index
    %c3_328 = arith.constant 3 : index
    %c0_329 = arith.constant 0 : index
    %c0_330 = arith.constant 0 : index
    %415 = vector.load %arg10[%c1_327, %c3_328, %c0_329, %c0_330] : memref<4x4x8x32xf32, #tpu.memory_space<vmem>>, vector<1x1x8x32xf32>
    %416 = vector.shape_cast %415 : vector<1x1x8x32xf32> to vector<8x32xf32>
    %cst_331 = arith.constant dense<0.000000e+00> : vector<17x32xf32>
    %417 = tpu.matmul %414, %416, %cst_331 {dimension_numbers = #tpu.dot_dimension_numbers<[1], [0], [0], [1], [0, 0, 1, 1], [], []>} : vector<17x8xf32>, vector<8x32xf32>, vector<17x32xf32> -> vector<17x32xf32>
    %418 = arith.addf %380, %417 : vector<17x32xf32>
    %419 = arith.addf %236, %418 : vector<17x32xf32>
    %420 = vector.broadcast %241 : vector<1x32xf32> to vector<17x32xf32>
    %421 = arith.addf %419, %420 : vector<17x32xf32>
    %cst_332 = arith.constant dense<0.000000e+00> : vector<17xf32>
    %422 = vector.multi_reduction <add>, %421, %cst_332 [1] : vector<17x32xf32> to vector<17xf32>
    %423 = vector.shape_cast %422 : vector<17xf32> to vector<17x1xf32>
    %cst_333 = arith.constant 3.200000e+01 : f32
    %424 = vector.broadcast %cst_333 : f32 to vector<17x1xf32>
    %425 = arith.divf %423, %424 : vector<17x1xf32>
    %426 = vector.broadcast %425 : vector<17x1xf32> to vector<17x32xf32>
    %427 = arith.subf %421, %426 : vector<17x32xf32>
    %428 = arith.mulf %427, %427 : vector<17x32xf32>
    %cst_334 = arith.constant dense<0.000000e+00> : vector<17xf32>
    %429 = vector.multi_reduction <add>, %428, %cst_334 [1] : vector<17x32xf32> to vector<17xf32>
    %430 = vector.shape_cast %429 : vector<17xf32> to vector<17x1xf32>
    %cst_335 = arith.constant 3.200000e+01 : f32
    %431 = vector.broadcast %cst_335 : f32 to vector<17x1xf32>
    %432 = arith.divf %430, %431 : vector<17x1xf32>
    %433 = vector.broadcast %425 : vector<17x1xf32> to vector<17x32xf32>
    %434 = arith.subf %421, %433 : vector<17x32xf32>
    %cst_336 = arith.constant 9.99999974E-6 : f32
    %435 = vector.broadcast %cst_336 : f32 to vector<17x1xf32>
    %436 = arith.addf %432, %435 : vector<17x1xf32>
    %437 = math.rsqrt %436 : vector<17x1xf32>
    %438 = vector.broadcast %437 : vector<17x1xf32> to vector<17x32xf32>
    %439 = arith.mulf %434, %438 : vector<17x32xf32>
    %440 = vector.broadcast %242 : vector<1x32xf32> to vector<17x32xf32>
    %441 = arith.mulf %439, %440 : vector<17x32xf32>
    %442 = vector.broadcast %243 : vector<1x32xf32> to vector<17x32xf32>
    %443 = arith.addf %441, %442 : vector<17x32xf32>
    %c1_337 = arith.constant 1 : index
    %c0_338 = arith.constant 0 : index
    %c0_339 = arith.constant 0 : index
    %444 = vector.load %arg11[%c1_337, %c0_338, %c0_339] : memref<4x32x128xf32, #tpu.memory_space<vmem>>, vector<1x32x128xf32>
    %445 = vector.shape_cast %444 : vector<1x32x128xf32> to vector<32x128xf32>
    %cst_340 = arith.constant dense<0.000000e+00> : vector<17x128xf32>
    %446 = tpu.matmul %443, %445, %cst_340 {dimension_numbers = #tpu.dot_dimension_numbers<[1], [0], [0], [1], [0, 0, 1, 1], [], []>} : vector<17x32xf32>, vector<32x128xf32>, vector<17x128xf32> -> vector<17x128xf32>
    %447 = vector.broadcast %245 : vector<1x128xf32> to vector<17x128xf32>
    %448 = arith.addf %446, %447 : vector<17x128xf32>
    %cst_341 = arith.constant 5.000000e-01 : f32
    %449 = vector.broadcast %cst_341 : f32 to vector<17x128xf32>
    %450 = arith.mulf %449, %448 : vector<17x128xf32>
    %cst_342 = arith.constant 4.471500e-02 : f32
    %451 = vector.broadcast %cst_342 : f32 to vector<17x128xf32>
    %452 = arith.mulf %451, %448 : vector<17x128xf32>
    %453 = arith.mulf %452, %448 : vector<17x128xf32>
    %454 = arith.mulf %453, %448 : vector<17x128xf32>
    %455 = arith.addf %448, %454 : vector<17x128xf32>
    %cst_343 = arith.constant 0.797884583 : f32
    %456 = vector.broadcast %cst_343 : f32 to vector<17x128xf32>
    %457 = arith.mulf %456, %455 : vector<17x128xf32>
    %458 = math.tanh %457 : vector<17x128xf32>
    %cst_344 = arith.constant 1.000000e+00 : f32
    %459 = vector.broadcast %cst_344 : f32 to vector<17x128xf32>
    %460 = arith.addf %459, %458 : vector<17x128xf32>
    %461 = arith.mulf %450, %460 : vector<17x128xf32>
    %c1_345 = arith.constant 1 : index
    %c0_346 = arith.constant 0 : index
    %c0_347 = arith.constant 0 : index
    %462 = vector.load %arg12[%c1_345, %c0_346, %c0_347] : memref<4x128x32xf32, #tpu.memory_space<vmem>>, vector<1x128x32xf32>
    %463 = vector.shape_cast %462 : vector<1x128x32xf32> to vector<128x32xf32>
    %cst_348 = arith.constant dense<0.000000e+00> : vector<17x32xf32>
    %464 = tpu.matmul %461, %463, %cst_348 {dimension_numbers = #tpu.dot_dimension_numbers<[1], [0], [0], [1], [0, 0, 1, 1], [], []>} : vector<17x128xf32>, vector<128x32xf32>, vector<17x32xf32> -> vector<17x32xf32>
    %465 = arith.addf %421, %464 : vector<17x32xf32>
    %466 = vector.broadcast %244 : vector<1x32xf32> to vector<17x32xf32>
    %467 = arith.addf %465, %466 : vector<17x32xf32>
    %c2_349 = arith.constant 2 : index
    %c0_350 = arith.constant 0 : index
    %c0_351 = arith.constant 0 : index
    %468 = vector.load %arg13[%c2_349, %c0_350, %c0_351] : memref<4x7x128xf32, #tpu.memory_space<vmem>>, vector<1x7x128xf32>
    %469 = vector.shape_cast %468 : vector<1x7x128xf32> to vector<7x128xf32>
    %470 = vector.extract_strided_slice %469 {offsets = [0, 0], sizes = [1, 32], strides = [1, 1]} : vector<7x128xf32> to vector<1x32xf32>
    %471 = vector.extract_strided_slice %469 {offsets = [1, 0], sizes = [1, 32], strides = [1, 1]} : vector<7x128xf32> to vector<1x32xf32>
    %472 = vector.extract_strided_slice %469 {offsets = [2, 0], sizes = [1, 32], strides = [1, 1]} : vector<7x128xf32> to vector<1x32xf32>
    %473 = vector.extract_strided_slice %469 {offsets = [3, 0], sizes = [1, 32], strides = [1, 1]} : vector<7x128xf32> to vector<1x32xf32>
    %474 = vector.extract_strided_slice %469 {offsets = [4, 0], sizes = [1, 32], strides = [1, 1]} : vector<7x128xf32> to vector<1x32xf32>
    %475 = vector.extract_strided_slice %469 {offsets = [5, 0], sizes = [1, 32], strides = [1, 1]} : vector<7x128xf32> to vector<1x32xf32>
    %476 = vector.extract_strided_slice %469 {offsets = [6, 0], sizes = [1, 128], strides = [1, 1]} : vector<7x128xf32> to vector<1x128xf32>
    %c0_352 = arith.constant 0 : index
    %c0_353 = arith.constant 0 : index
    %c0_354 = arith.constant 0 : index
    %477 = vector.load %arg16[%c0_352, %c0_353, %c0_354] : memref<2x4x128xf32, #tpu.memory_space<vmem>>, vector<1x4x128xf32>
    %478 = vector.shape_cast %477 : vector<1x4x128xf32> to vector<4x128xf32>
    %479 = vector.extract_strided_slice %478 {offsets = [0, 0], sizes = [1, 32], strides = [1, 1]} : vector<4x128xf32> to vector<1x32xf32>
    %480 = vector.extract_strided_slice %478 {offsets = [1, 0], sizes = [1, 32], strides = [1, 1]} : vector<4x128xf32> to vector<1x32xf32>
    %cst_355 = arith.constant dense<0.000000e+00> : vector<17xf32>
    %481 = vector.multi_reduction <add>, %467, %cst_355 [1] : vector<17x32xf32> to vector<17xf32>
    %482 = vector.shape_cast %481 : vector<17xf32> to vector<17x1xf32>
    %cst_356 = arith.constant 3.200000e+01 : f32
    %483 = vector.broadcast %cst_356 : f32 to vector<17x1xf32>
    %484 = arith.divf %482, %483 : vector<17x1xf32>
    %485 = vector.broadcast %484 : vector<17x1xf32> to vector<17x32xf32>
    %486 = arith.subf %467, %485 : vector<17x32xf32>
    %487 = arith.mulf %486, %486 : vector<17x32xf32>
    %cst_357 = arith.constant dense<0.000000e+00> : vector<17xf32>
    %488 = vector.multi_reduction <add>, %487, %cst_357 [1] : vector<17x32xf32> to vector<17xf32>
    %489 = vector.shape_cast %488 : vector<17xf32> to vector<17x1xf32>
    %cst_358 = arith.constant 3.200000e+01 : f32
    %490 = vector.broadcast %cst_358 : f32 to vector<17x1xf32>
    %491 = arith.divf %489, %490 : vector<17x1xf32>
    %492 = vector.broadcast %484 : vector<17x1xf32> to vector<17x32xf32>
    %493 = arith.subf %467, %492 : vector<17x32xf32>
    %cst_359 = arith.constant 9.99999974E-6 : f32
    %494 = vector.broadcast %cst_359 : f32 to vector<17x1xf32>
    %495 = arith.addf %491, %494 : vector<17x1xf32>
    %496 = math.rsqrt %495 : vector<17x1xf32>
    %497 = vector.broadcast %496 : vector<17x1xf32> to vector<17x32xf32>
    %498 = arith.mulf %493, %497 : vector<17x32xf32>
    %499 = vector.broadcast %479 : vector<1x32xf32> to vector<17x32xf32>
    %500 = arith.mulf %498, %499 : vector<17x32xf32>
    %501 = vector.broadcast %480 : vector<1x32xf32> to vector<17x32xf32>
    %502 = arith.addf %500, %501 : vector<17x32xf32>
    %c0_360 = arith.constant 0 : index
    %c0_361 = arith.constant 0 : index
    %c0_362 = arith.constant 0 : index
    %503 = vector.load %arg14[%c0_360, %c0_361, %c0_362] : memref<2x32x8xf32, #tpu.memory_space<vmem>>, vector<1x32x8xf32>
    %504 = vector.shape_cast %503 : vector<1x32x8xf32> to vector<32x8xf32>
    %cst_363 = arith.constant dense<0.000000e+00> : vector<17x8xf32>
    %505 = tpu.matmul %502, %504, %cst_363 {dimension_numbers = #tpu.dot_dimension_numbers<[1], [0], [0], [1], [0, 0, 1, 1], [], []>} : vector<17x32xf32>, vector<32x8xf32>, vector<17x8xf32> -> vector<17x8xf32>
    %506 = vector.extract_strided_slice %478 {offsets = [2, 0], sizes = [1, 8], strides = [1, 1]} : vector<4x128xf32> to vector<1x8xf32>
    %507 = vector.broadcast %506 : vector<1x8xf32> to vector<17x8xf32>
    %508 = arith.addf %505, %507 : vector<17x8xf32>
    %cst_364 = arith.constant 5.000000e-01 : f32
    %509 = vector.broadcast %cst_364 : f32 to vector<17x8xf32>
    %510 = arith.mulf %509, %508 : vector<17x8xf32>
    %cst_365 = arith.constant 4.471500e-02 : f32
    %511 = vector.broadcast %cst_365 : f32 to vector<17x8xf32>
    %512 = arith.mulf %511, %508 : vector<17x8xf32>
    %513 = arith.mulf %512, %508 : vector<17x8xf32>
    %514 = arith.mulf %513, %508 : vector<17x8xf32>
    %515 = arith.addf %508, %514 : vector<17x8xf32>
    %cst_366 = arith.constant 0.797884583 : f32
    %516 = vector.broadcast %cst_366 : f32 to vector<17x8xf32>
    %517 = arith.mulf %516, %515 : vector<17x8xf32>
    %518 = math.tanh %517 : vector<17x8xf32>
    %cst_367 = arith.constant 1.000000e+00 : f32
    %519 = vector.broadcast %cst_367 : f32 to vector<17x8xf32>
    %520 = arith.addf %519, %518 : vector<17x8xf32>
    %521 = arith.mulf %510, %520 : vector<17x8xf32>
    %c0_368 = arith.constant 0 : index
    %c0_369 = arith.constant 0 : index
    %c0_370 = arith.constant 0 : index
    %522 = vector.load %arg15[%c0_368, %c0_369, %c0_370] : memref<2x1x8xf32, #tpu.memory_space<vmem>>, vector<1x1x8xf32>
    %523 = vector.shape_cast %522 : vector<1x1x8xf32> to vector<1x8xf32>
    %cst_371 = arith.constant dense<0.000000e+00> : vector<1x17xf32>
    %524 = tpu.matmul %523, %521, %cst_371 {dimension_numbers = #tpu.dot_dimension_numbers<[1], [1], [0], [0], [0, 0, 1, 0], [], []>} : vector<1x8xf32>, vector<17x8xf32>, vector<1x17xf32> -> vector<1x17xf32>
    %525 = vector.extract_strided_slice %478 {offsets = [3, 0], sizes = [1, 1], strides = [1, 1]} : vector<4x128xf32> to vector<1x1xf32>
    %526 = vector.broadcast %525 : vector<1x1xf32> to vector<1x17xf32>
    %527 = arith.addf %524, %526 : vector<1x17xf32>
    %cst_372 = arith.constant 0.000000e+00 : f32
    %528 = vector.broadcast %cst_372 : f32 to vector<1x17xf32>
    %529 = arith.cmpf olt, %527, %528 : vector<1x17xf32>
    %530 = arith.extui %529 : vector<1x17xi1> to vector<1x17xi32>
    %c0_373 = arith.constant 0 : index
    %c0_374 = arith.constant 0 : index
    %c0_375 = arith.constant 0 : index
    %531 = vector.load %arg20[%c0_373, %c0_374, %c0_375] : memref<1x2x17xi32, #tpu.memory_space<vmem>>, vector<1x1x17xi32>
    %532 = vector.shape_cast %531 : vector<1x1x17xi32> to vector<1x17xi32>
    %533 = vector.shape_cast %530 : vector<1x17xi32> to vector<1x1x17xi32>
    tpu.vector_store %arg20[%c0_373, %c0_374, %c0_375], %533 {strides = array<i32>} : memref<1x2x17xi32, #tpu.memory_space<vmem>>, vector<1x1x17xi32>,
    %cst_376 = arith.constant 0.000000e+00 : f32
    %cst_377 = arith.constant -1.000000e+09 : f32
    %534 = vector.broadcast %cst_376 : f32 to vector<1x17xf32>
    %535 = vector.broadcast %cst_377 : f32 to vector<1x17xf32>
    %536 = arith.select %529, %534, %535 : vector<1x17xi1>, vector<1x17xf32>
    %cst_378 = arith.constant dense<0.000000e+00> : vector<17xf32>
    %537 = vector.multi_reduction <add>, %467, %cst_378 [1] : vector<17x32xf32> to vector<17xf32>
    %538 = vector.shape_cast %537 : vector<17xf32> to vector<17x1xf32>
    %cst_379 = arith.constant 3.200000e+01 : f32
    %539 = vector.broadcast %cst_379 : f32 to vector<17x1xf32>
    %540 = arith.divf %538, %539 : vector<17x1xf32>
    %541 = vector.broadcast %540 : vector<17x1xf32> to vector<17x32xf32>
    %542 = arith.subf %467, %541 : vector<17x32xf32>
    %543 = arith.mulf %542, %542 : vector<17x32xf32>
    %cst_380 = arith.constant dense<0.000000e+00> : vector<17xf32>
    %544 = vector.multi_reduction <add>, %543, %cst_380 [1] : vector<17x32xf32> to vector<17xf32>
    %545 = vector.shape_cast %544 : vector<17xf32> to vector<17x1xf32>
    %cst_381 = arith.constant 3.200000e+01 : f32
    %546 = vector.broadcast %cst_381 : f32 to vector<17x1xf32>
    %547 = arith.divf %545, %546 : vector<17x1xf32>
    %548 = vector.broadcast %540 : vector<17x1xf32> to vector<17x32xf32>
    %549 = arith.subf %467, %548 : vector<17x32xf32>
    %cst_382 = arith.constant 9.99999974E-6 : f32
    %550 = vector.broadcast %cst_382 : f32 to vector<17x1xf32>
    %551 = arith.addf %547, %550 : vector<17x1xf32>
    %552 = math.rsqrt %551 : vector<17x1xf32>
    %553 = vector.broadcast %552 : vector<17x1xf32> to vector<17x32xf32>
    %554 = arith.mulf %549, %553 : vector<17x32xf32>
    %555 = vector.broadcast %470 : vector<1x32xf32> to vector<17x32xf32>
    %556 = arith.mulf %554, %555 : vector<17x32xf32>
    %557 = vector.broadcast %471 : vector<1x32xf32> to vector<17x32xf32>
    %558 = arith.addf %556, %557 : vector<17x32xf32>
    %c2_383 = arith.constant 2 : index
    %c0_384 = arith.constant 0 : index
    %c0_385 = arith.constant 0 : index
    %c0_386 = arith.constant 0 : index
    %559 = vector.load %arg4[%c2_383, %c0_384, %c0_385, %c0_386] : memref<4x4x32x8xf32, #tpu.memory_space<vmem>>, vector<1x1x32x8xf32>
    %560 = vector.shape_cast %559 : vector<1x1x32x8xf32> to vector<32x8xf32>
    %cst_387 = arith.constant dense<0.000000e+00> : vector<17x8xf32>
    %561 = tpu.matmul %558, %560, %cst_387 {dimension_numbers = #tpu.dot_dimension_numbers<[1], [0], [0], [1], [0, 0, 1, 1], [], []>} : vector<17x32xf32>, vector<32x8xf32>, vector<17x8xf32> -> vector<17x8xf32>
    %c2_388 = arith.constant 2 : index
    %c0_389 = arith.constant 0 : index
    %c0_390 = arith.constant 0 : index
    %c0_391 = arith.constant 0 : index
    %562 = vector.load %arg7[%c2_388, %c0_389, %c0_390, %c0_391] : memref<4x4x1x8xf32, #tpu.memory_space<vmem>>, vector<1x1x1x8xf32>
    %563 = vector.shape_cast %562 : vector<1x1x1x8xf32> to vector<1x8xf32>
    %564 = vector.broadcast %563 : vector<1x8xf32> to vector<17x8xf32>
    %565 = arith.addf %561, %564 : vector<17x8xf32>
    %c2_392 = arith.constant 2 : index
    %c0_393 = arith.constant 0 : index
    %c0_394 = arith.constant 0 : index
    %c0_395 = arith.constant 0 : index
    %566 = vector.load %arg5[%c2_392, %c0_393, %c0_394, %c0_395] : memref<4x4x32x8xf32, #tpu.memory_space<vmem>>, vector<1x1x32x8xf32>
    %567 = vector.shape_cast %566 : vector<1x1x32x8xf32> to vector<32x8xf32>
    %cst_396 = arith.constant dense<0.000000e+00> : vector<17x8xf32>
    %568 = tpu.matmul %558, %567, %cst_396 {dimension_numbers = #tpu.dot_dimension_numbers<[1], [0], [0], [1], [0, 0, 1, 1], [], []>} : vector<17x32xf32>, vector<32x8xf32>, vector<17x8xf32> -> vector<17x8xf32>
    %c2_397 = arith.constant 2 : index
    %c0_398 = arith.constant 0 : index
    %c0_399 = arith.constant 0 : index
    %c0_400 = arith.constant 0 : index
    %569 = vector.load %arg8[%c2_397, %c0_398, %c0_399, %c0_400] : memref<4x4x1x8xf32, #tpu.memory_space<vmem>>, vector<1x1x1x8xf32>
    %570 = vector.shape_cast %569 : vector<1x1x1x8xf32> to vector<1x8xf32>
    %571 = vector.broadcast %570 : vector<1x8xf32> to vector<17x8xf32>
    %572 = arith.addf %568, %571 : vector<17x8xf32>
    %c2_401 = arith.constant 2 : index
    %c0_402 = arith.constant 0 : index
    %c0_403 = arith.constant 0 : index
    %c0_404 = arith.constant 0 : index
    %573 = vector.load %arg6[%c2_401, %c0_402, %c0_403, %c0_404] : memref<4x4x32x8xf32, #tpu.memory_space<vmem>>, vector<1x1x32x8xf32>
    %574 = vector.shape_cast %573 : vector<1x1x32x8xf32> to vector<32x8xf32>
    %cst_405 = arith.constant dense<0.000000e+00> : vector<17x8xf32>
    %575 = tpu.matmul %558, %574, %cst_405 {dimension_numbers = #tpu.dot_dimension_numbers<[1], [0], [0], [1], [0, 0, 1, 1], [], []>} : vector<17x32xf32>, vector<32x8xf32>, vector<17x8xf32> -> vector<17x8xf32>
    %c2_406 = arith.constant 2 : index
    %c0_407 = arith.constant 0 : index
    %c0_408 = arith.constant 0 : index
    %c0_409 = arith.constant 0 : index
    %576 = vector.load %arg9[%c2_406, %c0_407, %c0_408, %c0_409] : memref<4x4x1x8xf32, #tpu.memory_space<vmem>>, vector<1x1x1x8xf32>
    %577 = vector.shape_cast %576 : vector<1x1x1x8xf32> to vector<1x8xf32>
    %578 = vector.broadcast %577 : vector<1x8xf32> to vector<17x8xf32>
    %579 = arith.addf %575, %578 : vector<17x8xf32>
    %cst_410 = arith.constant dense<0.000000e+00> : vector<17x17xf32>
    %580 = tpu.matmul %565, %572, %cst_410 {dimension_numbers = #tpu.dot_dimension_numbers<[1], [1], [0], [0], [0, 0, 1, 0], [], []>} : vector<17x8xf32>, vector<17x8xf32>, vector<17x17xf32> -> vector<17x17xf32>
    %cst_411 = arith.constant 0.353553385 : f32
    %581 = vector.broadcast %cst_411 : f32 to vector<17x17xf32>
    %582 = arith.mulf %580, %581 : vector<17x17xf32>
    %583 = vector.broadcast %536 : vector<1x17xf32> to vector<17x17xf32>
    %584 = arith.addf %582, %583 : vector<17x17xf32>
    %cst_412 = arith.constant dense<0xFF800000> : vector<17xf32>
    %585 = vector.multi_reduction <maximumf>, %584, %cst_412 [1] : vector<17x17xf32> to vector<17xf32>
    %586 = vector.shape_cast %585 : vector<17xf32> to vector<17x1xf32>
    %587 = vector.broadcast %586 : vector<17x1xf32> to vector<17x17xf32>
    %588 = arith.subf %584, %587 : vector<17x17xf32>
    %589 = math.exp %588 : vector<17x17xf32>
    %cst_413 = arith.constant dense<0.000000e+00> : vector<17xf32>
    %590 = vector.multi_reduction <add>, %589, %cst_413 [1] : vector<17x17xf32> to vector<17xf32>
    %591 = vector.shape_cast %590 : vector<17xf32> to vector<17x1xf32>
    %592 = vector.broadcast %591 : vector<17x1xf32> to vector<17x17xf32>
    %593 = arith.divf %589, %592 : vector<17x17xf32>
    %cst_414 = arith.constant dense<0.000000e+00> : vector<17x8xf32>
    %594 = tpu.matmul %593, %579, %cst_414 {dimension_numbers = #tpu.dot_dimension_numbers<[1], [0], [0], [1], [0, 0, 1, 1], [], []>} : vector<17x17xf32>, vector<17x8xf32>, vector<17x8xf32> -> vector<17x8xf32>
    %c2_415 = arith.constant 2 : index
    %c0_416 = arith.constant 0 : index
    %c0_417 = arith.constant 0 : index
    %c0_418 = arith.constant 0 : index
    %595 = vector.load %arg10[%c2_415, %c0_416, %c0_417, %c0_418] : memref<4x4x8x32xf32, #tpu.memory_space<vmem>>, vector<1x1x8x32xf32>
    %596 = vector.shape_cast %595 : vector<1x1x8x32xf32> to vector<8x32xf32>
    %cst_419 = arith.constant dense<0.000000e+00> : vector<17x32xf32>
    %597 = tpu.matmul %594, %596, %cst_419 {dimension_numbers = #tpu.dot_dimension_numbers<[1], [0], [0], [1], [0, 0, 1, 1], [], []>} : vector<17x8xf32>, vector<8x32xf32>, vector<17x32xf32> -> vector<17x32xf32>
    %c2_420 = arith.constant 2 : index
    %c1_421 = arith.constant 1 : index
    %c0_422 = arith.constant 0 : index
    %c0_423 = arith.constant 0 : index
    %598 = vector.load %arg4[%c2_420, %c1_421, %c0_422, %c0_423] : memref<4x4x32x8xf32, #tpu.memory_space<vmem>>, vector<1x1x32x8xf32>
    %599 = vector.shape_cast %598 : vector<1x1x32x8xf32> to vector<32x8xf32>
    %cst_424 = arith.constant dense<0.000000e+00> : vector<17x8xf32>
    %600 = tpu.matmul %558, %599, %cst_424 {dimension_numbers = #tpu.dot_dimension_numbers<[1], [0], [0], [1], [0, 0, 1, 1], [], []>} : vector<17x32xf32>, vector<32x8xf32>, vector<17x8xf32> -> vector<17x8xf32>
    %c2_425 = arith.constant 2 : index
    %c1_426 = arith.constant 1 : index
    %c0_427 = arith.constant 0 : index
    %c0_428 = arith.constant 0 : index
    %601 = vector.load %arg7[%c2_425, %c1_426, %c0_427, %c0_428] : memref<4x4x1x8xf32, #tpu.memory_space<vmem>>, vector<1x1x1x8xf32>
    %602 = vector.shape_cast %601 : vector<1x1x1x8xf32> to vector<1x8xf32>
    %603 = vector.broadcast %602 : vector<1x8xf32> to vector<17x8xf32>
    %604 = arith.addf %600, %603 : vector<17x8xf32>
    %c2_429 = arith.constant 2 : index
    %c1_430 = arith.constant 1 : index
    %c0_431 = arith.constant 0 : index
    %c0_432 = arith.constant 0 : index
    %605 = vector.load %arg5[%c2_429, %c1_430, %c0_431, %c0_432] : memref<4x4x32x8xf32, #tpu.memory_space<vmem>>, vector<1x1x32x8xf32>
    %606 = vector.shape_cast %605 : vector<1x1x32x8xf32> to vector<32x8xf32>
    %cst_433 = arith.constant dense<0.000000e+00> : vector<17x8xf32>
    %607 = tpu.matmul %558, %606, %cst_433 {dimension_numbers = #tpu.dot_dimension_numbers<[1], [0], [0], [1], [0, 0, 1, 1], [], []>} : vector<17x32xf32>, vector<32x8xf32>, vector<17x8xf32> -> vector<17x8xf32>
    %c2_434 = arith.constant 2 : index
    %c1_435 = arith.constant 1 : index
    %c0_436 = arith.constant 0 : index
    %c0_437 = arith.constant 0 : index
    %608 = vector.load %arg8[%c2_434, %c1_435, %c0_436, %c0_437] : memref<4x4x1x8xf32, #tpu.memory_space<vmem>>, vector<1x1x1x8xf32>
    %609 = vector.shape_cast %608 : vector<1x1x1x8xf32> to vector<1x8xf32>
    %610 = vector.broadcast %609 : vector<1x8xf32> to vector<17x8xf32>
    %611 = arith.addf %607, %610 : vector<17x8xf32>
    %c2_438 = arith.constant 2 : index
    %c1_439 = arith.constant 1 : index
    %c0_440 = arith.constant 0 : index
    %c0_441 = arith.constant 0 : index
    %612 = vector.load %arg6[%c2_438, %c1_439, %c0_440, %c0_441] : memref<4x4x32x8xf32, #tpu.memory_space<vmem>>, vector<1x1x32x8xf32>
    %613 = vector.shape_cast %612 : vector<1x1x32x8xf32> to vector<32x8xf32>
    %cst_442 = arith.constant dense<0.000000e+00> : vector<17x8xf32>
    %614 = tpu.matmul %558, %613, %cst_442 {dimension_numbers = #tpu.dot_dimension_numbers<[1], [0], [0], [1], [0, 0, 1, 1], [], []>} : vector<17x32xf32>, vector<32x8xf32>, vector<17x8xf32> -> vector<17x8xf32>
    %c2_443 = arith.constant 2 : index
    %c1_444 = arith.constant 1 : index
    %c0_445 = arith.constant 0 : index
    %c0_446 = arith.constant 0 : index
    %615 = vector.load %arg9[%c2_443, %c1_444, %c0_445, %c0_446] : memref<4x4x1x8xf32, #tpu.memory_space<vmem>>, vector<1x1x1x8xf32>
    %616 = vector.shape_cast %615 : vector<1x1x1x8xf32> to vector<1x8xf32>
    %617 = vector.broadcast %616 : vector<1x8xf32> to vector<17x8xf32>
    %618 = arith.addf %614, %617 : vector<17x8xf32>
    %cst_447 = arith.constant dense<0.000000e+00> : vector<17x17xf32>
    %619 = tpu.matmul %604, %611, %cst_447 {dimension_numbers = #tpu.dot_dimension_numbers<[1], [1], [0], [0], [0, 0, 1, 0], [], []>} : vector<17x8xf32>, vector<17x8xf32>, vector<17x17xf32> -> vector<17x17xf32>
    %cst_448 = arith.constant 0.353553385 : f32
    %620 = vector.broadcast %cst_448 : f32 to vector<17x17xf32>
    %621 = arith.mulf %619, %620 : vector<17x17xf32>
    %622 = vector.broadcast %536 : vector<1x17xf32> to vector<17x17xf32>
    %623 = arith.addf %621, %622 : vector<17x17xf32>
    %cst_449 = arith.constant dense<0xFF800000> : vector<17xf32>
    %624 = vector.multi_reduction <maximumf>, %623, %cst_449 [1] : vector<17x17xf32> to vector<17xf32>
    %625 = vector.shape_cast %624 : vector<17xf32> to vector<17x1xf32>
    %626 = vector.broadcast %625 : vector<17x1xf32> to vector<17x17xf32>
    %627 = arith.subf %623, %626 : vector<17x17xf32>
    %628 = math.exp %627 : vector<17x17xf32>
    %cst_450 = arith.constant dense<0.000000e+00> : vector<17xf32>
    %629 = vector.multi_reduction <add>, %628, %cst_450 [1] : vector<17x17xf32> to vector<17xf32>
    %630 = vector.shape_cast %629 : vector<17xf32> to vector<17x1xf32>
    %631 = vector.broadcast %630 : vector<17x1xf32> to vector<17x17xf32>
    %632 = arith.divf %628, %631 : vector<17x17xf32>
    %cst_451 = arith.constant dense<0.000000e+00> : vector<17x8xf32>
    %633 = tpu.matmul %632, %618, %cst_451 {dimension_numbers = #tpu.dot_dimension_numbers<[1], [0], [0], [1], [0, 0, 1, 1], [], []>} : vector<17x17xf32>, vector<17x8xf32>, vector<17x8xf32> -> vector<17x8xf32>
    %c2_452 = arith.constant 2 : index
    %c1_453 = arith.constant 1 : index
    %c0_454 = arith.constant 0 : index
    %c0_455 = arith.constant 0 : index
    %634 = vector.load %arg10[%c2_452, %c1_453, %c0_454, %c0_455] : memref<4x4x8x32xf32, #tpu.memory_space<vmem>>, vector<1x1x8x32xf32>
    %635 = vector.shape_cast %634 : vector<1x1x8x32xf32> to vector<8x32xf32>
    %cst_456 = arith.constant dense<0.000000e+00> : vector<17x32xf32>
    %636 = tpu.matmul %633, %635, %cst_456 {dimension_numbers = #tpu.dot_dimension_numbers<[1], [0], [0], [1], [0, 0, 1, 1], [], []>} : vector<17x8xf32>, vector<8x32xf32>, vector<17x32xf32> -> vector<17x32xf32>
    %637 = arith.addf %597, %636 : vector<17x32xf32>
    %c2_457 = arith.constant 2 : index
    %c2_458 = arith.constant 2 : index
    %c0_459 = arith.constant 0 : index
    %c0_460 = arith.constant 0 : index
    %638 = vector.load %arg4[%c2_457, %c2_458, %c0_459, %c0_460] : memref<4x4x32x8xf32, #tpu.memory_space<vmem>>, vector<1x1x32x8xf32>
    %639 = vector.shape_cast %638 : vector<1x1x32x8xf32> to vector<32x8xf32>
    %cst_461 = arith.constant dense<0.000000e+00> : vector<17x8xf32>
    %640 = tpu.matmul %558, %639, %cst_461 {dimension_numbers = #tpu.dot_dimension_numbers<[1], [0], [0], [1], [0, 0, 1, 1], [], []>} : vector<17x32xf32>, vector<32x8xf32>, vector<17x8xf32> -> vector<17x8xf32>
    %c2_462 = arith.constant 2 : index
    %c2_463 = arith.constant 2 : index
    %c0_464 = arith.constant 0 : index
    %c0_465 = arith.constant 0 : index
    %641 = vector.load %arg7[%c2_462, %c2_463, %c0_464, %c0_465] : memref<4x4x1x8xf32, #tpu.memory_space<vmem>>, vector<1x1x1x8xf32>
    %642 = vector.shape_cast %641 : vector<1x1x1x8xf32> to vector<1x8xf32>
    %643 = vector.broadcast %642 : vector<1x8xf32> to vector<17x8xf32>
    %644 = arith.addf %640, %643 : vector<17x8xf32>
    %c2_466 = arith.constant 2 : index
    %c2_467 = arith.constant 2 : index
    %c0_468 = arith.constant 0 : index
    %c0_469 = arith.constant 0 : index
    %645 = vector.load %arg5[%c2_466, %c2_467, %c0_468, %c0_469] : memref<4x4x32x8xf32, #tpu.memory_space<vmem>>, vector<1x1x32x8xf32>
    %646 = vector.shape_cast %645 : vector<1x1x32x8xf32> to vector<32x8xf32>
    %cst_470 = arith.constant dense<0.000000e+00> : vector<17x8xf32>
    %647 = tpu.matmul %558, %646, %cst_470 {dimension_numbers = #tpu.dot_dimension_numbers<[1], [0], [0], [1], [0, 0, 1, 1], [], []>} : vector<17x32xf32>, vector<32x8xf32>, vector<17x8xf32> -> vector<17x8xf32>
    %c2_471 = arith.constant 2 : index
    %c2_472 = arith.constant 2 : index
    %c0_473 = arith.constant 0 : index
    %c0_474 = arith.constant 0 : index
    %648 = vector.load %arg8[%c2_471, %c2_472, %c0_473, %c0_474] : memref<4x4x1x8xf32, #tpu.memory_space<vmem>>, vector<1x1x1x8xf32>
    %649 = vector.shape_cast %648 : vector<1x1x1x8xf32> to vector<1x8xf32>
    %650 = vector.broadcast %649 : vector<1x8xf32> to vector<17x8xf32>
    %651 = arith.addf %647, %650 : vector<17x8xf32>
    %c2_475 = arith.constant 2 : index
    %c2_476 = arith.constant 2 : index
    %c0_477 = arith.constant 0 : index
    %c0_478 = arith.constant 0 : index
    %652 = vector.load %arg6[%c2_475, %c2_476, %c0_477, %c0_478] : memref<4x4x32x8xf32, #tpu.memory_space<vmem>>, vector<1x1x32x8xf32>
    %653 = vector.shape_cast %652 : vector<1x1x32x8xf32> to vector<32x8xf32>
    %cst_479 = arith.constant dense<0.000000e+00> : vector<17x8xf32>
    %654 = tpu.matmul %558, %653, %cst_479 {dimension_numbers = #tpu.dot_dimension_numbers<[1], [0], [0], [1], [0, 0, 1, 1], [], []>} : vector<17x32xf32>, vector<32x8xf32>, vector<17x8xf32> -> vector<17x8xf32>
    %c2_480 = arith.constant 2 : index
    %c2_481 = arith.constant 2 : index
    %c0_482 = arith.constant 0 : index
    %c0_483 = arith.constant 0 : index
    %655 = vector.load %arg9[%c2_480, %c2_481, %c0_482, %c0_483] : memref<4x4x1x8xf32, #tpu.memory_space<vmem>>, vector<1x1x1x8xf32>
    %656 = vector.shape_cast %655 : vector<1x1x1x8xf32> to vector<1x8xf32>
    %657 = vector.broadcast %656 : vector<1x8xf32> to vector<17x8xf32>
    %658 = arith.addf %654, %657 : vector<17x8xf32>
    %cst_484 = arith.constant dense<0.000000e+00> : vector<17x17xf32>
    %659 = tpu.matmul %644, %651, %cst_484 {dimension_numbers = #tpu.dot_dimension_numbers<[1], [1], [0], [0], [0, 0, 1, 0], [], []>} : vector<17x8xf32>, vector<17x8xf32>, vector<17x17xf32> -> vector<17x17xf32>
    %cst_485 = arith.constant 0.353553385 : f32
    %660 = vector.broadcast %cst_485 : f32 to vector<17x17xf32>
    %661 = arith.mulf %659, %660 : vector<17x17xf32>
    %662 = vector.broadcast %536 : vector<1x17xf32> to vector<17x17xf32>
    %663 = arith.addf %661, %662 : vector<17x17xf32>
    %cst_486 = arith.constant dense<0xFF800000> : vector<17xf32>
    %664 = vector.multi_reduction <maximumf>, %663, %cst_486 [1] : vector<17x17xf32> to vector<17xf32>
    %665 = vector.shape_cast %664 : vector<17xf32> to vector<17x1xf32>
    %666 = vector.broadcast %665 : vector<17x1xf32> to vector<17x17xf32>
    %667 = arith.subf %663, %666 : vector<17x17xf32>
    %668 = math.exp %667 : vector<17x17xf32>
    %cst_487 = arith.constant dense<0.000000e+00> : vector<17xf32>
    %669 = vector.multi_reduction <add>, %668, %cst_487 [1] : vector<17x17xf32> to vector<17xf32>
    %670 = vector.shape_cast %669 : vector<17xf32> to vector<17x1xf32>
    %671 = vector.broadcast %670 : vector<17x1xf32> to vector<17x17xf32>
    %672 = arith.divf %668, %671 : vector<17x17xf32>
    %cst_488 = arith.constant dense<0.000000e+00> : vector<17x8xf32>
    %673 = tpu.matmul %672, %658, %cst_488 {dimension_numbers = #tpu.dot_dimension_numbers<[1], [0], [0], [1], [0, 0, 1, 1], [], []>} : vector<17x17xf32>, vector<17x8xf32>, vector<17x8xf32> -> vector<17x8xf32>
    %c2_489 = arith.constant 2 : index
    %c2_490 = arith.constant 2 : index
    %c0_491 = arith.constant 0 : index
    %c0_492 = arith.constant 0 : index
    %674 = vector.load %arg10[%c2_489, %c2_490, %c0_491, %c0_492] : memref<4x4x8x32xf32, #tpu.memory_space<vmem>>, vector<1x1x8x32xf32>
    %675 = vector.shape_cast %674 : vector<1x1x8x32xf32> to vector<8x32xf32>
    %cst_493 = arith.constant dense<0.000000e+00> : vector<17x32xf32>
    %676 = tpu.matmul %673, %675, %cst_493 {dimension_numbers = #tpu.dot_dimension_numbers<[1], [0], [0], [1], [0, 0, 1, 1], [], []>} : vector<17x8xf32>, vector<8x32xf32>, vector<17x32xf32> -> vector<17x32xf32>
    %677 = arith.addf %637, %676 : vector<17x32xf32>
    %c2_494 = arith.constant 2 : index
    %c3_495 = arith.constant 3 : index
    %c0_496 = arith.constant 0 : index
    %c0_497 = arith.constant 0 : index
    %678 = vector.load %arg4[%c2_494, %c3_495, %c0_496, %c0_497] : memref<4x4x32x8xf32, #tpu.memory_space<vmem>>, vector<1x1x32x8xf32>
    %679 = vector.shape_cast %678 : vector<1x1x32x8xf32> to vector<32x8xf32>
    %cst_498 = arith.constant dense<0.000000e+00> : vector<17x8xf32>
    %680 = tpu.matmul %558, %679, %cst_498 {dimension_numbers = #tpu.dot_dimension_numbers<[1], [0], [0], [1], [0, 0, 1, 1], [], []>} : vector<17x32xf32>, vector<32x8xf32>, vector<17x8xf32> -> vector<17x8xf32>
    %c2_499 = arith.constant 2 : index
    %c3_500 = arith.constant 3 : index
    %c0_501 = arith.constant 0 : index
    %c0_502 = arith.constant 0 : index
    %681 = vector.load %arg7[%c2_499, %c3_500, %c0_501, %c0_502] : memref<4x4x1x8xf32, #tpu.memory_space<vmem>>, vector<1x1x1x8xf32>
    %682 = vector.shape_cast %681 : vector<1x1x1x8xf32> to vector<1x8xf32>
    %683 = vector.broadcast %682 : vector<1x8xf32> to vector<17x8xf32>
    %684 = arith.addf %680, %683 : vector<17x8xf32>
    %c2_503 = arith.constant 2 : index
    %c3_504 = arith.constant 3 : index
    %c0_505 = arith.constant 0 : index
    %c0_506 = arith.constant 0 : index
    %685 = vector.load %arg5[%c2_503, %c3_504, %c0_505, %c0_506] : memref<4x4x32x8xf32, #tpu.memory_space<vmem>>, vector<1x1x32x8xf32>
    %686 = vector.shape_cast %685 : vector<1x1x32x8xf32> to vector<32x8xf32>
    %cst_507 = arith.constant dense<0.000000e+00> : vector<17x8xf32>
    %687 = tpu.matmul %558, %686, %cst_507 {dimension_numbers = #tpu.dot_dimension_numbers<[1], [0], [0], [1], [0, 0, 1, 1], [], []>} : vector<17x32xf32>, vector<32x8xf32>, vector<17x8xf32> -> vector<17x8xf32>
    %c2_508 = arith.constant 2 : index
    %c3_509 = arith.constant 3 : index
    %c0_510 = arith.constant 0 : index
    %c0_511 = arith.constant 0 : index
    %688 = vector.load %arg8[%c2_508, %c3_509, %c0_510, %c0_511] : memref<4x4x1x8xf32, #tpu.memory_space<vmem>>, vector<1x1x1x8xf32>
    %689 = vector.shape_cast %688 : vector<1x1x1x8xf32> to vector<1x8xf32>
    %690 = vector.broadcast %689 : vector<1x8xf32> to vector<17x8xf32>
    %691 = arith.addf %687, %690 : vector<17x8xf32>
    %c2_512 = arith.constant 2 : index
    %c3_513 = arith.constant 3 : index
    %c0_514 = arith.constant 0 : index
    %c0_515 = arith.constant 0 : index
    %692 = vector.load %arg6[%c2_512, %c3_513, %c0_514, %c0_515] : memref<4x4x32x8xf32, #tpu.memory_space<vmem>>, vector<1x1x32x8xf32>
    %693 = vector.shape_cast %692 : vector<1x1x32x8xf32> to vector<32x8xf32>
    %cst_516 = arith.constant dense<0.000000e+00> : vector<17x8xf32>
    %694 = tpu.matmul %558, %693, %cst_516 {dimension_numbers = #tpu.dot_dimension_numbers<[1], [0], [0], [1], [0, 0, 1, 1], [], []>} : vector<17x32xf32>, vector<32x8xf32>, vector<17x8xf32> -> vector<17x8xf32>
    %c2_517 = arith.constant 2 : index
    %c3_518 = arith.constant 3 : index
    %c0_519 = arith.constant 0 : index
    %c0_520 = arith.constant 0 : index
    %695 = vector.load %arg9[%c2_517, %c3_518, %c0_519, %c0_520] : memref<4x4x1x8xf32, #tpu.memory_space<vmem>>, vector<1x1x1x8xf32>
    %696 = vector.shape_cast %695 : vector<1x1x1x8xf32> to vector<1x8xf32>
    %697 = vector.broadcast %696 : vector<1x8xf32> to vector<17x8xf32>
    %698 = arith.addf %694, %697 : vector<17x8xf32>
    %cst_521 = arith.constant dense<0.000000e+00> : vector<17x17xf32>
    %699 = tpu.matmul %684, %691, %cst_521 {dimension_numbers = #tpu.dot_dimension_numbers<[1], [1], [0], [0], [0, 0, 1, 0], [], []>} : vector<17x8xf32>, vector<17x8xf32>, vector<17x17xf32> -> vector<17x17xf32>
    %cst_522 = arith.constant 0.353553385 : f32
    %700 = vector.broadcast %cst_522 : f32 to vector<17x17xf32>
    %701 = arith.mulf %699, %700 : vector<17x17xf32>
    %702 = vector.broadcast %536 : vector<1x17xf32> to vector<17x17xf32>
    %703 = arith.addf %701, %702 : vector<17x17xf32>
    %cst_523 = arith.constant dense<0xFF800000> : vector<17xf32>
    %704 = vector.multi_reduction <maximumf>, %703, %cst_523 [1] : vector<17x17xf32> to vector<17xf32>
    %705 = vector.shape_cast %704 : vector<17xf32> to vector<17x1xf32>
    %706 = vector.broadcast %705 : vector<17x1xf32> to vector<17x17xf32>
    %707 = arith.subf %703, %706 : vector<17x17xf32>
    %708 = math.exp %707 : vector<17x17xf32>
    %cst_524 = arith.constant dense<0.000000e+00> : vector<17xf32>
    %709 = vector.multi_reduction <add>, %708, %cst_524 [1] : vector<17x17xf32> to vector<17xf32>
    %710 = vector.shape_cast %709 : vector<17xf32> to vector<17x1xf32>
    %711 = vector.broadcast %710 : vector<17x1xf32> to vector<17x17xf32>
    %712 = arith.divf %708, %711 : vector<17x17xf32>
    %cst_525 = arith.constant dense<0.000000e+00> : vector<17x8xf32>
    %713 = tpu.matmul %712, %698, %cst_525 {dimension_numbers = #tpu.dot_dimension_numbers<[1], [0], [0], [1], [0, 0, 1, 1], [], []>} : vector<17x17xf32>, vector<17x8xf32>, vector<17x8xf32> -> vector<17x8xf32>
    %c2_526 = arith.constant 2 : index
    %c3_527 = arith.constant 3 : index
    %c0_528 = arith.constant 0 : index
    %c0_529 = arith.constant 0 : index
    %714 = vector.load %arg10[%c2_526, %c3_527, %c0_528, %c0_529] : memref<4x4x8x32xf32, #tpu.memory_space<vmem>>, vector<1x1x8x32xf32>
    %715 = vector.shape_cast %714 : vector<1x1x8x32xf32> to vector<8x32xf32>
    %cst_530 = arith.constant dense<0.000000e+00> : vector<17x32xf32>
    %716 = tpu.matmul %713, %715, %cst_530 {dimension_numbers = #tpu.dot_dimension_numbers<[1], [0], [0], [1], [0, 0, 1, 1], [], []>} : vector<17x8xf32>, vector<8x32xf32>, vector<17x32xf32> -> vector<17x32xf32>
    %717 = arith.addf %677, %716 : vector<17x32xf32>
    %718 = arith.addf %467, %717 : vector<17x32xf32>
    %719 = vector.broadcast %472 : vector<1x32xf32> to vector<17x32xf32>
    %720 = arith.addf %718, %719 : vector<17x32xf32>
    %cst_531 = arith.constant dense<0.000000e+00> : vector<17xf32>
    %721 = vector.multi_reduction <add>, %720, %cst_531 [1] : vector<17x32xf32> to vector<17xf32>
    %722 = vector.shape_cast %721 : vector<17xf32> to vector<17x1xf32>
    %cst_532 = arith.constant 3.200000e+01 : f32
    %723 = vector.broadcast %cst_532 : f32 to vector<17x1xf32>
    %724 = arith.divf %722, %723 : vector<17x1xf32>
    %725 = vector.broadcast %724 : vector<17x1xf32> to vector<17x32xf32>
    %726 = arith.subf %720, %725 : vector<17x32xf32>
    %727 = arith.mulf %726, %726 : vector<17x32xf32>
    %cst_533 = arith.constant dense<0.000000e+00> : vector<17xf32>
    %728 = vector.multi_reduction <add>, %727, %cst_533 [1] : vector<17x32xf32> to vector<17xf32>
    %729 = vector.shape_cast %728 : vector<17xf32> to vector<17x1xf32>
    %cst_534 = arith.constant 3.200000e+01 : f32
    %730 = vector.broadcast %cst_534 : f32 to vector<17x1xf32>
    %731 = arith.divf %729, %730 : vector<17x1xf32>
    %732 = vector.broadcast %724 : vector<17x1xf32> to vector<17x32xf32>
    %733 = arith.subf %720, %732 : vector<17x32xf32>
    %cst_535 = arith.constant 9.99999974E-6 : f32
    %734 = vector.broadcast %cst_535 : f32 to vector<17x1xf32>
    %735 = arith.addf %731, %734 : vector<17x1xf32>
    %736 = math.rsqrt %735 : vector<17x1xf32>
    %737 = vector.broadcast %736 : vector<17x1xf32> to vector<17x32xf32>
    %738 = arith.mulf %733, %737 : vector<17x32xf32>
    %739 = vector.broadcast %473 : vector<1x32xf32> to vector<17x32xf32>
    %740 = arith.mulf %738, %739 : vector<17x32xf32>
    %741 = vector.broadcast %474 : vector<1x32xf32> to vector<17x32xf32>
    %742 = arith.addf %740, %741 : vector<17x32xf32>
    %c2_536 = arith.constant 2 : index
    %c0_537 = arith.constant 0 : index
    %c0_538 = arith.constant 0 : index
    %743 = vector.load %arg11[%c2_536, %c0_537, %c0_538] : memref<4x32x128xf32, #tpu.memory_space<vmem>>, vector<1x32x128xf32>
    %744 = vector.shape_cast %743 : vector<1x32x128xf32> to vector<32x128xf32>
    %cst_539 = arith.constant dense<0.000000e+00> : vector<17x128xf32>
    %745 = tpu.matmul %742, %744, %cst_539 {dimension_numbers = #tpu.dot_dimension_numbers<[1], [0], [0], [1], [0, 0, 1, 1], [], []>} : vector<17x32xf32>, vector<32x128xf32>, vector<17x128xf32> -> vector<17x128xf32>
    %746 = vector.broadcast %476 : vector<1x128xf32> to vector<17x128xf32>
    %747 = arith.addf %745, %746 : vector<17x128xf32>
    %cst_540 = arith.constant 5.000000e-01 : f32
    %748 = vector.broadcast %cst_540 : f32 to vector<17x128xf32>
    %749 = arith.mulf %748, %747 : vector<17x128xf32>
    %cst_541 = arith.constant 4.471500e-02 : f32
    %750 = vector.broadcast %cst_541 : f32 to vector<17x128xf32>
    %751 = arith.mulf %750, %747 : vector<17x128xf32>
    %752 = arith.mulf %751, %747 : vector<17x128xf32>
    %753 = arith.mulf %752, %747 : vector<17x128xf32>
    %754 = arith.addf %747, %753 : vector<17x128xf32>
    %cst_542 = arith.constant 0.797884583 : f32
    %755 = vector.broadcast %cst_542 : f32 to vector<17x128xf32>
    %756 = arith.mulf %755, %754 : vector<17x128xf32>
    %757 = math.tanh %756 : vector<17x128xf32>
    %cst_543 = arith.constant 1.000000e+00 : f32
    %758 = vector.broadcast %cst_543 : f32 to vector<17x128xf32>
    %759 = arith.addf %758, %757 : vector<17x128xf32>
    %760 = arith.mulf %749, %759 : vector<17x128xf32>
    %c2_544 = arith.constant 2 : index
    %c0_545 = arith.constant 0 : index
    %c0_546 = arith.constant 0 : index
    %761 = vector.load %arg12[%c2_544, %c0_545, %c0_546] : memref<4x128x32xf32, #tpu.memory_space<vmem>>, vector<1x128x32xf32>
    %762 = vector.shape_cast %761 : vector<1x128x32xf32> to vector<128x32xf32>
    %cst_547 = arith.constant dense<0.000000e+00> : vector<17x32xf32>
    %763 = tpu.matmul %760, %762, %cst_547 {dimension_numbers = #tpu.dot_dimension_numbers<[1], [0], [0], [1], [0, 0, 1, 1], [], []>} : vector<17x128xf32>, vector<128x32xf32>, vector<17x32xf32> -> vector<17x32xf32>
    %764 = arith.addf %720, %763 : vector<17x32xf32>
    %765 = vector.broadcast %475 : vector<1x32xf32> to vector<17x32xf32>
    %766 = arith.addf %764, %765 : vector<17x32xf32>
    %c3_548 = arith.constant 3 : index
    %c0_549 = arith.constant 0 : index
    %c0_550 = arith.constant 0 : index
    %767 = vector.load %arg13[%c3_548, %c0_549, %c0_550] : memref<4x7x128xf32, #tpu.memory_space<vmem>>, vector<1x7x128xf32>
    %768 = vector.shape_cast %767 : vector<1x7x128xf32> to vector<7x128xf32>
    %769 = vector.extract_strided_slice %768 {offsets = [0, 0], sizes = [1, 32], strides = [1, 1]} : vector<7x128xf32> to vector<1x32xf32>
    %770 = vector.extract_strided_slice %768 {offsets = [1, 0], sizes = [1, 32], strides = [1, 1]} : vector<7x128xf32> to vector<1x32xf32>
    %771 = vector.extract_strided_slice %768 {offsets = [2, 0], sizes = [1, 32], strides = [1, 1]} : vector<7x128xf32> to vector<1x32xf32>
    %772 = vector.extract_strided_slice %768 {offsets = [3, 0], sizes = [1, 32], strides = [1, 1]} : vector<7x128xf32> to vector<1x32xf32>
    %773 = vector.extract_strided_slice %768 {offsets = [4, 0], sizes = [1, 32], strides = [1, 1]} : vector<7x128xf32> to vector<1x32xf32>
    %774 = vector.extract_strided_slice %768 {offsets = [5, 0], sizes = [1, 32], strides = [1, 1]} : vector<7x128xf32> to vector<1x32xf32>
    %775 = vector.extract_strided_slice %768 {offsets = [6, 0], sizes = [1, 128], strides = [1, 1]} : vector<7x128xf32> to vector<1x128xf32>
    %c1_551 = arith.constant 1 : index
    %c0_552 = arith.constant 0 : index
    %c0_553 = arith.constant 0 : index
    %776 = vector.load %arg16[%c1_551, %c0_552, %c0_553] : memref<2x4x128xf32, #tpu.memory_space<vmem>>, vector<1x4x128xf32>
    %777 = vector.shape_cast %776 : vector<1x4x128xf32> to vector<4x128xf32>
    %778 = vector.extract_strided_slice %777 {offsets = [0, 0], sizes = [1, 32], strides = [1, 1]} : vector<4x128xf32> to vector<1x32xf32>
    %779 = vector.extract_strided_slice %777 {offsets = [1, 0], sizes = [1, 32], strides = [1, 1]} : vector<4x128xf32> to vector<1x32xf32>
    %cst_554 = arith.constant dense<0.000000e+00> : vector<17xf32>
    %780 = vector.multi_reduction <add>, %766, %cst_554 [1] : vector<17x32xf32> to vector<17xf32>
    %781 = vector.shape_cast %780 : vector<17xf32> to vector<17x1xf32>
    %cst_555 = arith.constant 3.200000e+01 : f32
    %782 = vector.broadcast %cst_555 : f32 to vector<17x1xf32>
    %783 = arith.divf %781, %782 : vector<17x1xf32>
    %784 = vector.broadcast %783 : vector<17x1xf32> to vector<17x32xf32>
    %785 = arith.subf %766, %784 : vector<17x32xf32>
    %786 = arith.mulf %785, %785 : vector<17x32xf32>
    %cst_556 = arith.constant dense<0.000000e+00> : vector<17xf32>
    %787 = vector.multi_reduction <add>, %786, %cst_556 [1] : vector<17x32xf32> to vector<17xf32>
    %788 = vector.shape_cast %787 : vector<17xf32> to vector<17x1xf32>
    %cst_557 = arith.constant 3.200000e+01 : f32
    %789 = vector.broadcast %cst_557 : f32 to vector<17x1xf32>
    %790 = arith.divf %788, %789 : vector<17x1xf32>
    %791 = vector.broadcast %783 : vector<17x1xf32> to vector<17x32xf32>
    %792 = arith.subf %766, %791 : vector<17x32xf32>
    %cst_558 = arith.constant 9.99999974E-6 : f32
    %793 = vector.broadcast %cst_558 : f32 to vector<17x1xf32>
    %794 = arith.addf %790, %793 : vector<17x1xf32>
    %795 = math.rsqrt %794 : vector<17x1xf32>
    %796 = vector.broadcast %795 : vector<17x1xf32> to vector<17x32xf32>
    %797 = arith.mulf %792, %796 : vector<17x32xf32>
    %798 = vector.broadcast %778 : vector<1x32xf32> to vector<17x32xf32>
    %799 = arith.mulf %797, %798 : vector<17x32xf32>
    %800 = vector.broadcast %779 : vector<1x32xf32> to vector<17x32xf32>
    %801 = arith.addf %799, %800 : vector<17x32xf32>
    %c1_559 = arith.constant 1 : index
    %c0_560 = arith.constant 0 : index
    %c0_561 = arith.constant 0 : index
    %802 = vector.load %arg14[%c1_559, %c0_560, %c0_561] : memref<2x32x8xf32, #tpu.memory_space<vmem>>, vector<1x32x8xf32>
    %803 = vector.shape_cast %802 : vector<1x32x8xf32> to vector<32x8xf32>
    %cst_562 = arith.constant dense<0.000000e+00> : vector<17x8xf32>
    %804 = tpu.matmul %801, %803, %cst_562 {dimension_numbers = #tpu.dot_dimension_numbers<[1], [0], [0], [1], [0, 0, 1, 1], [], []>} : vector<17x32xf32>, vector<32x8xf32>, vector<17x8xf32> -> vector<17x8xf32>
    %805 = vector.extract_strided_slice %777 {offsets = [2, 0], sizes = [1, 8], strides = [1, 1]} : vector<4x128xf32> to vector<1x8xf32>
    %806 = vector.broadcast %805 : vector<1x8xf32> to vector<17x8xf32>
    %807 = arith.addf %804, %806 : vector<17x8xf32>
    %cst_563 = arith.constant 5.000000e-01 : f32
    %808 = vector.broadcast %cst_563 : f32 to vector<17x8xf32>
    %809 = arith.mulf %808, %807 : vector<17x8xf32>
    %cst_564 = arith.constant 4.471500e-02 : f32
    %810 = vector.broadcast %cst_564 : f32 to vector<17x8xf32>
    %811 = arith.mulf %810, %807 : vector<17x8xf32>
    %812 = arith.mulf %811, %807 : vector<17x8xf32>
    %813 = arith.mulf %812, %807 : vector<17x8xf32>
    %814 = arith.addf %807, %813 : vector<17x8xf32>
    %cst_565 = arith.constant 0.797884583 : f32
    %815 = vector.broadcast %cst_565 : f32 to vector<17x8xf32>
    %816 = arith.mulf %815, %814 : vector<17x8xf32>
    %817 = math.tanh %816 : vector<17x8xf32>
    %cst_566 = arith.constant 1.000000e+00 : f32
    %818 = vector.broadcast %cst_566 : f32 to vector<17x8xf32>
    %819 = arith.addf %818, %817 : vector<17x8xf32>
    %820 = arith.mulf %809, %819 : vector<17x8xf32>
    %c1_567 = arith.constant 1 : index
    %c0_568 = arith.constant 0 : index
    %c0_569 = arith.constant 0 : index
    %821 = vector.load %arg15[%c1_567, %c0_568, %c0_569] : memref<2x1x8xf32, #tpu.memory_space<vmem>>, vector<1x1x8xf32>
    %822 = vector.shape_cast %821 : vector<1x1x8xf32> to vector<1x8xf32>
    %cst_570 = arith.constant dense<0.000000e+00> : vector<1x17xf32>
    %823 = tpu.matmul %822, %820, %cst_570 {dimension_numbers = #tpu.dot_dimension_numbers<[1], [1], [0], [0], [0, 0, 1, 0], [], []>} : vector<1x8xf32>, vector<17x8xf32>, vector<1x17xf32> -> vector<1x17xf32>
    %824 = vector.extract_strided_slice %777 {offsets = [3, 0], sizes = [1, 1], strides = [1, 1]} : vector<4x128xf32> to vector<1x1xf32>
    %825 = vector.broadcast %824 : vector<1x1xf32> to vector<1x17xf32>
    %826 = arith.addf %823, %825 : vector<1x17xf32>
    %cst_571 = arith.constant 0.000000e+00 : f32
    %827 = vector.broadcast %cst_571 : f32 to vector<1x17xf32>
    %828 = arith.cmpf olt, %826, %827 : vector<1x17xf32>
    %829 = arith.extui %828 : vector<1x17xi1> to vector<1x17xi32>
    %c0_572 = arith.constant 0 : index
    %c1_573 = arith.constant 1 : index
    %c0_574 = arith.constant 0 : index
    %830 = vector.load %arg20[%c0_572, %c1_573, %c0_574] : memref<1x2x17xi32, #tpu.memory_space<vmem>>, vector<1x1x17xi32>
    %831 = vector.shape_cast %830 : vector<1x1x17xi32> to vector<1x17xi32>
    %832 = vector.shape_cast %829 : vector<1x17xi32> to vector<1x1x17xi32>
    tpu.vector_store %arg20[%c0_572, %c1_573, %c0_574], %832 {strides = array<i32>} : memref<1x2x17xi32, #tpu.memory_space<vmem>>, vector<1x1x17xi32>,
    %cst_575 = arith.constant 0.000000e+00 : f32
    %cst_576 = arith.constant -1.000000e+09 : f32
    %833 = vector.broadcast %cst_575 : f32 to vector<1x17xf32>
    %834 = vector.broadcast %cst_576 : f32 to vector<1x17xf32>
    %835 = arith.select %828, %833, %834 : vector<1x17xi1>, vector<1x17xf32>
    %cst_577 = arith.constant dense<0.000000e+00> : vector<17xf32>
    %836 = vector.multi_reduction <add>, %766, %cst_577 [1] : vector<17x32xf32> to vector<17xf32>
    %837 = vector.shape_cast %836 : vector<17xf32> to vector<17x1xf32>
    %cst_578 = arith.constant 3.200000e+01 : f32
    %838 = vector.broadcast %cst_578 : f32 to vector<17x1xf32>
    %839 = arith.divf %837, %838 : vector<17x1xf32>
    %840 = vector.broadcast %839 : vector<17x1xf32> to vector<17x32xf32>
    %841 = arith.subf %766, %840 : vector<17x32xf32>
    %842 = arith.mulf %841, %841 : vector<17x32xf32>
    %cst_579 = arith.constant dense<0.000000e+00> : vector<17xf32>
    %843 = vector.multi_reduction <add>, %842, %cst_579 [1] : vector<17x32xf32> to vector<17xf32>
    %844 = vector.shape_cast %843 : vector<17xf32> to vector<17x1xf32>
    %cst_580 = arith.constant 3.200000e+01 : f32
    %845 = vector.broadcast %cst_580 : f32 to vector<17x1xf32>
    %846 = arith.divf %844, %845 : vector<17x1xf32>
    %847 = vector.broadcast %839 : vector<17x1xf32> to vector<17x32xf32>
    %848 = arith.subf %766, %847 : vector<17x32xf32>
    %cst_581 = arith.constant 9.99999974E-6 : f32
    %849 = vector.broadcast %cst_581 : f32 to vector<17x1xf32>
    %850 = arith.addf %846, %849 : vector<17x1xf32>
    %851 = math.rsqrt %850 : vector<17x1xf32>
    %852 = vector.broadcast %851 : vector<17x1xf32> to vector<17x32xf32>
    %853 = arith.mulf %848, %852 : vector<17x32xf32>
    %854 = vector.broadcast %769 : vector<1x32xf32> to vector<17x32xf32>
    %855 = arith.mulf %853, %854 : vector<17x32xf32>
    %856 = vector.broadcast %770 : vector<1x32xf32> to vector<17x32xf32>
    %857 = arith.addf %855, %856 : vector<17x32xf32>
    %c3_582 = arith.constant 3 : index
    %c0_583 = arith.constant 0 : index
    %c0_584 = arith.constant 0 : index
    %c0_585 = arith.constant 0 : index
    %858 = vector.load %arg4[%c3_582, %c0_583, %c0_584, %c0_585] : memref<4x4x32x8xf32, #tpu.memory_space<vmem>>, vector<1x1x32x8xf32>
    %859 = vector.shape_cast %858 : vector<1x1x32x8xf32> to vector<32x8xf32>
    %cst_586 = arith.constant dense<0.000000e+00> : vector<17x8xf32>
    %860 = tpu.matmul %857, %859, %cst_586 {dimension_numbers = #tpu.dot_dimension_numbers<[1], [0], [0], [1], [0, 0, 1, 1], [], []>} : vector<17x32xf32>, vector<32x8xf32>, vector<17x8xf32> -> vector<17x8xf32>
    %c3_587 = arith.constant 3 : index
    %c0_588 = arith.constant 0 : index
    %c0_589 = arith.constant 0 : index
    %c0_590 = arith.constant 0 : index
    %861 = vector.load %arg7[%c3_587, %c0_588, %c0_589, %c0_590] : memref<4x4x1x8xf32, #tpu.memory_space<vmem>>, vector<1x1x1x8xf32>
    %862 = vector.shape_cast %861 : vector<1x1x1x8xf32> to vector<1x8xf32>
    %863 = vector.broadcast %862 : vector<1x8xf32> to vector<17x8xf32>
    %864 = arith.addf %860, %863 : vector<17x8xf32>
    %c3_591 = arith.constant 3 : index
    %c0_592 = arith.constant 0 : index
    %c0_593 = arith.constant 0 : index
    %c0_594 = arith.constant 0 : index
    %865 = vector.load %arg5[%c3_591, %c0_592, %c0_593, %c0_594] : memref<4x4x32x8xf32, #tpu.memory_space<vmem>>, vector<1x1x32x8xf32>
    %866 = vector.shape_cast %865 : vector<1x1x32x8xf32> to vector<32x8xf32>
    %cst_595 = arith.constant dense<0.000000e+00> : vector<17x8xf32>
    %867 = tpu.matmul %857, %866, %cst_595 {dimension_numbers = #tpu.dot_dimension_numbers<[1], [0], [0], [1], [0, 0, 1, 1], [], []>} : vector<17x32xf32>, vector<32x8xf32>, vector<17x8xf32> -> vector<17x8xf32>
    %c3_596 = arith.constant 3 : index
    %c0_597 = arith.constant 0 : index
    %c0_598 = arith.constant 0 : index
    %c0_599 = arith.constant 0 : index
    %868 = vector.load %arg8[%c3_596, %c0_597, %c0_598, %c0_599] : memref<4x4x1x8xf32, #tpu.memory_space<vmem>>, vector<1x1x1x8xf32>
    %869 = vector.shape_cast %868 : vector<1x1x1x8xf32> to vector<1x8xf32>
    %870 = vector.broadcast %869 : vector<1x8xf32> to vector<17x8xf32>
    %871 = arith.addf %867, %870 : vector<17x8xf32>
    %c3_600 = arith.constant 3 : index
    %c0_601 = arith.constant 0 : index
    %c0_602 = arith.constant 0 : index
    %c0_603 = arith.constant 0 : index
    %872 = vector.load %arg6[%c3_600, %c0_601, %c0_602, %c0_603] : memref<4x4x32x8xf32, #tpu.memory_space<vmem>>, vector<1x1x32x8xf32>
    %873 = vector.shape_cast %872 : vector<1x1x32x8xf32> to vector<32x8xf32>
    %cst_604 = arith.constant dense<0.000000e+00> : vector<17x8xf32>
    %874 = tpu.matmul %857, %873, %cst_604 {dimension_numbers = #tpu.dot_dimension_numbers<[1], [0], [0], [1], [0, 0, 1, 1], [], []>} : vector<17x32xf32>, vector<32x8xf32>, vector<17x8xf32> -> vector<17x8xf32>
    %c3_605 = arith.constant 3 : index
    %c0_606 = arith.constant 0 : index
    %c0_607 = arith.constant 0 : index
    %c0_608 = arith.constant 0 : index
    %875 = vector.load %arg9[%c3_605, %c0_606, %c0_607, %c0_608] : memref<4x4x1x8xf32, #tpu.memory_space<vmem>>, vector<1x1x1x8xf32>
    %876 = vector.shape_cast %875 : vector<1x1x1x8xf32> to vector<1x8xf32>
    %877 = vector.broadcast %876 : vector<1x8xf32> to vector<17x8xf32>
    %878 = arith.addf %874, %877 : vector<17x8xf32>
    %cst_609 = arith.constant dense<0.000000e+00> : vector<17x17xf32>
    %879 = tpu.matmul %864, %871, %cst_609 {dimension_numbers = #tpu.dot_dimension_numbers<[1], [1], [0], [0], [0, 0, 1, 0], [], []>} : vector<17x8xf32>, vector<17x8xf32>, vector<17x17xf32> -> vector<17x17xf32>
    %cst_610 = arith.constant 0.353553385 : f32
    %880 = vector.broadcast %cst_610 : f32 to vector<17x17xf32>
    %881 = arith.mulf %879, %880 : vector<17x17xf32>
    %882 = vector.broadcast %835 : vector<1x17xf32> to vector<17x17xf32>
    %883 = arith.addf %881, %882 : vector<17x17xf32>
    %cst_611 = arith.constant dense<0xFF800000> : vector<17xf32>
    %884 = vector.multi_reduction <maximumf>, %883, %cst_611 [1] : vector<17x17xf32> to vector<17xf32>
    %885 = vector.shape_cast %884 : vector<17xf32> to vector<17x1xf32>
    %886 = vector.broadcast %885 : vector<17x1xf32> to vector<17x17xf32>
    %887 = arith.subf %883, %886 : vector<17x17xf32>
    %888 = math.exp %887 : vector<17x17xf32>
    %cst_612 = arith.constant dense<0.000000e+00> : vector<17xf32>
    %889 = vector.multi_reduction <add>, %888, %cst_612 [1] : vector<17x17xf32> to vector<17xf32>
    %890 = vector.shape_cast %889 : vector<17xf32> to vector<17x1xf32>
    %891 = vector.broadcast %890 : vector<17x1xf32> to vector<17x17xf32>
    %892 = arith.divf %888, %891 : vector<17x17xf32>
    %cst_613 = arith.constant dense<0.000000e+00> : vector<17x8xf32>
    %893 = tpu.matmul %892, %878, %cst_613 {dimension_numbers = #tpu.dot_dimension_numbers<[1], [0], [0], [1], [0, 0, 1, 1], [], []>} : vector<17x17xf32>, vector<17x8xf32>, vector<17x8xf32> -> vector<17x8xf32>
    %c3_614 = arith.constant 3 : index
    %c0_615 = arith.constant 0 : index
    %c0_616 = arith.constant 0 : index
    %c0_617 = arith.constant 0 : index
    %894 = vector.load %arg10[%c3_614, %c0_615, %c0_616, %c0_617] : memref<4x4x8x32xf32, #tpu.memory_space<vmem>>, vector<1x1x8x32xf32>
    %895 = vector.shape_cast %894 : vector<1x1x8x32xf32> to vector<8x32xf32>
    %cst_618 = arith.constant dense<0.000000e+00> : vector<17x32xf32>
    %896 = tpu.matmul %893, %895, %cst_618 {dimension_numbers = #tpu.dot_dimension_numbers<[1], [0], [0], [1], [0, 0, 1, 1], [], []>} : vector<17x8xf32>, vector<8x32xf32>, vector<17x32xf32> -> vector<17x32xf32>
    %c3_619 = arith.constant 3 : index
    %c1_620 = arith.constant 1 : index
    %c0_621 = arith.constant 0 : index
    %c0_622 = arith.constant 0 : index
    %897 = vector.load %arg4[%c3_619, %c1_620, %c0_621, %c0_622] : memref<4x4x32x8xf32, #tpu.memory_space<vmem>>, vector<1x1x32x8xf32>
    %898 = vector.shape_cast %897 : vector<1x1x32x8xf32> to vector<32x8xf32>
    %cst_623 = arith.constant dense<0.000000e+00> : vector<17x8xf32>
    %899 = tpu.matmul %857, %898, %cst_623 {dimension_numbers = #tpu.dot_dimension_numbers<[1], [0], [0], [1], [0, 0, 1, 1], [], []>} : vector<17x32xf32>, vector<32x8xf32>, vector<17x8xf32> -> vector<17x8xf32>
    %c3_624 = arith.constant 3 : index
    %c1_625 = arith.constant 1 : index
    %c0_626 = arith.constant 0 : index
    %c0_627 = arith.constant 0 : index
    %900 = vector.load %arg7[%c3_624, %c1_625, %c0_626, %c0_627] : memref<4x4x1x8xf32, #tpu.memory_space<vmem>>, vector<1x1x1x8xf32>
    %901 = vector.shape_cast %900 : vector<1x1x1x8xf32> to vector<1x8xf32>
    %902 = vector.broadcast %901 : vector<1x8xf32> to vector<17x8xf32>
    %903 = arith.addf %899, %902 : vector<17x8xf32>
    %c3_628 = arith.constant 3 : index
    %c1_629 = arith.constant 1 : index
    %c0_630 = arith.constant 0 : index
    %c0_631 = arith.constant 0 : index
    %904 = vector.load %arg5[%c3_628, %c1_629, %c0_630, %c0_631] : memref<4x4x32x8xf32, #tpu.memory_space<vmem>>, vector<1x1x32x8xf32>
    %905 = vector.shape_cast %904 : vector<1x1x32x8xf32> to vector<32x8xf32>
    %cst_632 = arith.constant dense<0.000000e+00> : vector<17x8xf32>
    %906 = tpu.matmul %857, %905, %cst_632 {dimension_numbers = #tpu.dot_dimension_numbers<[1], [0], [0], [1], [0, 0, 1, 1], [], []>} : vector<17x32xf32>, vector<32x8xf32>, vector<17x8xf32> -> vector<17x8xf32>
    %c3_633 = arith.constant 3 : index
    %c1_634 = arith.constant 1 : index
    %c0_635 = arith.constant 0 : index
    %c0_636 = arith.constant 0 : index
    %907 = vector.load %arg8[%c3_633, %c1_634, %c0_635, %c0_636] : memref<4x4x1x8xf32, #tpu.memory_space<vmem>>, vector<1x1x1x8xf32>
    %908 = vector.shape_cast %907 : vector<1x1x1x8xf32> to vector<1x8xf32>
    %909 = vector.broadcast %908 : vector<1x8xf32> to vector<17x8xf32>
    %910 = arith.addf %906, %909 : vector<17x8xf32>
    %c3_637 = arith.constant 3 : index
    %c1_638 = arith.constant 1 : index
    %c0_639 = arith.constant 0 : index
    %c0_640 = arith.constant 0 : index
    %911 = vector.load %arg6[%c3_637, %c1_638, %c0_639, %c0_640] : memref<4x4x32x8xf32, #tpu.memory_space<vmem>>, vector<1x1x32x8xf32>
    %912 = vector.shape_cast %911 : vector<1x1x32x8xf32> to vector<32x8xf32>
    %cst_641 = arith.constant dense<0.000000e+00> : vector<17x8xf32>
    %913 = tpu.matmul %857, %912, %cst_641 {dimension_numbers = #tpu.dot_dimension_numbers<[1], [0], [0], [1], [0, 0, 1, 1], [], []>} : vector<17x32xf32>, vector<32x8xf32>, vector<17x8xf32> -> vector<17x8xf32>
    %c3_642 = arith.constant 3 : index
    %c1_643 = arith.constant 1 : index
    %c0_644 = arith.constant 0 : index
    %c0_645 = arith.constant 0 : index
    %914 = vector.load %arg9[%c3_642, %c1_643, %c0_644, %c0_645] : memref<4x4x1x8xf32, #tpu.memory_space<vmem>>, vector<1x1x1x8xf32>
    %915 = vector.shape_cast %914 : vector<1x1x1x8xf32> to vector<1x8xf32>
    %916 = vector.broadcast %915 : vector<1x8xf32> to vector<17x8xf32>
    %917 = arith.addf %913, %916 : vector<17x8xf32>
    %cst_646 = arith.constant dense<0.000000e+00> : vector<17x17xf32>
    %918 = tpu.matmul %903, %910, %cst_646 {dimension_numbers = #tpu.dot_dimension_numbers<[1], [1], [0], [0], [0, 0, 1, 0], [], []>} : vector<17x8xf32>, vector<17x8xf32>, vector<17x17xf32> -> vector<17x17xf32>
    %cst_647 = arith.constant 0.353553385 : f32
    %919 = vector.broadcast %cst_647 : f32 to vector<17x17xf32>
    %920 = arith.mulf %918, %919 : vector<17x17xf32>
    %921 = vector.broadcast %835 : vector<1x17xf32> to vector<17x17xf32>
    %922 = arith.addf %920, %921 : vector<17x17xf32>
    %cst_648 = arith.constant dense<0xFF800000> : vector<17xf32>
    %923 = vector.multi_reduction <maximumf>, %922, %cst_648 [1] : vector<17x17xf32> to vector<17xf32>
    %924 = vector.shape_cast %923 : vector<17xf32> to vector<17x1xf32>
    %925 = vector.broadcast %924 : vector<17x1xf32> to vector<17x17xf32>
    %926 = arith.subf %922, %925 : vector<17x17xf32>
    %927 = math.exp %926 : vector<17x17xf32>
    %cst_649 = arith.constant dense<0.000000e+00> : vector<17xf32>
    %928 = vector.multi_reduction <add>, %927, %cst_649 [1] : vector<17x17xf32> to vector<17xf32>
    %929 = vector.shape_cast %928 : vector<17xf32> to vector<17x1xf32>
    %930 = vector.broadcast %929 : vector<17x1xf32> to vector<17x17xf32>
    %931 = arith.divf %927, %930 : vector<17x17xf32>
    %cst_650 = arith.constant dense<0.000000e+00> : vector<17x8xf32>
    %932 = tpu.matmul %931, %917, %cst_650 {dimension_numbers = #tpu.dot_dimension_numbers<[1], [0], [0], [1], [0, 0, 1, 1], [], []>} : vector<17x17xf32>, vector<17x8xf32>, vector<17x8xf32> -> vector<17x8xf32>
    %c3_651 = arith.constant 3 : index
    %c1_652 = arith.constant 1 : index
    %c0_653 = arith.constant 0 : index
    %c0_654 = arith.constant 0 : index
    %933 = vector.load %arg10[%c3_651, %c1_652, %c0_653, %c0_654] : memref<4x4x8x32xf32, #tpu.memory_space<vmem>>, vector<1x1x8x32xf32>
    %934 = vector.shape_cast %933 : vector<1x1x8x32xf32> to vector<8x32xf32>
    %cst_655 = arith.constant dense<0.000000e+00> : vector<17x32xf32>
    %935 = tpu.matmul %932, %934, %cst_655 {dimension_numbers = #tpu.dot_dimension_numbers<[1], [0], [0], [1], [0, 0, 1, 1], [], []>} : vector<17x8xf32>, vector<8x32xf32>, vector<17x32xf32> -> vector<17x32xf32>
    %936 = arith.addf %896, %935 : vector<17x32xf32>
    %c3_656 = arith.constant 3 : index
    %c2_657 = arith.constant 2 : index
    %c0_658 = arith.constant 0 : index
    %c0_659 = arith.constant 0 : index
    %937 = vector.load %arg4[%c3_656, %c2_657, %c0_658, %c0_659] : memref<4x4x32x8xf32, #tpu.memory_space<vmem>>, vector<1x1x32x8xf32>
    %938 = vector.shape_cast %937 : vector<1x1x32x8xf32> to vector<32x8xf32>
    %cst_660 = arith.constant dense<0.000000e+00> : vector<17x8xf32>
    %939 = tpu.matmul %857, %938, %cst_660 {dimension_numbers = #tpu.dot_dimension_numbers<[1], [0], [0], [1], [0, 0, 1, 1], [], []>} : vector<17x32xf32>, vector<32x8xf32>, vector<17x8xf32> -> vector<17x8xf32>
    %c3_661 = arith.constant 3 : index
    %c2_662 = arith.constant 2 : index
    %c0_663 = arith.constant 0 : index
    %c0_664 = arith.constant 0 : index
    %940 = vector.load %arg7[%c3_661, %c2_662, %c0_663, %c0_664] : memref<4x4x1x8xf32, #tpu.memory_space<vmem>>, vector<1x1x1x8xf32>
    %941 = vector.shape_cast %940 : vector<1x1x1x8xf32> to vector<1x8xf32>
    %942 = vector.broadcast %941 : vector<1x8xf32> to vector<17x8xf32>
    %943 = arith.addf %939, %942 : vector<17x8xf32>
    %c3_665 = arith.constant 3 : index
    %c2_666 = arith.constant 2 : index
    %c0_667 = arith.constant 0 : index
    %c0_668 = arith.constant 0 : index
    %944 = vector.load %arg5[%c3_665, %c2_666, %c0_667, %c0_668] : memref<4x4x32x8xf32, #tpu.memory_space<vmem>>, vector<1x1x32x8xf32>
    %945 = vector.shape_cast %944 : vector<1x1x32x8xf32> to vector<32x8xf32>
    %cst_669 = arith.constant dense<0.000000e+00> : vector<17x8xf32>
    %946 = tpu.matmul %857, %945, %cst_669 {dimension_numbers = #tpu.dot_dimension_numbers<[1], [0], [0], [1], [0, 0, 1, 1], [], []>} : vector<17x32xf32>, vector<32x8xf32>, vector<17x8xf32> -> vector<17x8xf32>
    %c3_670 = arith.constant 3 : index
    %c2_671 = arith.constant 2 : index
    %c0_672 = arith.constant 0 : index
    %c0_673 = arith.constant 0 : index
    %947 = vector.load %arg8[%c3_670, %c2_671, %c0_672, %c0_673] : memref<4x4x1x8xf32, #tpu.memory_space<vmem>>, vector<1x1x1x8xf32>
    %948 = vector.shape_cast %947 : vector<1x1x1x8xf32> to vector<1x8xf32>
    %949 = vector.broadcast %948 : vector<1x8xf32> to vector<17x8xf32>
    %950 = arith.addf %946, %949 : vector<17x8xf32>
    %c3_674 = arith.constant 3 : index
    %c2_675 = arith.constant 2 : index
    %c0_676 = arith.constant 0 : index
    %c0_677 = arith.constant 0 : index
    %951 = vector.load %arg6[%c3_674, %c2_675, %c0_676, %c0_677] : memref<4x4x32x8xf32, #tpu.memory_space<vmem>>, vector<1x1x32x8xf32>
    %952 = vector.shape_cast %951 : vector<1x1x32x8xf32> to vector<32x8xf32>
    %cst_678 = arith.constant dense<0.000000e+00> : vector<17x8xf32>
    %953 = tpu.matmul %857, %952, %cst_678 {dimension_numbers = #tpu.dot_dimension_numbers<[1], [0], [0], [1], [0, 0, 1, 1], [], []>} : vector<17x32xf32>, vector<32x8xf32>, vector<17x8xf32> -> vector<17x8xf32>
    %c3_679 = arith.constant 3 : index
    %c2_680 = arith.constant 2 : index
    %c0_681 = arith.constant 0 : index
    %c0_682 = arith.constant 0 : index
    %954 = vector.load %arg9[%c3_679, %c2_680, %c0_681, %c0_682] : memref<4x4x1x8xf32, #tpu.memory_space<vmem>>, vector<1x1x1x8xf32>
    %955 = vector.shape_cast %954 : vector<1x1x1x8xf32> to vector<1x8xf32>
    %956 = vector.broadcast %955 : vector<1x8xf32> to vector<17x8xf32>
    %957 = arith.addf %953, %956 : vector<17x8xf32>
    %cst_683 = arith.constant dense<0.000000e+00> : vector<17x17xf32>
    %958 = tpu.matmul %943, %950, %cst_683 {dimension_numbers = #tpu.dot_dimension_numbers<[1], [1], [0], [0], [0, 0, 1, 0], [], []>} : vector<17x8xf32>, vector<17x8xf32>, vector<17x17xf32> -> vector<17x17xf32>
    %cst_684 = arith.constant 0.353553385 : f32
    %959 = vector.broadcast %cst_684 : f32 to vector<17x17xf32>
    %960 = arith.mulf %958, %959 : vector<17x17xf32>
    %961 = vector.broadcast %835 : vector<1x17xf32> to vector<17x17xf32>
    %962 = arith.addf %960, %961 : vector<17x17xf32>
    %cst_685 = arith.constant dense<0xFF800000> : vector<17xf32>
    %963 = vector.multi_reduction <maximumf>, %962, %cst_685 [1] : vector<17x17xf32> to vector<17xf32>
    %964 = vector.shape_cast %963 : vector<17xf32> to vector<17x1xf32>
    %965 = vector.broadcast %964 : vector<17x1xf32> to vector<17x17xf32>
    %966 = arith.subf %962, %965 : vector<17x17xf32>
    %967 = math.exp %966 : vector<17x17xf32>
    %cst_686 = arith.constant dense<0.000000e+00> : vector<17xf32>
    %968 = vector.multi_reduction <add>, %967, %cst_686 [1] : vector<17x17xf32> to vector<17xf32>
    %969 = vector.shape_cast %968 : vector<17xf32> to vector<17x1xf32>
    %970 = vector.broadcast %969 : vector<17x1xf32> to vector<17x17xf32>
    %971 = arith.divf %967, %970 : vector<17x17xf32>
    %cst_687 = arith.constant dense<0.000000e+00> : vector<17x8xf32>
    %972 = tpu.matmul %971, %957, %cst_687 {dimension_numbers = #tpu.dot_dimension_numbers<[1], [0], [0], [1], [0, 0, 1, 1], [], []>} : vector<17x17xf32>, vector<17x8xf32>, vector<17x8xf32> -> vector<17x8xf32>
    %c3_688 = arith.constant 3 : index
    %c2_689 = arith.constant 2 : index
    %c0_690 = arith.constant 0 : index
    %c0_691 = arith.constant 0 : index
    %973 = vector.load %arg10[%c3_688, %c2_689, %c0_690, %c0_691] : memref<4x4x8x32xf32, #tpu.memory_space<vmem>>, vector<1x1x8x32xf32>
    %974 = vector.shape_cast %973 : vector<1x1x8x32xf32> to vector<8x32xf32>
    %cst_692 = arith.constant dense<0.000000e+00> : vector<17x32xf32>
    %975 = tpu.matmul %972, %974, %cst_692 {dimension_numbers = #tpu.dot_dimension_numbers<[1], [0], [0], [1], [0, 0, 1, 1], [], []>} : vector<17x8xf32>, vector<8x32xf32>, vector<17x32xf32> -> vector<17x32xf32>
    %976 = arith.addf %936, %975 : vector<17x32xf32>
    %c3_693 = arith.constant 3 : index
    %c3_694 = arith.constant 3 : index
    %c0_695 = arith.constant 0 : index
    %c0_696 = arith.constant 0 : index
    %977 = vector.load %arg4[%c3_693, %c3_694, %c0_695, %c0_696] : memref<4x4x32x8xf32, #tpu.memory_space<vmem>>, vector<1x1x32x8xf32>
    %978 = vector.shape_cast %977 : vector<1x1x32x8xf32> to vector<32x8xf32>
    %cst_697 = arith.constant dense<0.000000e+00> : vector<17x8xf32>
    %979 = tpu.matmul %857, %978, %cst_697 {dimension_numbers = #tpu.dot_dimension_numbers<[1], [0], [0], [1], [0, 0, 1, 1], [], []>} : vector<17x32xf32>, vector<32x8xf32>, vector<17x8xf32> -> vector<17x8xf32>
    %c3_698 = arith.constant 3 : index
    %c3_699 = arith.constant 3 : index
    %c0_700 = arith.constant 0 : index
    %c0_701 = arith.constant 0 : index
    %980 = vector.load %arg7[%c3_698, %c3_699, %c0_700, %c0_701] : memref<4x4x1x8xf32, #tpu.memory_space<vmem>>, vector<1x1x1x8xf32>
    %981 = vector.shape_cast %980 : vector<1x1x1x8xf32> to vector<1x8xf32>
    %982 = vector.broadcast %981 : vector<1x8xf32> to vector<17x8xf32>
    %983 = arith.addf %979, %982 : vector<17x8xf32>
    %c3_702 = arith.constant 3 : index
    %c3_703 = arith.constant 3 : index
    %c0_704 = arith.constant 0 : index
    %c0_705 = arith.constant 0 : index
    %984 = vector.load %arg5[%c3_702, %c3_703, %c0_704, %c0_705] : memref<4x4x32x8xf32, #tpu.memory_space<vmem>>, vector<1x1x32x8xf32>
    %985 = vector.shape_cast %984 : vector<1x1x32x8xf32> to vector<32x8xf32>
    %cst_706 = arith.constant dense<0.000000e+00> : vector<17x8xf32>
    %986 = tpu.matmul %857, %985, %cst_706 {dimension_numbers = #tpu.dot_dimension_numbers<[1], [0], [0], [1], [0, 0, 1, 1], [], []>} : vector<17x32xf32>, vector<32x8xf32>, vector<17x8xf32> -> vector<17x8xf32>
    %c3_707 = arith.constant 3 : index
    %c3_708 = arith.constant 3 : index
    %c0_709 = arith.constant 0 : index
    %c0_710 = arith.constant 0 : index
    %987 = vector.load %arg8[%c3_707, %c3_708, %c0_709, %c0_710] : memref<4x4x1x8xf32, #tpu.memory_space<vmem>>, vector<1x1x1x8xf32>
    %988 = vector.shape_cast %987 : vector<1x1x1x8xf32> to vector<1x8xf32>
    %989 = vector.broadcast %988 : vector<1x8xf32> to vector<17x8xf32>
    %990 = arith.addf %986, %989 : vector<17x8xf32>
    %c3_711 = arith.constant 3 : index
    %c3_712 = arith.constant 3 : index
    %c0_713 = arith.constant 0 : index
    %c0_714 = arith.constant 0 : index
    %991 = vector.load %arg6[%c3_711, %c3_712, %c0_713, %c0_714] : memref<4x4x32x8xf32, #tpu.memory_space<vmem>>, vector<1x1x32x8xf32>
    %992 = vector.shape_cast %991 : vector<1x1x32x8xf32> to vector<32x8xf32>
    %cst_715 = arith.constant dense<0.000000e+00> : vector<17x8xf32>
    %993 = tpu.matmul %857, %992, %cst_715 {dimension_numbers = #tpu.dot_dimension_numbers<[1], [0], [0], [1], [0, 0, 1, 1], [], []>} : vector<17x32xf32>, vector<32x8xf32>, vector<17x8xf32> -> vector<17x8xf32>
    %c3_716 = arith.constant 3 : index
    %c3_717 = arith.constant 3 : index
    %c0_718 = arith.constant 0 : index
    %c0_719 = arith.constant 0 : index
    %994 = vector.load %arg9[%c3_716, %c3_717, %c0_718, %c0_719] : memref<4x4x1x8xf32, #tpu.memory_space<vmem>>, vector<1x1x1x8xf32>
    %995 = vector.shape_cast %994 : vector<1x1x1x8xf32> to vector<1x8xf32>
    %996 = vector.broadcast %995 : vector<1x8xf32> to vector<17x8xf32>
    %997 = arith.addf %993, %996 : vector<17x8xf32>
    %cst_720 = arith.constant dense<0.000000e+00> : vector<17x17xf32>
    %998 = tpu.matmul %983, %990, %cst_720 {dimension_numbers = #tpu.dot_dimension_numbers<[1], [1], [0], [0], [0, 0, 1, 0], [], []>} : vector<17x8xf32>, vector<17x8xf32>, vector<17x17xf32> -> vector<17x17xf32>
    %cst_721 = arith.constant 0.353553385 : f32
    %999 = vector.broadcast %cst_721 : f32 to vector<17x17xf32>
    %1000 = arith.mulf %998, %999 : vector<17x17xf32>
    %1001 = vector.broadcast %835 : vector<1x17xf32> to vector<17x17xf32>
    %1002 = arith.addf %1000, %1001 : vector<17x17xf32>
    %cst_722 = arith.constant dense<0xFF800000> : vector<17xf32>
    %1003 = vector.multi_reduction <maximumf>, %1002, %cst_722 [1] : vector<17x17xf32> to vector<17xf32>
    %1004 = vector.shape_cast %1003 : vector<17xf32> to vector<17x1xf32>
    %1005 = vector.broadcast %1004 : vector<17x1xf32> to vector<17x17xf32>
    %1006 = arith.subf %1002, %1005 : vector<17x17xf32>
    %1007 = math.exp %1006 : vector<17x17xf32>
    %cst_723 = arith.constant dense<0.000000e+00> : vector<17xf32>
    %1008 = vector.multi_reduction <add>, %1007, %cst_723 [1] : vector<17x17xf32> to vector<17xf32>
    %1009 = vector.shape_cast %1008 : vector<17xf32> to vector<17x1xf32>
    %1010 = vector.broadcast %1009 : vector<17x1xf32> to vector<17x17xf32>
    %1011 = arith.divf %1007, %1010 : vector<17x17xf32>
    %cst_724 = arith.constant dense<0.000000e+00> : vector<17x8xf32>
    %1012 = tpu.matmul %1011, %997, %cst_724 {dimension_numbers = #tpu.dot_dimension_numbers<[1], [0], [0], [1], [0, 0, 1, 1], [], []>} : vector<17x17xf32>, vector<17x8xf32>, vector<17x8xf32> -> vector<17x8xf32>
    %c3_725 = arith.constant 3 : index
    %c3_726 = arith.constant 3 : index
    %c0_727 = arith.constant 0 : index
    %c0_728 = arith.constant 0 : index
    %1013 = vector.load %arg10[%c3_725, %c3_726, %c0_727, %c0_728] : memref<4x4x8x32xf32, #tpu.memory_space<vmem>>, vector<1x1x8x32xf32>
    %1014 = vector.shape_cast %1013 : vector<1x1x8x32xf32> to vector<8x32xf32>
    %cst_729 = arith.constant dense<0.000000e+00> : vector<17x32xf32>
    %1015 = tpu.matmul %1012, %1014, %cst_729 {dimension_numbers = #tpu.dot_dimension_numbers<[1], [0], [0], [1], [0, 0, 1, 1], [], []>} : vector<17x8xf32>, vector<8x32xf32>, vector<17x32xf32> -> vector<17x32xf32>
    %1016 = arith.addf %976, %1015 : vector<17x32xf32>
    %1017 = arith.addf %766, %1016 : vector<17x32xf32>
    %1018 = vector.broadcast %771 : vector<1x32xf32> to vector<17x32xf32>
    %1019 = arith.addf %1017, %1018 : vector<17x32xf32>
    %cst_730 = arith.constant dense<0.000000e+00> : vector<17xf32>
    %1020 = vector.multi_reduction <add>, %1019, %cst_730 [1] : vector<17x32xf32> to vector<17xf32>
    %1021 = vector.shape_cast %1020 : vector<17xf32> to vector<17x1xf32>
    %cst_731 = arith.constant 3.200000e+01 : f32
    %1022 = vector.broadcast %cst_731 : f32 to vector<17x1xf32>
    %1023 = arith.divf %1021, %1022 : vector<17x1xf32>
    %1024 = vector.broadcast %1023 : vector<17x1xf32> to vector<17x32xf32>
    %1025 = arith.subf %1019, %1024 : vector<17x32xf32>
    %1026 = arith.mulf %1025, %1025 : vector<17x32xf32>
    %cst_732 = arith.constant dense<0.000000e+00> : vector<17xf32>
    %1027 = vector.multi_reduction <add>, %1026, %cst_732 [1] : vector<17x32xf32> to vector<17xf32>
    %1028 = vector.shape_cast %1027 : vector<17xf32> to vector<17x1xf32>
    %cst_733 = arith.constant 3.200000e+01 : f32
    %1029 = vector.broadcast %cst_733 : f32 to vector<17x1xf32>
    %1030 = arith.divf %1028, %1029 : vector<17x1xf32>
    %1031 = vector.broadcast %1023 : vector<17x1xf32> to vector<17x32xf32>
    %1032 = arith.subf %1019, %1031 : vector<17x32xf32>
    %cst_734 = arith.constant 9.99999974E-6 : f32
    %1033 = vector.broadcast %cst_734 : f32 to vector<17x1xf32>
    %1034 = arith.addf %1030, %1033 : vector<17x1xf32>
    %1035 = math.rsqrt %1034 : vector<17x1xf32>
    %1036 = vector.broadcast %1035 : vector<17x1xf32> to vector<17x32xf32>
    %1037 = arith.mulf %1032, %1036 : vector<17x32xf32>
    %1038 = vector.broadcast %772 : vector<1x32xf32> to vector<17x32xf32>
    %1039 = arith.mulf %1037, %1038 : vector<17x32xf32>
    %1040 = vector.broadcast %773 : vector<1x32xf32> to vector<17x32xf32>
    %1041 = arith.addf %1039, %1040 : vector<17x32xf32>
    %c3_735 = arith.constant 3 : index
    %c0_736 = arith.constant 0 : index
    %c0_737 = arith.constant 0 : index
    %1042 = vector.load %arg11[%c3_735, %c0_736, %c0_737] : memref<4x32x128xf32, #tpu.memory_space<vmem>>, vector<1x32x128xf32>
    %1043 = vector.shape_cast %1042 : vector<1x32x128xf32> to vector<32x128xf32>
    %cst_738 = arith.constant dense<0.000000e+00> : vector<17x128xf32>
    %1044 = tpu.matmul %1041, %1043, %cst_738 {dimension_numbers = #tpu.dot_dimension_numbers<[1], [0], [0], [1], [0, 0, 1, 1], [], []>} : vector<17x32xf32>, vector<32x128xf32>, vector<17x128xf32> -> vector<17x128xf32>
    %1045 = vector.broadcast %775 : vector<1x128xf32> to vector<17x128xf32>
    %1046 = arith.addf %1044, %1045 : vector<17x128xf32>
    %cst_739 = arith.constant 5.000000e-01 : f32
    %1047 = vector.broadcast %cst_739 : f32 to vector<17x128xf32>
    %1048 = arith.mulf %1047, %1046 : vector<17x128xf32>
    %cst_740 = arith.constant 4.471500e-02 : f32
    %1049 = vector.broadcast %cst_740 : f32 to vector<17x128xf32>
    %1050 = arith.mulf %1049, %1046 : vector<17x128xf32>
    %1051 = arith.mulf %1050, %1046 : vector<17x128xf32>
    %1052 = arith.mulf %1051, %1046 : vector<17x128xf32>
    %1053 = arith.addf %1046, %1052 : vector<17x128xf32>
    %cst_741 = arith.constant 0.797884583 : f32
    %1054 = vector.broadcast %cst_741 : f32 to vector<17x128xf32>
    %1055 = arith.mulf %1054, %1053 : vector<17x128xf32>
    %1056 = math.tanh %1055 : vector<17x128xf32>
    %cst_742 = arith.constant 1.000000e+00 : f32
    %1057 = vector.broadcast %cst_742 : f32 to vector<17x128xf32>
    %1058 = arith.addf %1057, %1056 : vector<17x128xf32>
    %1059 = arith.mulf %1048, %1058 : vector<17x128xf32>
    %c3_743 = arith.constant 3 : index
    %c0_744 = arith.constant 0 : index
    %c0_745 = arith.constant 0 : index
    %1060 = vector.load %arg12[%c3_743, %c0_744, %c0_745] : memref<4x128x32xf32, #tpu.memory_space<vmem>>, vector<1x128x32xf32>
    %1061 = vector.shape_cast %1060 : vector<1x128x32xf32> to vector<128x32xf32>
    %cst_746 = arith.constant dense<0.000000e+00> : vector<17x32xf32>
    %1062 = tpu.matmul %1059, %1061, %cst_746 {dimension_numbers = #tpu.dot_dimension_numbers<[1], [0], [0], [1], [0, 0, 1, 1], [], []>} : vector<17x128xf32>, vector<128x32xf32>, vector<17x32xf32> -> vector<17x32xf32>
    %1063 = arith.addf %1019, %1062 : vector<17x32xf32>
    %1064 = vector.broadcast %774 : vector<1x32xf32> to vector<17x32xf32>
    %1065 = arith.addf %1063, %1064 : vector<17x32xf32>
    %c0_747 = arith.constant 0 : index
    %c0_748 = arith.constant 0 : index
    %1066 = vector.load %arg18[%c0_747, %c0_748] : memref<3x128xf32, #tpu.memory_space<vmem>>, vector<3x128xf32>
    %1067 = vector.extract_strided_slice %1065 {offsets = [0, 0], sizes = [1, 32], strides = [1, 1]} : vector<17x32xf32> to vector<1x32xf32>
    %1068 = vector.extract_strided_slice %1066 {offsets = [0, 0], sizes = [1, 32], strides = [1, 1]} : vector<3x128xf32> to vector<1x32xf32>
    %1069 = vector.extract_strided_slice %1066 {offsets = [1, 0], sizes = [1, 32], strides = [1, 1]} : vector<3x128xf32> to vector<1x32xf32>
    %cst_749 = arith.constant dense<0.000000e+00> : vector<1xf32>
    %1070 = vector.multi_reduction <add>, %1067, %cst_749 [1] : vector<1x32xf32> to vector<1xf32>
    %1071 = vector.shape_cast %1070 : vector<1xf32> to vector<1x1xf32>
    %cst_750 = arith.constant 3.200000e+01 : f32
    %1072 = vector.broadcast %cst_750 : f32 to vector<1x1xf32>
    %1073 = arith.divf %1071, %1072 : vector<1x1xf32>
    %1074 = vector.broadcast %1073 : vector<1x1xf32> to vector<1x32xf32>
    %1075 = arith.subf %1067, %1074 : vector<1x32xf32>
    %1076 = arith.mulf %1075, %1075 : vector<1x32xf32>
    %cst_751 = arith.constant dense<0.000000e+00> : vector<1xf32>
    %1077 = vector.multi_reduction <add>, %1076, %cst_751 [1] : vector<1x32xf32> to vector<1xf32>
    %1078 = vector.shape_cast %1077 : vector<1xf32> to vector<1x1xf32>
    %cst_752 = arith.constant 3.200000e+01 : f32
    %1079 = vector.broadcast %cst_752 : f32 to vector<1x1xf32>
    %1080 = arith.divf %1078, %1079 : vector<1x1xf32>
    %1081 = vector.broadcast %1073 : vector<1x1xf32> to vector<1x32xf32>
    %1082 = arith.subf %1067, %1081 : vector<1x32xf32>
    %cst_753 = arith.constant 9.99999997E-7 : f32
    %1083 = vector.broadcast %cst_753 : f32 to vector<1x1xf32>
    %1084 = arith.addf %1080, %1083 : vector<1x1xf32>
    %1085 = math.rsqrt %1084 : vector<1x1xf32>
    %1086 = vector.broadcast %1085 : vector<1x1xf32> to vector<1x32xf32>
    %1087 = arith.mulf %1082, %1086 : vector<1x32xf32>
    %1088 = arith.mulf %1087, %1068 : vector<1x32xf32>
    %1089 = arith.addf %1088, %1069 : vector<1x32xf32>
    %c0_754 = arith.constant 0 : index
    %c0_755 = arith.constant 0 : index
    %1090 = vector.load %arg17[%c0_754, %c0_755] : memref<32x128xf32, #tpu.memory_space<vmem>>, vector<32x128xf32>
    %cst_756 = arith.constant dense<0.000000e+00> : vector<1x128xf32>
    %1091 = tpu.matmul %1089, %1090, %cst_756 {dimension_numbers = #tpu.dot_dimension_numbers<[1], [0], [0], [1], [0, 0, 1, 1], [], []>} : vector<1x32xf32>, vector<32x128xf32>, vector<1x128xf32> -> vector<1x128xf32>
    %1092 = vector.extract_strided_slice %1066 {offsets = [2, 0], sizes = [1, 128], strides = [1, 1]} : vector<3x128xf32> to vector<1x128xf32>
    %1093 = arith.addf %1091, %1092 : vector<1x128xf32>
    %c0_757 = arith.constant 0 : index
    %c0_758 = arith.constant 0 : index
    %c0_759 = arith.constant 0 : index
    %1094 = vector.load %arg19[%c0_757, %c0_758, %c0_759] : memref<1x1x128xf32, #tpu.memory_space<vmem>>, vector<1x1x128xf32>
    %1095 = vector.shape_cast %1094 : vector<1x1x128xf32> to vector<1x128xf32>
    %1096 = vector.shape_cast %1093 : vector<1x128xf32> to vector<1x1x128xf32>
    tpu.vector_store %arg19[%c0_757, %c0_758, %c0_759], %1096 {strides = array<i32>} : memref<1x1x128xf32, #tpu.memory_space<vmem>>, vector<1x1x128xf32>,
    return
  }
  func.func @transform_0(%arg0: i32) -> (i32, i32, i32) {
    %c0_i32 = arith.constant 0 : i32
    %c0_i32_0 = arith.constant 0 : i32
    %c0_i32_1 = arith.constant 0 : i32
    return %arg0, %c0_i32, %c0_i32_0 : i32, i32, i32
  }
  func.func @transform_1(%arg0: i32) -> (i32, i32) {
    %c0_i32 = arith.constant 0 : i32
    %c0_i32_0 = arith.constant 0 : i32
    %c0_i32_1 = arith.constant 0 : i32
    return %c0_i32, %c0_i32_0 : i32, i32
  }
  func.func @transform_2(%arg0: i32) -> (i32, i32) {
    %c0_i32 = arith.constant 0 : i32
    %c0_i32_0 = arith.constant 0 : i32
    %c0_i32_1 = arith.constant 0 : i32
    return %c0_i32, %c0_i32_0 : i32, i32
  }
  func.func @transform_3(%arg0: i32) -> (i32, i32, i32, i32) {
    %c0_i32 = arith.constant 0 : i32
    %c0_i32_0 = arith.constant 0 : i32
    %c0_i32_1 = arith.constant 0 : i32
    %c0_i32_2 = arith.constant 0 : i32
    %c0_i32_3 = arith.constant 0 : i32
    return %c0_i32, %c0_i32_0, %c0_i32_1, %c0_i32_2 : i32, i32, i32, i32
  }
  func.func @transform_4(%arg0: i32) -> (i32, i32, i32, i32) {
    %c0_i32 = arith.constant 0 : i32
    %c0_i32_0 = arith.constant 0 : i32
    %c0_i32_1 = arith.constant 0 : i32
    %c0_i32_2 = arith.constant 0 : i32
    %c0_i32_3 = arith.constant 0 : i32
    return %c0_i32, %c0_i32_0, %c0_i32_1, %c0_i32_2 : i32, i32, i32, i32
  }
  func.func @transform_5(%arg0: i32) -> (i32, i32, i32, i32) {
    %c0_i32 = arith.constant 0 : i32
    %c0_i32_0 = arith.constant 0 : i32
    %c0_i32_1 = arith.constant 0 : i32
    %c0_i32_2 = arith.constant 0 : i32
    %c0_i32_3 = arith.constant 0 : i32
    return %c0_i32, %c0_i32_0, %c0_i32_1, %c0_i32_2 : i32, i32, i32, i32
  }
  func.func @transform_6(%arg0: i32) -> (i32, i32, i32, i32) {
    %c0_i32 = arith.constant 0 : i32
    %c0_i32_0 = arith.constant 0 : i32
    %c0_i32_1 = arith.constant 0 : i32
    %c0_i32_2 = arith.constant 0 : i32
    %c0_i32_3 = arith.constant 0 : i32
    return %c0_i32, %c0_i32_0, %c0_i32_1, %c0_i32_2 : i32, i32, i32, i32
  }
  func.func @transform_7(%arg0: i32) -> (i32, i32, i32, i32) {
    %c0_i32 = arith.constant 0 : i32
    %c0_i32_0 = arith.constant 0 : i32
    %c0_i32_1 = arith.constant 0 : i32
    %c0_i32_2 = arith.constant 0 : i32
    %c0_i32_3 = arith.constant 0 : i32
    return %c0_i32, %c0_i32_0, %c0_i32_1, %c0_i32_2 : i32, i32, i32, i32
  }
  func.func @transform_8(%arg0: i32) -> (i32, i32, i32, i32) {
    %c0_i32 = arith.constant 0 : i32
    %c0_i32_0 = arith.constant 0 : i32
    %c0_i32_1 = arith.constant 0 : i32
    %c0_i32_2 = arith.constant 0 : i32
    %c0_i32_3 = arith.constant 0 : i32
    return %c0_i32, %c0_i32_0, %c0_i32_1, %c0_i32_2 : i32, i32, i32, i32
  }
  func.func @transform_9(%arg0: i32) -> (i32, i32, i32, i32) {
    %c0_i32 = arith.constant 0 : i32
    %c0_i32_0 = arith.constant 0 : i32
    %c0_i32_1 = arith.constant 0 : i32
    %c0_i32_2 = arith.constant 0 : i32
    %c0_i32_3 = arith.constant 0 : i32
    return %c0_i32, %c0_i32_0, %c0_i32_1, %c0_i32_2 : i32, i32, i32, i32
  }
  func.func @transform_10(%arg0: i32) -> (i32, i32, i32) {
    %c0_i32 = arith.constant 0 : i32
    %c0_i32_0 = arith.constant 0 : i32
    %c0_i32_1 = arith.constant 0 : i32
    %c0_i32_2 = arith.constant 0 : i32
    return %c0_i32, %c0_i32_0, %c0_i32_1 : i32, i32, i32
  }
  func.func @transform_11(%arg0: i32) -> (i32, i32, i32) {
    %c0_i32 = arith.constant 0 : i32
    %c0_i32_0 = arith.constant 0 : i32
    %c0_i32_1 = arith.constant 0 : i32
    %c0_i32_2 = arith.constant 0 : i32
    return %c0_i32, %c0_i32_0, %c0_i32_1 : i32, i32, i32
  }
  func.func @transform_12(%arg0: i32) -> (i32, i32, i32) {
    %c0_i32 = arith.constant 0 : i32
    %c0_i32_0 = arith.constant 0 : i32
    %c0_i32_1 = arith.constant 0 : i32
    %c0_i32_2 = arith.constant 0 : i32
    return %c0_i32, %c0_i32_0, %c0_i32_1 : i32, i32, i32
  }
  func.func @transform_13(%arg0: i32) -> (i32, i32, i32) {
    %c0_i32 = arith.constant 0 : i32
    %c0_i32_0 = arith.constant 0 : i32
    %c0_i32_1 = arith.constant 0 : i32
    %c0_i32_2 = arith.constant 0 : i32
    return %c0_i32, %c0_i32_0, %c0_i32_1 : i32, i32, i32
  }
  func.func @transform_14(%arg0: i32) -> (i32, i32, i32) {
    %c0_i32 = arith.constant 0 : i32
    %c0_i32_0 = arith.constant 0 : i32
    %c0_i32_1 = arith.constant 0 : i32
    %c0_i32_2 = arith.constant 0 : i32
    return %c0_i32, %c0_i32_0, %c0_i32_1 : i32, i32, i32
  }
  func.func @transform_15(%arg0: i32) -> (i32, i32, i32) {
    %c0_i32 = arith.constant 0 : i32
    %c0_i32_0 = arith.constant 0 : i32
    %c0_i32_1 = arith.constant 0 : i32
    %c0_i32_2 = arith.constant 0 : i32
    return %c0_i32, %c0_i32_0, %c0_i32_1 : i32, i32, i32
  }
  func.func @transform_16(%arg0: i32) -> (i32, i32) {
    %c0_i32 = arith.constant 0 : i32
    %c0_i32_0 = arith.constant 0 : i32
    %c0_i32_1 = arith.constant 0 : i32
    return %c0_i32, %c0_i32_0 : i32, i32
  }
  func.func @transform_17(%arg0: i32) -> (i32, i32) {
    %c0_i32 = arith.constant 0 : i32
    %c0_i32_0 = arith.constant 0 : i32
    %c0_i32_1 = arith.constant 0 : i32
    return %c0_i32, %c0_i32_0 : i32, i32
  }
  func.func @transform_18(%arg0: i32) -> (i32, i32, i32) {
    %c0_i32 = arith.constant 0 : i32
    %c0_i32_0 = arith.constant 0 : i32
    %c0_i32_1 = arith.constant 0 : i32
    return %arg0, %c0_i32, %c0_i32_0 : i32, i32, i32
  }
  func.func @transform_19(%arg0: i32) -> (i32, i32, i32) {
    %c0_i32 = arith.constant 0 : i32
    %c0_i32_0 = arith.constant 0 : i32
    %c0_i32_1 = arith.constant 0 : i32
    return %arg0, %c0_i32, %c0_i32_0 : i32, i32, i32
  }
}

</mosaic_0001>

<bundles_post_ra>
// kernel: forward.1
= control target key start
LH: loop header
LB: loop body
LE: loop exit
PB: predicated region body
PF: predicated region fallthrough
CT: control target
= control target key end

     0   :  { %s10799_s0 = inlined_call_operand.vmem [shape: f32[2,17,192], index: 0, kind: input, shape index: {}]   ;;  %s10800_s1 = inlined_call_operand.vmem [shape: f32[17,32], index: 1, kind: input, shape index: {}]   ;;  %s10801_s2 = inlined_call_operand.vmem [shape: f32[192,32], index: 2, kind: input, shape index: {}]   ;;  %s10802_s3 = inlined_call_operand.vmem [shape: f32[4,4,32,8], index: 3, kind: input, shape index: {}]   ;;  %s10803_s4 = inlined_call_operand.vmem [shape: f32[4,4,32,8], index: 4, kind: input, shape index: {}]   ;;  %s10804_s5 = inlined_call_operand.vmem [shape: f32[4,4,32,8], index: 5, kind: input, shape index: {}]   ;;  %s10805_s6 = inlined_call_operand.vmem [shape: f32[4,4,1,8], index: 6, kind: input, shape index: {}]   ;;  %s10806_s7 = inlined_call_operand.vmem [shape: f32[4,4,1,8], index: 7, kind: input, shape index: {}]   ;;  %s10807_s8 = inlined_call_operand.vmem [shape: f32[4,4,1,8], index: 8, kind: input, shape index: {}]   ;;  %s10808_s9 = inlined_call_operand.vmem [shape: f32[4,4,8,32], index: 9, kind: input, shape index: {}]   ;;  %s10809_s10 = inlined_call_operand.vmem [shape: f32[4,32,128], index: 10, kind: input, shape index: {}]   ;;  %s10810_s11 = inlined_call_operand.vmem [shape: f32[4,128,32], index: 11, kind: input, shape index: {}]   ;;  %s10811_s12 = inlined_call_operand.vmem [shape: f32[4,7,128], index: 12, kind: input, shape index: {}]   ;;  %s10812_s13 = inlined_call_operand.vmem [shape: f32[2,32,8], index: 13, kind: input, shape index: {}]   ;;  %s10813_s14 = inlined_call_operand.vmem [shape: f32[2,1,8], index: 14, kind: input, shape index: {}]   ;;  %s10814_s15 = inlined_call_operand.vmem [shape: f32[2,4,128], index: 15, kind: input, shape index: {}]   ;;  %s10815_s16 = inlined_call_operand.vmem [shape: f32[32,128], index: 16, kind: input, shape index: {}]   ;;  %s10816_s17 = inlined_call_operand.vmem [shape: f32[3,128], index: 17, kind: input, shape index: {}]   ;;  %s10817_s18 = inlined_call_operand.hbm [shape: f32[2,1,128], index: 18, kind: output, shape index: {0}]   ;;  %s10818_s19 = inlined_call_operand.vmem [shape: s32[2,2,17], index: 19, kind: output, shape index: {1}]  }
   0x1   :  { %10831 = sst [smem:[#allocation12_spill]] %s10799_s0 }
   0x2   :  { %10832 = sst [smem:[#allocation13_spill]] %s10800_s1 }
   0x3   :  { %10833 = sst [smem:[#allocation14_spill]] %s10801_s2 }
   0x4   :  { %10834 = sst [smem:[#allocation15_spill]] %s10802_s3 }
   0x5   :  { %10835 = sst [smem:[#allocation16_spill]] %s10803_s4 }
   0x6   :  { %10836 = sst [smem:[#allocation17_spill]] %s10804_s5 }
   0x7   :  { %10837 = sst [smem:[#allocation18_spill]] %s10805_s6 }
   0x8   :  { %10838 = sst [smem:[#allocation19_spill]] %s10816_s17 }
   0x9   :  { %10839 = sst [smem:[#allocation20_spill]] %s10817_s18 }
   0xa   :  { %25 = vsyncpa [#allocation3], 0 }
   0xb   :  { %27 = vsyncpa [#allocation3 + $0x1], 0  ;;  %s8366_s0 = smov 0   ;;  %s8368_s30 = smov 0  }
   0xc   :  { %s8370_s20 = smov 0   ;;  %s8372_s21 = smov 0  }
   0xd LB: > { %10840 = sst [smem:[#allocation5_spill]] %s8249_s0  ;;  %s8387_s1 = sadd.s32 4294967295, %s8261_s21   ;;  %s8261_s21 = sphi %s8372_s21, %s10862_s21   ;;  %s8257_s20 = sphi %s8370_s20, %s10864_s20   ;;  %s8253_s30 = sphi %s8368_s30, %s10866_s30   ;;  %s8249_s0 = sphi %s8366_s0, %s10865_s0  }
   0xe   : > { %10841 = sst [smem:[#allocation6_spill]] %s8257_s20  ;;  %s7119_s22 = sadd.s32 4294967294, %s8261_s21  }
   0xf   : > { %10842 = sst [smem:[#allocation7_spill]] %s8261_s21  ;;  %s8391_s2 = sadd.s32 1, %s8261_s21  }
  0x10   : > { %10843 = sst [smem:[#allocation8_spill]] %s8391_s2  ;;  %s423_s23 = sadd.s32 1, %s8257_s20 }
  0x11   : > { %s420_s24 = ssub.s32 %s8261_s21, %s8391_s2  ;;  %p433_p0 = scmp.ne.s32.totalorder %s8257_s20, %s8253_s30 }
  0x12   : > { %p421_p1 = scmp.eq.s32.totalorder %s420_s24, 0  ;;  %p434_p2 = scmp.eq.s32.totalorder %s8387_s1, 1 }
  0x13   : > { %p439_p3 = scmp.ne.s32.totalorder %s8253_s30, %s8249_s0  ;;  %p440_p4 = scmp.eq.s32.totalorder %s7119_s22, 1 }
  0x14   : > { %s8402_s25 = scalar_select %p421_p1, %s8257_s20, %s423_s23  }
  0x15   : > { %p8404_p5 = por %p434_p2, %p433_p0  ;;  %p8408_p6 = por %p440_p4, %p439_p3 }
  0x16   : > { %10844 = sst [smem:[#allocation9_spill]] %s8402_s25  ;;  %p7122_p7 = scmp.ge.s32.totalorder %s8261_s21, 1 }
  0x17   : > { %s10845_s3 = scalar_select %p8404_p5, 1, 0 }
  0x18   : > { %s10847_s26 = scalar_select %p8408_p6, 1, 0 }
  0x19   : > { %10846 = sst [smem:[#allocation10_spill]] %s10845_s3  ;;  %p543_p8 = scmp.lt.s32.totalorder %s8261_s21, 3 }
  0x1a   : > { %10848 = sst [smem:[#allocation11_spill]] %s10847_s26 }
  0x1b   : > { %p544_p9 = pnand %p7122_p7, %p543_p8 }
  0x1c   : > { %s10849_s29 = sld [smem:[#allocation14_spill]] (!%p544_p9)  ;;  %p602_p10 = scmp.lt.s32.totalorder (!%p544_p9), %s8387_s1, 1 }
  0x1d   : > { %547 = sbr.rel (%p544_p9) target bundleno = 13528 (0x34d8), region = 92  ;;  %s10850_s0 = sld [smem:[#allocation12_spill]] (!%p544_p9) }
  0x1e   : > { %s10851_s27 = sld [smem:[#allocation13_spill]] (!%p544_p9) }
  0x1f   : > { %s10852_s4 = sld [smem:[#allocation16_spill]] (!%p544_p9) }
  0x20   : > { %s10854_s5 = sld [smem:[#allocation17_spill]] (!%p544_p9) }
  0x21   : > { %s10855_s6 = sld [smem:[#allocation18_spill]] (!%p544_p9) }
  0x22   : > { %v632_v0 = vld [vmem:[%s10849_s29 + $0x78] sm:$0xff]  ;;  %v631_v1 = vld [vmem:[%s10849_s29 + $0x70] sm:$0xff]  ;;  %v630_v2 = vld [vmem:[%s10849_s29 + $0x68] sm:$0xff]  ;;  %s8437_s25 = scalar_select %p602_p10, %s8387_s1, 1  ;;  %vm644_vm0 = vcmask 523264   ;;  %vm707_vm1 = vcmask 261120  }
  0x23   : > { %654 = vmatpush.msra.mxu0 %v632_v0  ;;  %v640_v3 = vld [vmem:[%s10849_s29 + $0xb8] sm:$0xff]  ;;  %v629_v4 = vld [vmem:[%s10849_s29 + $0x60] sm:$0xff]  ;;  %v639_v5 = vld [vmem:[%s10849_s29 + $0xb0] sm:$0xff]  ;;  %vm714_vm2 = vcmask 253952   ;;  %v8263_v48 = vmov 32.0   ;;  %vm901_vm13 = vcmask 64512  }
  0x24   : > { %688 = vmatpush.msra.mxu1 %v640_v3  ;;  %v638_v6 = vld [vmem:[%s10849_s29 + $0xa8] sm:$0xff]  ;;  %v628_v7 = vld [vmem:[%s10849_s29 + $0x58] sm:$0xff]  ;;  %v637_v8 = vld [vmem:[%s10849_s29 + $0xa0] sm:$0xff]  ;;  %s7822_s20 = smul.u32 48, %s8437_s25  ;;  %7915 = vrcp.f32 %v8263_v48  ;;  %vm1032_vm14 = vcmask 1040384   ;;  %vm949_vm15 = vcmask 138240  }
  0x25   : > { %655 = vmatpush.msra.mxu0 %v631_v1  ;;  %v627_v9 = vld [vmem:[%s10849_s29 + $0x50] sm:$0xff]  ;;  %v626_v10 = vld [vmem:[%s10849_s29 + $0x48] sm:$0xff]  ;;  %v636_v11 = vld [vmem:[%s10849_s29 + $0x98] sm:$0xff]  ;;  %s7124_s23 = sshll.u32 %s8437_s25, 1  ;;  %s10856_s21 = sld [smem:[#allocation19_spill]] }
  0x26   : > { %689 = vmatpush.msra.mxu1 %v639_v5  ;;  %v635_v12 = vld [vmem:[%s10849_s29 + $0x90] sm:$0xff]  ;;  %v625_v13 = vld [vmem:[%s10849_s29 + $0x40] sm:$0xff]  ;;  %v634_v14 = vld [vmem:[%s10849_s29 + $0x88] sm:$0xff]  ;;  %s606_s26 = scalar_lea.vmem %s10850_s0, %s7822_s20  ;;  %s9785_s2 = scalar_lea.vmem %s10818_s19, %s7124_s23 }
  0x27   : > { %656 = vmatpush.msra.mxu0 %v630_v2  ;;  %v624_v15 = vld [vmem:[%s10849_s29 + $0x38] sm:$0xff]  ;;  %v633_v16 = vld [vmem:[%s10849_s29 + $0x80] sm:$0xff]  ;;  %v623_v17 = vld [vmem:[%s10849_s29 + $0x30] sm:$0xff]  ;;  %s594_s20 = sand.u32 1, %s8253_s30   ;;  %s10857_s23 = sld [smem:[#allocation20_spill]] }
  0x28   : > { %690 = vmatpush.msra.mxu1 %v638_v6  ;;  %v622_v18 = vld [vmem:[%s10849_s29 + $0x28] sm:$0xff]  ;;  %v621_v20 = vld [vmem:[%s10849_s29 + $0x20] sm:$0xff]  ;;  %v620_v21 = vld [vmem:[%s10849_s29 + $0x18] sm:$0xff]  ;;  %s595_s25 = scalar_lea.vmem [#allocation2], %s594_s20  ;;  %s7021_s28 = scalar_lea.sflag [#allocation3], %s594_s20 }
  0x29   : > { %657 = vmatpush.msra.mxu0 %v629_v4  ;;  %v612_v19 = vld [vmem:[%s606_s26 + $0x8] sm:$0xff]  ;;  %v619_v22 = vld [vmem:[%s10849_s29 + $0x10] sm:$0xff]  ;;  %v614_v23 = vld [vmem:[%s606_s26 + $0x18] sm:$0xff] }
  0x2a   : > { %691 = vmatpush.msra.mxu1 %v637_v8  ;;  %v618_v24 = vld [vmem:[%s10849_s29 + $0x8] sm:$0xff]  ;;  %v617_v25 = vld [vmem:[%s10849_s29] sm:$0xff]  ;;  %v613_v28 = vld [vmem:[%s606_s26 + $0x10] sm:$0xff]  ;;  %v7916_v49 = vpop.eup %7915 }
  0x2b   : > { %658 = vmatpush.msra.mxu0 %v628_v7  ;;  %v611_v26 = vld [vmem:[%s606_s26] sm:$0xff]  ;;  %v616_v27 = vld [vmem:[%s606_s26 + $0x28] sm:$0x1]  ;;  %v643_v42 = vld [vmem:[%s10851_s27 + $0x10] sm:$0x1]  ;;  %v719_v50 = vmul.f32 32.0, %v7916_v49  ;;  %vm723_vm3 = vweird.f32 %v7916_v49 }
  0x2c   : > { %692 = vmatpush.msra.mxu1 %v636_v11  ;;  %v615_v29 = vld [vmem:[%s606_s26 + $0x20] sm:$0x1]  ;;  %v642_v36 = vld [vmem:[%s10851_s27 + $0x8] sm:$0xff]  ;;  %v836_v6 = vld [vmem:[%s10852_s4 + $0x18] sm:$0xff]  ;;  %s10853_s26 = sld [smem:[#allocation15_spill]] }
  0x2d   : > { %659 = vmatpush.msra.mxu0 %v627_v9  ;;  %v641_v31 = vld [vmem:[%s10851_s27] sm:$0xff]  ;;  %v720_v51 = vsub.f32 1.0, %v719_v50  ;;  %7818 = vmatpush.msra.mxu3 %v836_v6  ;;  %v835_v7 = vld [vmem:[%s10852_s4 + $0x10] sm:$0xff]  ;;  %v834_v8 = vld [vmem:[%s10852_s4 + $0x8] sm:$0xff]  ;;  %s7033_s3 = scalar_lea.hbm %s10857_s23, %s8387_s1  ;;  %s8219_s1 = scalar_lea.hbm %s10857_s23, 2 }
  0x2e   : > { %693 = vmatpush.msra.mxu1 %v635_v12  ;;  %v833_v9 = vld [vmem:[%s10852_s4] sm:$0xff]  ;;  %s7037_s0 = sshll.u32 %s7033_s3, 4  ;;  %s7038_s0 = int_to_ptr.hbm [resolvable:$true] %s7037_s0 }
  0x2f   : > { %660 = vmatpush.msra.mxu0 %v626_v10  ;;  %v721_v52 = vmul.f32 %v7916_v49, %v720_v51  ;;  %7819 = vmatpush.msra.mxu3 %v835_v7  ;;  %s8213_s22 = sshra.s32 %s7038_s0, 4  ;;  %s8214_s22 = int_to_ptr.hbm [resolvable:$true] %s8213_s22 }
  0x30   : > { %694 = vmatpush.msra.mxu1 %v634_v14  ;;  %p8220_p0 = scmp.lt.s32.totalorder %s8214_s22, %s10857_s23 }
  0x31   : > { %661 = vmatpush.msra.mxu0 %v625_v13  ;;  %v722_v53 = vadd.f32 %v7916_v49, %v721_v52  ;;  %7820 = vmatpush.msra.mxu3 %v834_v8 }
  0x32   : > { %695 = vmatpush.msra.mxu1 %v633_v16  ;;  %v793_v13 = vld [vmem:[%s10853_s26 + $0x18] sm:$0xff]  ;;  %v7149_v16 = vld [vmem:[%s10853_s26 + $0x30] sm:$0xff] }
  0x33   : > { %662 = vmatpush.msra.mxu0 %v624_v15  ;;  %7125 = vmatmul.msk.f32.vlgmr.msra.gmra.mxu1 %vm644_vm0, %v612_v19  ;;  %v8518_v54 = vsel %vm723_vm3, %v7916_v49, %v722_v53  ;;  %v7150_v14 = vld [vmem:[%s10853_s26 + $0x38] sm:$0xff]  ;;  %v792_v15 = vld [vmem:[%s10853_s26 + $0x10] sm:$0xff]  ;;  %v791_v19 = vld [vmem:[%s10853_s26 + $0x8] sm:$0xff] }
  0x34   : > { %853 = vmatpush.msrb.mxu1 %v836_v6  ;;  %7821 = vmatpush.msra.mxu3 %v833_v9  ;;  %v870_v53 = vld [vmem:[%s10854_s5 + $0x18] sm:$0xff]  ;;  %v7156_v6 = vld [vmem:[%s10852_s4 + $0x28] sm:$0xff] }
  0x35   : > { %663 = vmatpush.msra.mxu0 %v623_v17  ;;  %819 = vmatpush.msra.mxu2 %v793_v13 }
  0x36   : > { %854 = vmatpush.msrb.mxu1 %v835_v7  ;;  %v7155_v7 = vld [vmem:[%s10852_s4 + $0x20] sm:$0xff] }
  0x37   : > { %664 = vmatpush.msra.mxu0 %v622_v18  ;;  %820 = vmatpush.msra.mxu2 %v792_v15 }
  0x38   : > { %855 = vmatpush.msrb.mxu1 %v834_v8 }
  0x39   : > { %665 = vmatpush.msra.mxu0 %v621_v20  ;;  %v7148_v20 = vld [vmem:[%s10853_s26 + $0x28] sm:$0xff]  ;;  %821 = vmatpush.msra.mxu2 %v791_v19  ;;  %v7165_v19 = vld [vmem:[%s10854_s5 + $0x30] sm:$0xff] }
  0x3a   : > { %856 = vmatpush.msrb.mxu1 %v833_v9  ;;  %v7867_v9 = vld [vmem:[%s10806_s7] ss:$0 sm:$0xff] }
  0x3b   : > { %666 = vmatpush.msra.mxu0 %v620_v21  ;;  %7126 = vmatmul.msk.f32.gmra.mxu1 %vm644_vm0, %v614_v23  ;;  %v790_v23 = vld [vmem:[%s10853_s26] sm:$0xff] }
  0x3c   : > { %822 = vmatpush.msra.mxu2 %v790_v23 }
  0x3d   : > { %667 = vmatpush.msra.mxu0 %v619_v22 }
  0x3e   : > { %887 = vmatpush.msrb.mxu2 %v870_v53 }
  0x3f   : > { %668 = vmatpush.msra.mxu0 %v618_v24  ;;  %v7147_v24 = vld [vmem:[%s10853_s26 + $0x20] sm:$0xff] }
  0x41   : > { %669 = vmatpush.msra.mxu0 %v617_v25 }
  0x42   : > { %670 = vmatmul.f32.vlgmr.msra.gmra.mxu0 %v611_v26 }
  0x43   : > { %7127 = vmatmul.msk.f32.gmra.mxu1 %vm644_vm0, %v616_v27  ;;  %1085 = vmatpush.msrb.mxu0 %v7150_v14  ;;  %v7869_v14 = vld [vmem:[%s10855_s6] ss:$0 sm:$0xff]  ;;  %vm956_vm0 = vcmask 131072  }
  0x45   : > { %1086 = vmatpush.msrb.mxu0 %v7149_v16 }
  0x47   : > { %1087 = vmatpush.msrb.mxu0 %v7148_v20  ;;  %v7164_v20 = vld [vmem:[%s10854_s5 + $0x28] sm:$0xff] }
  0x49   : > { %1088 = vmatpush.msrb.mxu0 %v7147_v24 }
  0x4a   : > { %673 = vmatmul.f32.gmra.mxu0 %v613_v28 }
  0x52   : > { %676 = vmatmul.f32.gmra.mxu0 %v615_v29 }
  0xb0   : > { %v697_v30 = vpop.f32.mrf.mxu1 }
  0xb8   : > { %v700_v37 = vpop.f32.mrf.mxu1 }
  0xbf   : > { %v671_v32 = vpop.f32.mrf.mxu0 }
  0xc0   : > { %v672_v33 = vadd.f32 %v671_v32, %v641_v31  ;;  %v703_v44 = vpop.f32.mrf.mxu1 }
  0xc2   : > { %v8500_v34 = vadd.f32 %v697_v30, %v672_v33  ;;  %v706_v30 = vld [vmem:[%s10811_s12] sm:$0x7f] }
  0xc4   : > { %v708_v35 = vsel %vm707_vm1, %v8500_v34, 0.0 }
  0xc5   : > { %709 = vadd.xlane.f32.xlu1 %v708_v35 }
  0xc7   : > { %v674_v38 = vpop.f32.mrf.mxu0 }
  0xc8   : > { %v675_v39 = vadd.f32 %v674_v38, %v642_v36 }
  0xca   : > { %v8507_v40 = vadd.f32 %v700_v37, %v675_v39  ;;  %v782_v37 = vperm.slane %v706_v30, 0 }
  0xcc   : > { %v711_v41 = vsel %vm707_vm1, %v8507_v40, 0.0 }
  0xcd   : > { %712 = vadd.xlane.f32.xlu0 %v711_v41  ;;  %v786_v41 = vperm.slane %v706_v30, 1 }
  0xcf   : > { %v677_v43 = vpop.f32.mrf.mxu0 }
  0xd0   : > { %v678_v45 = vadd.f32 %v677_v43, %v643_v42 }
  0xd2   : > { %v8514_v46 = vadd.f32 %v703_v44, %v678_v45 }
  0xd4   : > { %v715_v47 = vsel %vm714_vm2, %v8514_v46, 0.0 }
  0xd5   : > { %716 = vadd.xlane.f32.xlu0 %v715_v47 }
 0x138   : > { %v710_v60 = vpop.xlane.xlu1 %709 }
 0x139   : > { %v725_v63 = vmul.f32 %v8518_v54, %v710_v60 }
 0x13b   : > { %v8535_v2 = vsub.f32 %v8500_v34, %v725_v63 }
 0x13d   : > { %v731_v4 = vmul.f32 %v8535_v2, %v8535_v2 }
 0x13f   : > { %v734_v5 = vsel %vm707_vm1, %v731_v4, 0.0 }
 0x140   : > { %v713_v55 = vpop.xlane.xlu0 %712 }
 0x141   : > { %v726_v56 = vmul.f32 %v8518_v54, %v713_v55  ;;  %v869_v55 = vld [vmem:[%s10854_s5 + $0x10] sm:$0xff] }
 0x142   : > { %888 = vmatpush.msrb.mxu2 %v869_v55 }
 0x143   : > { %v8522_v57 = vsub.f32 %v8507_v40, %v726_v56 }
 0x145   : > { %v732_v58 = vmul.f32 %v8522_v57, %v8522_v57 }
 0x147   : > { %v737_v59 = vsel %vm707_vm1, %v732_v58, 0.0  ;;  %v868_v58 = vld [vmem:[%s10854_s5 + $0x8] sm:$0xff] }
 0x148   : > { %v717_v61 = vpop.xlane.xlu0 %716  ;;  %738 = vadd.xlane.f32.xlu1 %v737_v59  ;;  %889 = vmatpush.msrb.mxu2 %v868_v58 }
 0x149   : > { %v727_v62 = vmul.f32 %v8518_v54, %v717_v61  ;;  %v867_v61 = vld [vmem:[%s10854_s5] sm:$0xff] }
 0x14a   : > { %890 = vmatpush.msrb.mxu2 %v867_v61 }
 0x14b   : > { %v8530_v0 = vsub.f32 %v8514_v46, %v727_v62 }
 0x14d   : > { %v733_v1 = vmul.f32 %v8530_v0, %v8530_v0 }
 0x14f   : > { %v740_v3 = vsel %vm714_vm2, %v733_v1, 0.0 }
 0x150   : > { %741 = vadd.xlane.f32.xlu2 %v740_v3 }
 0x158   : > { %735 = vadd.xlane.f32.xlu2 %v734_v5  ;;  %v7158_v5 = vld [vmem:[%s10852_s4 + $0x38] sm:$0xff] }
 0x1bb   : > { %v739_v10 = vpop.xlane.xlu1 %738 }
 0x1bc   : > { %v744_v11 = vmul.f32 %v739_v10, %v8518_v54 }
 0x1be   : > { %v747_v12 = vadd.f32 1e-05, %v744_v11 }
 0x1c0   : > { %7917 = vrsqrt.f32 %v747_v12  ;;  %vm765_vm5 = vweird.f32 %v747_v12 }
 0x1c3   : > { %v742_v17 = vpop.xlane.xlu2 %741 }
 0x1c4   : > { %v745_v18 = vmul.f32 %v742_v17, %v8518_v54  ;;  %v7166_v17 = vld [vmem:[%s10854_s5 + $0x38] sm:$0xff] }
 0x1c6   : > { %v7918_v21 = vpop.eup %7917  ;;  %v748_v22 = vadd.f32 1e-05, %v745_v18 }
 0x1c7   : > { %v760_v25 = vmul.f32 %v7918_v21, %v747_v12  ;;  %vm766_vm4 = vweird.f32 %v7918_v21 }
 0x1c8   : > { %7919 = vrsqrt.f32 %v748_v22  ;;  %vm767_vm6 = vmor %vm765_vm5, %vm766_vm4  ;;  %vm775_vm8 = vweird.f32 %v748_v22 }
 0x1c9   : > { %v761_v26 = vmul.f32 %v7918_v21, %v760_v25 }
 0x1cb   : > { %v762_v27 = vmul.f32 0.5, %v761_v26  ;;  %v736_v28 = vpop.xlane.xlu2 %735 }
 0x1cc   : > { %v743_v29 = vmul.f32 %v736_v28, %v8518_v54  ;;  %v7870_v28 = vld [vmem:[%s10807_s8] ss:$0 sm:$0xff] }
 0x1cd   : > { %v763_v31 = vsub.f32 1.5, %v762_v27 }
 0x1ce   : > { %v7920_v32 = vpop.eup %7919  ;;  %v746_v33 = vadd.f32 1e-05, %v743_v29 }
 0x1cf   : > { %v764_v35 = vmul.f32 %v7918_v21, %v763_v31  ;;  %v770_v36 = vmul.f32 %v7920_v32, %v748_v22  ;;  %vm776_vm7 = vweird.f32 %v7920_v32  ;;  %v7163_v22 = vld [vmem:[%s10854_s5 + $0x20] sm:$0xff] }
 0x1d0   : > { %7921 = vrsqrt.f32 %v746_v33  ;;  %vm777_vm9 = vmor %vm775_vm8, %vm776_vm7  ;;  %vm755_vm11 = vweird.f32 %v746_v33 }
 0x1d1   : > { %v768_v38 = vsel %vm767_vm6, %v7918_v21, %v764_v35  ;;  %v771_v39 = vmul.f32 %v7920_v32, %v770_v36  ;;  %v7871_v36 = vld [vmem:[%s10806_s7 + $0x1] ss:$0 sm:$0xff] }
 0x1d2   : > { %v780_v42 = vmul.f32 %v768_v38, %v8522_v57 }
 0x1d3   : > { %v772_v43 = vmul.f32 0.5, %v771_v39 }
 0x1d4   : > { %v784_v44 = vmul.f32 %v782_v37, %v780_v42 }
 0x1d5   : > { %v773_v45 = vsub.f32 1.5, %v772_v43 }
 0x1d6   : > { %v7922_v47 = vpop.eup %7921  ;;  %v8584_v48 = vadd.f32 %v786_v41, %v784_v44 }
 0x1d7   : > { %v774_v49 = vmul.f32 %v7920_v32, %v773_v45  ;;  %v750_v50 = vmul.f32 %v7922_v47, %v746_v33  ;;  %vm756_vm10 = vweird.f32 %v7922_v47 }
 0x1d8   : > { %7132 = vmatmul.msk.f32.vlgmr.msra.gmra.mxu3 %vm707_vm1, %v8584_v48  ;;  %vm757_vm12 = vmor %vm755_vm11, %vm756_vm10 }
 0x1d9   : > { %v778_v51 = vsel %vm777_vm9, %v7920_v32, %v774_v49  ;;  %v751_v52 = vmul.f32 %v7922_v47, %v750_v50 }
 0x1da   : > { %v781_v56 = vmul.f32 %v778_v51, %v8530_v0 }
 0x1db   : > { %v752_v57 = vmul.f32 0.5, %v751_v52 }
 0x1dc   : > { %v785_v59 = vmul.f32 %v782_v37, %v781_v56  ;;  %v7872_v56 = vld [vmem:[%s10807_s8 + $0x1] ss:$0 sm:$0xff] }
 0x1dd   : > { %v753_v60 = vsub.f32 1.5, %v752_v57 }
 0x1de   : > { %v8601_v62 = vadd.f32 %v786_v41, %v785_v59 }
 0x1df   : > { %v754_v63 = vmul.f32 %v7922_v47, %v753_v60 }
 0x1e0   : > { %7133 = vmatmul.msk.f32.gmra.mxu3 %vm707_vm1, %v8601_v62 }
 0x1e1   : > { %v758_v0 = vsel %vm757_vm12, %v7922_v47, %v754_v63 }
 0x1e2   : > { %v779_v1 = vmul.f32 %v758_v0, %v8535_v2  ;;  %v7157_v2 = vld [vmem:[%s10852_s4 + $0x30] sm:$0xff] }
 0x1e4   : > { %v783_v3 = vmul.f32 %v782_v37, %v779_v1 }
 0x1e6   : > { %v8606_v4 = vadd.f32 %v786_v41, %v783_v3 }
 0x1e8   : > { %7128 = vmatmul.msk.f32.vlgmr.msra.gmra.mxu2 %vm707_vm1, %v8606_v4  ;;  %7131 = vmatmul.msk.f32.vlgmr.msrb.gmra.mxu1 %vm707_vm1, %v8606_v4 }
 0x1e9   : > { %7152 = vmatmul.msk.f32.vlgmr.msrb.gmra.mxu0 %vm707_vm1, %v8606_v4  ;;  %1121 = vmatpush.msra.mxu2 %v7158_v5 }
 0x1eb   : > { %1122 = vmatpush.msra.mxu2 %v7157_v2 }
 0x1ed   : > { %1123 = vmatpush.msra.mxu2 %v7156_v6 }
 0x1ef   : > { %1124 = vmatpush.msra.mxu2 %v7155_v7 }
 0x1f0   : > { %7129 = vmatmul.msk.f32.gmra.mxu2 %vm707_vm1, %v8584_v48 }
 0x1f1   : > { %7153 = vmatmul.msk.f32.gmra.mxu0 %vm707_vm1, %v8584_v48 }
 0x1f8   : > { %7130 = vmatmul.msk.f32.gmra.mxu2 %vm707_vm1, %v8601_v62 }
 0x1f9   : > { %7154 = vmatmul.msk.f32.gmra.mxu0 %vm707_vm1, %v8601_v62 }
 0x200   : > { %7134 = vmatmul.msk.f32.vlgmr.msrb.gmra.mxu2 %vm707_vm1, %v8606_v4 }
 0x208   : > { %7135 = vmatmul.msk.f32.gmra.mxu2 %vm707_vm1, %v8584_v48 }
 0x210   : > { %7136 = vmatmul.msk.f32.gmra.mxu2 %vm707_vm1, %v8601_v62 }
 0x218   : > { %7160 = vmatmul.msk.f32.vlgmr.msra.gmra.mxu2 %vm707_vm1, %v8606_v4 }
 0x220   : > { %7161 = vmatmul.msk.f32.gmra.mxu2 %vm707_vm1, %v8584_v48 }
 0x228   : > { %7162 = vmatmul.msk.f32.gmra.mxu2 %vm707_vm1, %v8601_v62 }
 0x25b   : > { %v861_v8 = vpop.f32.mrf.mxu3 }
 0x25c   : > { %v862_v12 = vadd.f32 %v7867_v9, %v861_v8 }
 0x263   : > { %v864_v10 = vpop.f32.mrf.mxu3 }
 0x264   : > { %v865_v11 = vadd.f32 %v7867_v9, %v864_v10 }
 0x265   : > { %v858_v13 = vpop.f32.mrf.mxu1 }
 0x266   : > { %7137 = vmatpush.xpose.msk.msrb.mxu3 %vm901_vm13, %v865_v11  ;;  %v859_v16 = vadd.f32 %v7867_v9, %v858_v13 }
 0x26a   : > { %7138 = vmatpush.xpose.msk.msrb.mxu3 %vm901_vm13, %v862_v12 }
 0x26b   : > { %v824_v15 = vpop.f32.mrf.mxu2 }
 0x26c   : > { %v825_v18 = vadd.f32 %v7869_v14, %v824_v15 }
 0x26e   : > { %7139 = vmatpush.xpose.msk.msrb.mxu3 %vm901_vm13, %v859_v16 }
 0x271   : > { %7140 = vmatmul.msk.f32.vlgmr.msrb.gmra.mxu3 %vm901_vm13, %v825_v18 }
 0x272   : > { %1157 = vmatpush.msra.mxu3 %v7166_v17 }
 0x273   : > { %v827_v21 = vpop.f32.mrf.mxu2 }
 0x274   : > { %1158 = vmatpush.msra.mxu3 %v7165_v19  ;;  %v828_v23 = vadd.f32 %v7869_v14, %v827_v21 }
 0x276   : > { %1159 = vmatpush.msra.mxu3 %v7164_v20 }
 0x278   : > { %1160 = vmatpush.msra.mxu3 %v7163_v22 }
 0x279   : > { %7141 = vmatmul.msk.f32.gmra.mxu3 %vm901_vm13, %v828_v23 }
 0x27b   : > { %v830_v24 = vpop.f32.mrf.mxu2 }
 0x27c   : > { %v831_v25 = vadd.f32 %v7869_v14, %v830_v24 }
 0x281   : > { %7142 = vmatmul.msk.f32.gmra.mxu3 %vm901_vm13, %v831_v25 }
 0x283   : > { %v892_v26 = vpop.f32.mrf.mxu2 }
 0x284   : > { %v893_v32 = vadd.f32 %v7870_v28, %v892_v26 }
 0x289   : > { %7168 = vmatmul.msk.f32.vlgmr.msra.gmra.mxu3 %vm707_vm1, %v8606_v4 }
 0x28b   : > { %v895_v27 = vpop.f32.mrf.mxu2 }
 0x28c   : > { %v896_v31 = vadd.f32 %v7870_v28, %v895_v27 }
 0x291   : > { %7169 = vmatmul.msk.f32.gmra.mxu3 %vm707_vm1, %v8584_v48 }
 0x293   : > { %v898_v29 = vpop.f32.mrf.mxu2 }
 0x294   : > { %v899_v30 = vadd.f32 %v7870_v28, %v898_v29 }
 0x296   : > { %7143 = vmatpush.msk.msra.mxu1 %vm1032_vm14, %v899_v30 }
 0x298   : > { %1050 = vmatpush.msra.mxu1 %v896_v31 }
 0x299   : > { %7170 = vmatmul.msk.f32.gmra.mxu3 %vm707_vm1, %v8601_v62 }
 0x29a   : > { %1051 = vmatpush.msra.mxu1 %v893_v32 }
 0x29b   : > { %v1126_v33 = vpop.f32.mrf.mxu2 }
 0x29c   : > { %v1127_v41 = vadd.f32 %v7871_v36, %v1126_v33 }
 0x2a3   : > { %v1129_v35 = vpop.f32.mrf.mxu2 }
 0x2a4   : > { %v1130_v39 = vadd.f32 %v7871_v36, %v1129_v35 }
 0x2ab   : > { %v1132_v37 = vpop.f32.mrf.mxu2 }
 0x2ac   : > { %v1133_v38 = vadd.f32 %v7871_v36, %v1132_v37 }
 0x2ae   : > { %7171 = vmatpush.xpose.msk.msrb.mxu1 %vm901_vm13, %v1133_v38 }
 0x2b2   : > { %7172 = vmatpush.xpose.msk.msrb.mxu1 %vm901_vm13, %v1130_v39 }
 0x2b6   : > { %7173 = vmatpush.xpose.msk.msrb.mxu1 %vm901_vm13, %v1127_v41 }
 0x2f4   : > { %v937_v42 = vpop.f32.mrf.mxu3 }
 0x2f5   : > { %v946_v43 = vmul.f32 0.35355338, %v937_v42 }
 0x2f7   : > { %v950_v44 = vsel %vm949_vm15, %v946_v43, -inf }
 0x2f8   : > { %951 = vmax.xlane.f32.xlu0 %v950_v44 }
 0x2fc   : > { %v940_v45 = vpop.f32.mrf.mxu3 }
 0x2fd   : > { %v947_v47 = vmul.f32 0.35355338, %v940_v45 }
 0x2ff   : > { %v953_v49 = vsel %vm949_vm15, %v947_v47, -inf }
 0x300   : > { %954 = vmax.xlane.f32.xlu1 %v953_v49  ;;  %v7191_v49 = vld [vmem:[%s10853_s26 + $0x58] sm:$0xff] }
 0x304   : > { %v943_v50 = vpop.f32.mrf.mxu3 }
 0x305   : > { %v948_v51 = vmul.f32 0.35355338, %v943_v50  ;;  %v7190_v50 = vld [vmem:[%s10853_s26 + $0x50] sm:$0xff] }
 0x307   : > { %v957_v52 = vsel %vm956_vm0, %v948_v51, -inf }
 0x308   : > { %958 = vmax.xlane.f32.xlu2 %v957_v52  ;;  %v7189_v52 = vld [vmem:[%s10853_s26 + $0x48] sm:$0xff] }
 0x30c   : > { %v1162_v53 = vpop.f32.mrf.mxu3 }
 0x30d   : > { %v1163_v60 = vadd.f32 %v7872_v56, %v1162_v53 }
 0x314   : > { %v1165_v55 = vpop.f32.mrf.mxu3 }
 0x315   : > { %v1166_v59 = vadd.f32 %v7872_v56, %v1165_v55 }
 0x31c   : > { %v1168_v57 = vpop.f32.mrf.mxu3 }
 0x31d   : > { %v1169_v58 = vadd.f32 %v7872_v56, %v1168_v57  ;;  %v7188_v56 = vld [vmem:[%s10853_s26 + $0x40] sm:$0xff] }
 0x31f   : > { %7177 = vmatpush.msk.msra.mxu0 %vm1032_vm14, %v1169_v58 }
 0x321   : > { %1316 = vmatpush.msra.mxu0 %v1166_v59  ;;  %v1090_v59 = vpop.f32.mrf.mxu0 }
 0x323   : > { %1317 = vmatpush.msra.mxu0 %v1163_v60  ;;  %v7868_v60 = vld [vmem:[%s10855_s6 + $0x1] ss:$0 sm:$0xff] }
 0x36b   : > { %v952_v61 = vpop.xlane.xlu0 %951 }
 0x36c   : > { %v960_v63 = vsub.f32 %v946_v43, %v952_v61  ;;  %v1091_v61 = vadd.f32 %v7868_v60, %v1090_v59 }
 0x36e   : > { %v963_v0 = vmul.f32 1.442695, %v960_v63  ;;  %v1093_v63 = vpop.f32.mrf.mxu0 }
 0x370   : > { %7923 = vpow2.f32 %v963_v0  ;;  %v1094_v0 = vadd.f32 %v7868_v60, %v1093_v63 }
 0x373   : > { %v955_v1 = vpop.xlane.xlu1 %954 }
 0x374   : > { %v961_v3 = vsub.f32 %v947_v47, %v955_v1 }
 0x376   : > { %v7924_v5 = vpop.eup %7923  ;;  %v965_v2 = vmul.f32 1.442695, %v961_v3  ;;  %v1096_v1 = vpop.f32.mrf.mxu0 }
 0x377   : > { %v969_v6 = vsel %vm949_vm15, %v7924_v5, 0.0  ;;  %v1097_v3 = vadd.f32 %v7868_v60, %v1096_v1 }
 0x378   : > { %7925 = vpow2.f32 %v965_v2  ;;  %970 = vadd.xlane.f32.xlu0 %v969_v6 }
 0x37b   : > { %v959_v7 = vpop.xlane.xlu2 %958 }
 0x37c   : > { %v962_v8 = vsub.f32 %v948_v51, %v959_v7 }
 0x37e   : > { %v7926_v9 = vpop.eup %7925  ;;  %v967_v10 = vmul.f32 1.442695, %v962_v8 }
 0x37f   : > { %v972_v11 = vsel %vm949_vm15, %v7926_v9, 0.0 }
 0x380   : > { %7927 = vpow2.f32 %v967_v10  ;;  %973 = vadd.xlane.f32.xlu1 %v972_v11 }
 0x386   : > { %v7928_v12 = vpop.eup %7927 }
 0x387   : > { %v975_v13 = vsel %vm956_vm0, %v7928_v12, 0.0 }
 0x388   : > { %976 = vadd.xlane.f32.xlu2 %v975_v13 }
 0x3eb   : > { %v971_v14 = vpop.xlane.xlu0 %970 }
 0x3ec   : > { %7929 = vrcp.f32 %v971_v14  ;;  %v989_v19 = vand.u32 2147483648, %v971_v14  ;;  %v987_v21 = vand.u32 2147483647, %v971_v14  ;;  %vm983_vm4 = vweird.f32 %v971_v14 }
 0x3ee   : > { %v990_v24 = vor.u32 1.1754944e-38, %v989_v19  ;;  %vm988_vm6 = vcmp.eq.f32.partialorder %v987_v21, 8.507059e+37 }
 0x3f2   : > { %v7930_v15 = vpop.eup %7929 }
 0x3f3   : > { %v979_v16 = vmul.f32 %v7930_v15, %v971_v14  ;;  %v974_v17 = vpop.xlane.xlu1 %973  ;;  %vm984_vm3 = vweird.f32 %v7930_v15 }
 0x3f4   : > { %7931 = vrcp.f32 %v974_v17  ;;  %vm985_vm5 = vmor %vm983_vm4, %vm984_vm3  ;;  %v1004_v31 = vand.u32 2147483648, %v974_v17  ;;  %v1002_v33 = vand.u32 2147483647, %v974_v17  ;;  %vm998_vm8 = vweird.f32 %v974_v17 }
 0x3f5   : > { %v980_v18 = vsub.f32 1.0, %v979_v16 }
 0x3f6   : > { %v1005_v37 = vor.u32 1.1754944e-38, %v1004_v31  ;;  %vm1003_vm10 = vcmp.eq.f32.partialorder %v1002_v33, 8.507059e+37 }
 0x3f7   : > { %v981_v20 = vmul.f32 %v7930_v15, %v980_v18 }
 0x3f9   : > { %v982_v22 = vadd.f32 %v7930_v15, %v981_v20 }
 0x3fa   : > { %v7932_v23 = vpop.eup %7931 }
 0x3fb   : > { %v986_v25 = vsel %vm985_vm5, %v7930_v15, %v982_v22  ;;  %v994_v26 = vmul.f32 %v7932_v23, %v974_v17  ;;  %v977_v27 = vpop.xlane.xlu2 %976  ;;  %vm999_vm7 = vweird.f32 %v7932_v23 }
 0x3fc   : > { %v991_v28 = vsel %vm988_vm6, %v990_v24, %v986_v25  ;;  %7933 = vrcp.f32 %v977_v27  ;;  %vm1000_vm9 = vmor %vm998_vm8, %vm999_vm7  ;;  %v1019_v44 = vand.u32 2147483648, %v977_v27  ;;  %v1017_v47 = vand.u32 2147483647, %v977_v27 }
 0x3fd   : > { %v995_v29 = vsub.f32 1.0, %v994_v26  ;;  %v992_v30 = vmul.f32 %v7924_v5, %v991_v28  ;;  %vm1013_vm12 = vweird.f32 %v977_v27  ;;  %v1062_v5 = vld [vmem:[%s10808_s9] sm:$0xff] }
 0x3fe   : > { %v1020_v53 = vor.u32 1.1754944e-38, %v1019_v44  ;;  %vm1018_vm4 = vcmp.eq.f32.partialorder %v1017_v47, 8.507059e+37  ;;  %1389 = vmatpush.msrb.mxu3 %v1062_v5 }
 0x3ff   : > { %v996_v32 = vmul.f32 %v7932_v23, %v995_v29  ;;  %7144 = vmatmul.msk.f32.vlgmr.msra.gmra.mxu1 %vm949_vm15, %v992_v30 }
 0x400   : > { %1422 = vmatpush.msra.mxu1 %v7191_v49 }
 0x401   : > { %v997_v35 = vadd.f32 %v7932_v23, %v996_v32  ;;  %v7199_v32 = vld [vmem:[%s10852_s4 + $0x58] sm:$0xff] }
 0x402   : > { %v7934_v36 = vpop.eup %7933  ;;  %1423 = vmatpush.msra.mxu1 %v7190_v50  ;;  %1458 = vmatpush.msrb.mxu0 %v7199_v32 }
 0x403   : > { %v1009_v38 = vmul.f32 %v7934_v36, %v977_v27  ;;  %v1001_v39 = vsel %vm1000_vm9, %v7932_v23, %v997_v35  ;;  %vm1014_vm11 = vweird.f32 %v7934_v36  ;;  %v7198_v35 = vld [vmem:[%s10852_s4 + $0x50] sm:$0xff] }
 0x404   : > { %v1006_v41 = vsel %vm1003_vm10, %v1005_v37, %v1001_v39  ;;  %vm1015_vm3 = vmor %vm1013_vm12, %vm1014_vm11  ;;  %1424 = vmatpush.msra.mxu1 %v7189_v52  ;;  %1459 = vmatpush.msrb.mxu0 %v7198_v35  ;;  %v7196_v37 = vld [vmem:[%s10852_s4 + $0x40] sm:$0xff] }
 0x405   : > { %v1010_v42 = vsub.f32 1.0, %v1009_v38  ;;  %v1007_v43 = vmul.f32 %v7926_v9, %v1006_v41  ;;  %v7873_v35 = vld [vmem:[%s10855_s6 + $0x2] ss:$0 sm:$0xff] }
 0x406   : > { %1425 = vmatpush.msra.mxu1 %v7188_v56 }
 0x407   : > { %7145 = vmatmul.msk.f32.gmra.mxu1 %vm949_vm15, %v1007_v43  ;;  %v1011_v45 = vmul.f32 %v7934_v36, %v1010_v42 }
 0x409   : > { %v1012_v51 = vadd.f32 %v7934_v36, %v1011_v45 }
 0x40b   : > { %v1016_v55 = vsel %vm1015_vm3, %v7934_v36, %v1012_v51  ;;  %v7197_v36 = vld [vmem:[%s10852_s4 + $0x48] sm:$0xff] }
 0x40c   : > { %v1021_v57 = vsel %vm1018_vm4, %v1020_v53, %v1016_v55  ;;  %1460 = vmatpush.msrb.mxu0 %v7197_v36 }
 0x40d   : > { %v1022_v58 = vmul.f32 %v7928_v12, %v1021_v57 }
 0x40e   : > { %1461 = vmatpush.msrb.mxu0 %v7196_v37  ;;  %v7237_v37 = vld [vmem:[%s10852_s4 + $0x78] sm:$0xff] }
 0x40f   : > { %7146 = vmatmul.msk.f32.gmra.mxu1 %vm949_vm15, %v1022_v58 }
 0x417   : > { %7174 = vmatmul.msk.f32.vlgmr.msrb.gmra.mxu1 %vm901_vm13, %v1091_v61 }
 0x41f   : > { %7175 = vmatmul.msk.f32.gmra.mxu1 %vm901_vm13, %v1094_v0 }
 0x427   : > { %7176 = vmatmul.msk.f32.gmra.mxu1 %vm901_vm13, %v1097_v3 }
 0x42f   : > { %7193 = vmatmul.msk.f32.vlgmr.msra.gmra.mxu1 %vm707_vm1, %v8606_v4 }
 0x437   : > { %7194 = vmatmul.msk.f32.gmra.mxu1 %vm707_vm1, %v8584_v48 }
 0x43f   : > { %7195 = vmatmul.msk.f32.gmra.mxu1 %vm707_vm1, %v8601_v62 }
 0x47c   : > { %v1053_v2 = vpop.f32.mrf.mxu1 }
 0x47d   : > { %7185 = vmatmul.msk.f32.vlgmr.msrb.gmra.mxu3 %vm901_vm13, %v1053_v2 }
 0x484   : > { %v1056_v6 = vpop.f32.mrf.mxu1 }
 0x485   : > { %7186 = vmatmul.msk.f32.gmra.mxu3 %vm901_vm13, %v1056_v6 }
 0x48c   : > { %v1059_v7 = vpop.f32.mrf.mxu1 }
 0x48d   : > { %7187 = vmatmul.msk.f32.gmra.mxu3 %vm901_vm13, %v1059_v7 }
 0x494   : > { %v1206_v8 = vpop.f32.mrf.mxu1 }
 0x495   : > { %v1215_v9 = vmul.f32 0.35355338, %v1206_v8 }
 0x497   : > { %v1218_v10 = vsel %vm949_vm15, %v1215_v9, -inf }
 0x498   : > { %1219 = vmax.xlane.f32.xlu0 %v1218_v10 }
 0x49c   : > { %v1209_v11 = vpop.f32.mrf.mxu1 }
 0x49d   : > { %v1216_v12 = vmul.f32 0.35355338, %v1209_v11 }
 0x49f   : > { %v1221_v13 = vsel %vm949_vm15, %v1216_v12, -inf }
 0x4a0   : > { %1222 = vmax.xlane.f32.xlu1 %v1221_v13 }
 0x4a4   : > { %v1212_v14 = vpop.f32.mrf.mxu1 }
 0x4a5   : > { %v1217_v15 = vmul.f32 0.35355338, %v1212_v14 }
 0x4a7   : > { %v1224_v16 = vsel %vm956_vm0, %v1217_v15, -inf }
 0x4a8   : > { %1225 = vmax.xlane.f32.xlu2 %v1224_v16  ;;  %v7207_v16 = vld [vmem:[%s10854_s5 + $0x58] sm:$0xff] }
 0x4ac   : > { %v1427_v32 = vpop.f32.mrf.mxu1 }
 0x50b   : > { %v1220_v17 = vpop.xlane.xlu0 %1219 }
 0x50c   : > { %v1227_v18 = vsub.f32 %v1215_v9, %v1220_v17  ;;  %v7206_v17 = vld [vmem:[%s10854_s5 + $0x50] sm:$0xff] }
 0x50e   : > { %v1230_v19 = vmul.f32 1.442695, %v1227_v18  ;;  %v7205_v18 = vld [vmem:[%s10854_s5 + $0x48] sm:$0xff] }
 0x510   : > { %7935 = vpow2.f32 %v1230_v19  ;;  %v7204_v19 = vld [vmem:[%s10854_s5 + $0x40] sm:$0xff] }
 0x513   : > { %v1223_v20 = vpop.xlane.xlu1 %1222 }
 0x514   : > { %v1228_v21 = vsub.f32 %v1216_v12, %v1223_v20 }
 0x516   : > { %v7936_v22 = vpop.eup %7935  ;;  %v1232_v23 = vmul.f32 1.442695, %v1228_v21 }
 0x517   : > { %v1236_v24 = vsel %vm949_vm15, %v7936_v22, 0.0 }
 0x518   : > { %7937 = vpow2.f32 %v1232_v23  ;;  %1237 = vadd.xlane.f32.xlu0 %v1236_v24  ;;  %v7228_v23 = vld [vmem:[%s10853_s26 + $0x70] sm:$0xff]  ;;  %v7227_v24 = vld [vmem:[%s10853_s26 + $0x68] sm:$0xff] }
 0x51b   : > { %v1226_v25 = vpop.xlane.xlu2 %1225 }
 0x51c   : > { %v1229_v26 = vsub.f32 %v1217_v15, %v1226_v25  ;;  %v7181_v15 = vld [vmem:[%s10808_s9 + $0x8] sm:$0xff]  ;;  %v7226_v25 = vld [vmem:[%s10853_s26 + $0x60] sm:$0xff] }
 0x51d   : > { %1354 = vmatpush.msrb.mxu2 %v7181_v15 }
 0x51e   : > { %v7938_v27 = vpop.eup %7937  ;;  %v1234_v28 = vmul.f32 1.442695, %v1229_v26 }
 0x51f   : > { %v1239_v29 = vsel %vm949_vm15, %v7938_v27, 0.0  ;;  %1494 = vmatpush.msra.mxu2 %v7207_v16 }
 0x520   : > { %7939 = vpow2.f32 %v1234_v28  ;;  %1240 = vadd.xlane.f32.xlu1 %v1239_v29  ;;  %v7874_v29 = vld [vmem:[%s10806_s7 + $0x2] ss:$0 sm:$0xff] }
 0x521   : > { %1495 = vmatpush.msra.mxu2 %v7206_v17 }
 0x523   : > { %1496 = vmatpush.msra.mxu2 %v7205_v18 }
 0x525   : > { %1497 = vmatpush.msra.mxu2 %v7204_v19 }
 0x526   : > { %v8734_v30 = vpop.eup %7939 }
 0x527   : > { %v1242_v31 = vsel %vm956_vm0, %v8734_v30, 0.0 }
 0x528   : > { %1243 = vadd.xlane.f32.xlu2 %v1242_v31 }
 0x58b   : > { %v1238_v33 = vpop.xlane.xlu0 %1237 }
 0x58c   : > { %7941 = vrcp.f32 %v1238_v33  ;;  %v1256_v43 = vand.u32 2147483648, %v1238_v33  ;;  %v1254_v45 = vand.u32 2147483647, %v1238_v33  ;;  %vm1250_vm6 = vweird.f32 %v1238_v33 }
 0x58e   : > { %v1257_v50 = vor.u32 1.1754944e-38, %v1256_v43  ;;  %vm1255_vm8 = vcmp.eq.f32.partialorder %v1254_v45, 8.507059e+37  ;;  %v7234_v43 = vld [vmem:[%s10852_s4 + $0x60] sm:$0xff] }
 0x592   : > { %v7942_v38 = vpop.eup %7941 }
 0x593   : > { %v1246_v39 = vmul.f32 %v7942_v38, %v1238_v33  ;;  %v1241_v41 = vpop.xlane.xlu1 %1240  ;;  %vm1251_vm5 = vweird.f32 %v7942_v38 }
 0x594   : > { %7943 = vrcp.f32 %v1241_v41  ;;  %vm1252_vm7 = vmor %vm1250_vm6, %vm1251_vm5  ;;  %v1271_v58 = vand.u32 2147483648, %v1241_v41  ;;  %v1269_v60 = vand.u32 2147483647, %v1241_v41  ;;  %vm1265_vm10 = vweird.f32 %v1241_v41 }
 0x595   : > { %v1247_v42 = vsub.f32 1.0, %v1246_v39  ;;  %v7236_v39 = vld [vmem:[%s10852_s4 + $0x70] sm:$0xff] }
 0x596   : > { %v1272_v0 = vor.u32 1.1754944e-38, %v1271_v58  ;;  %vm1270_vm12 = vcmp.eq.f32.partialorder %v1269_v60, 8.507059e+37 }
 0x597   : > { %v1248_v44 = vmul.f32 %v7942_v38, %v1247_v42  ;;  %v1430_v42 = vpop.f32.mrf.mxu1 }
 0x599   : > { %v1249_v47 = vadd.f32 %v7942_v38, %v1248_v44  ;;  %v1431_v44 = vadd.f32 %v7873_v35, %v1430_v42  ;;  %v7242_v42 = vld [vmem:[%s10854_s5 + $0x60] sm:$0xff] }
 0x59a   : > { %v7944_v49 = vpop.eup %7943 }
 0x59b   : > { %v1253_v51 = vsel %vm1252_vm7, %v7942_v38, %v1249_v47  ;;  %v1261_v52 = vmul.f32 %v7944_v49, %v1241_v41  ;;  %v1244_v53 = vpop.xlane.xlu2 %1243  ;;  %vm1266_vm9 = vweird.f32 %v7944_v49  ;;  %v1428_v38 = vadd.f32 %v7873_v35, %v1427_v32  ;;  %v7235_v41 = vld [vmem:[%s10852_s4 + $0x68] sm:$0xff] }
 0x59c   : > { %v1258_v55 = vsel %vm1255_vm8, %v1257_v50, %v1253_v51  ;;  %7945 = vrcp.f32 %v1244_v53  ;;  %vm1267_vm11 = vmor %vm1265_vm10, %vm1266_vm9  ;;  %v1286_v7 = vand.u32 2147483648, %v1244_v53  ;;  %v1284_v9 = vand.u32 2147483647, %v1244_v53 }
 0x59d   : > { %v1262_v56 = vsub.f32 1.0, %v1261_v52  ;;  %v1259_v57 = vmul.f32 %v7936_v22, %v1258_v55  ;;  %vm1280_vm4 = vweird.f32 %v1244_v53  ;;  %v7229_v22 = vld [vmem:[%s10853_s26 + $0x78] sm:$0xff] }
 0x59e   : > { %v1287_v11 = vor.u32 1.1754944e-38, %v1286_v7  ;;  %vm1285_vm6 = vcmp.eq.f32.partialorder %v1284_v9, 8.507059e+37 }
 0x59f   : > { %v1263_v59 = vmul.f32 %v7944_v49, %v1262_v56  ;;  %7178 = vmatmul.msk.f32.vlgmr.msra.gmra.mxu0 %vm949_vm15, %v1259_v57  ;;  %v1433_v45 = vpop.f32.mrf.mxu1  ;;  %v7875_v57 = vld [vmem:[%s10807_s8 + $0x2] ss:$0 sm:$0xff] }
 0x5a0   : > { %v1434_v47 = vadd.f32 %v7873_v35, %v1433_v45  ;;  %v7245_v35 = vld [vmem:[%s10854_s5 + $0x78] sm:$0xff] }
 0x5a1   : > { %v1264_v61 = vadd.f32 %v7944_v49, %v1263_v59 }
 0x5a2   : > { %v7946_v63 = vpop.eup %7945 }
 0x5a3   : > { %v1276_v1 = vmul.f32 %v7946_v63, %v1244_v53  ;;  %v1268_v3 = vsel %vm1267_vm11, %v7944_v49, %v1264_v61  ;;  %vm1281_vm3 = vweird.f32 %v7946_v63  ;;  %v8838_v53 = vpop.f32.mrf.mxu3 }
 0x5a4   : > { %v1273_v5 = vsel %vm1270_vm12, %v1272_v0, %v1268_v3  ;;  %vm1282_vm5 = vmor %vm1280_vm4, %vm1281_vm3 }
 0x5a5   : > { %v1277_v2 = vsub.f32 1.0, %v1276_v1  ;;  %v1274_v6 = vmul.f32 %v7938_v27, %v1273_v5 }
 0x5a7   : > { %v1278_v8 = vmul.f32 %v7946_v63, %v1277_v2  ;;  %7179 = vmatmul.msk.f32.gmra.mxu0 %vm949_vm15, %v1274_v6  ;;  %v7222_v6 = vld [vmem:[%s10808_s9 + $0x10] sm:$0xff] }
 0x5a8   : > { %1691 = vmatpush.msra.mxu0 %v7222_v6 }
 0x5a9   : > { %v1279_v10 = vadd.f32 %v7946_v63, %v1278_v8 }
 0x5ab   : > { %v1283_v12 = vsel %vm1282_vm5, %v7946_v63, %v1279_v10  ;;  %v8840_v56 = vpop.f32.mrf.mxu3 }
 0x5ac   : > { %v1288_v13 = vsel %vm1285_vm6, %v1287_v11, %v1283_v12 }
 0x5ad   : > { %v1289_v14 = vmul.f32 %v8734_v30, %v1288_v13  ;;  %v7877_v13 = vld [vmem:[%s10806_s7 + $0x3] ss:$0 sm:$0xff] }
 0x5af   : > { %7180 = vmatmul.msk.f32.gmra.mxu0 %vm949_vm15, %v1289_v14 }
 0x5b3   : > { %v8846_v61 = vpop.f32.mrf.mxu3 }
 0x5b7   : > { %7201 = vmatmul.msk.f32.vlgmr.msrb.gmra.mxu0 %vm707_vm1, %v8606_v4 }
 0x5bf   : > { %7202 = vmatmul.msk.f32.gmra.mxu0 %vm707_vm1, %v8584_v48 }
 0x5c7   : > { %7203 = vmatmul.msk.f32.gmra.mxu0 %vm707_vm1, %v8601_v62 }
 0x61c   : > { %v1319_v20 = vpop.f32.mrf.mxu0 }
 0x61d   : > { %7182 = vmatmul.msk.f32.vlgmr.msrb.gmra.mxu2 %vm901_vm13, %v1319_v20 }
 0x61e   : > { %1727 = vmatpush.msrb.mxu2 %v7229_v22 }
 0x620   : > { %1728 = vmatpush.msrb.mxu2 %v7228_v23 }
 0x622   : > { %1729 = vmatpush.msrb.mxu2 %v7227_v24 }
 0x624   : > { %v1322_v21 = vpop.f32.mrf.mxu0  ;;  %1730 = vmatpush.msrb.mxu2 %v7226_v25 }
 0x625   : > { %7183 = vmatmul.msk.f32.gmra.mxu2 %vm901_vm13, %v1322_v21 }
 0x62c   : > { %v1325_v26 = vpop.f32.mrf.mxu0 }
 0x62d   : > { %7184 = vmatmul.msk.f32.gmra.mxu2 %vm901_vm13, %v1325_v26 }
 0x634   : > { %v1463_v27 = vpop.f32.mrf.mxu0 }
 0x635   : > { %7209 = vmatmul.msk.f32.vlgmr.msra.gmra.mxu2 %vm707_vm1, %v8606_v4  ;;  %v1464_v36 = vadd.f32 %v7874_v29, %v1463_v27 }
 0x63c   : > { %v1466_v28 = vpop.f32.mrf.mxu0 }
 0x63d   : > { %7210 = vmatmul.msk.f32.gmra.mxu2 %vm707_vm1, %v8584_v48  ;;  %v1467_v33 = vadd.f32 %v7874_v29, %v1466_v28 }
 0x644   : > { %v1469_v30 = vpop.f32.mrf.mxu0 }
 0x645   : > { %v1470_v31 = vadd.f32 %v7874_v29, %v1469_v30  ;;  %7211 = vmatmul.msk.f32.gmra.mxu2 %vm707_vm1, %v8601_v62 }
 0x647   : > { %7212 = vmatpush.xpose.msk.msra.mxu3 %vm901_vm13, %v1470_v31 }
 0x64b   : > { %7213 = vmatpush.xpose.msk.msra.mxu3 %vm901_vm13, %v1467_v33 }
 0x64d   : > { %7231 = vmatmul.msk.f32.vlgmr.msrb.gmra.mxu2 %vm707_vm1, %v8606_v4 }
 0x64f   : > { %7214 = vmatpush.xpose.msk.msra.mxu3 %vm901_vm13, %v1464_v36  ;;  %v7244_v36 = vld [vmem:[%s10854_s5 + $0x70] sm:$0xff] }
 0x652   : > { %7215 = vmatmul.msk.f32.vlgmr.msra.gmra.mxu3 %vm901_vm13, %v1428_v38 }
 0x653   : > { %1763 = vmatpush.msrb.mxu3 %v7237_v37  ;;  %v7243_v37 = vld [vmem:[%s10854_s5 + $0x68] sm:$0xff] }
 0x655   : > { %1764 = vmatpush.msrb.mxu3 %v7236_v39  ;;  %7232 = vmatmul.msk.f32.gmra.mxu2 %vm707_vm1, %v8584_v48 }
 0x657   : > { %1765 = vmatpush.msrb.mxu3 %v7235_v41 }
 0x659   : > { %1766 = vmatpush.msrb.mxu3 %v7234_v43 }
 0x65a   : > { %7216 = vmatmul.msk.f32.gmra.mxu3 %vm901_vm13, %v1431_v44 }
 0x65d   : > { %7233 = vmatmul.msk.f32.gmra.mxu2 %vm707_vm1, %v8601_v62 }
 0x662   : > { %7217 = vmatmul.msk.f32.gmra.mxu3 %vm901_vm13, %v1434_v47 }
 0x66a   : > { %7239 = vmatmul.msk.f32.vlgmr.msrb.gmra.mxu3 %vm707_vm1, %v8606_v4 }
 0x672   : > { %7240 = vmatmul.msk.f32.gmra.mxu3 %vm707_vm1, %v8584_v48 }
 0x67a   : > { %7241 = vmatmul.msk.f32.gmra.mxu3 %vm707_vm1, %v8601_v62 }
 0x6a0   : > { %v8832_v49 = vpop.f32.mrf.mxu2 }
 0x6a8   : > { %v8834_v50 = vpop.f32.mrf.mxu2 }
 0x6b0   : > { %v8836_v51 = vpop.f32.mrf.mxu2 }
 0x6b8   : > { %v1499_v52 = vpop.f32.mrf.mxu2 }
 0x6b9   : > { %v1500_v63 = vadd.f32 %v7875_v57, %v1499_v52 }
 0x6c0   : > { %v1502_v55 = vpop.f32.mrf.mxu2 }
 0x6c1   : > { %v1503_v60 = vadd.f32 %v7875_v57, %v1502_v55 }
 0x6c8   : > { %v1505_v58 = vpop.f32.mrf.mxu2 }
 0x6c9   : > { %v1506_v59 = vadd.f32 %v7875_v57, %v1505_v58 }
 0x6cb   : > { %7218 = vmatpush.msk.msrb.mxu1 %vm1032_vm14, %v1506_v59 }
 0x6cd   : > { %1653 = vmatpush.msrb.mxu1 %v1503_v60 }
 0x6cf   : > { %1654 = vmatpush.msrb.mxu1 %v1500_v63 }
 0x6d1   : > { %1799 = vmatpush.msra.mxu1 %v7245_v35 }
 0x6d3   : > { %1800 = vmatpush.msra.mxu1 %v7244_v36 }
 0x6d5   : > { %v1543_v0 = vpop.f32.mrf.mxu3  ;;  %1801 = vmatpush.msra.mxu1 %v7243_v37 }
 0x6d6   : > { %v1552_v1 = vmul.f32 0.35355338, %v1543_v0 }
 0x6d7   : > { %1802 = vmatpush.msra.mxu1 %v7242_v42 }
 0x6d8   : > { %v1555_v3 = vsel %vm949_vm15, %v1552_v1, -inf }
 0x6d9   : > { %1556 = vmax.xlane.f32.xlu0 %v1555_v3 }
 0x6dd   : > { %v1546_v5 = vpop.f32.mrf.mxu3 }
 0x6de   : > { %v1553_v2 = vmul.f32 0.35355338, %v1546_v5 }
 0x6e0   : > { %v1558_v7 = vsel %vm949_vm15, %v1553_v2, -inf }
 0x6e1   : > { %1559 = vmax.xlane.f32.xlu1 %v1558_v7 }
 0x6e5   : > { %v1549_v8 = vpop.f32.mrf.mxu3 }
 0x6e6   : > { %v1554_v9 = vmul.f32 0.35355338, %v1549_v8 }
 0x6e8   : > { %v1561_v10 = vsel %vm956_vm0, %v1554_v9, -inf }
 0x6e9   : > { %1562 = vmax.xlane.f32.xlu2 %v1561_v10 }
 0x6ed   : > { %v1768_v11 = vpop.f32.mrf.mxu3 }
 0x6ee   : > { %v1769_v17 = vadd.f32 %v7877_v13, %v1768_v11 }
 0x6f5   : > { %v1771_v12 = vpop.f32.mrf.mxu3 }
 0x6f6   : > { %v1772_v16 = vadd.f32 %v7877_v13, %v1771_v12 }
 0x6fd   : > { %v1774_v14 = vpop.f32.mrf.mxu3 }
 0x6fe   : > { %v1775_v15 = vadd.f32 %v7877_v13, %v1774_v14 }
 0x700   : > { %7250 = vmatpush.xpose.msk.msrb.mxu0 %vm901_vm13, %v1775_v15 }
 0x704   : > { %7251 = vmatpush.xpose.msk.msrb.mxu0 %vm901_vm13, %v1772_v16 }
 0x708   : > { %7252 = vmatpush.xpose.msk.msrb.mxu0 %vm901_vm13, %v1769_v17 }
 0x74c   : > { %v1557_v18 = vpop.xlane.xlu0 %1556 }
 0x74d   : > { %v1564_v19 = vsub.f32 %v1552_v1, %v1557_v18 }
 0x74f   : > { %v1567_v20 = vmul.f32 1.442695, %v1564_v19 }
 0x751   : > { %7947 = vpow2.f32 %v1567_v20 }
 0x754   : > { %v1560_v21 = vpop.xlane.xlu1 %1559 }
 0x755   : > { %v1565_v22 = vsub.f32 %v1553_v2, %v1560_v21 }
 0x757   : > { %v7948_v23 = vpop.eup %7947  ;;  %v1569_v24 = vmul.f32 1.442695, %v1565_v22 }
 0x758   : > { %v1573_v25 = vsel %vm949_vm15, %v7948_v23, 0.0 }
 0x759   : > { %7949 = vpow2.f32 %v1569_v24  ;;  %1574 = vadd.xlane.f32.xlu0 %v1573_v25  ;;  %v1732_v24 = vpop.f32.mrf.mxu2 }
 0x75c   : > { %v1563_v26 = vpop.xlane.xlu2 %1562 }
 0x75d   : > { %v1566_v27 = vsub.f32 %v1554_v9, %v1563_v26 }
 0x75f   : > { %v7950_v28 = vpop.eup %7949  ;;  %v1571_v29 = vmul.f32 1.442695, %v1566_v27 }
 0x760   : > { %v1576_v30 = vsel %vm949_vm15, %v7950_v28, 0.0 }
 0x761   : > { %7951 = vpow2.f32 %v1571_v29  ;;  %1577 = vadd.xlane.f32.xlu1 %v1576_v30 }
 0x767   : > { %v8862_v31 = vpop.eup %7951 }
 0x768   : > { %v1579_v32 = vsel %vm956_vm0, %v8862_v31, 0.0 }
 0x769   : > { %1580 = vadd.xlane.f32.xlu2 %v1579_v32 }
 0x7cc   : > { %v1575_v33 = vpop.xlane.xlu0 %1574 }
 0x7cd   : > { %7953 = vrcp.f32 %v1575_v33  ;;  %v1593_v44 = vand.u32 2147483648, %v1575_v33  ;;  %v1591_v47 = vand.u32 2147483647, %v1575_v33  ;;  %vm1587_vm8 = vweird.f32 %v1575_v33 }
 0x7cf   : > { %v1594_v57 = vor.u32 1.1754944e-38, %v1593_v44  ;;  %vm1592_vm10 = vcmp.eq.f32.partialorder %v1591_v47, 8.507059e+37 }
 0x7d3   : > { %v7954_v38 = vpop.eup %7953 }
 0x7d4   : > { %v1583_v39 = vmul.f32 %v7954_v38, %v1575_v33  ;;  %v1578_v41 = vpop.xlane.xlu1 %1577  ;;  %vm1588_vm7 = vweird.f32 %v7954_v38 }
 0x7d5   : > { %7955 = vrcp.f32 %v1578_v41  ;;  %vm1589_vm9 = vmor %vm1587_vm8, %vm1588_vm7  ;;  %v1608_v3 = vand.u32 2147483648, %v1578_v41  ;;  %v1606_v2 = vand.u32 2147483647, %v1578_v41  ;;  %vm1602_vm12 = vweird.f32 %v1578_v41 }
 0x7d6   : > { %v1584_v43 = vsub.f32 1.0, %v1583_v39 }
 0x7d7   : > { %v1609_v8 = vor.u32 1.1754944e-38, %v1608_v3  ;;  %vm1607_vm4 = vcmp.eq.f32.partialorder %v1606_v2, 8.507059e+37 }
 0x7d8   : > { %v1585_v45 = vmul.f32 %v7954_v38, %v1584_v43 }
 0x7da   : > { %v1586_v52 = vadd.f32 %v7954_v38, %v1585_v45 }
 0x7db   : > { %v7956_v55 = vpop.eup %7955 }
 0x7dc   : > { %v1590_v58 = vsel %vm1589_vm9, %v7954_v38, %v1586_v52  ;;  %v1598_v59 = vmul.f32 %v7956_v55, %v1578_v41  ;;  %v1581_v60 = vpop.xlane.xlu2 %1580  ;;  %vm1603_vm11 = vweird.f32 %v7956_v55 }
 0x7dd   : > { %v1595_v63 = vsel %vm1592_vm10, %v1594_v57, %v1590_v58  ;;  %7957 = vrcp.f32 %v1581_v60  ;;  %vm1604_vm3 = vmor %vm1602_vm12, %vm1603_vm11  ;;  %v1623_v14 = vand.u32 2147483648, %v1581_v60  ;;  %v1621_v16 = vand.u32 2147483647, %v1581_v60 }
 0x7de   : > { %v1599_v0 = vsub.f32 1.0, %v1598_v59  ;;  %v1596_v1 = vmul.f32 %v7948_v23, %v1595_v63  ;;  %vm1617_vm6 = vweird.f32 %v1581_v60 }
 0x7df   : > { %v1624_v18 = vor.u32 1.1754944e-38, %v1623_v14  ;;  %vm1622_vm8 = vcmp.eq.f32.partialorder %v1621_v16, 8.507059e+37 }
 0x7e0   : > { %v1600_v5 = vmul.f32 %v7956_v55, %v1599_v0  ;;  %7219 = vmatmul.msk.f32.vlgmr.msrb.gmra.mxu1 %vm949_vm15, %v1596_v1 }
 0x7e2   : > { %v1601_v6 = vadd.f32 %v7956_v55, %v1600_v5 }
 0x7e3   : > { %v7958_v7 = vpop.eup %7957 }
 0x7e4   : > { %v1613_v9 = vmul.f32 %v7958_v7, %v1581_v60  ;;  %v1605_v10 = vsel %vm1604_vm3, %v7956_v55, %v1601_v6  ;;  %vm1618_vm5 = vweird.f32 %v7958_v7 }
 0x7e5   : > { %v1610_v11 = vsel %vm1607_vm4, %v1609_v8, %v1605_v10  ;;  %vm1619_vm7 = vmor %vm1617_vm6, %vm1618_vm5 }
 0x7e6   : > { %v1614_v12 = vsub.f32 1.0, %v1613_v9  ;;  %v1611_v13 = vmul.f32 %v7950_v28, %v1610_v11 }
 0x7e8   : > { %v1615_v15 = vmul.f32 %v7958_v7, %v1614_v12  ;;  %7220 = vmatmul.msk.f32.gmra.mxu1 %vm949_vm15, %v1611_v13  ;;  %v7260_v13 = vld [vmem:[%s10808_s9 + $0x18] sm:$0xff] }
 0x7e9   : > { %1996 = vmatpush.msra.mxu3 %v7260_v13 }
 0x7ea   : > { %v1616_v17 = vadd.f32 %v7958_v7, %v1615_v15 }
 0x7ec   : > { %v1620_v19 = vsel %vm1619_vm7, %v7958_v7, %v1616_v17 }
 0x7ed   : > { %v1625_v20 = vsel %vm1622_vm8, %v1624_v18, %v1620_v19 }
 0x7ee   : > { %v1626_v21 = vmul.f32 %v8862_v31, %v1625_v20  ;;  %v7878_v31 = vld [vmem:[%s10807_s8 + $0x3] ss:$0 sm:$0xff] }
 0x7f0   : > { %7221 = vmatmul.msk.f32.gmra.mxu1 %vm949_vm15, %v1626_v21 }
 0x7f8   : > { %7247 = vmatmul.msk.f32.vlgmr.msra.gmra.mxu1 %vm707_vm1, %v8606_v4  ;;  %v7876_v4 = vld [vmem:[%s10855_s6 + $0x3] ss:$0 sm:$0xff] }
 0x7f9   : > { %v1733_v26 = vadd.f32 %v7876_v4, %v1732_v24 }
 0x800   : > { %7248 = vmatmul.msk.f32.gmra.mxu1 %vm707_vm1, %v8584_v48  ;;  %v1735_v48 = vpop.f32.mrf.mxu2 }
 0x808   : > { %7249 = vmatmul.msk.f32.gmra.mxu1 %vm707_vm1, %v8601_v62  ;;  %v1736_v62 = vadd.f32 %v7876_v4, %v1735_v48  ;;  %v1738_v29 = vpop.f32.mrf.mxu2 }
 0x809   : > { %v1739_v30 = vadd.f32 %v7876_v4, %v1738_v29 }
 0x85d   : > { %v1656_v22 = vpop.f32.mrf.mxu1 }
 0x85e   : > { %7223 = vmatmul.msk.f32.vlgmr.msra.gmra.mxu0 %vm901_vm13, %v1656_v22 }
 0x865   : > { %v1659_v23 = vpop.f32.mrf.mxu1 }
 0x866   : > { %7224 = vmatmul.msk.f32.gmra.mxu0 %vm901_vm13, %v1659_v23 }
 0x86d   : > { %v1662_v25 = vpop.f32.mrf.mxu1 }
 0x86e   : > { %7225 = vmatmul.msk.f32.gmra.mxu0 %vm901_vm13, %v1662_v25 }
 0x875   : > { %v1804_v27 = vpop.f32.mrf.mxu1 }
 0x876   : > { %7253 = vmatmul.msk.f32.vlgmr.msrb.gmra.mxu0 %vm901_vm13, %v1733_v26  ;;  %v1805_v36 = vadd.f32 %v7878_v31, %v1804_v27 }
 0x87d   : > { %v1807_v28 = vpop.f32.mrf.mxu1 }
 0x87e   : > { %7254 = vmatmul.msk.f32.gmra.mxu0 %vm901_vm13, %v1736_v62  ;;  %v1808_v35 = vadd.f32 %v7878_v31, %v1807_v28 }
 0x885   : > { %v1810_v32 = vpop.f32.mrf.mxu1 }
 0x886   : > { %v1811_v33 = vadd.f32 %v7878_v31, %v1810_v32  ;;  %7255 = vmatmul.msk.f32.gmra.mxu0 %vm901_vm13, %v1739_v30 }
 0x888   : > { %7256 = vmatpush.msk.msra.mxu2 %vm1032_vm14, %v1811_v33 }
 0x88a   : > { %1958 = vmatpush.msra.mxu2 %v1808_v35 }
 0x88c   : > { %1959 = vmatpush.msra.mxu2 %v1805_v36 }
 0x8db   : > { %v8901_v37 = vpop.f32.mrf.mxu0 }
 0x8e3   : > { %v8903_v38 = vpop.f32.mrf.mxu0 }
 0x8eb   : > { %v8905_v39 = vpop.f32.mrf.mxu0 }
 0x8f3   : > { %v1848_v41 = vpop.f32.mrf.mxu0 }
 0x8f4   : > { %v1857_v42 = vmul.f32 0.35355338, %v1848_v41 }
 0x8f6   : > { %v1860_v43 = vsel %vm949_vm15, %v1857_v42, -inf }
 0x8f7   : > { %1861 = vmax.xlane.f32.xlu0 %v1860_v43 }
 0x8fb   : > { %v1851_v44 = vpop.f32.mrf.mxu0 }
 0x8fc   : > { %v1858_v45 = vmul.f32 0.35355338, %v1851_v44 }
 0x8fe   : > { %v1863_v47 = vsel %vm949_vm15, %v1858_v45, -inf }
 0x8ff   : > { %1864 = vmax.xlane.f32.xlu1 %v1863_v47 }
 0x903   : > { %v1854_v52 = vpop.f32.mrf.mxu0 }
 0x904   : > { %v1859_v55 = vmul.f32 0.35355338, %v1854_v52 }
 0x906   : > { %v1866_v57 = vsel %vm956_vm0, %v1859_v55, -inf }
 0x907   : > { %1867 = vmax.xlane.f32.xlu2 %v1866_v57 }
 0x96a   : > { %v1862_v58 = vpop.xlane.xlu0 %1861 }
 0x96b   : > { %v1869_v59 = vsub.f32 %v1857_v42, %v1862_v58 }
 0x96d   : > { %v1872_v60 = vmul.f32 1.442695, %v1869_v59 }
 0x96f   : > { %7959 = vpow2.f32 %v1872_v60 }
 0x972   : > { %v1865_v63 = vpop.xlane.xlu1 %1864 }
 0x973   : > { %v1870_v0 = vsub.f32 %v1858_v45, %v1865_v63 }
 0x975   : > { %v7960_v1 = vpop.eup %7959  ;;  %v1874_v3 = vmul.f32 1.442695, %v1870_v0  ;;  %v1392_v0 = vadd.f32 %v8838_v53, %v8832_v49 }
 0x976   : > { %v1878_v5 = vsel %vm949_vm15, %v7960_v1, 0.0 }
 0x977   : > { %7961 = vpow2.f32 %v1874_v3  ;;  %1879 = vadd.xlane.f32.xlu0 %v1878_v5 }
 0x97a   : > { %v1868_v2 = vpop.xlane.xlu2 %1867 }
 0x97b   : > { %v1871_v6 = vsub.f32 %v1859_v55, %v1868_v2  ;;  %v8928_v2 = vld [vmem:[%s10811_s12] sm:$0x7f] }
 0x97d   : > { %v7962_v7 = vpop.eup %7961  ;;  %v1876_v8 = vmul.f32 1.442695, %v1871_v6  ;;  %v2013_v6 = vperm.slane %v8928_v2, 2 }
 0x97e   : > { %v1881_v9 = vsel %vm949_vm15, %v7962_v7, 0.0 }
 0x97f   : > { %7963 = vpow2.f32 %v1876_v8  ;;  %1882 = vadd.xlane.f32.xlu1 %v1881_v9  ;;  %v1395_v8 = vadd.f32 %v8840_v56, %v8834_v50 }
 0x981   : > { %v1703_v49 = vadd.f32 %v8903_v38, %v1395_v8 }
 0x985   : > { %v7964_v10 = vpop.eup %7963 }
 0x986   : > { %v1884_v11 = vsel %vm956_vm0, %v7964_v10, 0.0 }
 0x987   : > { %1885 = vadd.xlane.f32.xlu2 %v1884_v11 }
 0x9ea   : > { %v1880_v12 = vpop.xlane.xlu0 %1879 }
 0x9eb   : > { %7965 = vrcp.f32 %v1880_v12  ;;  %v1898_v18 = vand.u32 2147483648, %v1880_v12  ;;  %v1896_v20 = vand.u32 2147483647, %v1880_v12  ;;  %vm1892_vm10 = vweird.f32 %v1880_v12 }
 0x9ed   : > { %v1899_v23 = vor.u32 1.1754944e-38, %v1898_v18  ;;  %vm1897_vm12 = vcmp.eq.f32.partialorder %v1896_v20, 8.507059e+37 }
 0x9f1   : > { %v7966_v14 = vpop.eup %7965 }
 0x9f2   : > { %v1888_v15 = vmul.f32 %v7966_v14, %v1880_v12  ;;  %v1883_v16 = vpop.xlane.xlu1 %1882  ;;  %vm1893_vm9 = vweird.f32 %v7966_v14  ;;  %v1398_v12 = vadd.f32 %v8846_v61, %v8836_v51 }
 0x9f3   : > { %7967 = vrcp.f32 %v1883_v16  ;;  %vm1894_vm11 = vmor %vm1892_vm10, %vm1893_vm9  ;;  %v1913_v62 = vand.u32 2147483648, %v1883_v16  ;;  %v1911_v29 = vand.u32 2147483647, %v1883_v16  ;;  %vm1907_vm4 = vweird.f32 %v1883_v16 }
 0x9f4   : > { %v1889_v17 = vsub.f32 1.0, %v1888_v15 }
 0x9f5   : > { %v1914_v32 = vor.u32 1.1754944e-38, %v1913_v62  ;;  %vm1912_vm6 = vcmp.eq.f32.partialorder %v1911_v29, 8.507059e+37  ;;  %v2091_v62 = vld [vmem:[%s10809_s10] sm:$0xff] }
 0x9f6   : > { %v1890_v19 = vmul.f32 %v7966_v14, %v1889_v17 }
 0x9f8   : > { %v1891_v21 = vadd.f32 %v7966_v14, %v1890_v19 }
 0x9f9   : > { %v7968_v22 = vpop.eup %7967 }
 0x9fa   : > { %v1895_v24 = vsel %vm1894_vm11, %v7966_v14, %v1891_v21  ;;  %v1903_v25 = vmul.f32 %v7968_v22, %v1883_v16  ;;  %v1886_v4 = vpop.xlane.xlu2 %1885  ;;  %vm1908_vm3 = vweird.f32 %v7968_v22 }
 0x9fb   : > { %v1900_v26 = vsel %vm1897_vm12, %v1899_v23, %v1895_v24  ;;  %7969 = vrcp.f32 %v1886_v4  ;;  %vm1909_vm5 = vmor %vm1907_vm4, %vm1908_vm3  ;;  %v1928_v43 = vand.u32 2147483648, %v1886_v4  ;;  %v1926_v45 = vand.u32 2147483647, %v1886_v4 }
 0x9fc   : > { %v1904_v27 = vsub.f32 1.0, %v1903_v25  ;;  %v1901_v48 = vmul.f32 %v7960_v1, %v1900_v26  ;;  %vm1922_vm8 = vweird.f32 %v1886_v4  ;;  %v1702_v1 = vadd.f32 %v8901_v37, %v1392_v0  ;;  %v2094_v26 = vld [vmem:[%s10809_s10 + $0x18] sm:$0xff] }
 0x9fd   : > { %v1929_v52 = vor.u32 1.1754944e-38, %v1928_v43  ;;  %vm1927_vm10 = vcmp.eq.f32.partialorder %v1926_v45, 8.507059e+37  ;;  %2117 = vmatpush.msrb.mxu1 %v2094_v26  ;;  %v2083_v0 = vperm.slane %v8928_v2, 3  ;;  %v2159_v26 = vld [vmem:[%s10810_s11 + $0x8] sm:$0xff] }
 0x9fe   : > { %v1905_v28 = vmul.f32 %v7968_v22, %v1904_v27  ;;  %7257 = vmatmul.msk.f32.vlgmr.msra.gmra.mxu2 %vm949_vm15, %v1901_v48  ;;  %v2093_v27 = vld [vmem:[%s10809_s10 + $0x10] sm:$0xff]  ;;  %v2092_v48 = vld [vmem:[%s10809_s10 + $0x8] sm:$0xff] }
 0x9ff   : > { %2118 = vmatpush.msrb.mxu1 %v2093_v27  ;;  %v2158_v27 = vld [vmem:[%s10810_s11] sm:$0xff] }
 0xa00   : > { %v1906_v30 = vadd.f32 %v7968_v22, %v1905_v28 }
 0xa01   : > { %v7970_v31 = vpop.eup %7969  ;;  %2119 = vmatpush.msrb.mxu1 %v2092_v48  ;;  %v2095_v48 = vperm.slane %v8928_v2, 6 }
 0xa02   : > { %v1918_v33 = vmul.f32 %v7970_v31, %v1886_v4  ;;  %v1910_v35 = vsel %vm1909_vm5, %v7968_v22, %v1906_v30  ;;  %vm1923_vm7 = vweird.f32 %v7970_v31 }
 0xa03   : > { %v1915_v36 = vsel %vm1912_vm6, %v1914_v32, %v1910_v35  ;;  %vm1924_vm9 = vmor %vm1922_vm8, %vm1923_vm7  ;;  %2120 = vmatpush.msrb.mxu1 %v2091_v62 }
 0xa04   : > { %v1919_v41 = vsub.f32 1.0, %v1918_v33  ;;  %v1916_v42 = vmul.f32 %v7962_v7, %v1915_v36 }
 0xa06   : > { %v1920_v44 = vmul.f32 %v7970_v31, %v1919_v41  ;;  %7258 = vmatmul.msk.f32.gmra.mxu2 %vm949_vm15, %v1916_v42  ;;  %v2173_v41 = vld [vmem:[%s10810_s11 + $0x78] sm:$0xff]  ;;  %v2172_v42 = vld [vmem:[%s10810_s11 + $0x70] sm:$0xff] }
 0xa07   : > { %2174 = vmatpush.msra.mxu0 %v2173_v41 }
 0xa08   : > { %v1921_v47 = vadd.f32 %v7970_v31, %v1920_v44  ;;  %v2171_v44 = vld [vmem:[%s10810_s11 + $0x68] sm:$0xff] }
 0xa09   : > { %2175 = vmatpush.msra.mxu0 %v2172_v42 }
 0xa0a   : > { %v1925_v55 = vsel %vm1924_vm9, %v7970_v31, %v1921_v47 }
 0xa0b   : > { %v1930_v57 = vsel %vm1927_vm10, %v1929_v52, %v1925_v55  ;;  %v2170_v55 = vld [vmem:[%s10810_s11 + $0x60] sm:$0xff]  ;;  %2176 = vmatpush.msra.mxu0 %v2171_v44 }
 0xa0c   : > { %v1931_v58 = vmul.f32 %v7964_v10, %v1930_v57 }
 0xa0d   : > { %2177 = vmatpush.msra.mxu0 %v2170_v55 }
 0xa0e   : > { %7259 = vmatmul.msk.f32.gmra.mxu2 %vm949_vm15, %v1931_v58 }
 0xa81   : > { %v1961_v59 = vpop.f32.mrf.mxu2 }
 0xa82   : > { %7261 = vmatmul.msk.f32.vlgmr.msra.gmra.mxu3 %vm901_vm13, %v1961_v59 }
 0xa89   : > { %v1964_v60 = vpop.f32.mrf.mxu2 }
 0xa8a   : > { %7262 = vmatmul.msk.f32.gmra.mxu3 %vm901_vm13, %v1964_v60 }
 0xa91   : > { %v1967_v63 = vpop.f32.mrf.mxu2 }
 0xa92   : > { %7263 = vmatmul.msk.f32.gmra.mxu3 %vm901_vm13, %v1967_v63 }
 0xb05   : > { %v1998_v3 = vpop.f32.mrf.mxu3 }
 0xb06   : > { %v2007_v5 = vadd.f32 %v1998_v3, %v1702_v1 }
 0xb08   : > { %v2010_v7 = vadd.f32 %v2007_v5, %v8500_v34  ;;  %v1704_v34 = vadd.f32 %v8905_v39, %v1398_v12 }
 0xb0a   : > { %v8934_v9 = vadd.f32 %v2013_v6, %v2010_v7 }
 0xb0c   : > { %v2017_v53 = vsel %vm707_vm1, %v8934_v9, 0.0 }
 0xb0d   : > { %2018 = vadd.xlane.f32.xlu0 %v2017_v53  ;;  %v2001_v37 = vpop.f32.mrf.mxu3 }
 0xb0e   : > { %v2008_v10 = vadd.f32 %v2001_v37, %v1703_v49 }
 0xb10   : > { %v2011_v11 = vadd.f32 %v2008_v10, %v8507_v40 }
 0xb12   : > { %v8942_v13 = vadd.f32 %v2013_v6, %v2011_v11 }
 0xb14   : > { %v2020_v50 = vsel %vm707_vm1, %v8942_v13, 0.0 }
 0xb15   : > { %2021 = vadd.xlane.f32.xlu1 %v2020_v50  ;;  %v2004_v56 = vpop.f32.mrf.mxu3 }
 0xb16   : > { %v2009_v38 = vadd.f32 %v2004_v56, %v1704_v34 }
 0xb18   : > { %v2012_v14 = vadd.f32 %v2009_v38, %v8514_v46 }
 0xb1a   : > { %v8948_v15 = vadd.f32 %v2013_v6, %v2012_v14  ;;  %v2087_v6 = vperm.slane %v8928_v2, 4 }
 0xb1c   : > { %v2023_v40 = vsel %vm714_vm2, %v8948_v15, 0.0 }
 0xb1d   : > { %2024 = vadd.xlane.f32.xlu2 %v2023_v40 }
 0xb80   : > { %v2019_v16 = vpop.xlane.xlu0 %2018 }
 0xb81   : > { %v2026_v51 = vmul.f32 %v2019_v16, %v8518_v54 }
 0xb83   : > { %v2029_v61 = vsub.f32 %v8934_v9, %v2026_v51 }
 0xb85   : > { %v2032_v39 = vmul.f32 %v2029_v61, %v2029_v61 }
 0xb87   : > { %v2035_v17 = vsel %vm707_vm1, %v2032_v39, 0.0 }
 0xb88   : > { %2036 = vadd.xlane.f32.xlu0 %v2035_v17  ;;  %v2022_v18 = vpop.xlane.xlu1 %2021 }
 0xb89   : > { %v2027_v19 = vmul.f32 %v2022_v18, %v8518_v54  ;;  %v2169_v18 = vld [vmem:[%s10810_s11 + $0x58] sm:$0xff] }
 0xb8a   : > { %2178 = vmatpush.msra.mxu0 %v2169_v18 }
 0xb8b   : > { %v8957_v46 = vsub.f32 %v8942_v13, %v2027_v19  ;;  %v2168_v19 = vld [vmem:[%s10810_s11 + $0x50] sm:$0xff] }
 0xb8c   : > { %2179 = vmatpush.msra.mxu0 %v2168_v19 }
 0xb8d   : > { %v2033_v20 = vmul.f32 %v8957_v46, %v8957_v46 }
 0xb8f   : > { %v2038_v21 = vsel %vm707_vm1, %v2033_v20, 0.0  ;;  %v2166_v20 = vld [vmem:[%s10810_s11 + $0x40] sm:$0xff] }
 0xb90   : > { %2039 = vadd.xlane.f32.xlu1 %v2038_v21  ;;  %v2025_v22 = vpop.xlane.xlu2 %2024  ;;  %v2165_v21 = vld [vmem:[%s10810_s11 + $0x38] sm:$0xff] }
 0xb91   : > { %v2028_v23 = vmul.f32 %v2025_v22, %v8518_v54  ;;  %v2164_v22 = vld [vmem:[%s10810_s11 + $0x30] sm:$0xff] }
 0xb93   : > { %v8964_v24 = vsub.f32 %v8948_v15, %v2028_v23  ;;  %v2163_v23 = vld [vmem:[%s10810_s11 + $0x28] sm:$0xff] }
 0xb95   : > { %v2034_v25 = vmul.f32 %v8964_v24, %v8964_v24 }
 0xb97   : > { %v2041_v4 = vsel %vm714_vm2, %v2034_v25, 0.0  ;;  %v2161_v25 = vld [vmem:[%s10810_s11 + $0x18] sm:$0xff] }
 0xb98   : > { %2042 = vadd.xlane.f32.xlu2 %v2041_v4  ;;  %v2160_v4 = vld [vmem:[%s10810_s11 + $0x10] sm:$0xff] }
 0xbfb   : > { %v2037_v28 = vpop.xlane.xlu0 %2036 }
 0xbfc   : > { %v2044_v29 = vmul.f32 %v2037_v28, %v8518_v54 }
 0xbfe   : > { %v2047_v30 = vadd.f32 1e-05, %v2044_v29 }
 0xc00   : > { %7971 = vrsqrt.f32 %v2047_v30  ;;  %vm2056_vm12 = vweird.f32 %v2047_v30 }
 0xc03   : > { %v2040_v31 = vpop.xlane.xlu1 %2039 }
 0xc04   : > { %v2045_v32 = vmul.f32 %v2040_v31, %v8518_v54 }
 0xc06   : > { %v7972_v33 = vpop.eup %7971  ;;  %v2048_v35 = vadd.f32 1e-05, %v2045_v32 }
 0xc07   : > { %v2051_v36 = vmul.f32 %v7972_v33, %v2047_v30  ;;  %vm2057_vm11 = vweird.f32 %v7972_v33 }
 0xc08   : > { %7973 = vrsqrt.f32 %v2048_v35  ;;  %vm2058_vm3 = vmor %vm2056_vm12, %vm2057_vm11  ;;  %vm2066_vm5 = vweird.f32 %v2048_v35 }
 0xc09   : > { %v2052_v43 = vmul.f32 %v7972_v33, %v2051_v36 }
 0xc0b   : > { %v2053_v45 = vmul.f32 0.5, %v2052_v43  ;;  %v2043_v47 = vpop.xlane.xlu2 %2042 }
 0xc0c   : > { %v2046_v52 = vmul.f32 %v2043_v47, %v8518_v54 }
 0xc0d   : > { %v2054_v57 = vsub.f32 1.5, %v2053_v45 }
 0xc0e   : > { %v7974_v58 = vpop.eup %7973  ;;  %v2049_v59 = vadd.f32 1e-05, %v2046_v52 }
 0xc0f   : > { %v2055_v60 = vmul.f32 %v7972_v33, %v2054_v57  ;;  %v2061_v63 = vmul.f32 %v7974_v58, %v2048_v35  ;;  %vm2067_vm4 = vweird.f32 %v7974_v58 }
 0xc10   : > { %7975 = vrsqrt.f32 %v2049_v59  ;;  %vm2068_vm6 = vmor %vm2066_vm5, %vm2067_vm4  ;;  %vm2076_vm8 = vweird.f32 %v2049_v59 }
 0xc11   : > { %v2059_v1 = vsel %vm2058_vm3, %v7972_v33, %v2055_v60  ;;  %v2062_v3 = vmul.f32 %v7974_v58, %v2061_v63 }
 0xc12   : > { %v2080_v5 = vmul.f32 %v2059_v1, %v2029_v61 }
 0xc13   : > { %v2063_v7 = vmul.f32 0.5, %v2062_v3 }
 0xc14   : > { %v2084_v8 = vmul.f32 %v2083_v0, %v2080_v5 }
 0xc15   : > { %v2064_v49 = vsub.f32 1.5, %v2063_v7 }
 0xc16   : > { %v7976_v53 = vpop.eup %7975  ;;  %v2088_v37 = vadd.f32 %v2087_v6, %v2084_v8 }
 0xc17   : > { %v2065_v10 = vmul.f32 %v7974_v58, %v2064_v49  ;;  %v2071_v11 = vmul.f32 %v7976_v53, %v2049_v59  ;;  %vm2077_vm7 = vweird.f32 %v7976_v53 }
 0xc18   : > { %7264 = vmatmul.msk.f32.vlgmr.msrb.gmra.mxu1 %vm707_vm1, %v2088_v37  ;;  %vm2078_vm9 = vmor %vm2076_vm8, %vm2077_vm7 }
 0xc19   : > { %v2069_v12 = vsel %vm2068_vm6, %v7974_v58, %v2065_v10  ;;  %v2072_v34 = vmul.f32 %v7976_v53, %v2071_v11  ;;  %v2203_v11 = vperm.slane %v8928_v2, 5 }
 0xc1a   : > { %v2081_v50 = vmul.f32 %v2069_v12, %v8957_v46  ;;  %v2167_v46 = vld [vmem:[%s10810_s11 + $0x48] sm:$0xff] }
 0xc1b   : > { %v2073_v56 = vmul.f32 0.5, %v2072_v34  ;;  %2180 = vmatpush.msra.mxu0 %v2167_v46 }
 0xc1c   : > { %v2085_v38 = vmul.f32 %v2083_v0, %v2081_v50 }
 0xc1d   : > { %v2074_v14 = vsub.f32 1.5, %v2073_v56  ;;  %2181 = vmatpush.msra.mxu0 %v2166_v20 }
 0xc1e   : > { %v2089_v40 = vadd.f32 %v2087_v6, %v2085_v38 }
 0xc1f   : > { %v2075_v16 = vmul.f32 %v7976_v53, %v2074_v14  ;;  %2182 = vmatpush.msra.mxu0 %v2165_v21 }
 0xc20   : > { %7265 = vmatmul.msk.f32.gmra.mxu1 %vm707_vm1, %v2089_v40 }
 0xc21   : > { %v2079_v51 = vsel %vm2078_vm9, %v7976_v53, %v2075_v16  ;;  %2183 = vmatpush.msra.mxu0 %v2164_v22 }
 0xc22   : > { %v2082_v61 = vmul.f32 %v2079_v51, %v8964_v24  ;;  %v2162_v24 = vld [vmem:[%s10810_s11 + $0x20] sm:$0xff] }
 0xc23   : > { %2184 = vmatpush.msra.mxu0 %v2163_v23 }
 0xc24   : > { %v2086_v39 = vmul.f32 %v2083_v0, %v2082_v61 }
 0xc25   : > { %2185 = vmatpush.msra.mxu0 %v2162_v24 }
 0xc26   : > { %v2090_v17 = vadd.f32 %v2087_v6, %v2086_v39 }
 0xc27   : > { %2186 = vmatpush.msra.mxu0 %v2161_v25 }
 0xc28   : > { %7266 = vmatmul.msk.f32.gmra.mxu1 %vm707_vm1, %v2090_v17 }
 0xc29   : > { %2187 = vmatpush.msra.mxu0 %v2160_v4 }
 0xc2b   : > { %2188 = vmatpush.msra.mxu0 %v2159_v26 }
 0xc2d   : > { %2189 = vmatpush.msra.mxu0 %v2158_v27  ;;  %v7279_v27 = vld [vmem:[%s10852_s4 + $0x98] sm:$0xff] }
 0xc2e   : > { %2350 = vmatpush.msrb.mxu3 %v7279_v27 }
 0xc95   : > { %v2122_v62 = vpop.f32.mrf.mxu1 }
 0xc96   : > { %v2123_v28 = vadd.f32 %v2122_v62, %v2095_v48  ;;  %v7287_v62 = vld [vmem:[%s10854_s5 + $0x98] sm:$0xff] }
 0xc97   : > { %2386 = vmatpush.msra.mxu1 %v7287_v62 }
 0xc98   : > { %v2134_v29 = vmul.f32 0.044715, %v2123_v28  ;;  %v2131_v58 = vmul.f32 0.5, %v2123_v28 }
 0xc9a   : > { %v2137_v30 = vmul.f32 %v2134_v29, %v2123_v28  ;;  %v7270_v29 = vld [vmem:[%s10853_s26 + $0x90] sm:$0xff] }
 0xc9c   : > { %v2140_v31 = vmul.f32 %v2137_v30, %v2123_v28  ;;  %v7278_v30 = vld [vmem:[%s10852_s4 + $0x90] sm:$0xff] }
 0xc9d   : > { %v2125_v32 = vpop.f32.mrf.mxu1  ;;  %2351 = vmatpush.msrb.mxu3 %v7278_v30 }
 0xc9e   : > { %v2126_v33 = vadd.f32 %v2125_v32, %v2095_v48  ;;  %v2143_v35 = vadd.f32 %v2140_v31, %v2123_v28  ;;  %v7306_v28 = vld [vmem:[%s10853_s26 + $0xb8] sm:$0xff]  ;;  %v7286_v31 = vld [vmem:[%s10854_s5 + $0x90] sm:$0xff] }
 0xc9f   : > { %2581 = vmatpush.msrb.mxu0 %v7306_v28  ;;  %v7305_v32 = vld [vmem:[%s10853_s26 + $0xb0] sm:$0xff]  ;;  %2387 = vmatpush.msra.mxu1 %v7286_v31  ;;  %v7879_v31 = vld [vmem:[%s10807_s8 + $0x4] ss:$0 sm:$0xff] }
 0xca0   : > { %v2146_v36 = vmul.f32 0.7978846, %v2143_v35  ;;  %v2135_v41 = vmul.f32 0.044715, %v2126_v33  ;;  %v2132_v6 = vmul.f32 0.5, %v2126_v33  ;;  %v7277_v35 = vld [vmem:[%s10852_s4 + $0x88] sm:$0xff] }
 0xca1   : > { %2582 = vmatpush.msrb.mxu0 %v7305_v32  ;;  %2352 = vmatpush.msrb.mxu3 %v7277_v35 }
 0xca2   : > { %7977 = vtanh.f32 %v2146_v36  ;;  %v2138_v42 = vmul.f32 %v2135_v41, %v2126_v33  ;;  %v7285_v36 = vld [vmem:[%s10854_s5 + $0x88] sm:$0xff] }
 0xca3   : > { %v7304_v41 = vld [vmem:[%s10853_s26 + $0xa8] sm:$0xff]  ;;  %2388 = vmatpush.msra.mxu1 %v7285_v36  ;;  %v7882_v36 = vld [vmem:[%s10806_s7 + $0x4] ss:$0 sm:$0xff] }
 0xca4   : > { %v2141_v43 = vmul.f32 %v2138_v42, %v2126_v33  ;;  %2583 = vmatpush.msrb.mxu0 %v7304_v41  ;;  %v7268_v42 = vld [vmem:[%s10853_s26 + $0x80] sm:$0xff] }
 0xca5   : > { %v2128_v44 = vpop.f32.mrf.mxu1 }
 0xca6   : > { %v2129_v45 = vadd.f32 %v2128_v44, %v2095_v48  ;;  %v2144_v47 = vadd.f32 %v2141_v43, %v2126_v33  ;;  %v7271_v48 = vld [vmem:[%s10853_s26 + $0x98] sm:$0xff]  ;;  %v7269_v33 = vld [vmem:[%s10853_s26 + $0x88] sm:$0xff]  ;;  %v7276_v43 = vld [vmem:[%s10852_s4 + $0x80] sm:$0xff] }
 0xca7   : > { %2314 = vmatpush.msrb.mxu2 %v7271_v48  ;;  %v7284_v44 = vld [vmem:[%s10854_s5 + $0x80] sm:$0xff]  ;;  %2353 = vmatpush.msrb.mxu3 %v7276_v43 }
 0xca8   : > { %v7978_v52 = vpop.eup %7977  ;;  %v2147_v55 = vmul.f32 0.7978846, %v2144_v47  ;;  %v2136_v57 = vmul.f32 0.044715, %v2129_v45  ;;  %v2133_v53 = vmul.f32 0.5, %v2129_v45  ;;  %2389 = vmatpush.msra.mxu1 %v7284_v44 }
 0xca9   : > { %v2152_v59 = vadd.f32 1.0, %v7978_v52  ;;  %2315 = vmatpush.msrb.mxu2 %v7270_v29 }
 0xcaa   : > { %7979 = vtanh.f32 %v2147_v55  ;;  %v2139_v60 = vmul.f32 %v2136_v57, %v2129_v45 }
 0xcab   : > { %v2155_v63 = vmul.f32 %v2152_v59, %v2131_v58  ;;  %2316 = vmatpush.msrb.mxu2 %v7269_v33 }
 0xcac   : > { %v2142_v0 = vmul.f32 %v2139_v60, %v2129_v45 }
 0xcad   : > { %2190 = vmatmul.f32.vlgmr.msra.gmra.mxu0 %v2155_v63  ;;  %2317 = vmatpush.msrb.mxu2 %v7268_v42 }
 0xcae   : > { %v2145_v1 = vadd.f32 %v2142_v0, %v2129_v45  ;;  %v7303_v45 = vld [vmem:[%s10853_s26 + $0xa0] sm:$0xff] }
 0xcaf   : > { %2584 = vmatpush.msrb.mxu0 %v7303_v45 }
 0xcb0   : > { %v7980_v3 = vpop.eup %7979  ;;  %v2148_v5 = vmul.f32 0.7978846, %v2145_v1  ;;  %v7314_v1 = vld [vmem:[%s10852_s4 + $0xb8] sm:$0xff] }
 0xcb1   : > { %v2153_v7 = vadd.f32 1.0, %v7980_v3  ;;  %v7313_v3 = vld [vmem:[%s10852_s4 + $0xb0] sm:$0xff]  ;;  %2617 = vmatpush.msrb.mxu1 %v7314_v1  ;;  %v7319_v1 = vld [vmem:[%s10854_s5 + $0xa0] sm:$0xff] }
 0xcb2   : > { %7981 = vtanh.f32 %v2148_v5 }
 0xcb3   : > { %v2156_v8 = vmul.f32 %v2153_v7, %v2132_v6  ;;  %v7312_v7 = vld [vmem:[%s10852_s4 + $0xa8] sm:$0xff]  ;;  %2618 = vmatpush.msrb.mxu1 %v7313_v3  ;;  %v7883_v3 = vld [vmem:[%s10806_s7 + $0x5] ss:$0 sm:$0xff] }
 0xcb5   : > { %2193 = vmatmul.f32.gmra.mxu0 %v2156_v8  ;;  %2619 = vmatpush.msrb.mxu1 %v7312_v7 }
 0xcb8   : > { %v7982_v49 = vpop.eup %7981 }
 0xcb9   : > { %v2154_v37 = vadd.f32 1.0, %v7982_v49  ;;  %v7267_v49 = vld [vmem:[%s10811_s12 + $0x8] sm:$0x7f] }
 0xcbb   : > { %v2157_v10 = vmul.f32 %v2154_v37, %v2133_v53  ;;  %v7311_v37 = vld [vmem:[%s10852_s4 + $0xa0] sm:$0xff] }
 0xcbc   : > { %2620 = vmatpush.msrb.mxu1 %v7311_v37 }
 0xcbd   : > { %2196 = vmatmul.f32.gmra.mxu0 %v2157_v10 }
 0xd2a   : > { %v2191_v12 = vpop.f32.mrf.mxu0 }
 0xd2b   : > { %v2200_v34 = vadd.f32 %v2191_v12, %v8934_v9 }
 0xd2d   : > { %v9042_v50 = vadd.f32 %v2203_v11, %v2200_v34 }
 0xd2f   : > { %v2209_v56 = vsel %vm707_vm1, %v9042_v50, 0.0 }
 0xd30   : > { %2210 = vadd.xlane.f32.xlu0 %v2209_v56  ;;  %v2275_v56 = vperm.slane %v7267_v49, 0 }
 0xd32   : > { %v2194_v38 = vpop.f32.mrf.mxu0 }
 0xd33   : > { %v2201_v14 = vadd.f32 %v2194_v38, %v8942_v13 }
 0xd35   : > { %v9047_v40 = vadd.f32 %v2203_v11, %v2201_v14 }
 0xd37   : > { %v2212_v16 = vsel %vm707_vm1, %v9047_v40, 0.0 }
 0xd38   : > { %2213 = vadd.xlane.f32.xlu1 %v2212_v16  ;;  %v2279_v16 = vperm.slane %v7267_v49, 1 }
 0xd3a   : > { %v2197_v51 = vpop.f32.mrf.mxu0 }
 0xd3b   : > { %v2202_v2 = vadd.f32 %v2197_v51, %v8948_v15 }
 0xd3d   : > { %v9052_v61 = vadd.f32 %v2203_v11, %v2202_v2 }
 0xd3f   : > { %v2215_v9 = vsel %vm714_vm2, %v9052_v61, 0.0 }
 0xd40   : > { %2216 = vadd.xlane.f32.xlu2 %v2215_v9 }
 0xda3   : > { %v2211_v39 = vpop.xlane.xlu0 %2210 }
 0xda4   : > { %v2218_v17 = vmul.f32 %v2211_v39, %v8518_v54 }
 0xda6   : > { %v9058_v13 = vsub.f32 %v9042_v50, %v2218_v17 }
 0xda8   : > { %v2224_v18 = vmul.f32 %v9058_v13, %v9058_v13 }
 0xdaa   : > { %v2227_v19 = vsel %vm707_vm1, %v2224_v18, 0.0 }
 0xdab   : > { %2228 = vadd.xlane.f32.xlu0 %v2227_v19  ;;  %v2214_v46 = vpop.xlane.xlu1 %2213 }
 0xdac   : > { %v2219_v15 = vmul.f32 %v2214_v46, %v8518_v54 }
 0xdae   : > { %v9065_v20 = vsub.f32 %v9047_v40, %v2219_v15 }
 0xdb0   : > { %v2225_v21 = vmul.f32 %v9065_v20, %v9065_v20 }
 0xdb2   : > { %v2230_v22 = vsel %vm707_vm1, %v2225_v21, 0.0 }
 0xdb3   : > { %2231 = vadd.xlane.f32.xlu1 %v2230_v22  ;;  %v2217_v23 = vpop.xlane.xlu2 %2216 }
 0xdb4   : > { %v2220_v24 = vmul.f32 %v2217_v23, %v8518_v54 }
 0xdb6   : > { %v9072_v25 = vsub.f32 %v9052_v61, %v2220_v24 }
 0xdb8   : > { %v2226_v4 = vmul.f32 %v9072_v25, %v9072_v25 }
 0xdba   : > { %v2233_v26 = vsel %vm714_vm2, %v2226_v4, 0.0 }
 0xdbb   : > { %2234 = vadd.xlane.f32.xlu2 %v2233_v26 }
 0xe1e   : > { %v2229_v47 = vpop.xlane.xlu0 %2228 }
 0xe1f   : > { %v2236_v52 = vmul.f32 %v2229_v47, %v8518_v54 }
 0xe21   : > { %v2239_v55 = vadd.f32 1e-05, %v2236_v52  ;;  %v7881_v52 = vld [vmem:[%s10855_s6 + $0x4] ss:$0 sm:$0xff] }
 0xe23   : > { %7983 = vrsqrt.f32 %v2239_v55  ;;  %vm2248_vm11 = vweird.f32 %v2239_v55 }
 0xe26   : > { %v2232_v57 = vpop.xlane.xlu1 %2231 }
 0xe27   : > { %v2237_v58 = vmul.f32 %v2232_v57, %v8518_v54  ;;  %v7322_v57 = vld [vmem:[%s10854_s5 + $0xb8] sm:$0xff] }
 0xe29   : > { %v7984_v59 = vpop.eup %7983  ;;  %v2240_v60 = vadd.f32 1e-05, %v2237_v58 }
 0xe2a   : > { %v2243_v63 = vmul.f32 %v7984_v59, %v2239_v55  ;;  %vm2249_vm10 = vweird.f32 %v7984_v59 }
 0xe2b   : > { %7985 = vrsqrt.f32 %v2240_v60  ;;  %vm2250_vm12 = vmor %vm2248_vm11, %vm2249_vm10  ;;  %vm2258_vm4 = vweird.f32 %v2240_v60 }
 0xe2c   : > { %v2244_v0 = vmul.f32 %v7984_v59, %v2243_v63  ;;  %v7320_v63 = vld [vmem:[%s10854_s5 + $0xa8] sm:$0xff] }
 0xe2e   : > { %v2245_v5 = vmul.f32 0.5, %v2244_v0  ;;  %v2235_v6 = vpop.xlane.xlu2 %2234 }
 0xe2f   : > { %v2238_v8 = vmul.f32 %v2235_v6, %v8518_v54 }
 0xe30   : > { %v2246_v53 = vsub.f32 1.5, %v2245_v5 }
 0xe31   : > { %v7986_v10 = vpop.eup %7985  ;;  %v2241_v11 = vadd.f32 1e-05, %v2238_v8 }
 0xe32   : > { %v2247_v12 = vmul.f32 %v7984_v59, %v2246_v53  ;;  %v2253_v34 = vmul.f32 %v7986_v10, %v2240_v60  ;;  %vm2259_vm3 = vweird.f32 %v7986_v10  ;;  %v7321_v60 = vld [vmem:[%s10854_s5 + $0xb0] sm:$0xff] }
 0xe33   : > { %7987 = vrsqrt.f32 %v2241_v11  ;;  %vm2260_vm5 = vmor %vm2258_vm4, %vm2259_vm3  ;;  %vm2268_vm7 = vweird.f32 %v2241_v11 }
 0xe34   : > { %v2251_v38 = vsel %vm2250_vm12, %v7984_v59, %v2247_v12  ;;  %v2254_v14 = vmul.f32 %v7986_v10, %v2253_v34 }
 0xe35   : > { %v2272_v51 = vmul.f32 %v2251_v38, %v9058_v13 }
 0xe36   : > { %v2255_v2 = vmul.f32 0.5, %v2254_v14 }
 0xe37   : > { %v2276_v9 = vmul.f32 %v2275_v56, %v2272_v51 }
 0xe38   : > { %v2256_v39 = vsub.f32 1.5, %v2255_v2 }
 0xe39   : > { %v7988_v17 = vpop.eup %7987  ;;  %v9144_v18 = vadd.f32 %v2279_v16, %v2276_v9 }
 0xe3a   : > { %v2257_v19 = vmul.f32 %v7986_v10, %v2256_v39  ;;  %v2263_v46 = vmul.f32 %v7988_v17, %v2241_v11  ;;  %vm2269_vm6 = vweird.f32 %v7988_v17  ;;  %v7884_v39 = vld [vmem:[%s10807_s8 + $0x5] ss:$0 sm:$0xff] }
 0xe3b   : > { %7273 = vmatmul.msk.f32.vlgmr.msrb.gmra.mxu2 %vm707_vm1, %v9144_v18  ;;  %7281 = vmatmul.msk.f32.vlgmr.msrb.gmra.mxu3 %vm707_vm1, %v9144_v18  ;;  %vm2270_vm8 = vmor %vm2268_vm7, %vm2269_vm6 }
 0xe3c   : > { %v2261_v15 = vsel %vm2260_vm5, %v7986_v10, %v2257_v19  ;;  %v2264_v21 = vmul.f32 %v7988_v17, %v2263_v46  ;;  %7289 = vmatmul.msk.f32.vlgmr.msra.gmra.mxu1 %vm707_vm1, %v9144_v18  ;;  %7308 = vmatmul.msk.f32.vlgmr.msrb.gmra.mxu0 %vm707_vm1, %v9144_v18 }
 0xe3d   : > { %v2273_v13 = vmul.f32 %v2261_v15, %v9065_v20 }
 0xe3e   : > { %v2265_v22 = vmul.f32 0.5, %v2264_v21 }
 0xe3f   : > { %v2277_v23 = vmul.f32 %v2275_v56, %v2273_v13 }
 0xe40   : > { %v2266_v24 = vsub.f32 1.5, %v2265_v22 }
 0xe41   : > { %v9155_v4 = vadd.f32 %v2279_v16, %v2277_v23 }
 0xe42   : > { %v2267_v26 = vmul.f32 %v7988_v17, %v2266_v24 }
 0xe43   : > { %7274 = vmatmul.msk.f32.gmra.mxu2 %vm707_vm1, %v9155_v4  ;;  %7282 = vmatmul.msk.f32.gmra.mxu3 %vm707_vm1, %v9155_v4 }
 0xe44   : > { %v2271_v27 = vsel %vm2270_vm8, %v7988_v17, %v2267_v26  ;;  %7290 = vmatmul.msk.f32.gmra.mxu1 %vm707_vm1, %v9155_v4  ;;  %7309 = vmatmul.msk.f32.gmra.mxu0 %vm707_vm1, %v9155_v4 }
 0xe45   : > { %v2274_v20 = vmul.f32 %v2271_v27, %v9072_v25 }
 0xe47   : > { %v2278_v48 = vmul.f32 %v2275_v56, %v2274_v20 }
 0xe49   : > { %v9166_v62 = vadd.f32 %v2279_v16, %v2278_v48 }
 0xe4b   : > { %7275 = vmatmul.msk.f32.gmra.mxu2 %vm707_vm1, %v9166_v62  ;;  %7283 = vmatmul.msk.f32.gmra.mxu3 %vm707_vm1, %v9166_v62 }
 0xe4c   : > { %7291 = vmatmul.msk.f32.gmra.mxu1 %vm707_vm1, %v9166_v62  ;;  %7310 = vmatmul.msk.f32.gmra.mxu0 %vm707_vm1, %v9166_v62 }
 0xe54   : > { %7316 = vmatmul.msk.f32.vlgmr.msrb.gmra.mxu1 %vm707_vm1, %v9144_v18 }
 0xe5c   : > { %7317 = vmatmul.msk.f32.gmra.mxu1 %vm707_vm1, %v9155_v4 }
 0xe64   : > { %7318 = vmatmul.msk.f32.gmra.mxu1 %vm707_vm1, %v9166_v62 }
 0xeb9   : > { %v2391_v25 = vpop.f32.mrf.mxu1 }
 0xeba   : > { %v2392_v41 = vadd.f32 %v7879_v31, %v2391_v25 }
 0xebe   : > { %v2355_v28 = vpop.f32.mrf.mxu3  ;;  %v2319_v45 = vpop.f32.mrf.mxu2 }
 0xebf   : > { %v2356_v55 = vadd.f32 %v7882_v36, %v2355_v28  ;;  %v2320_v59 = vadd.f32 %v7881_v52, %v2319_v45 }
 0xec1   : > { %v2394_v29 = vpop.f32.mrf.mxu1 }
 0xec2   : > { %v2395_v35 = vadd.f32 %v7879_v31, %v2394_v29 }
 0xec6   : > { %v2358_v30 = vpop.f32.mrf.mxu3  ;;  %v2322_v0 = vpop.f32.mrf.mxu2 }
 0xec7   : > { %v2359_v47 = vadd.f32 %v7882_v36, %v2358_v30  ;;  %v2323_v6 = vadd.f32 %v7881_v52, %v2322_v0 }
 0xec9   : > { %v2397_v32 = vpop.f32.mrf.mxu1 }
 0xeca   : > { %v2398_v33 = vadd.f32 %v7879_v31, %v2397_v32 }
 0xecc   : > { %7298 = vmatpush.msk.msra.mxu3 %vm1032_vm14, %v2398_v33 }
 0xece   : > { %2545 = vmatpush.msra.mxu3 %v2395_v35  ;;  %v2361_v42 = vpop.f32.mrf.mxu3  ;;  %v2325_v49 = vpop.f32.mrf.mxu2 }
 0xecf   : > { %v2362_v43 = vadd.f32 %v7882_v36, %v2361_v42  ;;  %v2326_v53 = vadd.f32 %v7881_v52, %v2325_v49 }
 0xed0   : > { %2546 = vmatpush.msra.mxu3 %v2392_v41 }
 0xed1   : > { %v2622_v44 = vpop.f32.mrf.mxu1  ;;  %7292 = vmatpush.xpose.msk.msra.mxu2 %vm901_vm13, %v2362_v43 }
 0xed2   : > { %v2623_v37 = vadd.f32 %v7883_v3, %v2622_v44 }
 0xed5   : > { %7293 = vmatpush.xpose.msk.msra.mxu2 %vm901_vm13, %v2359_v47 }
 0xed9   : > { %v2625_v58 = vpop.f32.mrf.mxu1  ;;  %7294 = vmatpush.xpose.msk.msra.mxu2 %vm901_vm13, %v2356_v55 }
 0xeda   : > { %v2626_v8 = vadd.f32 %v7883_v3, %v2625_v58 }
 0xedc   : > { %7295 = vmatmul.msk.f32.vlgmr.msra.gmra.mxu2 %vm901_vm13, %v2320_v59 }
 0xedd   : > { %2653 = vmatpush.msrb.mxu2 %v7322_v57 }
 0xedf   : > { %2654 = vmatpush.msrb.mxu2 %v7321_v60 }
 0xee1   : > { %2655 = vmatpush.msrb.mxu2 %v7320_v63  ;;  %v2628_v5 = vpop.f32.mrf.mxu1 }
 0xee2   : > { %v2629_v7 = vadd.f32 %v7883_v3, %v2628_v5 }
 0xee3   : > { %2656 = vmatpush.msrb.mxu2 %v7319_v1 }
 0xee4   : > { %7327 = vmatpush.xpose.msk.msrb.mxu3 %vm901_vm13, %v2629_v7  ;;  %7296 = vmatmul.msk.f32.gmra.mxu2 %vm901_vm13, %v2323_v6 }
 0xee8   : > { %7328 = vmatpush.xpose.msk.msrb.mxu3 %vm901_vm13, %v2626_v8 }
 0xeec   : > { %7329 = vmatpush.xpose.msk.msrb.mxu3 %vm901_vm13, %v2623_v37  ;;  %7297 = vmatmul.msk.f32.gmra.mxu2 %vm901_vm13, %v2326_v53 }
 0xef4   : > { %7324 = vmatmul.msk.f32.vlgmr.msrb.gmra.mxu2 %vm707_vm1, %v9144_v18 }
 0xefc   : > { %7325 = vmatmul.msk.f32.gmra.mxu2 %vm707_vm1, %v9155_v4 }
 0xf04   : > { %7326 = vmatmul.msk.f32.gmra.mxu2 %vm707_vm1, %v9166_v62 }
 0xf5f   : > { %v2435_v10 = vpop.f32.mrf.mxu2 }
 0xf60   : > { %v2444_v11 = vmul.f32 0.35355338, %v2435_v10 }
 0xf62   : > { %v2447_v12 = vsel %vm949_vm15, %v2444_v11, -inf }
 0xf63   : > { %2448 = vmax.xlane.f32.xlu0 %v2447_v12 }
 0xf67   : > { %v2438_v34 = vpop.f32.mrf.mxu2 }
 0xf68   : > { %v2445_v56 = vmul.f32 0.35355338, %v2438_v34 }
 0xf6a   : > { %v2450_v38 = vsel %vm949_vm15, %v2445_v56, -inf }
 0xf6b   : > { %2451 = vmax.xlane.f32.xlu1 %v2450_v38  ;;  %v7347_v38 = vld [vmem:[%s10853_s26 + $0xd8] sm:$0xff] }
 0xf6f   : > { %v2441_v14 = vpop.f32.mrf.mxu2 }
 0xf70   : > { %v2446_v16 = vmul.f32 0.35355338, %v2441_v14  ;;  %v7346_v14 = vld [vmem:[%s10853_s26 + $0xd0] sm:$0xff] }
 0xf72   : > { %v2453_v51 = vsel %vm956_vm0, %v2446_v16, -inf }
 0xf73   : > { %2454 = vmax.xlane.f32.xlu2 %v2453_v51  ;;  %v7345_v51 = vld [vmem:[%s10853_s26 + $0xc8] sm:$0xff] }
 0xf77   : > { %v2658_v2 = vpop.f32.mrf.mxu2 }
 0xf78   : > { %v2659_v15 = vadd.f32 %v7884_v39, %v2658_v2 }
 0xf7f   : > { %v2661_v9 = vpop.f32.mrf.mxu2 }
 0xf80   : > { %v2662_v46 = vadd.f32 %v7884_v39, %v2661_v9 }
 0xf87   : > { %v2664_v17 = vpop.f32.mrf.mxu2 }
 0xf88   : > { %v2665_v19 = vadd.f32 %v7884_v39, %v2664_v17  ;;  %v7344_v39 = vld [vmem:[%s10853_s26 + $0xc0] sm:$0xff] }
 0xf8a   : > { %7333 = vmatpush.msk.msra.mxu0 %vm1032_vm14, %v2665_v19 }
 0xf8c   : > { %2812 = vmatpush.msra.mxu0 %v2662_v46  ;;  %v2586_v46 = vpop.f32.mrf.mxu0 }
 0xf8e   : > { %2813 = vmatpush.msra.mxu0 %v2659_v15  ;;  %v7880_v15 = vld [vmem:[%s10855_s6 + $0x5] ss:$0 sm:$0xff] }
 0xfd6   : > { %v2449_v21 = vpop.xlane.xlu0 %2448 }
 0xfd7   : > { %v2456_v13 = vsub.f32 %v2444_v11, %v2449_v21  ;;  %v2587_v21 = vadd.f32 %v7880_v15, %v2586_v46 }
 0xfd9   : > { %v2459_v22 = vmul.f32 1.442695, %v2456_v13  ;;  %v2589_v13 = vpop.f32.mrf.mxu0 }
 0xfdb   : > { %7989 = vpow2.f32 %v2459_v22  ;;  %v2590_v22 = vadd.f32 %v7880_v15, %v2589_v13 }
 0xfde   : > { %v2452_v23 = vpop.xlane.xlu1 %2451 }
 0xfdf   : > { %v2457_v24 = vsub.f32 %v2445_v56, %v2452_v23 }
 0xfe1   : > { %v7990_v26 = vpop.eup %7989  ;;  %v2461_v27 = vmul.f32 1.442695, %v2457_v24  ;;  %v2592_v23 = vpop.f32.mrf.mxu0 }
 0xfe2   : > { %v2465_v20 = vsel %vm949_vm15, %v7990_v26, 0.0  ;;  %v2593_v24 = vadd.f32 %v7880_v15, %v2592_v23 }
 0xfe3   : > { %7991 = vpow2.f32 %v2461_v27  ;;  %2466 = vadd.xlane.f32.xlu0 %v2465_v20 }
 0xfe6   : > { %v2455_v48 = vpop.xlane.xlu2 %2454 }
 0xfe7   : > { %v2458_v25 = vsub.f32 %v2446_v16, %v2455_v48 }
 0xfe9   : > { %v7992_v28 = vpop.eup %7991  ;;  %v2463_v29 = vmul.f32 1.442695, %v2458_v25 }
 0xfea   : > { %v2468_v30 = vsel %vm949_vm15, %v7992_v28, 0.0 }
 0xfeb   : > { %7993 = vpow2.f32 %v2463_v29  ;;  %2469 = vadd.xlane.f32.xlu1 %v2468_v30 }
 0xff1   : > { %v7994_v31 = vpop.eup %7993 }
 0xff2   : > { %v2471_v32 = vsel %vm956_vm0, %v7994_v31, 0.0 }
 0xff3   : > { %2472 = vadd.xlane.f32.xlu2 %v2471_v32 }
0x1056   : > { %v2467_v33 = vpop.xlane.xlu0 %2466 }
0x1057   : > { %7995 = vrcp.f32 %v2467_v33  ;;  %v2485_v43 = vand.u32 2147483648, %v2467_v33  ;;  %v2483_v45 = vand.u32 2147483647, %v2467_v33  ;;  %vm2479_vm10 = vweird.f32 %v2467_v33 }
0x1059   : > { %v2486_v55 = vor.u32 1.1754944e-38, %v2485_v43  ;;  %vm2484_vm12 = vcmp.eq.f32.partialorder %v2483_v45, 8.507059e+37 }
0x105d   : > { %v7996_v35 = vpop.eup %7995 }
0x105e   : > { %v2475_v36 = vmul.f32 %v7996_v35, %v2467_v33  ;;  %v2470_v41 = vpop.xlane.xlu1 %2469  ;;  %vm2480_vm9 = vweird.f32 %v7996_v35 }
0x105f   : > { %7997 = vrcp.f32 %v2470_v41  ;;  %vm2481_vm11 = vmor %vm2479_vm10, %vm2480_vm9  ;;  %v2500_v1 = vand.u32 2147483648, %v2470_v41  ;;  %v2498_v5 = vand.u32 2147483647, %v2470_v41  ;;  %vm2494_vm4 = vweird.f32 %v2470_v41 }
0x1060   : > { %v2476_v42 = vsub.f32 1.0, %v2475_v36 }
0x1061   : > { %v2501_v8 = vor.u32 1.1754944e-38, %v2500_v1  ;;  %vm2499_vm6 = vcmp.eq.f32.partialorder %v2498_v5, 8.507059e+37 }
0x1062   : > { %v2477_v44 = vmul.f32 %v7996_v35, %v2476_v42 }
0x1064   : > { %v2478_v47 = vadd.f32 %v7996_v35, %v2477_v44 }
0x1065   : > { %v7998_v52 = vpop.eup %7997 }
0x1066   : > { %v2482_v57 = vsel %vm2481_vm11, %v7996_v35, %v2478_v47  ;;  %v2490_v58 = vmul.f32 %v7998_v52, %v2470_v41  ;;  %v2473_v59 = vpop.xlane.xlu2 %2472  ;;  %vm2495_vm3 = vweird.f32 %v7998_v52 }
0x1067   : > { %v2487_v60 = vsel %vm2484_vm12, %v2486_v55, %v2482_v57  ;;  %7999 = vrcp.f32 %v2473_v59  ;;  %vm2496_vm5 = vmor %vm2494_vm4, %vm2495_vm3  ;;  %v2515_v12 = vand.u32 2147483648, %v2473_v59  ;;  %v2513_v56 = vand.u32 2147483647, %v2473_v59 }
0x1068   : > { %v2491_v63 = vsub.f32 1.0, %v2490_v58  ;;  %v2488_v0 = vmul.f32 %v7990_v26, %v2487_v60  ;;  %vm2509_vm8 = vweird.f32 %v2473_v59  ;;  %v7302_v26 = vld [vmem:[%s10808_s9 + $0x20] sm:$0xff] }
0x1069   : > { %v2516_v2 = vor.u32 1.1754944e-38, %v2515_v12  ;;  %vm2514_vm10 = vcmp.eq.f32.partialorder %v2513_v56, 8.507059e+37  ;;  %2885 = vmatpush.msra.mxu2 %v7302_v26 }
0x106a   : > { %v2492_v3 = vmul.f32 %v7998_v52, %v2491_v63  ;;  %7299 = vmatmul.msk.f32.vlgmr.msra.gmra.mxu3 %vm949_vm15, %v2488_v0 }
0x106b   : > { %2918 = vmatpush.msra.mxu3 %v7347_v38 }
0x106c   : > { %v2493_v6 = vadd.f32 %v7998_v52, %v2492_v3  ;;  %v7355_v3 = vld [vmem:[%s10852_s4 + $0xd8] sm:$0xff] }
0x106d   : > { %v8000_v7 = vpop.eup %7999  ;;  %2919 = vmatpush.msra.mxu3 %v7346_v14  ;;  %2954 = vmatpush.msrb.mxu0 %v7355_v3 }
0x106e   : > { %v2505_v49 = vmul.f32 %v8000_v7, %v2473_v59  ;;  %v2497_v53 = vsel %vm2496_vm5, %v7998_v52, %v2493_v6  ;;  %vm2510_vm7 = vweird.f32 %v8000_v7  ;;  %v7354_v6 = vld [vmem:[%s10852_s4 + $0xd0] sm:$0xff] }
0x106f   : > { %v2502_v37 = vsel %vm2499_vm6, %v2501_v8, %v2497_v53  ;;  %vm2511_vm9 = vmor %vm2509_vm8, %vm2510_vm7  ;;  %2920 = vmatpush.msra.mxu3 %v7345_v51  ;;  %2955 = vmatpush.msrb.mxu0 %v7354_v6  ;;  %v7352_v8 = vld [vmem:[%s10852_s4 + $0xc0] sm:$0xff] }
0x1070   : > { %v2506_v10 = vsub.f32 1.0, %v2505_v49  ;;  %v2503_v11 = vmul.f32 %v7992_v28, %v2502_v37  ;;  %v7885_v6 = vld [vmem:[%s10855_s6 + $0x6] ss:$0 sm:$0xff] }
0x1071   : > { %2921 = vmatpush.msra.mxu3 %v7344_v39 }
0x1072   : > { %v2507_v34 = vmul.f32 %v8000_v7, %v2506_v10  ;;  %7300 = vmatmul.msk.f32.gmra.mxu3 %vm949_vm15, %v2503_v11 }
0x1074   : > { %v2508_v16 = vadd.f32 %v8000_v7, %v2507_v34 }
0x1076   : > { %v2512_v9 = vsel %vm2511_vm9, %v8000_v7, %v2508_v16  ;;  %v7353_v7 = vld [vmem:[%s10852_s4 + $0xc8] sm:$0xff] }
0x1077   : > { %v2517_v17 = vsel %vm2514_vm10, %v2516_v2, %v2512_v9  ;;  %2956 = vmatpush.msrb.mxu0 %v7353_v7 }
0x1078   : > { %v2518_v19 = vmul.f32 %v7994_v31, %v2517_v17 }
0x1079   : > { %2957 = vmatpush.msrb.mxu0 %v7352_v8  ;;  %v7393_v8 = vld [vmem:[%s10852_s4 + $0xf8] sm:$0xff] }
0x107a   : > { %7301 = vmatmul.msk.f32.gmra.mxu3 %vm949_vm15, %v2518_v19 }
0x1082   : > { %7330 = vmatmul.msk.f32.vlgmr.msrb.gmra.mxu3 %vm901_vm13, %v2587_v21 }
0x108a   : > { %7331 = vmatmul.msk.f32.gmra.mxu3 %vm901_vm13, %v2590_v22 }
0x1092   : > { %7332 = vmatmul.msk.f32.gmra.mxu3 %vm901_vm13, %v2593_v24 }
0x109a   : > { %7349 = vmatmul.msk.f32.vlgmr.msra.gmra.mxu3 %vm707_vm1, %v9144_v18 }
0x10a2   : > { %7350 = vmatmul.msk.f32.gmra.mxu3 %vm707_vm1, %v9155_v4 }
0x10aa   : > { %7351 = vmatmul.msk.f32.gmra.mxu3 %vm707_vm1, %v9166_v62 }
0x10ed   : > { %v2548_v27 = vpop.f32.mrf.mxu3 }
0x10ee   : > { %7341 = vmatmul.msk.f32.vlgmr.msra.gmra.mxu2 %vm901_vm13, %v2548_v27 }
0x10f5   : > { %v2551_v20 = vpop.f32.mrf.mxu3 }
0x10f6   : > { %7342 = vmatmul.msk.f32.gmra.mxu2 %vm901_vm13, %v2551_v20 }
0x10fd   : > { %v2554_v48 = vpop.f32.mrf.mxu3 }
0x10fe   : > { %7343 = vmatmul.msk.f32.gmra.mxu2 %vm901_vm13, %v2554_v48 }
0x1105   : > { %v2702_v25 = vpop.f32.mrf.mxu3 }
0x1106   : > { %v2711_v28 = vmul.f32 0.35355338, %v2702_v25 }
0x1108   : > { %v2714_v29 = vsel %vm949_vm15, %v2711_v28, -inf }
0x1109   : > { %2715 = vmax.xlane.f32.xlu0 %v2714_v29 }
0x110d   : > { %v2705_v30 = vpop.f32.mrf.mxu3 }
0x110e   : > { %v2712_v31 = vmul.f32 0.35355338, %v2705_v30 }
0x1110   : > { %v2717_v32 = vsel %vm949_vm15, %v2712_v31, -inf }
0x1111   : > { %2718 = vmax.xlane.f32.xlu1 %v2717_v32 }
0x1115   : > { %v2708_v33 = vpop.f32.mrf.mxu3 }
0x1116   : > { %v2713_v35 = vmul.f32 0.35355338, %v2708_v33 }
0x1118   : > { %v2720_v36 = vsel %vm956_vm0, %v2713_v35, -inf }
0x1119   : > { %2721 = vmax.xlane.f32.xlu2 %v2720_v36  ;;  %v7363_v36 = vld [vmem:[%s10854_s5 + $0xd8] sm:$0xff] }
0x111d   : > { %v2923_v3 = vpop.f32.mrf.mxu3 }
0x117c   : > { %v2716_v41 = vpop.xlane.xlu0 %2715 }
0x117d   : > { %v2723_v42 = vsub.f32 %v2711_v28, %v2716_v41  ;;  %v7362_v41 = vld [vmem:[%s10854_s5 + $0xd0] sm:$0xff] }
0x117f   : > { %v2726_v43 = vmul.f32 1.442695, %v2723_v42  ;;  %v7361_v42 = vld [vmem:[%s10854_s5 + $0xc8] sm:$0xff] }
0x1181   : > { %8001 = vpow2.f32 %v2726_v43  ;;  %v7360_v43 = vld [vmem:[%s10854_s5 + $0xc0] sm:$0xff] }
0x1184   : > { %v2719_v44 = vpop.xlane.xlu1 %2718 }
0x1185   : > { %v2724_v45 = vsub.f32 %v2712_v31, %v2719_v44 }
0x1187   : > { %v8002_v47 = vpop.eup %8001  ;;  %v2728_v52 = vmul.f32 1.442695, %v2724_v45 }
0x1188   : > { %v2732_v55 = vsel %vm949_vm15, %v8002_v47, 0.0 }
0x1189   : > { %8003 = vpow2.f32 %v2728_v52  ;;  %2733 = vadd.xlane.f32.xlu0 %v2732_v55  ;;  %v7384_v52 = vld [vmem:[%s10853_s26 + $0xf0] sm:$0xff]  ;;  %v7383_v55 = vld [vmem:[%s10853_s26 + $0xe8] sm:$0xff] }
0x118c   : > { %v2722_v57 = vpop.xlane.xlu2 %2721 }
0x118d   : > { %v2725_v58 = vsub.f32 %v2713_v35, %v2722_v57  ;;  %v7337_v35 = vld [vmem:[%s10808_s9 + $0x28] sm:$0xff]  ;;  %v7382_v57 = vld [vmem:[%s10853_s26 + $0xe0] sm:$0xff] }
0x118e   : > { %2850 = vmatpush.msra.mxu1 %v7337_v35 }
0x118f   : > { %v8004_v59 = vpop.eup %8003  ;;  %v2730_v60 = vmul.f32 1.442695, %v2725_v58 }
0x1190   : > { %v2735_v63 = vsel %vm949_vm15, %v8004_v59, 0.0  ;;  %2990 = vmatpush.msrb.mxu1 %v7363_v36 }
0x1191   : > { %8005 = vpow2.f32 %v2730_v60  ;;  %2736 = vadd.xlane.f32.xlu1 %v2735_v63  ;;  %v7886_v63 = vld [vmem:[%s10806_s7 + $0x6] ss:$0 sm:$0xff] }
0x1192   : > { %2991 = vmatpush.msrb.mxu1 %v7362_v41 }
0x1194   : > { %2992 = vmatpush.msrb.mxu1 %v7361_v42 }
0x1196   : > { %2993 = vmatpush.msrb.mxu1 %v7360_v43 }
0x1197   : > { %v9270_v0 = vpop.eup %8005 }
0x1198   : > { %v2738_v1 = vsel %vm956_vm0, %v9270_v0, 0.0 }
0x1199   : > { %2739 = vadd.xlane.f32.xlu2 %v2738_v1 }
0x11fc   : > { %v2734_v5 = vpop.xlane.xlu0 %2733 }
0x11fd   : > { %8007 = vrcp.f32 %v2734_v5  ;;  %v2752_v11 = vand.u32 2147483648, %v2734_v5  ;;  %v2750_v34 = vand.u32 2147483647, %v2734_v5  ;;  %vm2746_vm12 = vweird.f32 %v2734_v5 }
0x11ff   : > { %v2753_v14 = vor.u32 1.1754944e-38, %v2752_v11  ;;  %vm2751_vm4 = vcmp.eq.f32.partialorder %v2750_v34, 8.507059e+37  ;;  %v7390_v11 = vld [vmem:[%s10852_s4 + $0xe0] sm:$0xff] }
0x1203   : > { %v8008_v49 = vpop.eup %8007 }
0x1204   : > { %v2742_v53 = vmul.f32 %v8008_v49, %v2734_v5  ;;  %v2737_v37 = vpop.xlane.xlu1 %2736  ;;  %vm2747_vm11 = vweird.f32 %v8008_v49 }
0x1205   : > { %8009 = vrcp.f32 %v2737_v37  ;;  %vm2748_vm3 = vmor %vm2746_vm12, %vm2747_vm11  ;;  %v2767_v19 = vand.u32 2147483648, %v2737_v37  ;;  %v2765_v15 = vand.u32 2147483647, %v2737_v37  ;;  %vm2761_vm6 = vweird.f32 %v2737_v37 }
0x1206   : > { %v2743_v10 = vsub.f32 1.0, %v2742_v53  ;;  %v7392_v53 = vld [vmem:[%s10852_s4 + $0xf0] sm:$0xff] }
0x1207   : > { %v2768_v22 = vor.u32 1.1754944e-38, %v2767_v19  ;;  %vm2766_vm8 = vcmp.eq.f32.partialorder %v2765_v15, 8.507059e+37 }
0x1208   : > { %v2744_v12 = vmul.f32 %v8008_v49, %v2743_v10  ;;  %v2926_v10 = vpop.f32.mrf.mxu3 }
0x120a   : > { %v2745_v56 = vadd.f32 %v8008_v49, %v2744_v12  ;;  %v2927_v12 = vadd.f32 %v7885_v6, %v2926_v10  ;;  %v7398_v10 = vld [vmem:[%s10854_s5 + $0xe0] sm:$0xff] }
0x120b   : > { %v8010_v38 = vpop.eup %8009 }
0x120c   : > { %v2749_v16 = vsel %vm2748_vm3, %v8008_v49, %v2745_v56  ;;  %v2757_v51 = vmul.f32 %v8010_v38, %v2737_v37  ;;  %v2740_v2 = vpop.xlane.xlu2 %2739  ;;  %vm2762_vm5 = vweird.f32 %v8010_v38  ;;  %v2924_v49 = vadd.f32 %v7885_v6, %v2923_v3  ;;  %v7391_v37 = vld [vmem:[%s10852_s4 + $0xe8] sm:$0xff] }
0x120d   : > { %v2754_v9 = vsel %vm2751_vm4, %v2753_v14, %v2749_v16  ;;  %8011 = vrcp.f32 %v2740_v2  ;;  %vm2763_vm7 = vmor %vm2761_vm6, %vm2762_vm5  ;;  %v2782_v48 = vand.u32 2147483648, %v2740_v2  ;;  %v2780_v28 = vand.u32 2147483647, %v2740_v2 }
0x120e   : > { %v2755_v39 = vmul.f32 %v8002_v47, %v2754_v9  ;;  %v2758_v17 = vsub.f32 1.0, %v2757_v51  ;;  %vm2776_vm10 = vweird.f32 %v2740_v2  ;;  %v7385_v47 = vld [vmem:[%s10853_s26 + $0xf8] sm:$0xff] }
0x120f   : > { %v2783_v30 = vor.u32 1.1754944e-38, %v2782_v48  ;;  %vm2781_vm12 = vcmp.eq.f32.partialorder %v2780_v28, 8.507059e+37 }
0x1210   : > { %v2759_v46 = vmul.f32 %v8010_v38, %v2758_v17  ;;  %7334 = vmatmul.msk.f32.vlgmr.msra.gmra.mxu0 %vm949_vm15, %v2755_v39  ;;  %v2929_v34 = vpop.f32.mrf.mxu3  ;;  %v7887_v39 = vld [vmem:[%s10807_s8 + $0x6] ss:$0 sm:$0xff] }
0x1211   : > { %v2930_v56 = vadd.f32 %v7885_v6, %v2929_v34  ;;  %v7401_v6 = vld [vmem:[%s10854_s5 + $0xf8] sm:$0xff] }
0x1212   : > { %v2760_v21 = vadd.f32 %v8010_v38, %v2759_v46 }
0x1213   : > { %v8012_v13 = vpop.eup %8011 }
0x1214   : > { %v2772_v23 = vmul.f32 %v8012_v13, %v2740_v2  ;;  %v2764_v24 = vsel %vm2763_vm7, %v8010_v38, %v2760_v21  ;;  %vm2777_vm9 = vweird.f32 %v8012_v13  ;;  %v9374_v2 = vpop.f32.mrf.mxu2 }
0x1215   : > { %v2769_v26 = vsel %vm2766_vm8, %v2768_v22, %v2764_v24  ;;  %vm2778_vm11 = vmor %vm2776_vm10, %vm2777_vm9 }
0x1216   : > { %v2773_v27 = vsub.f32 1.0, %v2772_v23  ;;  %v2770_v20 = vmul.f32 %v8004_v59, %v2769_v26 }
0x1218   : > { %v2774_v25 = vmul.f32 %v8012_v13, %v2773_v27  ;;  %7335 = vmatmul.msk.f32.gmra.mxu0 %vm949_vm15, %v2770_v20  ;;  %v7378_v20 = vld [vmem:[%s10808_s9 + $0x30] sm:$0xff] }
0x1219   : > { %3187 = vmatpush.msra.mxu0 %v7378_v20 }
0x121a   : > { %v2775_v29 = vadd.f32 %v8012_v13, %v2774_v25 }
0x121c   : > { %v2779_v31 = vsel %vm2778_vm11, %v8012_v13, %v2775_v29  ;;  %v9379_v19 = vpop.f32.mrf.mxu2 }
0x121d   : > { %v2784_v32 = vsel %vm2781_vm12, %v2783_v30, %v2779_v31 }
0x121e   : > { %v2785_v33 = vmul.f32 %v9270_v0, %v2784_v32  ;;  %v7889_v32 = vld [vmem:[%s10806_s7 + $0x7] ss:$0 sm:$0xff] }
0x1220   : > { %7336 = vmatmul.msk.f32.gmra.mxu0 %vm949_vm15, %v2785_v33 }
0x1224   : > { %v9382_v13 = vpop.f32.mrf.mxu2 }
0x1228   : > { %7357 = vmatmul.msk.f32.vlgmr.msrb.gmra.mxu0 %vm707_vm1, %v9144_v18 }
0x1230   : > { %7358 = vmatmul.msk.f32.gmra.mxu0 %vm707_vm1, %v9155_v4 }
0x1238   : > { %7359 = vmatmul.msk.f32.gmra.mxu0 %vm707_vm1, %v9166_v62 }
0x128d   : > { %v2815_v44 = vpop.f32.mrf.mxu0 }
0x128e   : > { %7338 = vmatmul.msk.f32.vlgmr.msra.gmra.mxu1 %vm901_vm13, %v2815_v44 }
0x128f   : > { %3223 = vmatpush.msra.mxu1 %v7385_v47 }
0x1291   : > { %3224 = vmatpush.msra.mxu1 %v7384_v52 }
0x1293   : > { %3225 = vmatpush.msra.mxu1 %v7383_v55 }
0x1295   : > { %v2818_v45 = vpop.f32.mrf.mxu0  ;;  %3226 = vmatpush.msra.mxu1 %v7382_v57 }
0x1296   : > { %7339 = vmatmul.msk.f32.gmra.mxu1 %vm901_vm13, %v2818_v45 }
0x129d   : > { %v2821_v58 = vpop.f32.mrf.mxu0 }
0x129e   : > { %7340 = vmatmul.msk.f32.gmra.mxu1 %vm901_vm13, %v2821_v58 }
0x12a5   : > { %v2959_v59 = vpop.f32.mrf.mxu0 }
0x12a6   : > { %7365 = vmatmul.msk.f32.vlgmr.msrb.gmra.mxu1 %vm707_vm1, %v9144_v18  ;;  %v2960_v7 = vadd.f32 %v7886_v63, %v2959_v59 }
0x12ad   : > { %v2962_v60 = vpop.f32.mrf.mxu0 }
0x12ae   : > { %7366 = vmatmul.msk.f32.gmra.mxu1 %vm707_vm1, %v9155_v4  ;;  %v2963_v5 = vadd.f32 %v7886_v63, %v2962_v60 }
0x12b5   : > { %v2965_v0 = vpop.f32.mrf.mxu0 }
0x12b6   : > { %v2966_v1 = vadd.f32 %v7886_v63, %v2965_v0  ;;  %7367 = vmatmul.msk.f32.gmra.mxu1 %vm707_vm1, %v9166_v62 }
0x12b8   : > { %7368 = vmatpush.xpose.msk.msrb.mxu2 %vm901_vm13, %v2966_v1 }
0x12bc   : > { %7369 = vmatpush.xpose.msk.msrb.mxu2 %vm901_vm13, %v2963_v5 }
0x12be   : > { %7387 = vmatmul.msk.f32.vlgmr.msra.gmra.mxu1 %vm707_vm1, %v9144_v18 }
0x12c0   : > { %7370 = vmatpush.xpose.msk.msrb.mxu2 %vm901_vm13, %v2960_v7  ;;  %v7400_v7 = vld [vmem:[%s10854_s5 + $0xf0] sm:$0xff] }
0x12c3   : > { %7371 = vmatmul.msk.f32.vlgmr.msrb.gmra.mxu2 %vm901_vm13, %v2924_v49 }
0x12c4   : > { %3259 = vmatpush.msra.mxu2 %v7393_v8  ;;  %v7399_v8 = vld [vmem:[%s10854_s5 + $0xe8] sm:$0xff] }
0x12c6   : > { %3260 = vmatpush.msra.mxu2 %v7392_v53  ;;  %7388 = vmatmul.msk.f32.gmra.mxu1 %vm707_vm1, %v9155_v4 }
0x12c8   : > { %3261 = vmatpush.msra.mxu2 %v7391_v37 }
0x12ca   : > { %3262 = vmatpush.msra.mxu2 %v7390_v11 }
0x12cb   : > { %7372 = vmatmul.msk.f32.gmra.mxu2 %vm901_vm13, %v2927_v12 }
0x12ce   : > { %7389 = vmatmul.msk.f32.gmra.mxu1 %vm707_vm1, %v9166_v62 }
0x12d3   : > { %7373 = vmatmul.msk.f32.gmra.mxu2 %vm901_vm13, %v2930_v56 }
0x12db   : > { %7395 = vmatmul.msk.f32.vlgmr.msra.gmra.mxu2 %vm707_vm1, %v9144_v18 }
0x12e3   : > { %7396 = vmatmul.msk.f32.gmra.mxu2 %vm707_vm1, %v9155_v4 }
0x12eb   : > { %7397 = vmatmul.msk.f32.gmra.mxu2 %vm707_vm1, %v9166_v62 }
0x130b   : > { %v9368_v38 = vpop.f32.mrf.mxu1 }
0x1313   : > { %v9370_v14 = vpop.f32.mrf.mxu1 }
0x131b   : > { %v9372_v16 = vpop.f32.mrf.mxu1 }
0x1323   : > { %v2995_v51 = vpop.f32.mrf.mxu1 }
0x1324   : > { %v2996_v21 = vadd.f32 %v7887_v39, %v2995_v51 }
0x132b   : > { %v2998_v9 = vpop.f32.mrf.mxu1 }
0x132c   : > { %v2999_v15 = vadd.f32 %v7887_v39, %v2998_v9 }
0x1333   : > { %v3001_v17 = vpop.f32.mrf.mxu1 }
0x1334   : > { %v3002_v46 = vadd.f32 %v7887_v39, %v3001_v17 }
0x1336   : > { %7374 = vmatpush.msk.msrb.mxu3 %vm1032_vm14, %v3002_v46 }
0x1338   : > { %3149 = vmatpush.msrb.mxu3 %v2999_v15 }
0x133a   : > { %3150 = vmatpush.msrb.mxu3 %v2996_v21 }
0x133c   : > { %3295 = vmatpush.msra.mxu3 %v7401_v6 }
0x133e   : > { %3296 = vmatpush.msra.mxu3 %v7400_v7 }
0x1340   : > { %3297 = vmatpush.msra.mxu3 %v7399_v8 }
0x1342   : > { %3298 = vmatpush.msra.mxu3 %v7398_v10 }
0x1346   : > { %v3039_v22 = vpop.f32.mrf.mxu2 }
0x1347   : > { %v3048_v23 = vmul.f32 0.35355338, %v3039_v22 }
0x1349   : > { %v3051_v24 = vsel %vm949_vm15, %v3048_v23, -inf }
0x134a   : > { %3052 = vmax.xlane.f32.xlu0 %v3051_v24 }
0x134e   : > { %v3042_v26 = vpop.f32.mrf.mxu2 }
0x134f   : > { %v3049_v27 = vmul.f32 0.35355338, %v3042_v26 }
0x1351   : > { %v3054_v48 = vsel %vm949_vm15, %v3049_v27, -inf }
0x1352   : > { %3055 = vmax.xlane.f32.xlu1 %v3054_v48 }
0x1356   : > { %v3045_v25 = vpop.f32.mrf.mxu2 }
0x1357   : > { %v3050_v28 = vmul.f32 0.35355338, %v3045_v25 }
0x1359   : > { %v3057_v29 = vsel %vm956_vm0, %v3050_v28, -inf }
0x135a   : > { %3058 = vmax.xlane.f32.xlu2 %v3057_v29 }
0x135e   : > { %v3264_v30 = vpop.f32.mrf.mxu2 }
0x135f   : > { %v3265_v41 = vadd.f32 %v7889_v32, %v3264_v30 }
0x1366   : > { %v3267_v31 = vpop.f32.mrf.mxu2 }
0x1367   : > { %v3268_v36 = vadd.f32 %v7889_v32, %v3267_v31 }
0x136e   : > { %v3270_v33 = vpop.f32.mrf.mxu2 }
0x136f   : > { %v3271_v35 = vadd.f32 %v7889_v32, %v3270_v33 }
0x1371   : > { %7406 = vmatpush.xpose.msk.msrb.mxu0 %vm901_vm13, %v3271_v35 }
0x1375   : > { %7407 = vmatpush.xpose.msk.msrb.mxu0 %vm901_vm13, %v3268_v36 }
0x1379   : > { %7408 = vmatpush.xpose.msk.msrb.mxu0 %vm901_vm13, %v3265_v41 }
0x13bd   : > { %v3053_v42 = vpop.xlane.xlu0 %3052 }
0x13be   : > { %v3060_v43 = vsub.f32 %v3048_v23, %v3053_v42 }
0x13c0   : > { %v3063_v44 = vmul.f32 1.442695, %v3060_v43 }
0x13c2   : > { %8013 = vpow2.f32 %v3063_v44 }
0x13c5   : > { %v3056_v45 = vpop.xlane.xlu1 %3055 }
0x13c6   : > { %v3061_v47 = vsub.f32 %v3049_v27, %v3056_v45 }
0x13c8   : > { %v8014_v52 = vpop.eup %8013  ;;  %v3065_v55 = vmul.f32 1.442695, %v3061_v47 }
0x13c9   : > { %v3069_v57 = vsel %vm949_vm15, %v8014_v52, 0.0 }
0x13ca   : > { %8015 = vpow2.f32 %v3065_v55  ;;  %3070 = vadd.xlane.f32.xlu0 %v3069_v57  ;;  %v3228_v55 = vpop.f32.mrf.mxu1 }
0x13cd   : > { %v3059_v58 = vpop.xlane.xlu2 %3058 }
0x13ce   : > { %v3062_v59 = vsub.f32 %v3050_v28, %v3059_v58 }
0x13d0   : > { %v8016_v60 = vpop.eup %8015  ;;  %v3067_v63 = vmul.f32 1.442695, %v3062_v59 }
0x13d1   : > { %v3072_v0 = vsel %vm949_vm15, %v8016_v60, 0.0 }
0x13d2   : > { %8017 = vpow2.f32 %v3067_v63  ;;  %3073 = vadd.xlane.f32.xlu1 %v3072_v0 }
0x13d8   : > { %v9398_v1 = vpop.eup %8017 }
0x13d9   : > { %v3075_v3 = vsel %vm956_vm0, %v9398_v1, 0.0 }
0x13da   : > { %3076 = vadd.xlane.f32.xlu2 %v3075_v3 }
0x143d   : > { %v3071_v5 = vpop.xlane.xlu0 %3070 }
0x143e   : > { %8019 = vrcp.f32 %v3071_v5  ;;  %v3089_v12 = vand.u32 2147483648, %v3071_v5  ;;  %v3087_v56 = vand.u32 2147483647, %v3071_v5  ;;  %vm3083_vm4 = vweird.f32 %v3071_v5 }
0x1440   : > { %v3090_v39 = vor.u32 1.1754944e-38, %v3089_v12  ;;  %vm3088_vm6 = vcmp.eq.f32.partialorder %v3087_v56, 8.507059e+37 }
0x1444   : > { %v8020_v49 = vpop.eup %8019 }
0x1445   : > { %v3079_v53 = vmul.f32 %v8020_v49, %v3071_v5  ;;  %v3074_v37 = vpop.xlane.xlu1 %3073  ;;  %vm3084_vm3 = vweird.f32 %v8020_v49 }
0x1446   : > { %8021 = vrcp.f32 %v3074_v37  ;;  %vm3085_vm5 = vmor %vm3083_vm4, %vm3084_vm3  ;;  %v3104_v24 = vand.u32 2147483648, %v3074_v37  ;;  %v3102_v27 = vand.u32 2147483647, %v3074_v37  ;;  %vm3098_vm8 = vweird.f32 %v3074_v37 }
0x1447   : > { %v3080_v11 = vsub.f32 1.0, %v3079_v53 }
0x1448   : > { %v3105_v25 = vor.u32 1.1754944e-38, %v3104_v24  ;;  %vm3103_vm10 = vcmp.eq.f32.partialorder %v3102_v27, 8.507059e+37 }
0x1449   : > { %v3081_v34 = vmul.f32 %v8020_v49, %v3080_v11 }
0x144b   : > { %v3082_v51 = vadd.f32 %v8020_v49, %v3081_v34 }
0x144c   : > { %v8022_v9 = vpop.eup %8021 }
0x144d   : > { %v3086_v17 = vsel %vm3085_vm5, %v8020_v49, %v3082_v51  ;;  %v3094_v46 = vmul.f32 %v8022_v9, %v3074_v37  ;;  %v3077_v15 = vpop.xlane.xlu2 %3076  ;;  %vm3099_vm7 = vweird.f32 %v8022_v9 }
0x144e   : > { %v3091_v21 = vsel %vm3088_vm6, %v3090_v39, %v3086_v17  ;;  %8023 = vrcp.f32 %v3077_v15  ;;  %vm3100_vm9 = vmor %vm3098_vm8, %vm3099_vm7  ;;  %v3119_v33 = vand.u32 2147483648, %v3077_v15  ;;  %v3117_v36 = vand.u32 2147483647, %v3077_v15 }
0x144f   : > { %v3092_v22 = vmul.f32 %v8014_v52, %v3091_v21  ;;  %v3095_v23 = vsub.f32 1.0, %v3094_v46  ;;  %vm3113_vm12 = vweird.f32 %v3077_v15 }
0x1450   : > { %v3120_v42 = vor.u32 1.1754944e-38, %v3119_v33  ;;  %vm3118_vm4 = vcmp.eq.f32.partialorder %v3117_v36, 8.507059e+37 }
0x1451   : > { %v3096_v26 = vmul.f32 %v8022_v9, %v3095_v23  ;;  %7375 = vmatmul.msk.f32.vlgmr.msrb.gmra.mxu3 %vm949_vm15, %v3092_v22 }
0x1453   : > { %v3097_v20 = vadd.f32 %v8022_v9, %v3096_v26 }
0x1454   : > { %v8024_v48 = vpop.eup %8023 }
0x1455   : > { %v3109_v28 = vmul.f32 %v8024_v48, %v3077_v15  ;;  %v3101_v29 = vsel %vm3100_vm9, %v8022_v9, %v3097_v20  ;;  %vm3114_vm11 = vweird.f32 %v8024_v48 }
0x1456   : > { %v3106_v30 = vsel %vm3103_vm10, %v3105_v25, %v3101_v29  ;;  %vm3115_vm3 = vmor %vm3113_vm12, %vm3114_vm11 }
0x1457   : > { %v3110_v31 = vsub.f32 1.0, %v3109_v28  ;;  %v3107_v32 = vmul.f32 %v8016_v60, %v3106_v30 }
0x1459   : > { %v3111_v35 = vmul.f32 %v8024_v48, %v3110_v31  ;;  %7376 = vmatmul.msk.f32.gmra.mxu3 %vm949_vm15, %v3107_v32  ;;  %v7416_v32 = vld [vmem:[%s10808_s9 + $0x38] sm:$0xff] }
0x145a   : > { %3492 = vmatpush.msrb.mxu2 %v7416_v32 }
0x145b   : > { %v3112_v41 = vadd.f32 %v8024_v48, %v3111_v35 }
0x145d   : > { %v3116_v43 = vsel %vm3115_vm3, %v8024_v48, %v3112_v41 }
0x145e   : > { %v3121_v44 = vsel %vm3118_vm4, %v3120_v42, %v3116_v43 }
0x145f   : > { %v3122_v45 = vmul.f32 %v9398_v1, %v3121_v44  ;;  %v7890_v1 = vld [vmem:[%s10807_s8 + $0x7] ss:$0 sm:$0xff] }
0x1461   : > { %7377 = vmatmul.msk.f32.gmra.mxu3 %vm949_vm15, %v3122_v45 }
0x1469   : > { %7403 = vmatmul.msk.f32.vlgmr.msra.gmra.mxu3 %vm707_vm1, %v9144_v18  ;;  %v7888_v18 = vld [vmem:[%s10855_s6 + $0x7] ss:$0 sm:$0xff] }
0x146a   : > { %v3229_v58 = vadd.f32 %v7888_v18, %v3228_v55 }
0x1471   : > { %7404 = vmatmul.msk.f32.gmra.mxu3 %vm707_vm1, %v9155_v4  ;;  %v3231_v4 = vpop.f32.mrf.mxu1 }
0x1479   : > { %7405 = vmatmul.msk.f32.gmra.mxu3 %vm707_vm1, %v9166_v62  ;;  %v3232_v62 = vadd.f32 %v7888_v18, %v3231_v4  ;;  %v3234_v63 = vpop.f32.mrf.mxu1 }
0x147a   : > { %v3235_v0 = vadd.f32 %v7888_v18, %v3234_v63 }
0x14d4   : > { %v3152_v47 = vpop.f32.mrf.mxu3 }
0x14d5   : > { %7379 = vmatmul.msk.f32.vlgmr.msra.gmra.mxu0 %vm901_vm13, %v3152_v47 }
0x14dc   : > { %v3155_v52 = vpop.f32.mrf.mxu3 }
0x14dd   : > { %7380 = vmatmul.msk.f32.gmra.mxu0 %vm901_vm13, %v3155_v52 }
0x14e4   : > { %v3158_v57 = vpop.f32.mrf.mxu3 }
0x14e5   : > { %7381 = vmatmul.msk.f32.gmra.mxu0 %vm901_vm13, %v3158_v57 }
0x14ec   : > { %v3300_v59 = vpop.f32.mrf.mxu3 }
0x14ed   : > { %7409 = vmatmul.msk.f32.vlgmr.msrb.gmra.mxu0 %vm901_vm13, %v3229_v58  ;;  %v3301_v7 = vadd.f32 %v7890_v1, %v3300_v59 }
0x14f4   : > { %v3303_v60 = vpop.f32.mrf.mxu3 }
0x14f5   : > { %7410 = vmatmul.msk.f32.gmra.mxu0 %vm901_vm13, %v3232_v62  ;;  %v3304_v6 = vadd.f32 %v7890_v1, %v3303_v60 }
0x14fc   : > { %v3306_v3 = vpop.f32.mrf.mxu3 }
0x14fd   : > { %v3307_v5 = vadd.f32 %v7890_v1, %v3306_v3  ;;  %7411 = vmatmul.msk.f32.gmra.mxu0 %vm901_vm13, %v3235_v0 }
0x14ff   : > { %7412 = vmatpush.msk.msrb.mxu1 %vm1032_vm14, %v3307_v5 }
0x1501   : > { %3454 = vmatpush.msrb.mxu1 %v3304_v6 }
0x1503   : > { %3455 = vmatpush.msrb.mxu1 %v3301_v7 }
0x1552   : > { %v9437_v8 = vpop.f32.mrf.mxu0 }
0x155a   : > { %v9439_v49 = vpop.f32.mrf.mxu0 }
0x1562   : > { %v9441_v53 = vpop.f32.mrf.mxu0 }
0x156a   : > { %v3344_v37 = vpop.f32.mrf.mxu0 }
0x156b   : > { %v3353_v10 = vmul.f32 0.35355338, %v3344_v37 }
0x156d   : > { %v3356_v11 = vsel %vm949_vm15, %v3353_v10, -inf }
0x156e   : > { %3357 = vmax.xlane.f32.xlu0 %v3356_v11 }
0x1572   : > { %v3347_v12 = vpop.f32.mrf.mxu0 }
0x1573   : > { %v3354_v34 = vmul.f32 0.35355338, %v3347_v12 }
0x1575   : > { %v3359_v56 = vsel %vm949_vm15, %v3354_v34, -inf }
0x1576   : > { %3360 = vmax.xlane.f32.xlu1 %v3359_v56 }
0x157a   : > { %v3350_v51 = vpop.f32.mrf.mxu0 }
0x157b   : > { %v3355_v9 = vmul.f32 0.35355338, %v3350_v51 }
0x157d   : > { %v3362_v39 = vsel %vm956_vm0, %v3355_v9, -inf }
0x157e   : > { %3363 = vmax.xlane.f32.xlu2 %v3362_v39 }
0x15e1   : > { %v3358_v17 = vpop.xlane.xlu0 %3357 }
0x15e2   : > { %v3365_v46 = vsub.f32 %v3353_v10, %v3358_v17 }
0x15e4   : > { %v3368_v15 = vmul.f32 1.442695, %v3365_v46 }
0x15e6   : > { %8025 = vpow2.f32 %v3368_v15 }
0x15e9   : > { %v3361_v21 = vpop.xlane.xlu1 %3360 }
0x15ea   : > { %v3366_v22 = vsub.f32 %v3354_v34, %v3361_v21 }
0x15ec   : > { %v8026_v23 = vpop.eup %8025  ;;  %v3370_v24 = vmul.f32 1.442695, %v3366_v22  ;;  %v2888_v22 = vadd.f32 %v9374_v2, %v9368_v38 }
0x15ed   : > { %v3374_v26 = vsel %vm949_vm15, %v8026_v23, 0.0 }
0x15ee   : > { %8027 = vpow2.f32 %v3370_v24  ;;  %3375 = vadd.xlane.f32.xlu0 %v3374_v26 }
0x15f1   : > { %v3364_v27 = vpop.xlane.xlu2 %3363 }
0x15f2   : > { %v3367_v20 = vsub.f32 %v3355_v9, %v3364_v27  ;;  %v9464_v27 = vld [vmem:[%s10811_s12 + $0x8] sm:$0x7f] }
0x15f4   : > { %v8028_v48 = vpop.eup %8027  ;;  %v3372_v25 = vmul.f32 1.442695, %v3367_v20  ;;  %v3509_v20 = vperm.slane %v9464_v27, 2 }
0x15f5   : > { %v3377_v28 = vsel %vm949_vm15, %v8028_v48, 0.0 }
0x15f6   : > { %8029 = vpow2.f32 %v3372_v25  ;;  %3378 = vadd.xlane.f32.xlu1 %v3377_v28  ;;  %v2891_v25 = vadd.f32 %v9379_v19, %v9370_v14 }
0x15f8   : > { %v3199_v38 = vadd.f32 %v9439_v49, %v2891_v25 }
0x15fc   : > { %v8030_v29 = vpop.eup %8029 }
0x15fd   : > { %v3380_v30 = vsel %vm956_vm0, %v8030_v29, 0.0 }
0x15fe   : > { %3381 = vadd.xlane.f32.xlu2 %v3380_v30 }
0x1661   : > { %v3376_v31 = vpop.xlane.xlu0 %3375 }
0x1662   : > { %8031 = vrcp.f32 %v3376_v31  ;;  %v3394_v42 = vand.u32 2147483648, %v3376_v31  ;;  %v3392_v44 = vand.u32 2147483647, %v3376_v31  ;;  %vm3388_vm6 = vweird.f32 %v3376_v31 }
0x1664   : > { %v3395_v52 = vor.u32 1.1754944e-38, %v3394_v42  ;;  %vm3393_vm8 = vcmp.eq.f32.partialorder %v3392_v44, 8.507059e+37 }
0x1668   : > { %v8032_v33 = vpop.eup %8031 }
0x1669   : > { %v3384_v35 = vmul.f32 %v8032_v33, %v3376_v31  ;;  %v3379_v36 = vpop.xlane.xlu1 %3378  ;;  %vm3389_vm5 = vweird.f32 %v8032_v33  ;;  %v2894_v31 = vadd.f32 %v9382_v13, %v9372_v16 }
0x166a   : > { %8033 = vrcp.f32 %v3379_v36  ;;  %vm3390_vm7 = vmor %vm3388_vm6, %vm3389_vm5  ;;  %v3409_v62 = vand.u32 2147483648, %v3379_v36  ;;  %v3407_v63 = vand.u32 2147483647, %v3379_v36  ;;  %vm3403_vm10 = vweird.f32 %v3379_v36 }
0x166b   : > { %v3385_v41 = vsub.f32 1.0, %v3384_v35 }
0x166c   : > { %v3410_v3 = vor.u32 1.1754944e-38, %v3409_v62  ;;  %vm3408_vm12 = vcmp.eq.f32.partialorder %v3407_v63, 8.507059e+37  ;;  %v7420_v62 = vld [vmem:[%s10809_s10 + $0x20] sm:$0xff] }
0x166d   : > { %v3386_v43 = vmul.f32 %v8032_v33, %v3385_v41 }
0x166f   : > { %v3387_v45 = vadd.f32 %v8032_v33, %v3386_v43 }
0x1670   : > { %v8034_v47 = vpop.eup %8033 }
0x1671   : > { %v3391_v55 = vsel %vm3390_vm7, %v8032_v33, %v3387_v45  ;;  %v3399_v57 = vmul.f32 %v8034_v47, %v3379_v36  ;;  %v3382_v18 = vpop.xlane.xlu2 %3381  ;;  %vm3404_vm9 = vweird.f32 %v8034_v47 }
0x1672   : > { %v3396_v58 = vsel %vm3393_vm8, %v3395_v52, %v3391_v55  ;;  %8035 = vrcp.f32 %v3382_v18  ;;  %vm3405_vm11 = vmor %vm3403_vm10, %vm3404_vm9  ;;  %v3424_v11 = vand.u32 2147483648, %v3382_v18  ;;  %v3422_v34 = vand.u32 2147483647, %v3382_v18 }
0x1673   : > { %v3397_v59 = vmul.f32 %v8026_v23, %v3396_v58  ;;  %v3400_v4 = vsub.f32 1.0, %v3399_v57  ;;  %vm3418_vm4 = vweird.f32 %v3382_v18  ;;  %v3198_v23 = vadd.f32 %v9437_v8, %v2888_v22  ;;  %v7423_v58 = vld [vmem:[%s10809_s10 + $0x38] sm:$0xff] }
0x1674   : > { %v3425_v51 = vor.u32 1.1754944e-38, %v3424_v11  ;;  %vm3423_vm6 = vcmp.eq.f32.partialorder %v3422_v34, 8.507059e+37  ;;  %3614 = vmatpush.msrb.mxu3 %v7423_v58  ;;  %v3579_v22 = vperm.slane %v9464_v27, 3  ;;  %v7428_v58 = vld [vmem:[%s10810_s11 + $0x88] sm:$0xff] }
0x1675   : > { %v3401_v60 = vmul.f32 %v8034_v47, %v3400_v4  ;;  %7413 = vmatmul.msk.f32.vlgmr.msrb.gmra.mxu1 %vm949_vm15, %v3397_v59  ;;  %v7422_v59 = vld [vmem:[%s10809_s10 + $0x30] sm:$0xff]  ;;  %v7421_v4 = vld [vmem:[%s10809_s10 + $0x28] sm:$0xff] }
0x1676   : > { %3615 = vmatpush.msrb.mxu3 %v7422_v59  ;;  %v7427_v59 = vld [vmem:[%s10810_s11 + $0x80] sm:$0xff] }
0x1677   : > { %v3402_v0 = vadd.f32 %v8034_v47, %v3401_v60 }
0x1678   : > { %v8036_v1 = vpop.eup %8035  ;;  %3616 = vmatpush.msrb.mxu3 %v7421_v4  ;;  %v3592_v4 = vperm.slane %v9464_v27, 6 }
0x1679   : > { %v3414_v5 = vmul.f32 %v8036_v1, %v3382_v18  ;;  %v3406_v6 = vsel %vm3405_vm11, %v8034_v47, %v3402_v0  ;;  %vm3419_vm3 = vweird.f32 %v8036_v1 }
0x167a   : > { %v3411_v7 = vsel %vm3408_vm12, %v3410_v3, %v3406_v6  ;;  %vm3420_vm5 = vmor %vm3418_vm4, %vm3419_vm3  ;;  %3617 = vmatpush.msrb.mxu3 %v7420_v62 }
0x167b   : > { %v3415_v37 = vsub.f32 1.0, %v3414_v5  ;;  %v3412_v10 = vmul.f32 %v8028_v48, %v3411_v7 }
0x167d   : > { %v3416_v12 = vmul.f32 %v8036_v1, %v3415_v37  ;;  %7414 = vmatmul.msk.f32.gmra.mxu1 %vm949_vm15, %v3412_v10  ;;  %v7442_v37 = vld [vmem:[%s10810_s11 + $0xf8] sm:$0xff]  ;;  %v7441_v10 = vld [vmem:[%s10810_s11 + $0xf0] sm:$0xff] }
0x167e   : > { %3672 = vmatpush.msra.mxu0 %v7442_v37 }
0x167f   : > { %v3417_v56 = vadd.f32 %v8036_v1, %v3416_v12  ;;  %v7440_v12 = vld [vmem:[%s10810_s11 + $0xe8] sm:$0xff] }
0x1680   : > { %3673 = vmatpush.msra.mxu0 %v7441_v10 }
0x1681   : > { %v3421_v9 = vsel %vm3420_vm5, %v8036_v1, %v3417_v56 }
0x1682   : > { %v3426_v39 = vsel %vm3423_vm6, %v3425_v51, %v3421_v9  ;;  %v7439_v9 = vld [vmem:[%s10810_s11 + $0xe0] sm:$0xff]  ;;  %3674 = vmatpush.msra.mxu0 %v7440_v12 }
0x1683   : > { %v3427_v17 = vmul.f32 %v8030_v29, %v3426_v39 }
0x1684   : > { %3675 = vmatpush.msra.mxu0 %v7439_v9 }
0x1685   : > { %7415 = vmatmul.msk.f32.gmra.mxu1 %vm949_vm15, %v3427_v17 }
0x16f2   : > { %v3457_v46 = vpop.f32.mrf.mxu1 }
0x16f3   : > { %7417 = vmatmul.msk.f32.vlgmr.msrb.gmra.mxu2 %vm901_vm13, %v3457_v46 }
0x16fa   : > { %v3460_v15 = vpop.f32.mrf.mxu1 }
0x16fb   : > { %7418 = vmatmul.msk.f32.gmra.mxu2 %vm901_vm13, %v3460_v15 }
0x1702   : > { %v3463_v21 = vpop.f32.mrf.mxu1 }
0x1703   : > { %7419 = vmatmul.msk.f32.gmra.mxu2 %vm901_vm13, %v3463_v21 }
0x1776   : > { %v3494_v24 = vpop.f32.mrf.mxu2 }
0x1777   : > { %v3503_v26 = vadd.f32 %v3494_v24, %v3198_v23 }
0x1779   : > { %v3506_v48 = vadd.f32 %v3503_v26, %v9042_v50  ;;  %v3200_v50 = vadd.f32 %v9441_v53, %v2894_v31  ;;  %v3583_v26 = vperm.slane %v9464_v27, 4 }
0x177b   : > { %v9470_v28 = vadd.f32 %v3509_v20, %v3506_v48 }
0x177d   : > { %v3513_v2 = vsel %vm707_vm1, %v9470_v28, 0.0 }
0x177e   : > { %3514 = vadd.xlane.f32.xlu0 %v3513_v2  ;;  %v3497_v8 = vpop.f32.mrf.mxu2 }
0x177f   : > { %v3504_v29 = vadd.f32 %v3497_v8, %v3199_v38 }
0x1781   : > { %v3507_v30 = vadd.f32 %v3504_v29, %v9047_v40 }
0x1783   : > { %v9478_v32 = vadd.f32 %v3509_v20, %v3507_v30 }
0x1785   : > { %v3516_v14 = vsel %vm707_vm1, %v9478_v32, 0.0 }
0x1786   : > { %3517 = vadd.xlane.f32.xlu1 %v3516_v14  ;;  %v3500_v19 = vpop.f32.mrf.mxu2 }
0x1787   : > { %v3505_v49 = vadd.f32 %v3500_v19, %v3200_v50 }
0x1789   : > { %v3508_v33 = vadd.f32 %v3505_v49, %v9052_v61 }
0x178b   : > { %v9484_v35 = vadd.f32 %v3509_v20, %v3508_v33 }
0x178d   : > { %v3519_v40 = vsel %vm714_vm2, %v9484_v35, 0.0 }
0x178e   : > { %3520 = vadd.xlane.f32.xlu2 %v3519_v40 }
0x17f1   : > { %v3515_v36 = vpop.xlane.xlu0 %3514 }
0x17f2   : > { %v3522_v16 = vmul.f32 %v3515_v36, %v8518_v54 }
0x17f4   : > { %v3525_v13 = vsub.f32 %v9470_v28, %v3522_v16 }
0x17f6   : > { %v3528_v53 = vmul.f32 %v3525_v13, %v3525_v13 }
0x17f8   : > { %v3531_v41 = vsel %vm707_vm1, %v3528_v53, 0.0 }
0x17f9   : > { %3532 = vadd.xlane.f32.xlu0 %v3531_v41  ;;  %v3518_v42 = vpop.xlane.xlu1 %3517 }
0x17fa   : > { %v3523_v43 = vmul.f32 %v3518_v42, %v8518_v54  ;;  %v7438_v42 = vld [vmem:[%s10810_s11 + $0xd8] sm:$0xff] }
0x17fb   : > { %3676 = vmatpush.msra.mxu0 %v7438_v42 }
0x17fc   : > { %v9493_v61 = vsub.f32 %v9478_v32, %v3523_v43  ;;  %v7437_v43 = vld [vmem:[%s10810_s11 + $0xd0] sm:$0xff] }
0x17fd   : > { %3677 = vmatpush.msra.mxu0 %v7437_v43 }
0x17fe   : > { %v3529_v44 = vmul.f32 %v9493_v61, %v9493_v61 }
0x1800   : > { %v3534_v45 = vsel %vm707_vm1, %v3529_v44, 0.0  ;;  %v7435_v44 = vld [vmem:[%s10810_s11 + $0xc0] sm:$0xff] }
0x1801   : > { %3535 = vadd.xlane.f32.xlu1 %v3534_v45  ;;  %v3521_v47 = vpop.xlane.xlu2 %3520  ;;  %v7434_v45 = vld [vmem:[%s10810_s11 + $0xb8] sm:$0xff] }
0x1802   : > { %v3524_v52 = vmul.f32 %v3521_v47, %v8518_v54  ;;  %v7433_v47 = vld [vmem:[%s10810_s11 + $0xb0] sm:$0xff] }
0x1804   : > { %v9500_v55 = vsub.f32 %v9484_v35, %v3524_v52  ;;  %v7432_v52 = vld [vmem:[%s10810_s11 + $0xa8] sm:$0xff] }
0x1806   : > { %v3530_v57 = vmul.f32 %v9500_v55, %v9500_v55 }
0x1808   : > { %v3537_v18 = vsel %vm714_vm2, %v3530_v57, 0.0  ;;  %v7430_v57 = vld [vmem:[%s10810_s11 + $0x98] sm:$0xff] }
0x1809   : > { %3538 = vadd.xlane.f32.xlu2 %v3537_v18  ;;  %v7429_v18 = vld [vmem:[%s10810_s11 + $0x90] sm:$0xff] }
0x186c   : > { %v3533_v60 = vpop.xlane.xlu0 %3532 }
0x186d   : > { %v3540_v63 = vmul.f32 %v3533_v60, %v8518_v54 }
0x186f   : > { %v3543_v0 = vadd.f32 1e-05, %v3540_v63 }
0x1871   : > { %8037 = vrsqrt.f32 %v3543_v0  ;;  %vm3552_vm8 = vweird.f32 %v3543_v0 }
0x1874   : > { %v3536_v1 = vpop.xlane.xlu1 %3535 }
0x1875   : > { %v3541_v3 = vmul.f32 %v3536_v1, %v8518_v54 }
0x1877   : > { %v8038_v5 = vpop.eup %8037  ;;  %v3544_v6 = vadd.f32 1e-05, %v3541_v3 }
0x1878   : > { %v3547_v7 = vmul.f32 %v8038_v5, %v3543_v0  ;;  %vm3553_vm7 = vweird.f32 %v8038_v5 }
0x1879   : > { %8039 = vrsqrt.f32 %v3544_v6  ;;  %vm3554_vm9 = vmor %vm3552_vm8, %vm3553_vm7  ;;  %vm3562_vm11 = vweird.f32 %v3544_v6 }
0x187a   : > { %v3548_v11 = vmul.f32 %v8038_v5, %v3547_v7 }
0x187c   : > { %v3549_v34 = vmul.f32 0.5, %v3548_v11  ;;  %v3539_v56 = vpop.xlane.xlu2 %3538 }
0x187d   : > { %v3542_v51 = vmul.f32 %v3539_v56, %v8518_v54 }
0x187e   : > { %v3550_v39 = vsub.f32 1.5, %v3549_v34 }
0x187f   : > { %v8040_v17 = vpop.eup %8039  ;;  %v3545_v46 = vadd.f32 1e-05, %v3542_v51 }
0x1880   : > { %v3551_v15 = vmul.f32 %v8038_v5, %v3550_v39  ;;  %v3557_v21 = vmul.f32 %v8040_v17, %v3544_v6  ;;  %vm3563_vm10 = vweird.f32 %v8040_v17 }
0x1881   : > { %8041 = vrsqrt.f32 %v3545_v46  ;;  %vm3564_vm12 = vmor %vm3562_vm11, %vm3563_vm10  ;;  %vm3572_vm4 = vweird.f32 %v3545_v46 }
0x1882   : > { %v3555_v23 = vsel %vm3554_vm9, %v8038_v5, %v3551_v15  ;;  %v3558_v24 = vmul.f32 %v8040_v17, %v3557_v21 }
0x1883   : > { %v3576_v20 = vmul.f32 %v3555_v23, %v3525_v13 }
0x1884   : > { %v3559_v48 = vmul.f32 0.5, %v3558_v24 }
0x1885   : > { %v3580_v25 = vmul.f32 %v3579_v22, %v3576_v20 }
0x1886   : > { %v3560_v38 = vsub.f32 1.5, %v3559_v48 }
0x1887   : > { %v8042_v2 = vpop.eup %8041  ;;  %v3584_v8 = vadd.f32 %v3583_v26, %v3580_v25 }
0x1888   : > { %v3561_v29 = vmul.f32 %v8040_v17, %v3560_v38  ;;  %v3567_v30 = vmul.f32 %v8042_v2, %v3545_v46  ;;  %vm3573_vm3 = vweird.f32 %v8042_v2 }
0x1889   : > { %7424 = vmatmul.msk.f32.vlgmr.msrb.gmra.mxu3 %vm707_vm1, %v3584_v8  ;;  %vm3574_vm5 = vmor %vm3572_vm4, %vm3573_vm3 }
0x188a   : > { %v3565_v31 = vsel %vm3564_vm12, %v8040_v17, %v3561_v29  ;;  %v3568_v50 = vmul.f32 %v8042_v2, %v3567_v30  ;;  %v3701_v30 = vperm.slane %v9464_v27, 5 }
0x188b   : > { %v3577_v14 = vmul.f32 %v3565_v31, %v9493_v61  ;;  %v7436_v61 = vld [vmem:[%s10810_s11 + $0xc8] sm:$0xff] }
0x188c   : > { %v3569_v19 = vmul.f32 0.5, %v3568_v50  ;;  %3678 = vmatpush.msra.mxu0 %v7436_v61 }
0x188d   : > { %v3581_v49 = vmul.f32 %v3579_v22, %v3577_v14 }
0x188e   : > { %v3570_v33 = vsub.f32 1.5, %v3569_v19  ;;  %3679 = vmatpush.msra.mxu0 %v7435_v44 }
0x188f   : > { %v3585_v40 = vadd.f32 %v3583_v26, %v3581_v49 }
0x1890   : > { %v3571_v36 = vmul.f32 %v8042_v2, %v3570_v33  ;;  %3680 = vmatpush.msra.mxu0 %v7434_v45 }
0x1891   : > { %7425 = vmatmul.msk.f32.gmra.mxu3 %vm707_vm1, %v3585_v40 }
0x1892   : > { %v3575_v16 = vsel %vm3574_vm5, %v8042_v2, %v3571_v36  ;;  %3681 = vmatpush.msra.mxu0 %v7433_v47 }
0x1893   : > { %v3578_v13 = vmul.f32 %v3575_v16, %v9500_v55  ;;  %v7431_v55 = vld [vmem:[%s10810_s11 + $0xa0] sm:$0xff] }
0x1894   : > { %3682 = vmatpush.msra.mxu0 %v7432_v52 }
0x1895   : > { %v3582_v53 = vmul.f32 %v3579_v22, %v3578_v13 }
0x1896   : > { %3683 = vmatpush.msra.mxu0 %v7431_v55 }
0x1897   : > { %v3586_v41 = vadd.f32 %v3583_v26, %v3582_v53 }
0x1898   : > { %3684 = vmatpush.msra.mxu0 %v7430_v57 }
0x1899   : > { %7426 = vmatmul.msk.f32.gmra.mxu3 %vm707_vm1, %v3586_v41 }
0x189a   : > { %3685 = vmatpush.msra.mxu0 %v7429_v18 }
0x189c   : > { %3686 = vmatpush.msra.mxu0 %v7428_v58 }
0x189e   : > { %3687 = vmatpush.msra.mxu0 %v7427_v59  ;;  %v3785_v59 = vld [vmem:[%s10812_s13 + $0x18] sm:$0xff] }
0x189f   : > { %3808 = vmatpush.msra.mxu1 %v3785_v59 }
0x190c   : > { %v3619_v62 = vpop.f32.mrf.mxu3 }
0x190d   : > { %v3620_v60 = vadd.f32 %v3619_v62, %v3592_v4  ;;  %v3784_v62 = vld [vmem:[%s10812_s13 + $0x10] sm:$0xff] }
0x190e   : > { %3809 = vmatpush.msra.mxu1 %v3784_v62  ;;  %v7487_v62 = vld [vmem:[%s10853_s26 + $0x128] sm:$0xff] }
0x190f   : > { %v3631_v63 = vmul.f32 0.044715, %v3620_v60  ;;  %v3628_v17 = vmul.f32 0.5, %v3620_v60 }
0x1911   : > { %v3634_v0 = vmul.f32 %v3631_v63, %v3620_v60  ;;  %v3783_v63 = vld [vmem:[%s10812_s13 + $0x8] sm:$0xff] }
0x1912   : > { %3810 = vmatpush.msra.mxu1 %v3783_v63 }
0x1913   : > { %v3637_v1 = vmul.f32 %v3634_v0, %v3620_v60  ;;  %v7452_v0 = vld [vmem:[%s10853_s26 + $0x108] sm:$0xff] }
0x1914   : > { %v3622_v3 = vpop.f32.mrf.mxu3 }
0x1915   : > { %v3640_v5 = vadd.f32 %v3637_v1, %v3620_v60  ;;  %v3623_v6 = vadd.f32 %v3622_v3, %v3592_v4  ;;  %v7453_v60 = vld [vmem:[%s10853_s26 + $0x110] sm:$0xff]  ;;  %v3782_v1 = vld [vmem:[%s10812_s13] sm:$0xff] }
0x1916   : > { %v7451_v3 = vld [vmem:[%s10853_s26 + $0x100] sm:$0xff]  ;;  %3811 = vmatpush.msra.mxu1 %v3782_v1 }
0x1917   : > { %v3643_v7 = vmul.f32 0.7978846, %v3640_v5  ;;  %v3632_v37 = vmul.f32 0.044715, %v3623_v6  ;;  %v3629_v20 = vmul.f32 0.5, %v3623_v6 }
0x1919   : > { %8043 = vtanh.f32 %v3643_v7  ;;  %v3635_v10 = vmul.f32 %v3632_v37, %v3623_v6 }
0x191b   : > { %v3638_v11 = vmul.f32 %v3635_v10, %v3623_v6 }
0x191c   : > { %v3625_v12 = vpop.f32.mrf.mxu3 }
0x191d   : > { %v3626_v34 = vadd.f32 %v3625_v12, %v3592_v4  ;;  %v3641_v56 = vadd.f32 %v3638_v11, %v3623_v6  ;;  %v7454_v4 = vld [vmem:[%s10853_s26 + $0x118] sm:$0xff] }
0x191e   : > { %3931 = vmatpush.msra.mxu3 %v7454_v4 }
0x191f   : > { %v8044_v51 = vpop.eup %8043  ;;  %v3633_v9 = vmul.f32 0.044715, %v3626_v34  ;;  %v3644_v39 = vmul.f32 0.7978846, %v3641_v56  ;;  %v3630_v2 = vmul.f32 0.5, %v3626_v34  ;;  %v7462_v56 = vld [vmem:[%s10852_s4 + $0x118] sm:$0xff] }
0x1920   : > { %v3649_v46 = vadd.f32 1.0, %v8044_v51  ;;  %3932 = vmatpush.msra.mxu3 %v7453_v60  ;;  %v7461_v51 = vld [vmem:[%s10852_s4 + $0x110] sm:$0xff]  ;;  %3967 = vmatpush.msrb.mxu1 %v7462_v56 }
0x1921   : > { %8045 = vtanh.f32 %v3644_v39  ;;  %v3636_v15 = vmul.f32 %v3633_v9, %v3626_v34  ;;  %v7460_v39 = vld [vmem:[%s10852_s4 + $0x108] sm:$0xff] }
0x1922   : > { %v3652_v21 = vmul.f32 %v3649_v46, %v3628_v17  ;;  %3933 = vmatpush.msra.mxu3 %v7452_v0  ;;  %3968 = vmatpush.msrb.mxu1 %v7461_v51  ;;  %v7486_v0 = vld [vmem:[%s10853_s26 + $0x120] sm:$0xff] }
0x1923   : > { %v3639_v22 = vmul.f32 %v3636_v15, %v3626_v34 }
0x1924   : > { %3688 = vmatmul.f32.vlgmr.msra.gmra.mxu0 %v3652_v21  ;;  %3934 = vmatpush.msra.mxu3 %v7451_v3  ;;  %v7459_v21 = vld [vmem:[%s10852_s4 + $0x100] sm:$0xff] }
0x1925   : > { %v3642_v23 = vadd.f32 %v3639_v22, %v3626_v34  ;;  %v7443_v22 = vld [vmem:[%s10811_s12 + $0x10] sm:$0x7f]  ;;  %3969 = vmatpush.msrb.mxu1 %v7460_v39 }
0x1927   : > { %v8046_v24 = vpop.eup %8045  ;;  %v3645_v26 = vmul.f32 0.7978846, %v3642_v23  ;;  %v9658_v23 = vld [vmem:[%s10814_s15] sm:$0xf]  ;;  %3970 = vmatpush.msrb.mxu1 %v7459_v21 }
0x1928   : > { %v3650_v48 = vadd.f32 1.0, %v8046_v24 }
0x1929   : > { %8047 = vtanh.f32 %v3645_v26 }
0x192a   : > { %v3653_v25 = vmul.f32 %v3650_v48, %v3629_v20 }
0x192c   : > { %3691 = vmatmul.f32.gmra.mxu0 %v3653_v25 }
0x192f   : > { %v8048_v38 = vpop.eup %8047 }
0x1930   : > { %v3651_v8 = vadd.f32 1.0, %v8048_v38  ;;  %v3774_v38 = vperm.slane %v9658_v23, 0 }
0x1932   : > { %v3654_v29 = vmul.f32 %v3651_v8, %v3630_v2  ;;  %v3892_v2 = vperm.slane %v7443_v22, 0 }
0x1934   : > { %3694 = vmatmul.f32.gmra.mxu0 %v3654_v29 }
0x19a1   : > { %v3689_v31 = vpop.f32.mrf.mxu0 }
0x19a2   : > { %v3698_v50 = vadd.f32 %v3689_v31, %v9470_v28  ;;  %v3896_v31 = vperm.slane %v7443_v22, 1 }
0x19a4   : > { %v9578_v14 = vadd.f32 %v3701_v30, %v3698_v50 }
0x19a6   : > { %v3708_v19 = vsel %vm707_vm1, %v9578_v14, 0.0 }
0x19a7   : > { %3709 = vadd.xlane.f32.xlu0 %v3708_v19 }
0x19a9   : > { %v3692_v49 = vpop.f32.mrf.mxu0 }
0x19aa   : > { %v3699_v33 = vadd.f32 %v3692_v49, %v9478_v32 }
0x19ac   : > { %v9583_v40 = vadd.f32 %v3701_v30, %v3699_v33 }
0x19ae   : > { %v3711_v36 = vsel %vm707_vm1, %v9583_v40, 0.0 }
0x19af   : > { %3712 = vadd.xlane.f32.xlu1 %v3711_v36 }
0x19b1   : > { %v3695_v16 = vpop.f32.mrf.mxu0 }
0x19b2   : > { %v3700_v27 = vadd.f32 %v3695_v16, %v9484_v35 }
0x19b4   : > { %v9588_v13 = vadd.f32 %v3701_v30, %v3700_v27  ;;  %v3778_v30 = vperm.slane %v9658_v23, 1 }
0x19b6   : > { %v3714_v28 = vsel %vm714_vm2, %v9588_v13, 0.0 }
0x19b7   : > { %3715 = vadd.xlane.f32.xlu2 %v3714_v28 }
0x1a1a   : > { %v3710_v53 = vpop.xlane.xlu0 %3709 }
0x1a1b   : > { %v3717_v41 = vmul.f32 %v3710_v53, %v8518_v54 }
0x1a1d   : > { %v9594_v32 = vsub.f32 %v9578_v14, %v3717_v41 }
0x1a1f   : > { %v3723_v42 = vmul.f32 %v9594_v32, %v9594_v32 }
0x1a21   : > { %v3726_v43 = vsel %vm707_vm1, %v3723_v42, 0.0 }
0x1a22   : > { %3727 = vadd.xlane.f32.xlu0 %v3726_v43  ;;  %v3713_v61 = vpop.xlane.xlu1 %3712 }
0x1a23   : > { %v3718_v35 = vmul.f32 %v3713_v61, %v8518_v54 }
0x1a25   : > { %v9601_v44 = vsub.f32 %v9583_v40, %v3718_v35 }
0x1a27   : > { %v3724_v45 = vmul.f32 %v9601_v44, %v9601_v44 }
0x1a29   : > { %v3729_v47 = vsel %vm707_vm1, %v3724_v45, 0.0 }
0x1a2a   : > { %3730 = vadd.xlane.f32.xlu1 %v3729_v47  ;;  %v3716_v52 = vpop.xlane.xlu2 %3715 }
0x1a2b   : > { %v3719_v55 = vmul.f32 %v3716_v52, %v8518_v54 }
0x1a2d   : > { %v9608_v57 = vsub.f32 %v9588_v13, %v3719_v55 }
0x1a2f   : > { %v3725_v18 = vmul.f32 %v9608_v57, %v9608_v57 }
0x1a31   : > { %v3732_v58 = vsel %vm714_vm2, %v3725_v18, 0.0 }
0x1a32   : > { %3733 = vadd.xlane.f32.xlu2 %v3732_v58  ;;  %v7488_v58 = vld [vmem:[%s10853_s26 + $0x130] sm:$0xff] }
0x1a95   : > { %v3728_v5 = vpop.xlane.xlu0 %3727 }
0x1a96   : > { %v3735_v6 = vmul.f32 %v3728_v5, %v8518_v54  ;;  %v3786_v5 = vperm.slane %v9658_v23, 2 }
0x1a98   : > { %v3738_v7 = vadd.f32 1e-05, %v3735_v6 }
0x1a9a   : > { %8049 = vrsqrt.f32 %v3738_v7  ;;  %vm3747_vm7 = vweird.f32 %v3738_v7 }
0x1a9d   : > { %v3731_v37 = vpop.xlane.xlu1 %3730 }
0x1a9e   : > { %v3736_v10 = vmul.f32 %v3731_v37, %v8518_v54 }
0x1aa0   : > { %v8050_v11 = vpop.eup %8049  ;;  %v3739_v12 = vadd.f32 1e-05, %v3736_v10 }
0x1aa1   : > { %v3742_v34 = vmul.f32 %v8050_v11, %v3738_v7  ;;  %vm3748_vm6 = vweird.f32 %v8050_v11 }
0x1aa2   : > { %8051 = vrsqrt.f32 %v3739_v12  ;;  %vm3749_vm8 = vmor %vm3747_vm7, %vm3748_vm6  ;;  %vm3757_vm10 = vweird.f32 %v3739_v12 }
0x1aa3   : > { %v3743_v9 = vmul.f32 %v8050_v11, %v3742_v34 }
0x1aa5   : > { %v3744_v17 = vmul.f32 0.5, %v3743_v9  ;;  %v3734_v46 = vpop.xlane.xlu2 %3733 }
0x1aa6   : > { %v3737_v15 = vmul.f32 %v3734_v46, %v8518_v54 }
0x1aa7   : > { %v3745_v24 = vsub.f32 1.5, %v3744_v17 }
0x1aa8   : > { %v8052_v26 = vpop.eup %8051  ;;  %v3740_v20 = vadd.f32 1e-05, %v3737_v15 }
0x1aa9   : > { %v3746_v48 = vmul.f32 %v8050_v11, %v3745_v24  ;;  %v3752_v25 = vmul.f32 %v8052_v26, %v3739_v12  ;;  %vm3758_vm9 = vweird.f32 %v8052_v26 }
0x1aaa   : > { %8053 = vrsqrt.f32 %v3740_v20  ;;  %vm3759_vm11 = vmor %vm3757_vm10, %vm3758_vm9  ;;  %vm3767_vm3 = vweird.f32 %v3740_v20 }
0x1aab   : > { %v3750_v8 = vsel %vm3749_vm8, %v8050_v11, %v3746_v48  ;;  %v3753_v29 = vmul.f32 %v8052_v26, %v3752_v25 }
0x1aac   : > { %v3771_v50 = vmul.f32 %v3750_v8, %v9594_v32  ;;  %v8264_v8 = vmov 0  }
0x1aad   : > { %v3754_v19 = vmul.f32 0.5, %v3753_v29  ;;  %7865 = vset.pattern.permute.xlu0 %v8264_v8  ;;  %7866 = vset.pattern.permute.xlu1 %v8264_v8 }
0x1aae   : > { %v3775_v49 = vmul.f32 %v3774_v38, %v3771_v50  ;;  %v3893_v33 = vmul.f32 %v3892_v2, %v3771_v50  ;;  %3852 = vperm.xlu0 %7865, %v9658_v23  }
0x1aaf   : > { %v3755_v36 = vsub.f32 1.5, %v3754_v19 }
0x1ab0   : > { %v8054_v16 = vpop.eup %8053  ;;  %v3779_v27 = vadd.f32 %v3778_v30, %v3775_v49  ;;  %v9663_v28 = vadd.f32 %v3896_v31, %v3893_v33  ;;  %v7892_v33 = vld [vmem:[%s10806_s7 + $0x8] ss:$0 sm:$0xff] }
0x1ab1   : > { %v3756_v53 = vmul.f32 %v8052_v26, %v3755_v36  ;;  %v3762_v41 = vmul.f32 %v8054_v16, %v3740_v20  ;;  %vm3768_vm12 = vweird.f32 %v8054_v16 }
0x1ab2   : > { %7444 = vmatmul.msk.f32.vlgmr.msra.gmra.mxu1 %vm707_vm1, %v3779_v27  ;;  %7456 = vmatmul.msk.f32.vlgmr.msra.gmra.mxu3 %vm707_vm1, %v9663_v28  ;;  %vm3769_vm4 = vmor %vm3767_vm3, %vm3768_vm12 }
0x1ab3   : > { %v3760_v42 = vsel %vm3759_vm11, %v8052_v26, %v3756_v53  ;;  %v3763_v32 = vmul.f32 %v8054_v16, %v3762_v41 }
0x1ab4   : > { %v3772_v43 = vmul.f32 %v3760_v42, %v9601_v44  ;;  %v7489_v44 = vld [vmem:[%s10853_s26 + $0x138] sm:$0xff] }
0x1ab5   : > { %v3764_v61 = vmul.f32 0.5, %v3763_v32  ;;  %4202 = vmatpush.msra.mxu1 %v7489_v44  ;;  %v7468_v44 = vld [vmem:[%s10854_s5 + $0x108] sm:$0xff] }
0x1ab6   : > { %v3894_v35 = vmul.f32 %v3892_v2, %v3772_v43  ;;  %v3776_v45 = vmul.f32 %v3774_v38, %v3772_v43 }
0x1ab7   : > { %v3765_v47 = vsub.f32 1.5, %v3764_v61  ;;  %4203 = vmatpush.msra.mxu1 %v7488_v58  ;;  %v7470_v61 = vld [vmem:[%s10854_s5 + $0x118] sm:$0xff] }
0x1ab8   : > { %v9669_v52 = vadd.f32 %v3896_v31, %v3894_v35  ;;  %v3780_v55 = vadd.f32 %v3778_v30, %v3776_v45  ;;  %v7891_v35 = vld [vmem:[%s10855_s6 + $0x8] ss:$0 sm:$0xff]  ;;  %v3849_v45 = vld [vmem:[%s10813_s14] sm:$0x1] }
0x1ab9   : > { %v3766_v18 = vmul.f32 %v8054_v16, %v3765_v47  ;;  %4204 = vmatpush.msra.mxu1 %v7487_v62  ;;  %v7503_v62 = vld [vmem:[%s10854_s5 + $0x128] sm:$0xff] }
0x1aba   : > { %7445 = vmatmul.msk.f32.gmra.mxu1 %vm707_vm1, %v3780_v55  ;;  %7457 = vmatmul.msk.f32.gmra.mxu3 %vm707_vm1, %v9669_v52  ;;  %v7469_v55 = vld [vmem:[%s10854_s5 + $0x110] sm:$0xff] }
0x1abb   : > { %v3770_v59 = vsel %vm3769_vm4, %v8054_v16, %v3766_v18  ;;  %4205 = vmatpush.msra.mxu1 %v7486_v0  ;;  %v7505_v18 = vld [vmem:[%s10854_s5 + $0x138] sm:$0xff]  ;;  %v7502_v0 = vld [vmem:[%s10854_s5 + $0x120] sm:$0xff] }
0x1abc   : > { %v3773_v4 = vmul.f32 %v3770_v59, %v9608_v57  ;;  %v7504_v59 = vld [vmem:[%s10854_s5 + $0x130] sm:$0xff] }
0x1abe   : > { %v3895_v60 = vmul.f32 %v3892_v2, %v3773_v4  ;;  %v3777_v63 = vmul.f32 %v3774_v38, %v3773_v4  ;;  %v7467_v4 = vld [vmem:[%s10854_s5 + $0x100] sm:$0xff] }
0x1ac0   : > { %v9687_v1 = vadd.f32 %v3896_v31, %v3895_v60  ;;  %v3781_v3 = vadd.f32 %v3778_v30, %v3777_v63  ;;  %v7497_v60 = vld [vmem:[%s10852_s4 + $0x138] sm:$0xff] }
0x1ac2   : > { %7446 = vmatmul.msk.f32.gmra.mxu1 %vm707_vm1, %v3781_v3  ;;  %7458 = vmatmul.msk.f32.gmra.mxu3 %vm707_vm1, %v9687_v1  ;;  %v7496_v3 = vld [vmem:[%s10852_s4 + $0x130] sm:$0xff] }
0x1aca   : > { %7464 = vmatmul.msk.f32.vlgmr.msrb.gmra.mxu1 %vm707_vm1, %v9663_v28 }
0x1ad2   : > { %7465 = vmatmul.msk.f32.gmra.mxu1 %vm707_vm1, %v9669_v52 }
0x1ada   : > { %7466 = vmatmul.msk.f32.gmra.mxu1 %vm707_vm1, %v9687_v1 }
0x1ae2   : > { %7491 = vmatmul.msk.f32.vlgmr.msra.gmra.mxu1 %vm707_vm1, %v9663_v28 }
0x1aea   : > { %7492 = vmatmul.msk.f32.gmra.mxu1 %vm707_vm1, %v9669_v52 }
0x1af2   : > { %7493 = vmatmul.msk.f32.gmra.mxu1 %vm707_vm1, %v9687_v1 }
0x1b2f   : > { %v3813_v57 = vpop.f32.mrf.mxu1 }
0x1b30   : > { %v3814_v7 = vadd.f32 %v3813_v57, %v3786_v5  ;;  %v7495_v57 = vld [vmem:[%s10852_s4 + $0x128] sm:$0xff] }
0x1b32   : > { %v3825_v11 = vmul.f32 0.044715, %v3814_v7  ;;  %v3822_v23 = vmul.f32 0.5, %v3814_v7 }
0x1b34   : > { %v3828_v51 = vmul.f32 %v3825_v11, %v3814_v7 }
0x1b35   : > { %v3936_v42 = vpop.f32.mrf.mxu3 }
0x1b36   : > { %v3831_v15 = vmul.f32 %v3828_v51, %v3814_v7  ;;  %v3937_v58 = vadd.f32 %v7891_v35, %v3936_v42 }
0x1b37   : > { %v3816_v6 = vpop.f32.mrf.mxu1 }
0x1b38   : > { %v3817_v37 = vadd.f32 %v3816_v6, %v3786_v5  ;;  %v3834_v20 = vadd.f32 %v3831_v15, %v3814_v7  ;;  %v7494_v6 = vld [vmem:[%s10852_s4 + $0x120] sm:$0xff] }
0x1b3a   : > { %v3826_v10 = vmul.f32 0.044715, %v3817_v37  ;;  %v3837_v25 = vmul.f32 0.7978846, %v3834_v20  ;;  %v3823_v16 = vmul.f32 0.5, %v3817_v37 }
0x1b3c   : > { %v3829_v12 = vmul.f32 %v3826_v10, %v3817_v37  ;;  %v3853_v10 = vpop.permute.xlu0 %3852 }
0x1b3d   : > { %v3939_v63 = vpop.f32.mrf.mxu3 }
0x1b3e   : > { %v3832_v56 = vmul.f32 %v3829_v12, %v3817_v37  ;;  %v3854_v12 = vrot.slane %v3853_v10, 3 }
0x1b3f   : > { %v3819_v34 = vpop.f32.mrf.mxu1 }
0x1b40   : > { %v3820_v9 = vadd.f32 %v3819_v34, %v3786_v5  ;;  %v3835_v17 = vadd.f32 %v3832_v56, %v3817_v37  ;;  %v3940_v5 = vadd.f32 %v7891_v35, %v3939_v63 }
0x1b42   : > { %v3827_v39 = vmul.f32 0.044715, %v3820_v9  ;;  %v3838_v24 = vmul.f32 0.7978846, %v3835_v17  ;;  %v3824_v30 = vmul.f32 0.5, %v3820_v9 }
0x1b44   : > { %v3830_v46 = vmul.f32 %v3827_v39, %v3820_v9  ;;  %8055 = vtanh.f32 %v3838_v24 }
0x1b45   : > { %v3942_v7 = vpop.f32.mrf.mxu3 }
0x1b46   : > { %v3833_v21 = vmul.f32 %v3830_v46, %v3820_v9  ;;  %v3943_v37 = vadd.f32 %v7891_v35, %v3942_v7 }
0x1b47   : > { %v3972_v22 = vpop.f32.mrf.mxu1 }
0x1b48   : > { %v3836_v26 = vadd.f32 %v3833_v21, %v3820_v9  ;;  %v3973_v47 = vadd.f32 %v7892_v33, %v3972_v22  ;;  %v8265_v9 = vmov -1e+09  }
0x1b4a   : > { %v3839_v48 = vmul.f32 0.7978846, %v3836_v26  ;;  %v8056_v2 = vpop.eup %8055 }
0x1b4b   : > { %v3844_v19 = vadd.f32 1.0, %v8056_v2 }
0x1b4c   : > { %8057 = vtanh.f32 %v3839_v48 }
0x1b4d   : > { %8059 = vtanh.f32 %v3837_v25  ;;  %v3847_v53 = vmul.f32 %v3844_v19, %v3823_v16 }
0x1b4f   : > { %v3975_v38 = vpop.f32.mrf.mxu1 }
0x1b50   : > { %v3976_v32 = vadd.f32 %v7892_v33, %v3975_v38 }
0x1b52   : > { %v8058_v29 = vpop.eup %8057 }
0x1b53   : > { %v3845_v31 = vadd.f32 1.0, %v8058_v29  ;;  %v8060_v49 = vpop.eup %8059 }
0x1b54   : > { %v3843_v41 = vadd.f32 1.0, %v8060_v49 }
0x1b55   : > { %v3848_v50 = vmul.f32 %v3845_v31, %v3824_v30 }
0x1b56   : > { %v3846_v43 = vmul.f32 %v3843_v41, %v3822_v23 }
0x1b57   : > { %7447 = vmatpush.xpose.msk.msra.mxu2 %vm901_vm13, %v3848_v50  ;;  %v3978_v36 = vpop.f32.mrf.mxu1  ;;  %v7894_v50 = vld [vmem:[%s10807_s8 + $0x8] ss:$0 sm:$0xff] }
0x1b58   : > { %v3979_v27 = vadd.f32 %v7892_v33, %v3978_v36 }
0x1b5a   : > { %7475 = vmatpush.xpose.msk.msrb.mxu0 %vm901_vm13, %v3979_v27 }
0x1b5b   : > { %7448 = vmatpush.xpose.msk.msra.mxu2 %vm901_vm13, %v3847_v53  ;;  %v7895_v53 = vld [vmem:[%s10807_s8 + $0x9] ss:$0 sm:$0xff] }
0x1b5e   : > { %7476 = vmatpush.xpose.msk.msrb.mxu0 %vm901_vm13, %v3976_v32 }
0x1b5f   : > { %7449 = vmatpush.xpose.msk.msra.mxu2 %vm901_vm13, %v3846_v43 }
0x1b62   : > { %7450 = vmatmul.msk.f32.vlgmr.msra.gmra.mxu2 %vm901_vm13, %v3849_v45  ;;  %7477 = vmatpush.xpose.msk.msrb.mxu0 %vm901_vm13, %v3973_v47 }
0x1b63   : > { %4003 = vmatpush.msrb.mxu2 %v7470_v61  ;;  %v7896_v61 = vld [vmem:[%s10806_s7 + $0x9] ss:$0 sm:$0xff] }
0x1b65   : > { %4004 = vmatpush.msrb.mxu2 %v7469_v55  ;;  %7478 = vmatmul.msk.f32.vlgmr.msrb.gmra.mxu0 %vm901_vm13, %v3937_v58 }
0x1b66   : > { %4274 = vmatpush.msra.mxu0 %v7505_v18 }
0x1b67   : > { %4005 = vmatpush.msrb.mxu2 %v7468_v44 }
0x1b68   : > { %4275 = vmatpush.msra.mxu0 %v7504_v59 }
0x1b69   : > { %4006 = vmatpush.msrb.mxu2 %v7467_v4 }
0x1b6a   : > { %4276 = vmatpush.msra.mxu0 %v7503_v62  ;;  %7472 = vmatmul.msk.f32.vlgmr.msrb.gmra.mxu2 %vm707_vm1, %v9663_v28 }
0x1b6b   : > { %4238 = vmatpush.msra.mxu2 %v7497_v60 }
0x1b6c   : > { %4277 = vmatpush.msra.mxu0 %v7502_v0 }
0x1b6d   : > { %4239 = vmatpush.msra.mxu2 %v7496_v3  ;;  %7479 = vmatmul.msk.f32.gmra.mxu0 %vm901_vm13, %v3940_v5 }
0x1b6f   : > { %4240 = vmatpush.msra.mxu2 %v7495_v57 }
0x1b71   : > { %4241 = vmatpush.msra.mxu2 %v7494_v6 }
0x1b72   : > { %7473 = vmatmul.msk.f32.gmra.mxu2 %vm707_vm1, %v9669_v52 }
0x1b75   : > { %7480 = vmatmul.msk.f32.gmra.mxu0 %vm901_vm13, %v3943_v37 }
0x1b7a   : > { %7474 = vmatmul.msk.f32.gmra.mxu2 %vm707_vm1, %v9687_v1 }
0x1b7d   : > { %7507 = vmatmul.msk.f32.vlgmr.msra.gmra.mxu0 %vm707_vm1, %v9663_v28 }
0x1b82   : > { %7499 = vmatmul.msk.f32.vlgmr.msra.gmra.mxu2 %vm707_vm1, %v9663_v28 }
0x1b85   : > { %7508 = vmatmul.msk.f32.gmra.mxu0 %vm707_vm1, %v9669_v52 }
0x1b8a   : > { %7500 = vmatmul.msk.f32.gmra.mxu2 %vm707_vm1, %v9669_v52 }
0x1b8d   : > { %7509 = vmatmul.msk.f32.gmra.mxu0 %vm707_vm1, %v9687_v1 }
0x1b92   : > { %7501 = vmatmul.msk.f32.gmra.mxu2 %vm707_vm1, %v9687_v1 }
0x1be2   : > { %v4052_v11 = vpop.f32.mrf.mxu0 }
0x1be3   : > { %v4061_v17 = vmul.f32 0.35355338, %v4052_v11 }
0x1be5   : > { %v3885_v34 = vpop.f32.mrf.mxu2 }
0x1be6   : > { %v3886_v56 = vadd.f32 %v3885_v34, %v3854_v12 }
0x1be8   : > { %vm3888_vm5 = vcmp.lt.f32.partialorder %v3886_v56, 0.0 }
0x1be9   : > { %v3889_v51 = vsel %vm3888_vm5, 1, %v8264_v8  ;;  %v3891_v39 = vsel %vm3888_vm5, 0.0, %v8265_v9 }
0x1bea   : > { %3890 = vst.msk [vmem:[%s9785_s2] sm:$0x1] %vm956_vm0, %v3889_v51  ;;  %v9791_v46 = vperm.slane %v3891_v39, 0  ;;  %v4055_v15 = vpop.f32.mrf.mxu0 }
0x1beb   : > { %v4062_v21 = vmul.f32 0.35355338, %v4055_v15 }
0x1bec   : > { %v4065_v22 = vadd.f32 %v9791_v46, %v4061_v17 }
0x1bed   : > { %v4008_v24 = vpop.f32.mrf.mxu2  ;;  %v4066_v26 = vadd.f32 %v9791_v46, %v4062_v21 }
0x1bee   : > { %v4068_v20 = vsel %vm949_vm15, %v4065_v22, -inf  ;;  %v4009_v36 = vadd.f32 %v7894_v50, %v4008_v24 }
0x1bef   : > { %4069 = vmax.xlane.f32.xlu1 %v4068_v20  ;;  %v4071_v48 = vsel %vm949_vm15, %v4066_v26, -inf }
0x1bf0   : > { %4072 = vmax.xlane.f32.xlu2 %v4071_v48 }
0x1bf2   : > { %v4058_v25 = vpop.f32.mrf.mxu0 }
0x1bf3   : > { %v4063_v38 = vmul.f32 0.35355338, %v4058_v25 }
0x1bf5   : > { %v4011_v2 = vpop.f32.mrf.mxu2  ;;  %v4067_v29 = vadd.f32 %v9791_v46, %v4063_v38 }
0x1bf6   : > { %v4012_v33 = vadd.f32 %v7894_v50, %v4011_v2 }
0x1bf7   : > { %v4074_v30 = vsel %vm956_vm0, %v4067_v29, -inf }
0x1bf8   : > { %4075 = vmax.xlane.f32.xlu1 %v4074_v30 }
0x1bfa   : > { %v4279_v31 = vpop.f32.mrf.mxu0 }
0x1bfb   : > { %v4280_v43 = vadd.f32 %v7895_v53, %v4279_v31 }
0x1bfd   : > { %v4014_v19 = vpop.f32.mrf.mxu2 }
0x1bfe   : > { %v4015_v49 = vadd.f32 %v7894_v50, %v4014_v19 }
0x1c00   : > { %7481 = vmatpush.msk.msrb.mxu3 %vm1032_vm14, %v4015_v49 }
0x1c02   : > { %4166 = vmatpush.msrb.mxu3 %v4012_v33  ;;  %v4282_v16 = vpop.f32.mrf.mxu0 }
0x1c03   : > { %v4283_v42 = vadd.f32 %v7895_v53, %v4282_v16 }
0x1c04   : > { %4167 = vmatpush.msrb.mxu3 %v4009_v36 }
0x1c05   : > { %v4243_v27 = vpop.f32.mrf.mxu2 }
0x1c06   : > { %v4244_v55 = vadd.f32 %v7896_v61, %v4243_v27 }
0x1c0a   : > { %v4285_v41 = vpop.f32.mrf.mxu0 }
0x1c0b   : > { %v4286_v23 = vadd.f32 %v7895_v53, %v4285_v41 }
0x1c0d   : > { %v4246_v32 = vpop.f32.mrf.mxu2  ;;  %7516 = vmatpush.msk.msrb.mxu1 %vm1032_vm14, %v4286_v23 }
0x1c0e   : > { %v4247_v47 = vadd.f32 %v7896_v61, %v4246_v32 }
0x1c0f   : > { %4436 = vmatpush.msrb.mxu1 %v4283_v42 }
0x1c11   : > { %4437 = vmatpush.msrb.mxu1 %v4280_v43  ;;  %v7530_v43 = vld [vmem:[%s10853_s26 + $0x158] sm:$0xff] }
0x1c15   : > { %v4249_v35 = vpop.f32.mrf.mxu2 }
0x1c16   : > { %v4250_v45 = vadd.f32 %v7896_v61, %v4249_v35  ;;  %v7529_v61 = vld [vmem:[%s10853_s26 + $0x150] sm:$0xff] }
0x1c18   : > { %7510 = vmatpush.xpose.msk.msra.mxu3 %vm901_vm13, %v4250_v45  ;;  %v7528_v45 = vld [vmem:[%s10853_s26 + $0x148] sm:$0xff] }
0x1c1c   : > { %7511 = vmatpush.xpose.msk.msra.mxu3 %vm901_vm13, %v4247_v47 }
0x1c20   : > { %7512 = vmatpush.xpose.msk.msra.mxu3 %vm901_vm13, %v4244_v55  ;;  %v7527_v55 = vld [vmem:[%s10853_s26 + $0x140] sm:$0xff] }
0x1c62   : > { %v4070_v18 = vpop.xlane.xlu1 %4069 }
0x1c63   : > { %v4077_v44 = vsub.f32 %v4065_v22, %v4070_v18  ;;  %v4073_v58 = vpop.xlane.xlu2 %4072 }
0x1c64   : > { %v4078_v59 = vsub.f32 %v4066_v26, %v4073_v58  ;;  %v7893_v58 = vld [vmem:[%s10855_s6 + $0x9] ss:$0 sm:$0xff] }
0x1c65   : > { %v4080_v4 = vmul.f32 1.442695, %v4077_v44  ;;  %v4207_v44 = vpop.f32.mrf.mxu1 }
0x1c66   : > { %v4082_v62 = vmul.f32 1.442695, %v4078_v59  ;;  %v4208_v59 = vadd.f32 %v7893_v58, %v4207_v44 }
0x1c67   : > { %8061 = vpow2.f32 %v4080_v4 }
0x1c68   : > { %8063 = vpow2.f32 %v4082_v62 }
0x1c6b   : > { %v4076_v60 = vpop.xlane.xlu1 %4075 }
0x1c6c   : > { %v4079_v63 = vsub.f32 %v4067_v29, %v4076_v60 }
0x1c6d   : > { %v8062_v0 = vpop.eup %8061  ;;  %v4210_v4 = vpop.f32.mrf.mxu1 }
0x1c6e   : > { %v8064_v3 = vpop.eup %8063  ;;  %v4084_v57 = vmul.f32 1.442695, %v4079_v63  ;;  %v4086_v5 = vsel %vm949_vm15, %v8062_v0, 0.0  ;;  %v4211_v62 = vadd.f32 %v7893_v58, %v4210_v4 }
0x1c6f   : > { %4087 = vadd.xlane.f32.xlu2 %v4086_v5  ;;  %v4089_v6 = vsel %vm949_vm15, %v8064_v3, 0.0 }
0x1c70   : > { %8065 = vpow2.f32 %v4084_v57  ;;  %4090 = vadd.xlane.f32.xlu1 %v4089_v6 }
0x1c75   : > { %v4213_v60 = vpop.f32.mrf.mxu1 }
0x1c76   : > { %v8066_v7 = vpop.eup %8065  ;;  %v4214_v63 = vadd.f32 %v7893_v58, %v4213_v60 }
0x1c77   : > { %v4092_v37 = vsel %vm956_vm0, %v8066_v7, 0.0 }
0x1c78   : > { %4093 = vadd.xlane.f32.xlu2 %v4092_v37 }
0x1ce2   : > { %v4088_v10 = vpop.xlane.xlu2 %4087 }
0x1ce3   : > { %8067 = vrcp.f32 %v4088_v10  ;;  %v4091_v11 = vpop.xlane.xlu1 %4090  ;;  %v4106_v15 = vand.u32 2147483648, %v4088_v10  ;;  %v4104_v24 = vand.u32 2147483647, %v4088_v10  ;;  %vm4100_vm7 = vweird.f32 %v4088_v10 }
0x1ce4   : > { %8069 = vrcp.f32 %v4091_v11  ;;  %v4121_v30 = vand.u32 2147483648, %v4091_v11  ;;  %vm4115_vm11 = vweird.f32 %v4091_v11  ;;  %v4119_v19 = vand.u32 2147483647, %v4091_v11 }
0x1ce5   : > { %v4107_v48 = vor.u32 1.1754944e-38, %v4106_v15  ;;  %vm4105_vm9 = vcmp.eq.f32.partialorder %v4104_v24, 8.507059e+37 }
0x1ce6   : > { %v4122_v36 = vor.u32 1.1754944e-38, %v4121_v30  ;;  %vm4120_vm3 = vcmp.eq.f32.partialorder %v4119_v19, 8.507059e+37 }
0x1ce9   : > { %v8068_v12 = vpop.eup %8067 }
0x1cea   : > { %v8070_v34 = vpop.eup %8069  ;;  %v4096_v56 = vmul.f32 %v8068_v12, %v4088_v10  ;;  %vm4101_vm6 = vweird.f32 %v8068_v12 }
0x1ceb   : > { %v4111_v51 = vmul.f32 %v8070_v34, %v4091_v11  ;;  %v4094_v39 = vpop.xlane.xlu2 %4093  ;;  %vm4102_vm8 = vmor %vm4100_vm7, %vm4101_vm6  ;;  %vm4116_vm10 = vweird.f32 %v8070_v34 }
0x1cec   : > { %v4097_v17 = vsub.f32 1.0, %v4096_v56  ;;  %8071 = vrcp.f32 %v4094_v39  ;;  %vm4117_vm12 = vmor %vm4115_vm11, %vm4116_vm10  ;;  %v4136_v41 = vand.u32 2147483648, %v4094_v39  ;;  %vm4130_vm5 = vweird.f32 %v4094_v39 }
0x1ced   : > { %v4112_v21 = vsub.f32 1.0, %v4111_v51  ;;  %v4134_v23 = vand.u32 2147483647, %v4094_v39 }
0x1cee   : > { %v4098_v22 = vmul.f32 %v8068_v12, %v4097_v17  ;;  %v4137_v35 = vor.u32 1.1754944e-38, %v4136_v41 }
0x1cef   : > { %v4113_v26 = vmul.f32 %v8070_v34, %v4112_v21  ;;  %vm4135_vm7 = vcmp.eq.f32.partialorder %v4134_v23, 8.507059e+37 }
0x1cf0   : > { %v4099_v20 = vadd.f32 %v8068_v12, %v4098_v22 }
0x1cf1   : > { %v4114_v2 = vadd.f32 %v8070_v34, %v4113_v26 }
0x1cf2   : > { %v8072_v25 = vpop.eup %8071  ;;  %v4103_v38 = vsel %vm4102_vm8, %v8068_v12, %v4099_v20 }
0x1cf3   : > { %v4108_v29 = vsel %vm4105_vm9, %v4107_v48, %v4103_v38  ;;  %v4126_v31 = vmul.f32 %v8072_v25, %v4094_v39  ;;  %v4118_v33 = vsel %vm4117_vm12, %v8070_v34, %v4114_v2  ;;  %vm4131_vm4 = vweird.f32 %v8072_v25 }
0x1cf4   : > { %v4109_v50 = vmul.f32 %v8062_v0, %v4108_v29  ;;  %v4123_v27 = vsel %vm4120_vm3, %v4122_v36, %v4118_v33  ;;  %vm4132_vm6 = vmor %vm4130_vm5, %vm4131_vm4  ;;  %v7485_v0 = vld [vmem:[%s10808_s9 + $0x40] sm:$0xff]  ;;  %v7538_v33 = vld [vmem:[%s10852_s4 + $0x158] sm:$0xff] }
0x1cf5   : > { %v4127_v49 = vsub.f32 1.0, %v4126_v31  ;;  %v4124_v42 = vmul.f32 %v8064_v3, %v4123_v27  ;;  %4509 = vmatpush.msrb.mxu0 %v7485_v0  ;;  %4578 = vmatpush.msra.mxu1 %v7538_v33  ;;  %v7536_v27 = vld [vmem:[%s10852_s4 + $0x148] sm:$0xff] }
0x1cf6   : > { %7482 = vmatmul.msk.f32.vlgmr.msrb.gmra.mxu3 %vm949_vm15, %v4109_v50  ;;  %v7898_v33 = vld [vmem:[%s10806_s7 + $0xa] ss:$0 sm:$0xff] }
0x1cf7   : > { %v4128_v16 = vmul.f32 %v8072_v25, %v4127_v49  ;;  %4542 = vmatpush.msrb.mxu3 %v7530_v43 }
0x1cf9   : > { %v4129_v53 = vadd.f32 %v8072_v25, %v4128_v16  ;;  %4543 = vmatpush.msrb.mxu3 %v7529_v61  ;;  %v7537_v16 = vld [vmem:[%s10852_s4 + $0x150] sm:$0xff] }
0x1cfa   : > { %4579 = vmatpush.msra.mxu1 %v7537_v16 }
0x1cfb   : > { %v4133_v32 = vsel %vm4132_vm6, %v8072_v25, %v4129_v53  ;;  %4544 = vmatpush.msrb.mxu3 %v7528_v45  ;;  %v7535_v53 = vld [vmem:[%s10852_s4 + $0x140] sm:$0xff] }
0x1cfc   : > { %v4138_v47 = vsel %vm4135_vm7, %v4137_v35, %v4133_v32  ;;  %4580 = vmatpush.msra.mxu1 %v7536_v27 }
0x1cfd   : > { %v4139_v18 = vmul.f32 %v8066_v7, %v4138_v47  ;;  %4545 = vmatpush.msrb.mxu3 %v7527_v55 }
0x1cfe   : > { %7483 = vmatmul.msk.f32.gmra.mxu3 %vm949_vm15, %v4124_v42  ;;  %4581 = vmatpush.msra.mxu1 %v7535_v53 }
0x1d06   : > { %7484 = vmatmul.msk.f32.gmra.mxu3 %vm949_vm15, %v4139_v18 }
0x1d0e   : > { %7513 = vmatmul.msk.f32.vlgmr.msra.gmra.mxu3 %vm901_vm13, %v4208_v59 }
0x1d16   : > { %7514 = vmatmul.msk.f32.gmra.mxu3 %vm901_vm13, %v4211_v62 }
0x1d1e   : > { %7515 = vmatmul.msk.f32.gmra.mxu3 %vm901_vm13, %v4214_v63 }
0x1d26   : > { %7532 = vmatmul.msk.f32.vlgmr.msrb.gmra.mxu3 %vm707_vm1, %v9663_v28 }
0x1d2e   : > { %7533 = vmatmul.msk.f32.gmra.mxu3 %vm707_vm1, %v9669_v52 }
0x1d36   : > { %7534 = vmatmul.msk.f32.gmra.mxu3 %vm707_vm1, %v9687_v1 }
0x1d79   : > { %v4169_v3 = vpop.f32.mrf.mxu3 }
0x1d7a   : > { %7524 = vmatmul.msk.f32.vlgmr.msrb.gmra.mxu0 %vm901_vm13, %v4169_v3 }
0x1d81   : > { %v4172_v57 = vpop.f32.mrf.mxu3 }
0x1d82   : > { %7525 = vmatmul.msk.f32.gmra.mxu0 %vm901_vm13, %v4172_v57 }
0x1d89   : > { %v4175_v5 = vpop.f32.mrf.mxu3 }
0x1d8a   : > { %7526 = vmatmul.msk.f32.gmra.mxu0 %vm901_vm13, %v4175_v5 }
0x1d91   : > { %v4323_v6 = vpop.f32.mrf.mxu3 }
0x1d92   : > { %v4332_v7 = vmul.f32 0.35355338, %v4323_v6 }
0x1d94   : > { %v4335_v37 = vadd.f32 %v4332_v7, %v9791_v46 }
0x1d96   : > { %v4338_v10 = vsel %vm949_vm15, %v4335_v37, -inf }
0x1d97   : > { %4339 = vmax.xlane.f32.xlu1 %v4338_v10 }
0x1d99   : > { %v4326_v11 = vpop.f32.mrf.mxu3 }
0x1d9a   : > { %v4333_v12 = vmul.f32 0.35355338, %v4326_v11 }
0x1d9c   : > { %v4336_v34 = vadd.f32 %v4333_v12, %v9791_v46 }
0x1d9e   : > { %v4341_v56 = vsel %vm949_vm15, %v4336_v34, -inf }
0x1d9f   : > { %4342 = vmax.xlane.f32.xlu2 %v4341_v56 }
0x1da1   : > { %v4329_v51 = vpop.f32.mrf.mxu3 }
0x1da2   : > { %v4334_v39 = vmul.f32 0.35355338, %v4329_v51 }
0x1da4   : > { %v4337_v17 = vadd.f32 %v4334_v39, %v9791_v46 }
0x1da6   : > { %v4344_v15 = vsel %vm956_vm0, %v4337_v17, -inf }
0x1da7   : > { %4345 = vmax.xlane.f32.xlu1 %v4344_v15 }
0x1da9   : > { %v4547_v27 = vpop.f32.mrf.mxu3 }
0x1e0a   : > { %v4340_v21 = vpop.xlane.xlu1 %4339 }
0x1e0b   : > { %v4347_v22 = vsub.f32 %v4335_v37, %v4340_v21 }
0x1e0d   : > { %v4350_v24 = vmul.f32 1.442695, %v4347_v22  ;;  %v7520_v22 = vld [vmem:[%s10808_s9 + $0x48] sm:$0xff] }
0x1e0e   : > { %4474 = vmatpush.msrb.mxu2 %v7520_v22 }
0x1e0f   : > { %8073 = vpow2.f32 %v4350_v24  ;;  %v7546_v24 = vld [vmem:[%s10854_s5 + $0x158] sm:$0xff] }
0x1e10   : > { %4614 = vmatpush.msra.mxu2 %v7546_v24 }
0x1e12   : > { %v4343_v26 = vpop.xlane.xlu2 %4342 }
0x1e13   : > { %v4348_v20 = vsub.f32 %v4336_v34, %v4343_v26  ;;  %v7545_v26 = vld [vmem:[%s10854_s5 + $0x150] sm:$0xff] }
0x1e14   : > { %4615 = vmatpush.msra.mxu2 %v7545_v26 }
0x1e15   : > { %v8074_v48 = vpop.eup %8073  ;;  %v4352_v25 = vmul.f32 1.442695, %v4348_v20  ;;  %v7544_v20 = vld [vmem:[%s10854_s5 + $0x148] sm:$0xff] }
0x1e16   : > { %v4356_v38 = vsel %vm949_vm15, %v8074_v48, 0.0  ;;  %4616 = vmatpush.msra.mxu2 %v7544_v20 }
0x1e17   : > { %8075 = vpow2.f32 %v4352_v25  ;;  %4357 = vadd.xlane.f32.xlu2 %v4356_v38 }
0x1e1a   : > { %v4346_v2 = vpop.xlane.xlu1 %4345 }
0x1e1b   : > { %v4349_v29 = vsub.f32 %v4337_v17, %v4346_v2  ;;  %v7568_v2 = vld [vmem:[%s10853_s26 + $0x178] sm:$0xff] }
0x1e1d   : > { %v8076_v30 = vpop.eup %8075  ;;  %v4354_v31 = vmul.f32 1.442695, %v4349_v29  ;;  %v7567_v29 = vld [vmem:[%s10853_s26 + $0x170] sm:$0xff] }
0x1e1e   : > { %v4359_v50 = vsel %vm949_vm15, %v8076_v30, 0.0 }
0x1e1f   : > { %8077 = vpow2.f32 %v4354_v31  ;;  %4360 = vadd.xlane.f32.xlu0 %v4359_v50  ;;  %v7565_v31 = vld [vmem:[%s10853_s26 + $0x160] sm:$0xff] }
0x1e25   : > { %v9857_v19 = vpop.eup %8077 }
0x1e26   : > { %v4362_v49 = vsel %vm956_vm0, %v9857_v19, 0.0 }
0x1e27   : > { %4363 = vadd.xlane.f32.xlu1 %v4362_v49 }
0x1e8a   : > { %v4358_v36 = vpop.xlane.xlu2 %4357 }
0x1e8b   : > { %8079 = vrcp.f32 %v4358_v36  ;;  %v4376_v43 = vand.u32 2147483648, %v4358_v36  ;;  %v4374_v35 = vand.u32 2147483647, %v4358_v36  ;;  %vm4370_vm9 = vweird.f32 %v4358_v36 }
0x1e8d   : > { %v4377_v55 = vor.u32 1.1754944e-38, %v4376_v43  ;;  %vm4375_vm11 = vcmp.eq.f32.partialorder %v4374_v35, 8.507059e+37  ;;  %v7575_v43 = vld [vmem:[%s10852_s4 + $0x170] sm:$0xff]  ;;  %v4550_v35 = vpop.f32.mrf.mxu3 }
0x1e91   : > { %v8080_v41 = vpop.eup %8079 }
0x1e92   : > { %v4366_v23 = vmul.f32 %v8080_v41, %v4358_v36  ;;  %v4361_v42 = vpop.xlane.xlu0 %4360  ;;  %vm4371_vm8 = vweird.f32 %v8080_v41 }
0x1e93   : > { %8081 = vrcp.f32 %v4361_v42  ;;  %vm4372_vm10 = vmor %vm4370_vm9, %vm4371_vm8  ;;  %v4391_v60 = vand.u32 2147483648, %v4361_v42  ;;  %v4389_v0 = vand.u32 2147483647, %v4361_v42  ;;  %vm4385_vm3 = vweird.f32 %v4361_v42 }
0x1e94   : > { %v4367_v32 = vsub.f32 1.0, %v4366_v23 }
0x1e95   : > { %v4392_v5 = vor.u32 1.1754944e-38, %v4391_v60  ;;  %vm4390_vm5 = vcmp.eq.f32.partialorder %v4389_v0, 8.507059e+37 }
0x1e96   : > { %v4368_v61 = vmul.f32 %v8080_v41, %v4367_v32 }
0x1e98   : > { %v4369_v45 = vadd.f32 %v8080_v41, %v4368_v61  ;;  %v7574_v61 = vld [vmem:[%s10852_s4 + $0x168] sm:$0xff] }
0x1e99   : > { %v8082_v47 = vpop.eup %8081 }
0x1e9a   : > { %v4373_v18 = vsel %vm4372_vm10, %v8080_v41, %v4369_v45  ;;  %v4381_v44 = vmul.f32 %v8082_v47, %v4361_v42  ;;  %v4364_v58 = vpop.xlane.xlu1 %4363  ;;  %vm4386_vm12 = vweird.f32 %v8082_v47  ;;  %v7897_v41 = vld [vmem:[%s10855_s6 + $0xa] ss:$0 sm:$0xff]  ;;  %v7576_v42 = vld [vmem:[%s10852_s4 + $0x178] sm:$0xff]  ;;  %v7573_v45 = vld [vmem:[%s10852_s4 + $0x160] sm:$0xff] }
0x1e9b   : > { %v4378_v59 = vsel %vm4375_vm11, %v4377_v55, %v4373_v18  ;;  %8083 = vrcp.f32 %v4364_v58  ;;  %vm4387_vm4 = vmor %vm4385_vm3, %vm4386_vm12  ;;  %v4406_v12 = vand.u32 2147483648, %v4364_v58  ;;  %v4404_v56 = vand.u32 2147483647, %v4364_v58  ;;  %v4553_v55 = vpop.f32.mrf.mxu3 }
0x1e9c   : > { %v4379_v4 = vmul.f32 %v8074_v48, %v4378_v59  ;;  %v4382_v62 = vsub.f32 1.0, %v4381_v44  ;;  %vm4400_vm7 = vweird.f32 %v4364_v58  ;;  %v7543_v48 = vld [vmem:[%s10854_s5 + $0x140] sm:$0xff]  ;;  %v4548_v32 = vadd.f32 %v7897_v41, %v4547_v27 }
0x1e9d   : > { %v4407_v39 = vor.u32 1.1754944e-38, %v4406_v12  ;;  %vm4405_vm9 = vcmp.eq.f32.partialorder %v4404_v56, 8.507059e+37  ;;  %4617 = vmatpush.msra.mxu2 %v7543_v48  ;;  %v4554_v18 = vadd.f32 %v7897_v41, %v4553_v55  ;;  %v7901_v48 = vld [vmem:[%s10806_s7 + $0xb] ss:$0 sm:$0xff] }
0x1e9e   : > { %v4383_v63 = vmul.f32 %v8082_v47, %v4382_v62  ;;  %7517 = vmatmul.msk.f32.vlgmr.msrb.gmra.mxu1 %vm949_vm15, %v4379_v4  ;;  %v9961_v4 = vpop.f32.mrf.mxu0 }
0x1ea0   : > { %v4384_v3 = vadd.f32 %v8082_v47, %v4383_v63 }
0x1ea1   : > { %v8084_v57 = vpop.eup %8083 }
0x1ea2   : > { %v4396_v6 = vmul.f32 %v8084_v57, %v4364_v58  ;;  %v4388_v7 = vsel %vm4387_vm4, %v8082_v47, %v4384_v3  ;;  %vm4401_vm6 = vweird.f32 %v8084_v57  ;;  %v4551_v47 = vadd.f32 %v7897_v41, %v4550_v35  ;;  %v7899_v3 = vld [vmem:[%s10807_s8 + $0xa] ss:$0 sm:$0xff]  ;;  %v7584_v35 = vld [vmem:[%s10854_s5 + $0x178] sm:$0xff] }
0x1ea3   : > { %v4393_v37 = vsel %vm4390_vm5, %v4392_v5, %v4388_v7  ;;  %vm4402_vm8 = vmor %vm4400_vm7, %vm4401_vm6 }
0x1ea4   : > { %v4397_v10 = vsub.f32 1.0, %v4396_v6  ;;  %v4394_v11 = vmul.f32 %v8076_v30, %v4393_v37  ;;  %v7566_v30 = vld [vmem:[%s10853_s26 + $0x168] sm:$0xff] }
0x1ea6   : > { %v4398_v34 = vmul.f32 %v8084_v57, %v4397_v10  ;;  %7518 = vmatmul.msk.f32.gmra.mxu1 %vm949_vm15, %v4394_v11  ;;  %v9963_v60 = vpop.f32.mrf.mxu0 }
0x1ea8   : > { %v4399_v51 = vadd.f32 %v8084_v57, %v4398_v34 }
0x1eaa   : > { %v4403_v17 = vsel %vm4402_vm8, %v8084_v57, %v4399_v51  ;;  %v7561_v51 = vld [vmem:[%s10808_s9 + $0x50] sm:$0xff] }
0x1eab   : > { %v4408_v15 = vsel %vm4405_vm9, %v4407_v39, %v4403_v17  ;;  %4814 = vmatpush.msrb.mxu1 %v7561_v51 }
0x1eac   : > { %v4409_v21 = vmul.f32 %v9857_v19, %v4408_v15 }
0x1eae   : > { %7519 = vmatmul.msk.f32.gmra.mxu1 %vm949_vm15, %v4409_v21  ;;  %v9965_v0 = vpop.f32.mrf.mxu0 }
0x1eb6   : > { %7540 = vmatmul.msk.f32.vlgmr.msra.gmra.mxu1 %vm707_vm1, %v9663_v28 }
0x1ebe   : > { %7541 = vmatmul.msk.f32.gmra.mxu1 %vm707_vm1, %v9669_v52 }
0x1ec6   : > { %7542 = vmatmul.msk.f32.gmra.mxu1 %vm707_vm1, %v9687_v1 }
0x1f1b   : > { %v4439_v25 = vpop.f32.mrf.mxu1 }
0x1f1c   : > { %7521 = vmatmul.msk.f32.vlgmr.msrb.gmra.mxu2 %vm901_vm13, %v4439_v25 }
0x1f1d   : > { %4850 = vmatpush.msrb.mxu2 %v7568_v2 }
0x1f1f   : > { %4851 = vmatpush.msrb.mxu2 %v7567_v29 }
0x1f21   : > { %4852 = vmatpush.msrb.mxu2 %v7566_v30 }
0x1f23   : > { %v4442_v38 = vpop.f32.mrf.mxu1  ;;  %4853 = vmatpush.msrb.mxu2 %v7565_v31 }
0x1f24   : > { %7522 = vmatmul.msk.f32.gmra.mxu2 %vm901_vm13, %v4442_v38 }
0x1f2b   : > { %v4445_v50 = vpop.f32.mrf.mxu1 }
0x1f2c   : > { %7523 = vmatmul.msk.f32.gmra.mxu2 %vm901_vm13, %v4445_v50 }
0x1f33   : > { %v4583_v19 = vpop.f32.mrf.mxu1 }
0x1f34   : > { %7548 = vmatmul.msk.f32.vlgmr.msra.gmra.mxu2 %vm707_vm1, %v9663_v28  ;;  %v4584_v23 = vadd.f32 %v7898_v33, %v4583_v19 }
0x1f3b   : > { %v4586_v49 = vpop.f32.mrf.mxu1 }
0x1f3c   : > { %7549 = vmatmul.msk.f32.gmra.mxu2 %vm707_vm1, %v9669_v52  ;;  %v4587_v53 = vadd.f32 %v7898_v33, %v4586_v49 }
0x1f43   : > { %v4589_v36 = vpop.f32.mrf.mxu1 }
0x1f44   : > { %v4590_v16 = vadd.f32 %v7898_v33, %v4589_v36  ;;  %7550 = vmatmul.msk.f32.gmra.mxu2 %vm707_vm1, %v9687_v1 }
0x1f46   : > { %7551 = vmatpush.xpose.msk.msra.mxu0 %vm901_vm13, %v4590_v16 }
0x1f4a   : > { %7552 = vmatpush.xpose.msk.msra.mxu0 %vm901_vm13, %v4587_v53 }
0x1f4c   : > { %7570 = vmatmul.msk.f32.vlgmr.msrb.gmra.mxu2 %vm707_vm1, %v9663_v28 }
0x1f4e   : > { %7553 = vmatpush.xpose.msk.msra.mxu0 %vm901_vm13, %v4584_v23 }
0x1f51   : > { %7554 = vmatmul.msk.f32.vlgmr.msra.gmra.mxu0 %vm901_vm13, %v4548_v32 }
0x1f52   : > { %4886 = vmatpush.msrb.mxu0 %v7576_v42 }
0x1f54   : > { %4887 = vmatpush.msrb.mxu0 %v7575_v43  ;;  %7571 = vmatmul.msk.f32.gmra.mxu2 %vm707_vm1, %v9669_v52 }
0x1f56   : > { %4888 = vmatpush.msrb.mxu0 %v7574_v61 }
0x1f58   : > { %4889 = vmatpush.msrb.mxu0 %v7573_v45  ;;  %v7583_v45 = vld [vmem:[%s10854_s5 + $0x170] sm:$0xff] }
0x1f59   : > { %7555 = vmatmul.msk.f32.gmra.mxu0 %vm901_vm13, %v4551_v47  ;;  %v7582_v47 = vld [vmem:[%s10854_s5 + $0x168] sm:$0xff] }
0x1f5c   : > { %7572 = vmatmul.msk.f32.gmra.mxu2 %vm707_vm1, %v9687_v1 }
0x1f61   : > { %7556 = vmatmul.msk.f32.gmra.mxu0 %vm901_vm13, %v4554_v18 }
0x1f69   : > { %7578 = vmatmul.msk.f32.vlgmr.msrb.gmra.mxu0 %vm707_vm1, %v9663_v28 }
0x1f71   : > { %7579 = vmatmul.msk.f32.gmra.mxu0 %vm707_vm1, %v9669_v52 }
0x1f79   : > { %7580 = vmatmul.msk.f32.gmra.mxu0 %vm707_vm1, %v9687_v1 }
0x1f9f   : > { %v9955_v44 = vpop.f32.mrf.mxu2 }
0x1fa7   : > { %v9957_v58 = vpop.f32.mrf.mxu2 }
0x1faf   : > { %v9959_v59 = vpop.f32.mrf.mxu2 }
0x1fb7   : > { %v4619_v62 = vpop.f32.mrf.mxu2 }
0x1fb8   : > { %v4620_v7 = vadd.f32 %v7899_v3, %v4619_v62 }
0x1fbf   : > { %v4622_v63 = vpop.f32.mrf.mxu2 }
0x1fc0   : > { %v4623_v6 = vadd.f32 %v7899_v3, %v4622_v63  ;;  %v7581_v63 = vld [vmem:[%s10854_s5 + $0x160] sm:$0xff] }
0x1fc7   : > { %v4625_v57 = vpop.f32.mrf.mxu2 }
0x1fc8   : > { %v4626_v5 = vadd.f32 %v7899_v3, %v4625_v57 }
0x1fca   : > { %7557 = vmatpush.msk.msra.mxu3 %vm1032_vm14, %v4626_v5 }
0x1fcc   : > { %4776 = vmatpush.msra.mxu3 %v4623_v6 }
0x1fce   : > { %v4663_v37 = vpop.f32.mrf.mxu0  ;;  %4777 = vmatpush.msra.mxu3 %v4620_v7 }
0x1fcf   : > { %v4672_v10 = vmul.f32 0.35355338, %v4663_v37 }
0x1fd0   : > { %4922 = vmatpush.msrb.mxu3 %v7584_v35  ;;  %v7902_v35 = vld [vmem:[%s10807_s8 + $0xb] ss:$0 sm:$0xff] }
0x1fd1   : > { %v4675_v11 = vadd.f32 %v4672_v10, %v9791_v46 }
0x1fd2   : > { %4923 = vmatpush.msrb.mxu3 %v7583_v45 }
0x1fd3   : > { %v4678_v12 = vsel %vm949_vm15, %v4675_v11, -inf }
0x1fd4   : > { %4679 = vmax.xlane.f32.xlu2 %v4678_v12  ;;  %4924 = vmatpush.msrb.mxu3 %v7582_v47 }
0x1fd6   : > { %v4666_v34 = vpop.f32.mrf.mxu0  ;;  %4925 = vmatpush.msrb.mxu3 %v7581_v63 }
0x1fd7   : > { %v4673_v56 = vmul.f32 0.35355338, %v4666_v34 }
0x1fd9   : > { %v4676_v39 = vadd.f32 %v4673_v56, %v9791_v46 }
0x1fdb   : > { %v4681_v17 = vsel %vm949_vm15, %v4676_v39, -inf }
0x1fdc   : > { %4682 = vmax.xlane.f32.xlu1 %v4681_v17 }
0x1fde   : > { %v4669_v15 = vpop.f32.mrf.mxu0 }
0x1fdf   : > { %v4674_v21 = vmul.f32 0.35355338, %v4669_v15 }
0x1fe1   : > { %v4677_v22 = vadd.f32 %v4674_v21, %v9791_v46 }
0x1fe3   : > { %v4684_v24 = vsel %vm956_vm0, %v4677_v22, -inf }
0x1fe4   : > { %4685 = vmax.xlane.f32.xlu2 %v4684_v24 }
0x1fe6   : > { %v4891_v26 = vpop.f32.mrf.mxu0 }
0x1fe7   : > { %v4892_v29 = vadd.f32 %v7901_v48, %v4891_v26 }
0x1fee   : > { %v4894_v20 = vpop.f32.mrf.mxu0 }
0x1fef   : > { %v4895_v2 = vadd.f32 %v7901_v48, %v4894_v20 }
0x1ff6   : > { %v4897_v25 = vpop.f32.mrf.mxu0 }
0x1ff7   : > { %v4898_v38 = vadd.f32 %v7901_v48, %v4897_v25 }
0x1ff9   : > { %7589 = vmatpush.xpose.msk.msra.mxu1 %vm901_vm13, %v4898_v38 }
0x1ffd   : > { %7590 = vmatpush.xpose.msk.msra.mxu1 %vm901_vm13, %v4895_v2 }
0x2001   : > { %7591 = vmatpush.xpose.msk.msra.mxu1 %vm901_vm13, %v4892_v29 }
0x2047   : > { %v4680_v30 = vpop.xlane.xlu2 %4679 }
0x2048   : > { %v4687_v31 = vsub.f32 %v4675_v11, %v4680_v30 }
0x204a   : > { %v4690_v50 = vmul.f32 1.442695, %v4687_v31 }
0x204c   : > { %8085 = vpow2.f32 %v4690_v50 }
0x204f   : > { %v4683_v19 = vpop.xlane.xlu1 %4682 }
0x2050   : > { %v4688_v49 = vsub.f32 %v4676_v39, %v4683_v19 }
0x2052   : > { %v8086_v33 = vpop.eup %8085  ;;  %v4692_v36 = vmul.f32 1.442695, %v4688_v49 }
0x2053   : > { %v4696_v16 = vsel %vm949_vm15, %v8086_v33, 0.0 }
0x2054   : > { %8087 = vpow2.f32 %v4692_v36  ;;  %4697 = vadd.xlane.f32.xlu1 %v4696_v16 }
0x2057   : > { %v4686_v27 = vpop.xlane.xlu2 %4685 }
0x2058   : > { %v4689_v53 = vsub.f32 %v4677_v22, %v4686_v27 }
0x205a   : > { %v8088_v41 = vpop.eup %8087  ;;  %v4694_v23 = vmul.f32 1.442695, %v4689_v53  ;;  %v4855_v53 = vpop.f32.mrf.mxu2 }
0x205b   : > { %v4699_v42 = vsel %vm949_vm15, %v8088_v41, 0.0 }
0x205c   : > { %8089 = vpow2.f32 %v4694_v23  ;;  %4700 = vadd.xlane.f32.xlu2 %v4699_v42 }
0x2062   : > { %v9988_v32 = vpop.eup %8089 }
0x2063   : > { %v4702_v43 = vsel %vm956_vm0, %v9988_v32, 0.0 }
0x2064   : > { %4703 = vadd.xlane.f32.xlu1 %v4702_v43 }
0x20c7   : > { %v4698_v61 = vpop.xlane.xlu1 %4697 }
0x20c8   : > { %8091 = vrcp.f32 %v4698_v61  ;;  %v4716_v57 = vand.u32 2147483648, %v4698_v61  ;;  %v4714_v6 = vand.u32 2147483647, %v4698_v61  ;;  %vm4710_vm11 = vweird.f32 %v4698_v61 }
0x20ca   : > { %v4717_v10 = vor.u32 1.1754944e-38, %v4716_v57  ;;  %vm4715_vm3 = vcmp.eq.f32.partialorder %v4714_v6, 8.507059e+37 }
0x20ce   : > { %v8092_v55 = vpop.eup %8091 }
0x20cf   : > { %v4706_v18 = vmul.f32 %v8092_v55, %v4698_v61  ;;  %v4701_v62 = vpop.xlane.xlu2 %4700  ;;  %vm4711_vm10 = vweird.f32 %v8092_v55 }
0x20d0   : > { %8093 = vrcp.f32 %v4701_v62  ;;  %vm4712_vm12 = vmor %vm4710_vm11, %vm4711_vm10  ;;  %v4731_v17 = vand.u32 2147483648, %v4701_v62  ;;  %v4729_v21 = vand.u32 2147483647, %v4701_v62  ;;  %vm4725_vm5 = vweird.f32 %v4701_v62 }
0x20d1   : > { %v4707_v3 = vsub.f32 1.0, %v4706_v18 }
0x20d2   : > { %v4732_v26 = vor.u32 1.1754944e-38, %v4731_v17  ;;  %vm4730_vm7 = vcmp.eq.f32.partialorder %v4729_v21, 8.507059e+37 }
0x20d3   : > { %v4708_v5 = vmul.f32 %v8092_v55, %v4707_v3 }
0x20d5   : > { %v4709_v7 = vadd.f32 %v8092_v55, %v4708_v5 }
0x20d6   : > { %v8094_v37 = vpop.eup %8093 }
0x20d7   : > { %v4713_v11 = vsel %vm4712_vm12, %v8092_v55, %v4709_v7  ;;  %v4721_v12 = vmul.f32 %v8094_v37, %v4701_v62  ;;  %v4704_v34 = vpop.xlane.xlu1 %4703  ;;  %vm4726_vm4 = vweird.f32 %v8094_v37 }
0x20d8   : > { %v4718_v56 = vsel %vm4715_vm3, %v4717_v10, %v4713_v11  ;;  %8095 = vrcp.f32 %v4704_v34  ;;  %vm4727_vm6 = vmor %vm4725_vm5, %vm4726_vm4  ;;  %v4746_v29 = vand.u32 2147483648, %v4704_v34  ;;  %v4744_v31 = vand.u32 2147483647, %v4704_v34 }
0x20d9   : > { %v4719_v51 = vmul.f32 %v8086_v33, %v4718_v56  ;;  %v4722_v39 = vsub.f32 1.0, %v4721_v12  ;;  %vm4740_vm9 = vweird.f32 %v4704_v34 }
0x20da   : > { %v4747_v19 = vor.u32 1.1754944e-38, %v4746_v29  ;;  %vm4745_vm11 = vcmp.eq.f32.partialorder %v4744_v31, 8.507059e+37 }
0x20db   : > { %v4723_v15 = vmul.f32 %v8094_v37, %v4722_v39  ;;  %7558 = vmatmul.msk.f32.vlgmr.msra.gmra.mxu3 %vm949_vm15, %v4719_v51 }
0x20dd   : > { %v4724_v22 = vadd.f32 %v8094_v37, %v4723_v15 }
0x20de   : > { %v8096_v24 = vpop.eup %8095 }
0x20df   : > { %v4736_v20 = vmul.f32 %v8096_v24, %v4704_v34  ;;  %v4728_v48 = vsel %vm4727_vm6, %v8094_v37, %v4724_v22  ;;  %vm4741_vm8 = vweird.f32 %v8096_v24 }
0x20e0   : > { %v4733_v25 = vsel %vm4730_vm7, %v4732_v26, %v4728_v48  ;;  %vm4742_vm10 = vmor %vm4740_vm9, %vm4741_vm8 }
0x20e1   : > { %v4737_v38 = vsub.f32 1.0, %v4736_v20  ;;  %v4734_v2 = vmul.f32 %v8088_v41, %v4733_v25 }
0x20e3   : > { %v4738_v30 = vmul.f32 %v8096_v24, %v4737_v38  ;;  %7559 = vmatmul.msk.f32.gmra.mxu3 %vm949_vm15, %v4734_v2 }
0x20e5   : > { %v4739_v50 = vadd.f32 %v8096_v24, %v4738_v30 }
0x20e7   : > { %v4743_v49 = vsel %vm4742_vm10, %v8096_v24, %v4739_v50 }
0x20e8   : > { %v4748_v33 = vsel %vm4745_vm11, %v4747_v19, %v4743_v49  ;;  %v7599_v19 = vld [vmem:[%s10808_s9 + $0x58] sm:$0xff] }
0x20e9   : > { %v4749_v36 = vmul.f32 %v9988_v32, %v4748_v33  ;;  %5122 = vmatpush.msra.mxu0 %v7599_v19 }
0x20eb   : > { %7560 = vmatmul.msk.f32.gmra.mxu3 %vm949_vm15, %v4749_v36 }
0x20f3   : > { %7586 = vmatmul.msk.f32.vlgmr.msrb.gmra.mxu3 %vm707_vm1, %v9663_v28  ;;  %v7900_v28 = vld [vmem:[%s10855_s6 + $0xb] ss:$0 sm:$0xff] }
0x20f4   : > { %v4856_v23 = vadd.f32 %v7900_v28, %v4855_v53 }
0x20fb   : > { %7587 = vmatmul.msk.f32.gmra.mxu3 %vm707_vm1, %v9669_v52  ;;  %v4858_v52 = vpop.f32.mrf.mxu2 }
0x2103   : > { %7588 = vmatmul.msk.f32.gmra.mxu3 %vm707_vm1, %v9687_v1  ;;  %v4859_v1 = vadd.f32 %v7900_v28, %v4858_v52  ;;  %v4861_v43 = vpop.f32.mrf.mxu2 }
0x2104   : > { %v4862_v61 = vadd.f32 %v7900_v28, %v4861_v43 }
0x215e   : > { %v4779_v16 = vpop.f32.mrf.mxu3 }
0x215f   : > { %7562 = vmatmul.msk.f32.vlgmr.msrb.gmra.mxu1 %vm901_vm13, %v4779_v16 }
0x2166   : > { %v4782_v27 = vpop.f32.mrf.mxu3 }
0x2167   : > { %7563 = vmatmul.msk.f32.gmra.mxu1 %vm901_vm13, %v4782_v27 }
0x216e   : > { %v4785_v41 = vpop.f32.mrf.mxu3 }
0x216f   : > { %7564 = vmatmul.msk.f32.gmra.mxu1 %vm901_vm13, %v4785_v41 }
0x2176   : > { %v4927_v42 = vpop.f32.mrf.mxu3 }
0x2177   : > { %7592 = vmatmul.msk.f32.vlgmr.msra.gmra.mxu1 %vm901_vm13, %v4856_v23  ;;  %v4928_v18 = vadd.f32 %v7902_v35, %v4927_v42 }
0x217e   : > { %v4930_v32 = vpop.f32.mrf.mxu3 }
0x217f   : > { %7593 = vmatmul.msk.f32.gmra.mxu1 %vm901_vm13, %v4859_v1  ;;  %v4931_v55 = vadd.f32 %v7902_v35, %v4930_v32 }
0x2186   : > { %v4933_v45 = vpop.f32.mrf.mxu3 }
0x2187   : > { %v4934_v47 = vadd.f32 %v7902_v35, %v4933_v45  ;;  %7594 = vmatmul.msk.f32.gmra.mxu1 %vm901_vm13, %v4862_v61 }
0x2189   : > { %7595 = vmatpush.msk.msra.mxu2 %vm1032_vm14, %v4934_v47 }
0x218b   : > { %5084 = vmatpush.msra.mxu2 %v4931_v55 }
0x218d   : > { %5085 = vmatpush.msra.mxu2 %v4928_v18 }
0x21dc   : > { %v10027_v62 = vpop.f32.mrf.mxu1 }
0x21e4   : > { %v10029_v63 = vpop.f32.mrf.mxu1 }
0x21ec   : > { %v10031_v3 = vpop.f32.mrf.mxu1 }
0x21f4   : > { %v4971_v57 = vpop.f32.mrf.mxu1 }
0x21f5   : > { %v4980_v5 = vmul.f32 0.35355338, %v4971_v57 }
0x21f7   : > { %v4983_v6 = vadd.f32 %v4980_v5, %v9791_v46 }
0x21f9   : > { %v4986_v7 = vsel %vm949_vm15, %v4983_v6, -inf }
0x21fa   : > { %4987 = vmax.xlane.f32.xlu2 %v4986_v7 }
0x21fc   : > { %v4974_v37 = vpop.f32.mrf.mxu1 }
0x21fd   : > { %v4981_v10 = vmul.f32 0.35355338, %v4974_v37 }
0x21ff   : > { %v4984_v11 = vadd.f32 %v4981_v10, %v9791_v46 }
0x2201   : > { %v4989_v12 = vsel %vm949_vm15, %v4984_v11, -inf }
0x2202   : > { %4990 = vmax.xlane.f32.xlu1 %v4989_v12 }
0x2204   : > { %v4977_v34 = vpop.f32.mrf.mxu1 }
0x2205   : > { %v4982_v56 = vmul.f32 0.35355338, %v4977_v34 }
0x2207   : > { %v4985_v51 = vadd.f32 %v4982_v56, %v9791_v46 }
0x2209   : > { %v4992_v39 = vsel %vm956_vm0, %v4985_v51, -inf }
0x220a   : > { %4993 = vmax.xlane.f32.xlu2 %v4992_v39 }
0x226d   : > { %v4988_v17 = vpop.xlane.xlu2 %4987 }
0x226e   : > { %v4995_v15 = vsub.f32 %v4983_v6, %v4988_v17 }
0x2270   : > { %v4998_v21 = vmul.f32 1.442695, %v4995_v15 }
0x2272   : > { %8097 = vpow2.f32 %v4998_v21 }
0x2275   : > { %v4991_v22 = vpop.xlane.xlu1 %4990 }
0x2276   : > { %v4996_v24 = vsub.f32 %v4984_v11, %v4991_v22 }
0x2278   : > { %v8098_v26 = vpop.eup %8097  ;;  %v5000_v20 = vmul.f32 1.442695, %v4996_v24 }
0x2279   : > { %v5004_v48 = vsel %vm949_vm15, %v8098_v26, 0.0 }
0x227a   : > { %8099 = vpow2.f32 %v5000_v20  ;;  %5005 = vadd.xlane.f32.xlu1 %v5004_v48  ;;  %v4512_v20 = vadd.f32 %v9961_v4, %v9955_v44 }
0x227c   : > { %v4825_v48 = vadd.f32 %v10027_v62, %v4512_v20 }
0x227d   : > { %v4994_v25 = vpop.xlane.xlu2 %4993 }
0x227e   : > { %v4997_v38 = vsub.f32 %v4985_v51, %v4994_v25 }
0x2280   : > { %v8100_v2 = vpop.eup %8099  ;;  %v5002_v29 = vmul.f32 1.442695, %v4997_v38 }
0x2281   : > { %v5007_v46 = vsel %vm949_vm15, %v8100_v2, 0.0 }
0x2282   : > { %8101 = vpow2.f32 %v5002_v29  ;;  %5008 = vadd.xlane.f32.xlu2 %v5007_v46 }
0x2288   : > { %v8102_v30 = vpop.eup %8101 }
0x2289   : > { %v5010_v31 = vsel %vm956_vm0, %v8102_v30, 0.0 }
0x228a   : > { %5011 = vadd.xlane.f32.xlu0 %v5010_v31 }
0x22ed   : > { %v5006_v50 = vpop.xlane.xlu1 %5005 }
0x22ee   : > { %8103 = vrcp.f32 %v5006_v50  ;;  %v5024_v27 = vand.u32 2147483648, %v5006_v50  ;;  %v5022_v41 = vand.u32 2147483647, %v5006_v50  ;;  %vm5018_vm3 = vweird.f32 %v5006_v50 }
0x22f0   : > { %v5025_v42 = vor.u32 1.1754944e-38, %v5024_v27  ;;  %vm5023_vm5 = vcmp.eq.f32.partialorder %v5022_v41, 8.507059e+37 }
0x22f4   : > { %v8104_v49 = vpop.eup %8103 }
0x22f5   : > { %v5014_v33 = vmul.f32 %v8104_v49, %v5006_v50  ;;  %v5009_v36 = vpop.xlane.xlu2 %5008  ;;  %vm5019_vm12 = vweird.f32 %v8104_v49 }
0x22f6   : > { %8105 = vrcp.f32 %v5009_v36  ;;  %vm5020_vm4 = vmor %vm5018_vm3, %vm5019_vm12  ;;  %v5039_v45 = vand.u32 2147483648, %v5009_v36  ;;  %v5037_v55 = vand.u32 2147483647, %v5009_v36  ;;  %vm5033_vm7 = vweird.f32 %v5009_v36 }
0x22f7   : > { %v5015_v16 = vsub.f32 1.0, %v5014_v33 }
0x22f8   : > { %v5040_v5 = vor.u32 1.1754944e-38, %v5039_v45  ;;  %vm5038_vm9 = vcmp.eq.f32.partialorder %v5037_v55, 8.507059e+37  ;;  %v7605_v45 = vld [vmem:[%s10809_s10 + $0x50] sm:$0xff]  ;;  %v7603_v55 = vld [vmem:[%s10809_s10 + $0x40] sm:$0xff] }
0x22f9   : > { %v5016_v53 = vmul.f32 %v8104_v49, %v5015_v16 }
0x22fb   : > { %v5017_v28 = vadd.f32 %v8104_v49, %v5016_v53 }
0x22fc   : > { %v8106_v23 = vpop.eup %8105 }
0x22fd   : > { %v5021_v52 = vsel %vm5020_vm4, %v8104_v49, %v5017_v28  ;;  %v5029_v1 = vmul.f32 %v8106_v23, %v5009_v36  ;;  %v5012_v32 = vpop.xlane.xlu0 %5011  ;;  %vm5034_vm6 = vweird.f32 %v8106_v23  ;;  %v4518_v49 = vadd.f32 %v9965_v0, %v9959_v59 }
0x22fe   : > { %v5026_v43 = vsel %vm5023_vm5, %v5025_v42, %v5021_v52  ;;  %8107 = vrcp.f32 %v5012_v32  ;;  %vm5035_vm8 = vmor %vm5033_vm7, %vm5034_vm6  ;;  %v5054_v12 = vand.u32 2147483648, %v5012_v32  ;;  %v5052_v56 = vand.u32 2147483647, %v5012_v32 }
0x22ff   : > { %v5027_v61 = vmul.f32 %v8098_v26, %v5026_v43  ;;  %v5030_v35 = vsub.f32 1.0, %v5029_v1  ;;  %vm5048_vm11 = vweird.f32 %v5012_v32 }
0x2300   : > { %v5055_v39 = vor.u32 1.1754944e-38, %v5054_v12  ;;  %vm5053_vm3 = vcmp.eq.f32.partialorder %v5052_v56, 8.507059e+37  ;;  %v7625_v12 = vld [vmem:[%s10810_s11 + $0x178] sm:$0xff] }
0x2301   : > { %v5031_v47 = vmul.f32 %v8106_v23, %v5030_v35  ;;  %7596 = vmatmul.msk.f32.vlgmr.msra.gmra.mxu2 %vm949_vm15, %v5027_v61  ;;  %v7606_v35 = vld [vmem:[%s10809_s10 + $0x58] sm:$0xff]  ;;  %5302 = vmatpush.msrb.mxu1 %v7625_v12 }
0x2302   : > { %5244 = vmatpush.msra.mxu3 %v7606_v35  ;;  %v7613_v35 = vld [vmem:[%s10810_s11 + $0x118] sm:$0xff] }
0x2303   : > { %v5032_v18 = vadd.f32 %v8106_v23, %v5031_v47  ;;  %v7604_v47 = vld [vmem:[%s10809_s10 + $0x48] sm:$0xff] }
0x2304   : > { %v8108_v57 = vpop.eup %8107  ;;  %5245 = vmatpush.msra.mxu3 %v7605_v45  ;;  %v7612_v45 = vld [vmem:[%s10810_s11 + $0x110] sm:$0xff] }
0x2305   : > { %v5044_v6 = vmul.f32 %v8108_v57, %v5012_v32  ;;  %v5036_v7 = vsel %vm5035_vm8, %v8106_v23, %v5032_v18  ;;  %vm5049_vm10 = vweird.f32 %v8108_v57 }
0x2306   : > { %v5041_v37 = vsel %vm5038_vm9, %v5040_v5, %v5036_v7  ;;  %vm5050_vm12 = vmor %vm5048_vm11, %vm5049_vm10  ;;  %5246 = vmatpush.msra.mxu3 %v7604_v47  ;;  %v7611_v47 = vld [vmem:[%s10810_s11 + $0x108] sm:$0xff] }
0x2307   : > { %v5045_v10 = vsub.f32 1.0, %v5044_v6  ;;  %v5042_v11 = vmul.f32 %v8100_v2, %v5041_v37  ;;  %v10057_v2 = vld [vmem:[%s10811_s12 + $0x10] sm:$0x7f] }
0x2308   : > { %v5139_v29 = vperm.slane %v10057_v2, 2  ;;  %5247 = vmatpush.msra.mxu3 %v7603_v55  ;;  %v7610_v55 = vld [vmem:[%s10810_s11 + $0x100] sm:$0xff] }
0x2309   : > { %v5046_v34 = vmul.f32 %v8108_v57, %v5045_v10  ;;  %7597 = vmatmul.msk.f32.gmra.mxu2 %vm949_vm15, %v5042_v11 }
0x230b   : > { %v5047_v51 = vadd.f32 %v8108_v57, %v5046_v34  ;;  %v7624_v34 = vld [vmem:[%s10810_s11 + $0x170] sm:$0xff] }
0x230c   : > { %5303 = vmatpush.msrb.mxu1 %v7624_v34 }
0x230d   : > { %v5051_v17 = vsel %vm5050_vm12, %v8108_v57, %v5047_v51  ;;  %v7623_v51 = vld [vmem:[%s10810_s11 + $0x168] sm:$0xff] }
0x230e   : > { %v5056_v15 = vsel %vm5053_vm3, %v5055_v39, %v5051_v17  ;;  %5304 = vmatpush.msrb.mxu1 %v7623_v51 }
0x230f   : > { %v5057_v21 = vmul.f32 %v8102_v30, %v5056_v15  ;;  %v4515_v30 = vadd.f32 %v9963_v60, %v9957_v58 }
0x2311   : > { %7598 = vmatmul.msk.f32.gmra.mxu2 %vm949_vm15, %v5057_v21  ;;  %v4826_v44 = vadd.f32 %v10029_v63, %v4515_v30  ;;  %v7622_v21 = vld [vmem:[%s10810_s11 + $0x160] sm:$0xff] }
0x2312   : > { %5305 = vmatpush.msrb.mxu1 %v7622_v21 }
0x2384   : > { %v5087_v22 = vpop.f32.mrf.mxu2 }
0x2385   : > { %7600 = vmatmul.msk.f32.vlgmr.msra.gmra.mxu0 %vm901_vm13, %v5087_v22 }
0x238c   : > { %v5090_v24 = vpop.f32.mrf.mxu2 }
0x238d   : > { %7601 = vmatmul.msk.f32.gmra.mxu0 %vm901_vm13, %v5090_v24 }
0x2394   : > { %v5093_v26 = vpop.f32.mrf.mxu2 }
0x2395   : > { %7602 = vmatmul.msk.f32.gmra.mxu0 %vm901_vm13, %v5093_v26 }
0x2402   : > { %v5124_v25 = vpop.f32.mrf.mxu0 }
0x2403   : > { %v5133_v38 = vadd.f32 %v5124_v25, %v4825_v48  ;;  %v5209_v25 = vperm.slane %v10057_v2, 3 }
0x2405   : > { %v5136_v46 = vadd.f32 %v5133_v38, %v9578_v14  ;;  %v4827_v14 = vadd.f32 %v10031_v3, %v4518_v49 }
0x2407   : > { %v10063_v31 = vadd.f32 %v5139_v29, %v5136_v46  ;;  %v5213_v46 = vperm.slane %v10057_v2, 4 }
0x2409   : > { %v5143_v4 = vsel %vm707_vm1, %v10063_v31, 0.0 }
0x240a   : > { %5144 = vadd.xlane.f32.xlu1 %v5143_v4  ;;  %v5127_v62 = vpop.f32.mrf.mxu0 }
0x240b   : > { %v5134_v50 = vadd.f32 %v5127_v62, %v4826_v44 }
0x240d   : > { %v5137_v19 = vadd.f32 %v5134_v50, %v9583_v40 }
0x240f   : > { %v10071_v33 = vadd.f32 %v5139_v29, %v5137_v19 }
0x2411   : > { %v5146_v58 = vsel %vm707_vm1, %v10071_v33, 0.0 }
0x2412   : > { %5147 = vadd.xlane.f32.xlu2 %v5146_v58  ;;  %v5130_v60 = vpop.f32.mrf.mxu0 }
0x2413   : > { %v5135_v63 = vadd.f32 %v5130_v60, %v4827_v14 }
0x2415   : > { %v5138_v36 = vadd.f32 %v5135_v63, %v9588_v13 }
0x2417   : > { %v10077_v16 = vadd.f32 %v5139_v29, %v5138_v36 }
0x2419   : > { %v5149_v40 = vsel %vm714_vm2, %v10077_v16, 0.0 }
0x241a   : > { %5150 = vadd.xlane.f32.xlu0 %v5149_v40 }
0x247d   : > { %v5145_v27 = vpop.xlane.xlu1 %5144 }
0x247e   : > { %v5152_v59 = vmul.f32 %v5145_v27, %v8518_v54 }
0x2480   : > { %v5155_v0 = vsub.f32 %v10063_v31, %v5152_v59 }
0x2482   : > { %v5158_v3 = vmul.f32 %v5155_v0, %v5155_v0 }
0x2484   : > { %v5161_v53 = vsel %vm707_vm1, %v5158_v3, 0.0 }
0x2485   : > { %5162 = vadd.xlane.f32.xlu1 %v5161_v53  ;;  %v5148_v41 = vpop.xlane.xlu2 %5147 }
0x2486   : > { %v5153_v28 = vmul.f32 %v5148_v41, %v8518_v54 }
0x2488   : > { %v10086_v13 = vsub.f32 %v10071_v33, %v5153_v28 }
0x248a   : > { %v5159_v23 = vmul.f32 %v10086_v13, %v10086_v13 }
0x248c   : > { %v5164_v42 = vsel %vm707_vm1, %v5159_v23, 0.0  ;;  %v7620_v23 = vld [vmem:[%s10810_s11 + $0x150] sm:$0xff] }
0x248d   : > { %5165 = vadd.xlane.f32.xlu2 %v5164_v42  ;;  %v5151_v52 = vpop.xlane.xlu0 %5150  ;;  %v7619_v42 = vld [vmem:[%s10810_s11 + $0x148] sm:$0xff] }
0x248e   : > { %v5154_v1 = vmul.f32 %v5151_v52, %v8518_v54  ;;  %v7618_v52 = vld [vmem:[%s10810_s11 + $0x140] sm:$0xff] }
0x2490   : > { %v10093_v32 = vsub.f32 %v10077_v16, %v5154_v1  ;;  %v7617_v1 = vld [vmem:[%s10810_s11 + $0x138] sm:$0xff] }
0x2492   : > { %v5160_v43 = vmul.f32 %v10093_v32, %v10093_v32 }
0x2494   : > { %v5167_v61 = vsel %vm714_vm2, %v5160_v43, 0.0  ;;  %v7615_v43 = vld [vmem:[%s10810_s11 + $0x128] sm:$0xff] }
0x2495   : > { %5168 = vadd.xlane.f32.xlu0 %v5167_v61  ;;  %v7614_v61 = vld [vmem:[%s10810_s11 + $0x120] sm:$0xff] }
0x24f8   : > { %v5163_v18 = vpop.xlane.xlu1 %5162 }
0x24f9   : > { %v5170_v57 = vmul.f32 %v5163_v18, %v8518_v54  ;;  %v5222_v18 = vperm.slane %v10057_v2, 6 }
0x24fb   : > { %v5173_v5 = vadd.f32 1e-05, %v5170_v57 }
0x24fd   : > { %8109 = vrsqrt.f32 %v5173_v5  ;;  %vm5182_vm5 = vweird.f32 %v5173_v5 }
0x2500   : > { %v5166_v6 = vpop.xlane.xlu2 %5165 }
0x2501   : > { %v5171_v7 = vmul.f32 %v5166_v6, %v8518_v54 }
0x2503   : > { %v8110_v37 = vpop.eup %8109  ;;  %v5174_v10 = vadd.f32 1e-05, %v5171_v7 }
0x2504   : > { %v5177_v11 = vmul.f32 %v8110_v37, %v5173_v5  ;;  %vm5183_vm4 = vweird.f32 %v8110_v37 }
0x2505   : > { %8111 = vrsqrt.f32 %v5174_v10  ;;  %vm5184_vm6 = vmor %vm5182_vm5, %vm5183_vm4  ;;  %vm5192_vm8 = vweird.f32 %v5174_v10 }
0x2506   : > { %v5178_v56 = vmul.f32 %v8110_v37, %v5177_v11 }
0x2508   : > { %v5179_v39 = vmul.f32 0.5, %v5178_v56  ;;  %v5169_v17 = vpop.xlane.xlu0 %5168 }
0x2509   : > { %v5172_v15 = vmul.f32 %v5169_v17, %v8518_v54 }
0x250a   : > { %v5180_v22 = vsub.f32 1.5, %v5179_v39 }
0x250b   : > { %v8112_v24 = vpop.eup %8111  ;;  %v5175_v26 = vadd.f32 1e-05, %v5172_v15 }
0x250c   : > { %v5181_v20 = vmul.f32 %v8110_v37, %v5180_v22  ;;  %v5187_v48 = vmul.f32 %v8112_v24, %v5174_v10  ;;  %vm5193_vm7 = vweird.f32 %v8112_v24 }
0x250d   : > { %8113 = vrsqrt.f32 %v5175_v26  ;;  %vm5194_vm9 = vmor %vm5192_vm8, %vm5193_vm7  ;;  %vm5202_vm11 = vweird.f32 %v5175_v26 }
0x250e   : > { %v5185_v38 = vsel %vm5184_vm6, %v8110_v37, %v5181_v20  ;;  %v5188_v29 = vmul.f32 %v8112_v24, %v5187_v48 }
0x250f   : > { %v5206_v30 = vmul.f32 %v5185_v38, %v5155_v0 }
0x2510   : > { %v5189_v44 = vmul.f32 0.5, %v5188_v29 }
0x2511   : > { %v5210_v4 = vmul.f32 %v5209_v25, %v5206_v30 }
0x2512   : > { %v5190_v62 = vsub.f32 1.5, %v5189_v44 }
0x2513   : > { %v8114_v50 = vpop.eup %8113  ;;  %v5214_v19 = vadd.f32 %v5213_v46, %v5210_v4 }
0x2514   : > { %v5191_v49 = vmul.f32 %v8112_v24, %v5190_v62  ;;  %v5197_v14 = vmul.f32 %v8114_v50, %v5175_v26  ;;  %vm5203_vm10 = vweird.f32 %v8114_v50 }
0x2515   : > { %7607 = vmatmul.msk.f32.vlgmr.msra.gmra.mxu3 %vm707_vm1, %v5214_v19  ;;  %vm5204_vm12 = vmor %vm5202_vm11, %vm5203_vm10 }
0x2516   : > { %v5195_v58 = vsel %vm5194_vm9, %v8112_v24, %v5191_v49  ;;  %v5198_v60 = vmul.f32 %v8114_v50, %v5197_v14 }
0x2517   : > { %v5207_v63 = vmul.f32 %v5195_v58, %v10086_v13  ;;  %v7621_v13 = vld [vmem:[%s10810_s11 + $0x158] sm:$0xff] }
0x2518   : > { %v5199_v36 = vmul.f32 0.5, %v5198_v60  ;;  %5306 = vmatpush.msrb.mxu1 %v7621_v13  ;;  %v5331_v60 = vperm.slane %v10057_v2, 5 }
0x2519   : > { %v5211_v40 = vmul.f32 %v5209_v25, %v5207_v63 }
0x251a   : > { %v5200_v27 = vsub.f32 1.5, %v5199_v36  ;;  %5307 = vmatpush.msrb.mxu1 %v7620_v23 }
0x251b   : > { %v5215_v59 = vadd.f32 %v5213_v46, %v5211_v40 }
0x251c   : > { %v5201_v0 = vmul.f32 %v8114_v50, %v5200_v27  ;;  %5308 = vmatpush.msrb.mxu1 %v7619_v42 }
0x251d   : > { %7608 = vmatmul.msk.f32.gmra.mxu3 %vm707_vm1, %v5215_v59 }
0x251e   : > { %v5205_v3 = vsel %vm5204_vm12, %v8114_v50, %v5201_v0  ;;  %5309 = vmatpush.msrb.mxu1 %v7618_v52 }
0x251f   : > { %v5208_v53 = vmul.f32 %v5205_v3, %v10093_v32  ;;  %v7616_v32 = vld [vmem:[%s10810_s11 + $0x130] sm:$0xff] }
0x2520   : > { %5310 = vmatpush.msrb.mxu1 %v7617_v1 }
0x2521   : > { %v5212_v41 = vmul.f32 %v5209_v25, %v5208_v53 }
0x2522   : > { %5311 = vmatpush.msrb.mxu1 %v7616_v32 }
0x2523   : > { %v5216_v28 = vadd.f32 %v5213_v46, %v5212_v41 }
0x2524   : > { %5312 = vmatpush.msrb.mxu1 %v7615_v43 }
0x2525   : > { %7609 = vmatmul.msk.f32.gmra.mxu3 %vm707_vm1, %v5216_v28 }
0x2526   : > { %5313 = vmatpush.msrb.mxu1 %v7614_v61 }
0x2528   : > { %5314 = vmatpush.msrb.mxu1 %v7613_v35 }
0x252a   : > { %5315 = vmatpush.msrb.mxu1 %v7612_v45 }
0x252c   : > { %5316 = vmatpush.msrb.mxu1 %v7611_v47 }
0x252e   : > { %5317 = vmatpush.msrb.mxu1 %v7610_v55 }
0x2598   : > { %v5249_v57 = vpop.f32.mrf.mxu3 }
0x2599   : > { %v5250_v5 = vadd.f32 %v5249_v57, %v5222_v18  ;;  %v10209_v57 = vld [vmem:[%s10814_s15 + $0x4] sm:$0xf] }
0x259b   : > { %v5261_v6 = vmul.f32 0.044715, %v5250_v5  ;;  %v5258_v20 = vmul.f32 0.5, %v5250_v5 }
0x259d   : > { %v5264_v7 = vmul.f32 %v5261_v6, %v5250_v5  ;;  %v7651_v6 = vld [vmem:[%s10852_s4 + $0x198] sm:$0xff] }
0x259e   : > { %5600 = vmatpush.msrb.mxu3 %v7651_v6 }
0x259f   : > { %v5267_v37 = vmul.f32 %v5264_v7, %v5250_v5  ;;  %v7630_v7 = vld [vmem:[%s10812_s13 + $0x30] sm:$0xff] }
0x25a0   : > { %v5252_v10 = vpop.f32.mrf.mxu3 }
0x25a1   : > { %v5270_v11 = vadd.f32 %v5267_v37, %v5250_v5  ;;  %v5253_v12 = vadd.f32 %v5252_v10, %v5222_v18  ;;  %v7631_v5 = vld [vmem:[%s10812_s13 + $0x38] sm:$0xff]  ;;  %v7650_v37 = vld [vmem:[%s10852_s4 + $0x190] sm:$0xff]  ;;  %v7629_v10 = vld [vmem:[%s10812_s13 + $0x28] sm:$0xff] }
0x25a2   : > { %5440 = vmatpush.msrb.mxu2 %v7631_v5  ;;  %5601 = vmatpush.msrb.mxu3 %v7650_v37 }
0x25a3   : > { %v5273_v34 = vmul.f32 0.7978846, %v5270_v11  ;;  %v5262_v56 = vmul.f32 0.044715, %v5253_v12  ;;  %v5259_v4 = vmul.f32 0.5, %v5253_v12  ;;  %v7649_v11 = vld [vmem:[%s10852_s4 + $0x188] sm:$0xff] }
0x25a4   : > { %5441 = vmatpush.msrb.mxu2 %v7630_v7  ;;  %5602 = vmatpush.msrb.mxu3 %v7649_v11  ;;  %v7685_v11 = vld [vmem:[%s10852_s4 + $0x1b0] sm:$0xff] }
0x25a5   : > { %8115 = vtanh.f32 %v5273_v34  ;;  %v5265_v51 = vmul.f32 %v5262_v56, %v5253_v12  ;;  %v7648_v34 = vld [vmem:[%s10852_s4 + $0x180] sm:$0xff] }
0x25a6   : > { %5442 = vmatpush.msrb.mxu2 %v7629_v10  ;;  %5603 = vmatpush.msrb.mxu3 %v7648_v34 }
0x25a7   : > { %v5268_v39 = vmul.f32 %v5265_v51, %v5253_v12 }
0x25a8   : > { %v5255_v17 = vpop.f32.mrf.mxu3 }
0x25a9   : > { %v5256_v15 = vadd.f32 %v5255_v17, %v5222_v18  ;;  %v5271_v21 = vadd.f32 %v5268_v39, %v5253_v12  ;;  %v7628_v12 = vld [vmem:[%s10812_s13 + $0x20] sm:$0xff] }
0x25aa   : > { %5443 = vmatpush.msrb.mxu2 %v7628_v12 }
0x25ab   : > { %v8116_v22 = vpop.eup %8115  ;;  %v5263_v24 = vmul.f32 0.044715, %v5256_v15  ;;  %v5274_v26 = vmul.f32 0.7978846, %v5271_v21  ;;  %v5260_v49 = vmul.f32 0.5, %v5256_v15 }
0x25ac   : > { %v5279_v48 = vadd.f32 1.0, %v8116_v22 }
0x25ad   : > { %8117 = vtanh.f32 %v5274_v26  ;;  %v5266_v25 = vmul.f32 %v5263_v24, %v5256_v15  ;;  %v7659_v26 = vld [vmem:[%s10854_s5 + $0x198] sm:$0xff] }
0x25ae   : > { %v5282_v38 = vmul.f32 %v5279_v48, %v5258_v20  ;;  %v7678_v20 = vld [vmem:[%s10853_s26 + $0x1b8] sm:$0xff]  ;;  %5636 = vmatpush.msra.mxu2 %v7659_v26 }
0x25af   : > { %v5269_v29 = vmul.f32 %v5266_v25, %v5256_v15  ;;  %5835 = vmatpush.msra.mxu3 %v7678_v20  ;;  %v7658_v25 = vld [vmem:[%s10854_s5 + $0x190] sm:$0xff] }
0x25b0   : > { %5318 = vmatmul.f32.vlgmr.msrb.gmra.mxu1 %v5282_v38  ;;  %v7677_v38 = vld [vmem:[%s10853_s26 + $0x1b0] sm:$0xff]  ;;  %5637 = vmatpush.msra.mxu2 %v7658_v25 }
0x25b1   : > { %v5272_v46 = vadd.f32 %v5269_v29, %v5256_v15  ;;  %v7657_v29 = vld [vmem:[%s10854_s5 + $0x188] sm:$0xff]  ;;  %5836 = vmatpush.msra.mxu3 %v7677_v38 }
0x25b2   : > { %5638 = vmatpush.msra.mxu2 %v7657_v29 }
0x25b3   : > { %v8118_v30 = vpop.eup %8117  ;;  %v5275_v44 = vmul.f32 0.7978846, %v5272_v46  ;;  %v7676_v46 = vld [vmem:[%s10853_s26 + $0x1a8] sm:$0xff] }
0x25b4   : > { %v5280_v62 = vadd.f32 1.0, %v8118_v30  ;;  %5837 = vmatpush.msra.mxu3 %v7676_v46 }
0x25b5   : > { %8119 = vtanh.f32 %v5275_v44 }
0x25b6   : > { %v5283_v50 = vmul.f32 %v5280_v62, %v5259_v4  ;;  %v7656_v62 = vld [vmem:[%s10854_s5 + $0x180] sm:$0xff] }
0x25b7   : > { %5639 = vmatpush.msra.mxu2 %v7656_v62 }
0x25b8   : > { %5321 = vmatmul.f32.gmra.mxu1 %v5283_v50  ;;  %v7675_v50 = vld [vmem:[%s10853_s26 + $0x1a0] sm:$0xff] }
0x25b9   : > { %5838 = vmatpush.msra.mxu3 %v7675_v50 }
0x25bb   : > { %v8120_v19 = vpop.eup %8119 }
0x25bc   : > { %v5281_v14 = vadd.f32 1.0, %v8120_v19  ;;  %v7626_v19 = vld [vmem:[%s10811_s12 + $0x18] sm:$0x7f] }
0x25be   : > { %v5284_v58 = vmul.f32 %v5281_v14, %v5260_v49 }
0x25c0   : > { %5324 = vmatmul.f32.gmra.mxu1 %v5284_v58 }
0x262d   : > { %v5319_v63 = vpop.f32.mrf.mxu1 }
0x262e   : > { %v5328_v36 = vadd.f32 %v5319_v63, %v10063_v31 }
0x2630   : > { %v10171_v40 = vadd.f32 %v5331_v60, %v5328_v36  ;;  %v5405_v36 = vperm.slane %v10209_v57, 0 }
0x2632   : > { %v5339_v27 = vsel %vm707_vm1, %v10171_v40, 0.0 }
0x2633   : > { %5340 = vadd.xlane.f32.xlu1 %v5339_v27  ;;  %v5525_v27 = vperm.slane %v7626_v19, 0 }
0x2635   : > { %v5322_v59 = vpop.f32.mrf.mxu1 }
0x2636   : > { %v5329_v0 = vadd.f32 %v5322_v59, %v10071_v33 }
0x2638   : > { %v10176_v3 = vadd.f32 %v5331_v60, %v5329_v0 }
0x263a   : > { %v5342_v53 = vsel %vm707_vm1, %v10176_v3, 0.0 }
0x263b   : > { %5343 = vadd.xlane.f32.xlu2 %v5342_v53  ;;  %v5409_v53 = vperm.slane %v10209_v57, 1 }
0x263d   : > { %v5325_v41 = vpop.f32.mrf.mxu1 }
0x263e   : > { %v5330_v2 = vadd.f32 %v5325_v41, %v10077_v16  ;;  %v5529_v41 = vperm.slane %v7626_v19, 1 }
0x2640   : > { %v10181_v28 = vadd.f32 %v5331_v60, %v5330_v2 }
0x2642   : > { %v5345_v31 = vsel %vm714_vm2, %v10181_v28, 0.0 }
0x2643   : > { %5346 = vadd.xlane.f32.xlu0 %v5345_v31 }
0x26a6   : > { %v5341_v13 = vpop.xlane.xlu1 %5340 }
0x26a7   : > { %v5348_v23 = vmul.f32 %v5341_v13, %v8518_v54 }
0x26a9   : > { %v10187_v33 = vsub.f32 %v10171_v40, %v5348_v23 }
0x26ab   : > { %v5354_v42 = vmul.f32 %v10187_v33, %v10187_v33 }
0x26ad   : > { %v5357_v52 = vsel %vm707_vm1, %v5354_v42, 0.0 }
0x26ae   : > { %5358 = vadd.xlane.f32.xlu1 %v5357_v52  ;;  %v5344_v1 = vpop.xlane.xlu2 %5343 }
0x26af   : > { %v5349_v16 = vmul.f32 %v5344_v1, %v8518_v54 }
0x26b1   : > { %v10194_v32 = vsub.f32 %v10176_v3, %v5349_v16 }
0x26b3   : > { %v5355_v43 = vmul.f32 %v10194_v32, %v10194_v32 }
0x26b5   : > { %v5360_v61 = vsel %vm707_vm1, %v5355_v43, 0.0 }
0x26b6   : > { %5361 = vadd.xlane.f32.xlu2 %v5360_v61  ;;  %v5347_v35 = vpop.xlane.xlu0 %5346 }
0x26b7   : > { %v5350_v45 = vmul.f32 %v5347_v35, %v8518_v54 }
0x26b9   : > { %v10201_v47 = vsub.f32 %v10181_v28, %v5350_v45 }
0x26bb   : > { %v5356_v55 = vmul.f32 %v10201_v47, %v10201_v47 }
0x26bd   : > { %v5363_v18 = vsel %vm714_vm2, %v5356_v55, 0.0 }
0x26be   : > { %5364 = vadd.xlane.f32.xlu0 %v5363_v18 }
0x26c7   : > { %5485 = vperm.xlu1 %7866, %v10209_v57  }
0x2721   : > { %v5359_v56 = vpop.xlane.xlu1 %5358 }
0x2722   : > { %v5366_v51 = vmul.f32 %v5359_v56, %v8518_v54  ;;  %v7684_v56 = vld [vmem:[%s10852_s4 + $0x1a8] sm:$0xff] }
0x2724   : > { %v5369_v39 = vadd.f32 1e-05, %v5366_v51 }
0x2726   : > { %8121 = vrsqrt.f32 %v5369_v39  ;;  %vm5378_vm4 = vweird.f32 %v5369_v39 }
0x2729   : > { %v5362_v17 = vpop.xlane.xlu2 %5361 }
0x272a   : > { %v5367_v15 = vmul.f32 %v5362_v17, %v8518_v54  ;;  %v7683_v17 = vld [vmem:[%s10852_s4 + $0x1a0] sm:$0xff] }
0x272c   : > { %v8122_v21 = vpop.eup %8121  ;;  %v5370_v22 = vadd.f32 1e-05, %v5367_v15 }
0x272d   : > { %v5373_v24 = vmul.f32 %v8122_v21, %v5369_v39  ;;  %vm5379_vm3 = vweird.f32 %v8122_v21 }
0x272e   : > { %8123 = vrsqrt.f32 %v5370_v22  ;;  %vm5380_vm5 = vmor %vm5378_vm4, %vm5379_vm3  ;;  %vm5388_vm7 = vweird.f32 %v5370_v22 }
0x272f   : > { %v5374_v48 = vmul.f32 %v8122_v21, %v5373_v24  ;;  %v5418_v24 = vperm.slane %v10209_v57, 2 }
0x2731   : > { %v5375_v30 = vmul.f32 0.5, %v5374_v48  ;;  %v5365_v44 = vpop.xlane.xlu0 %5364 }
0x2732   : > { %v5368_v4 = vmul.f32 %v5365_v44, %v8518_v54 }
0x2733   : > { %v5376_v49 = vsub.f32 1.5, %v5375_v30  ;;  %v7903_v30 = vld [vmem:[%s10806_s7 + $0xc] ss:$0 sm:$0xff] }
0x2734   : > { %v8124_v14 = vpop.eup %8123  ;;  %v5371_v58 = vadd.f32 1e-05, %v5368_v4 }
0x2735   : > { %v5377_v60 = vmul.f32 %v8122_v21, %v5376_v49  ;;  %v5383_v63 = vmul.f32 %v8124_v14, %v5370_v22  ;;  %vm5389_vm6 = vweird.f32 %v8124_v14 }
0x2736   : > { %8125 = vrsqrt.f32 %v5371_v58  ;;  %vm5390_vm8 = vmor %vm5388_vm7, %vm5389_vm6  ;;  %vm5398_vm10 = vweird.f32 %v5371_v58 }
0x2737   : > { %v5381_v59 = vsel %vm5380_vm5, %v8122_v21, %v5377_v60  ;;  %v5384_v0 = vmul.f32 %v8124_v14, %v5383_v63 }
0x2738   : > { %v5402_v2 = vmul.f32 %v5381_v59, %v10187_v33 }
0x2739   : > { %v5385_v31 = vmul.f32 0.5, %v5384_v0 }
0x273a   : > { %v5406_v13 = vmul.f32 %v5405_v36, %v5402_v2  ;;  %v5526_v23 = vmul.f32 %v5525_v27, %v5402_v2 }
0x273b   : > { %v5386_v42 = vsub.f32 1.5, %v5385_v31 }
0x273c   : > { %v8126_v52 = vpop.eup %8125  ;;  %v5410_v1 = vadd.f32 %v5409_v53, %v5406_v13  ;;  %v10269_v16 = vadd.f32 %v5529_v41, %v5526_v23 }
0x273d   : > { %v5387_v43 = vmul.f32 %v8124_v14, %v5386_v42  ;;  %v5393_v61 = vmul.f32 %v8126_v52, %v5371_v58  ;;  %vm5399_vm9 = vweird.f32 %v8126_v52 }
0x273e   : > { %7632 = vmatmul.msk.f32.vlgmr.msrb.gmra.mxu2 %vm707_vm1, %v5410_v1  ;;  %7653 = vmatmul.msk.f32.vlgmr.msrb.gmra.mxu3 %vm707_vm1, %v10269_v16  ;;  %vm5400_vm11 = vmor %vm5398_vm10, %vm5399_vm9 }
0x273f   : > { %v5391_v35 = vsel %vm5390_vm8, %v8124_v14, %v5387_v43  ;;  %v5394_v33 = vmul.f32 %v8126_v52, %v5393_v61 }
0x2740   : > { %v5403_v45 = vmul.f32 %v5391_v35, %v10194_v32  ;;  %v7686_v32 = vld [vmem:[%s10852_s4 + $0x1b8] sm:$0xff] }
0x2741   : > { %v5395_v55 = vmul.f32 0.5, %v5394_v33  ;;  %5871 = vmatpush.msrb.mxu2 %v7686_v32  ;;  %v7635_v32 = vld [vmem:[%s10813_s14 + $0x1] sm:$0x1] }
0x2742   : > { %v5527_v18 = vmul.f32 %v5525_v27, %v5403_v45  ;;  %v5407_v5 = vmul.f32 %v5405_v36, %v5403_v45 }
0x2743   : > { %v5396_v6 = vsub.f32 1.5, %v5395_v55  ;;  %5872 = vmatpush.msrb.mxu2 %v7685_v11  ;;  %v7642_v11 = vld [vmem:[%s10853_s26 + $0x190] sm:$0xff] }
0x2744   : > { %v10275_v7 = vadd.f32 %v5529_v41, %v5527_v18  ;;  %v5411_v37 = vadd.f32 %v5409_v53, %v5407_v5 }
0x2745   : > { %v5397_v10 = vmul.f32 %v8126_v52, %v5396_v6  ;;  %5873 = vmatpush.msrb.mxu2 %v7684_v56  ;;  %v7640_v56 = vld [vmem:[%s10853_s26 + $0x180] sm:$0xff] }
0x2746   : > { %7633 = vmatmul.msk.f32.gmra.mxu2 %vm707_vm1, %v5411_v37  ;;  %7654 = vmatmul.msk.f32.gmra.mxu3 %vm707_vm1, %v10275_v7  ;;  %v7643_v37 = vld [vmem:[%s10853_s26 + $0x198] sm:$0xff] }
0x2747   : > { %v5401_v12 = vsel %vm5400_vm11, %v8126_v52, %v5397_v10  ;;  %5874 = vmatpush.msrb.mxu2 %v7683_v17 }
0x2748   : > { %v5404_v34 = vmul.f32 %v5401_v12, %v10201_v47  ;;  %v7641_v12 = vld [vmem:[%s10853_s26 + $0x188] sm:$0xff] }
0x274a   : > { %v5528_v51 = vmul.f32 %v5525_v27, %v5404_v34  ;;  %v5408_v39 = vmul.f32 %v5405_v36, %v5404_v34  ;;  %v7904_v34 = vld [vmem:[%s10807_s8 + $0xc] ss:$0 sm:$0xff] }
0x274c   : > { %v10293_v15 = vadd.f32 %v5529_v41, %v5528_v51  ;;  %v5412_v21 = vadd.f32 %v5409_v53, %v5408_v39 }
0x274e   : > { %7634 = vmatmul.msk.f32.gmra.mxu2 %vm707_vm1, %v5412_v21  ;;  %7655 = vmatmul.msk.f32.gmra.mxu3 %vm707_vm1, %v10293_v15 }
0x2756   : > { %7661 = vmatmul.msk.f32.vlgmr.msra.gmra.mxu2 %vm707_vm1, %v10269_v16  ;;  %7680 = vmatmul.msk.f32.vlgmr.msra.gmra.mxu3 %vm707_vm1, %v10269_v16 }
0x275e   : > { %7662 = vmatmul.msk.f32.gmra.mxu2 %vm707_vm1, %v10275_v7  ;;  %7681 = vmatmul.msk.f32.gmra.mxu3 %vm707_vm1, %v10275_v7 }
0x2766   : > { %7663 = vmatmul.msk.f32.gmra.mxu2 %vm707_vm1, %v10293_v15  ;;  %7682 = vmatmul.msk.f32.gmra.mxu3 %vm707_vm1, %v10293_v15 }
0x276e   : > { %7688 = vmatmul.msk.f32.vlgmr.msrb.gmra.mxu2 %vm707_vm1, %v10269_v16 }
0x2776   : > { %7689 = vmatmul.msk.f32.gmra.mxu2 %vm707_vm1, %v10275_v7 }
0x277e   : > { %7690 = vmatmul.msk.f32.gmra.mxu2 %vm707_vm1, %v10293_v15 }
0x27c1   : > { %v5445_v47 = vpop.f32.mrf.mxu2  ;;  %v5605_v22 = vpop.f32.mrf.mxu3 }
0x27c2   : > { %v5446_v48 = vadd.f32 %v5445_v47, %v5418_v24  ;;  %v5606_v0 = vadd.f32 %v7903_v30, %v5605_v22  ;;  %v7906_v47 = vld [vmem:[%s10806_s7 + $0xd] ss:$0 sm:$0xff] }
0x27c4   : > { %v5457_v29 = vmul.f32 0.044715, %v5446_v48  ;;  %v5454_v5 = vmul.f32 0.5, %v5446_v48 }
0x27c6   : > { %v5460_v50 = vmul.f32 %v5457_v29, %v5446_v48 }
0x27c8   : > { %v5463_v58 = vmul.f32 %v5460_v50, %v5446_v48  ;;  %v7907_v50 = vld [vmem:[%s10855_s6 + $0xc] ss:$0 sm:$0xff] }
0x27c9   : > { %v5448_v26 = vpop.f32.mrf.mxu2  ;;  %v5608_v20 = vpop.f32.mrf.mxu3 }
0x27ca   : > { %v5449_v25 = vadd.f32 %v5448_v26, %v5418_v24  ;;  %v5609_v60 = vadd.f32 %v7903_v30, %v5608_v20  ;;  %v5466_v41 = vadd.f32 %v5463_v58, %v5446_v48  ;;  %v5486_v48 = vpop.permute.xlu1 %5485 }
0x27cb   : > { %v5487_v29 = vrot.slane %v5486_v48, 3 }
0x27cc   : > { %v5458_v38 = vmul.f32 0.044715, %v5449_v25  ;;  %v5469_v31 = vmul.f32 0.7978846, %v5466_v41  ;;  %v5455_v45 = vmul.f32 0.5, %v5449_v25 }
0x27ce   : > { %v5461_v46 = vmul.f32 %v5458_v38, %v5449_v25  ;;  %v7693_v38 = vld [vmem:[%s10854_s5 + $0x1b0] sm:$0xff] }
0x27d0   : > { %v5464_v44 = vmul.f32 %v5461_v46, %v5449_v25  ;;  %v7692_v46 = vld [vmem:[%s10854_s5 + $0x1a8] sm:$0xff] }
0x27d1   : > { %v5451_v4 = vpop.f32.mrf.mxu2  ;;  %v5611_v62 = vpop.f32.mrf.mxu3 }
0x27d2   : > { %v5452_v19 = vadd.f32 %v5451_v4, %v5418_v24  ;;  %v5612_v49 = vadd.f32 %v7903_v30, %v5611_v62  ;;  %v5467_v57 = vadd.f32 %v5464_v44, %v5449_v25  ;;  %v7694_v25 = vld [vmem:[%s10854_s5 + $0x1b8] sm:$0xff]  ;;  %v7691_v44 = vld [vmem:[%s10854_s5 + $0x1a0] sm:$0xff] }
0x27d4   : > { %v5459_v14 = vmul.f32 0.044715, %v5452_v19  ;;  %7664 = vmatpush.xpose.msk.msra.mxu1 %vm901_vm13, %v5612_v49  ;;  %v5470_v59 = vmul.f32 0.7978846, %v5467_v57  ;;  %v5456_v52 = vmul.f32 0.5, %v5452_v19 }
0x27d6   : > { %v5462_v63 = vmul.f32 %v5459_v14, %v5452_v19  ;;  %8127 = vtanh.f32 %v5470_v59 }
0x27d8   : > { %v5465_v36 = vmul.f32 %v5462_v63, %v5452_v19  ;;  %7665 = vmatpush.xpose.msk.msra.mxu1 %vm901_vm13, %v5609_v60 }
0x27d9   : > { %v5641_v27 = vpop.f32.mrf.mxu2 }
0x27da   : > { %v5468_v53 = vadd.f32 %v5465_v36, %v5452_v19  ;;  %v5642_v21 = vadd.f32 %v7904_v34, %v5641_v27 }
0x27dc   : > { %v5471_v2 = vmul.f32 0.7978846, %v5468_v53  ;;  %7666 = vmatpush.xpose.msk.msra.mxu1 %vm901_vm13, %v5606_v0  ;;  %v8128_v23 = vpop.eup %8127 }
0x27dd   : > { %v5476_v61 = vadd.f32 1.0, %v8128_v23 }
0x27de   : > { %8129 = vtanh.f32 %v5471_v2 }
0x27df   : > { %8131 = vtanh.f32 %v5469_v31  ;;  %v5479_v55 = vmul.f32 %v5476_v61, %v5455_v45 }
0x27e0   : > { %5907 = vmatpush.msrb.mxu1 %v7694_v25 }
0x27e1   : > { %v5644_v13 = vpop.f32.mrf.mxu2 }
0x27e2   : > { %v5645_v17 = vadd.f32 %v7904_v34, %v5644_v13  ;;  %5908 = vmatpush.msrb.mxu1 %v7693_v38 }
0x27e4   : > { %v8130_v42 = vpop.eup %8129  ;;  %5909 = vmatpush.msrb.mxu1 %v7692_v46 }
0x27e5   : > { %v5477_v1 = vadd.f32 1.0, %v8130_v42  ;;  %v8132_v35 = vpop.eup %8131 }
0x27e6   : > { %v5475_v18 = vadd.f32 1.0, %v8132_v35  ;;  %5910 = vmatpush.msrb.mxu1 %v7691_v44 }
0x27e7   : > { %v5480_v43 = vmul.f32 %v5477_v1, %v5456_v52 }
0x27e8   : > { %v5478_v6 = vmul.f32 %v5475_v18, %v5454_v5 }
0x27e9   : > { %7636 = vmatpush.xpose.msk.msrb.mxu0 %vm901_vm13, %v5480_v43  ;;  %v5647_v33 = vpop.f32.mrf.mxu2  ;;  %v7908_v43 = vld [vmem:[%s10807_s8 + $0xd] ss:$0 sm:$0xff] }
0x27ea   : > { %v5648_v51 = vadd.f32 %v7904_v34, %v5647_v33 }
0x27ed   : > { %7637 = vmatpush.xpose.msk.msrb.mxu0 %vm901_vm13, %v5479_v55 }
0x27f1   : > { %7638 = vmatpush.xpose.msk.msrb.mxu0 %vm901_vm13, %v5478_v6  ;;  %v5876_v10 = vpop.f32.mrf.mxu2 }
0x27f2   : > { %v5877_v20 = vadd.f32 %v7906_v47, %v5876_v10 }
0x27f4   : > { %7639 = vmatmul.msk.f32.vlgmr.msrb.gmra.mxu0 %vm901_vm13, %v7635_v32 }
0x27f5   : > { %5564 = vmatpush.msra.mxu0 %v7643_v37 }
0x27f7   : > { %5565 = vmatpush.msra.mxu0 %v7642_v11 }
0x27f9   : > { %5566 = vmatpush.msra.mxu0 %v7641_v12  ;;  %v5879_v39 = vpop.f32.mrf.mxu2 }
0x27fa   : > { %v5880_v26 = vadd.f32 %v7906_v47, %v5879_v39 }
0x27fb   : > { %5567 = vmatpush.msra.mxu0 %v7640_v56 }
0x27fc   : > { %7645 = vmatmul.msk.f32.vlgmr.msra.gmra.mxu0 %vm707_vm1, %v10269_v16 }
0x27fd   : > { %7670 = vmatpush.msk.msrb.mxu0 %vm1032_vm14, %v5648_v51 }
0x27ff   : > { %5799 = vmatpush.msrb.mxu0 %v5645_v17 }
0x2801   : > { %5800 = vmatpush.msrb.mxu0 %v5642_v21  ;;  %v5882_v22 = vpop.f32.mrf.mxu2 }
0x2802   : > { %v5883_v24 = vadd.f32 %v7906_v47, %v5882_v22 }
0x2804   : > { %7699 = vmatpush.xpose.msk.msra.mxu0 %vm901_vm13, %v5883_v24 }
0x2805   : > { %7646 = vmatmul.msk.f32.gmra.mxu0 %vm707_vm1, %v10275_v7 }
0x2808   : > { %7700 = vmatpush.xpose.msk.msra.mxu0 %vm901_vm13, %v5880_v26 }
0x280c   : > { %7701 = vmatpush.xpose.msk.msra.mxu0 %vm901_vm13, %v5877_v20 }
0x280d   : > { %7647 = vmatmul.msk.f32.gmra.mxu0 %vm707_vm1, %v10293_v15 }
0x2871   : > { %v5518_v30 = vpop.f32.mrf.mxu0 }
0x2872   : > { %v5519_v4 = vadd.f32 %v5518_v30, %v5487_v29 }
0x2874   : > { %vm5521_vm12 = vcmp.lt.f32.partialorder %v5519_v4, 0.0 }
0x2875   : > { %v5522_v62 = vsel %vm5521_vm12, 1, %v8264_v8  ;;  %v5524_v8 = vsel %vm5521_vm12, 0.0, %v8265_v9 }
0x2876   : > { %5523 = vst.msk [vmem:[%s9785_s2 + $0x1] sm:$0x1] %vm956_vm0, %v5522_v62  ;;  %v10388_v36 = vperm.slane %v5524_v8, 0  ;;  %s7035_s2 = sshll.u32 %s595_s25, 4  ;;  %s7036_s2 = int_to_ptr.vmem [resolvable:$true] %s7035_s2 }
0x2879   : > { %v5569_v19 = vpop.f32.mrf.mxu0 }
0x287a   : > { %v5570_v49 = vadd.f32 %v7907_v50, %v5569_v19 }
0x287c   : > { %7667 = vmatmul.msk.f32.vlgmr.msra.gmra.mxu1 %vm901_vm13, %v5570_v49 }
0x2882   : > { %v5572_v14 = vpop.f32.mrf.mxu0 }
0x2883   : > { %v5573_v57 = vadd.f32 %v7907_v50, %v5572_v14 }
0x2885   : > { %7668 = vmatmul.msk.f32.gmra.mxu1 %vm901_vm13, %v5573_v57 }
0x288a   : > { %v5575_v58 = vpop.f32.mrf.mxu0 }
0x288b   : > { %v5576_v60 = vadd.f32 %v7907_v50, %v5575_v58 }
0x288d   : > { %7669 = vmatmul.msk.f32.gmra.mxu1 %vm901_vm13, %v5576_v60 }
0x2895   : > { %7696 = vmatmul.msk.f32.vlgmr.msrb.gmra.mxu1 %vm707_vm1, %v10269_v16 }
0x289d   : > { %7697 = vmatmul.msk.f32.gmra.mxu1 %vm707_vm1, %v10275_v7 }
0x28a5   : > { %7698 = vmatmul.msk.f32.gmra.mxu1 %vm707_vm1, %v10293_v15 }
0x28f9   : > { %v5685_v63 = vpop.f32.mrf.mxu1 }
0x28fa   : > { %v5694_v27 = vmul.f32 0.35355338, %v5685_v63 }
0x28fc   : > { %v5698_v59 = vadd.f32 %v10388_v36, %v5694_v27 }
0x28fe   : > { %v5701_v0 = vsel %vm949_vm15, %v5698_v59, -inf }
0x28ff   : > { %5702 = vmax.xlane.f32.xlu2 %v5701_v0 }
0x2902   : > { %v5688_v53 = vpop.f32.mrf.mxu1 }
0x2903   : > { %v5695_v41 = vmul.f32 0.35355338, %v5688_v53 }
0x2905   : > { %v5699_v2 = vadd.f32 %v10388_v36, %v5695_v41 }
0x2907   : > { %v5704_v31 = vsel %vm949_vm15, %v5699_v2, -inf }
0x2908   : > { %5705 = vmax.xlane.f32.xlu0 %v5704_v31 }
0x290a   : > { %v5691_v13 = vpop.f32.mrf.mxu1 }
0x290b   : > { %v5696_v23 = vmul.f32 0.35355338, %v5691_v13 }
0x290d   : > { %v5700_v9 = vadd.f32 %v10388_v36, %v5696_v23  ;;  %v7719_v23 = vld [vmem:[%s10853_s26 + $0x1d8] sm:$0xff] }
0x290f   : > { %v5707_v42 = vsel %vm956_vm0, %v5700_v9, -inf }
0x2910   : > { %5708 = vmax.xlane.f32.xlu2 %v5707_v42 }
0x2912   : > { %v5912_v52 = vpop.f32.mrf.mxu1 }
0x2913   : > { %v5913_v45 = vadd.f32 %v7908_v43, %v5912_v52  ;;  %v7717_v52 = vld [vmem:[%s10853_s26 + $0x1c8] sm:$0xff] }
0x291a   : > { %v5915_v1 = vpop.f32.mrf.mxu1 }
0x291b   : > { %v5916_v33 = vadd.f32 %v7908_v43, %v5915_v1 }
0x2922   : > { %v5918_v61 = vpop.f32.mrf.mxu1 }
0x2923   : > { %v5919_v35 = vadd.f32 %v7908_v43, %v5918_v61  ;;  %v7716_v61 = vld [vmem:[%s10853_s26 + $0x1c0] sm:$0xff] }
0x2925   : > { %7705 = vmatpush.msk.msrb.mxu3 %vm1032_vm14, %v5919_v35 }
0x2927   : > { %6069 = vmatpush.msrb.mxu3 %v5916_v33 }
0x2929   : > { %6070 = vmatpush.msrb.mxu3 %v5913_v45  ;;  %v5840_v45 = vpop.f32.mrf.mxu3 }
0x2972   : > { %v5703_v55 = vpop.xlane.xlu2 %5702 }
0x2973   : > { %v5710_v18 = vsub.f32 %v5698_v59, %v5703_v55  ;;  %v7905_v55 = vld [vmem:[%s10855_s6 + $0xd] ss:$0 sm:$0xff] }
0x2975   : > { %v5713_v5 = vmul.f32 1.442695, %v5710_v18  ;;  %v5841_v18 = vadd.f32 %v7905_v55, %v5840_v45 }
0x2977   : > { %8133 = vpow2.f32 %v5713_v5  ;;  %v5843_v5 = vpop.f32.mrf.mxu3 }
0x297b   : > { %v5706_v6 = vpop.xlane.xlu0 %5705 }
0x297c   : > { %v5711_v37 = vsub.f32 %v5699_v2, %v5706_v6  ;;  %v5844_v6 = vadd.f32 %v7905_v55, %v5843_v5 }
0x297d   : > { %v8134_v10 = vpop.eup %8133 }
0x297e   : > { %v5715_v32 = vmul.f32 1.442695, %v5711_v37  ;;  %v5719_v11 = vsel %vm949_vm15, %v8134_v10, 0.0 }
0x297f   : > { %5720 = vadd.xlane.f32.xlu0 %v5719_v11  ;;  %v5846_v37 = vpop.f32.mrf.mxu3 }
0x2980   : > { %8135 = vpow2.f32 %v5715_v32  ;;  %v7674_v32 = vld [vmem:[%s10808_s9 + $0x60] sm:$0xff] }
0x2981   : > { %6142 = vmatpush.msra.mxu1 %v7674_v32 }
0x2983   : > { %v5709_v12 = vpop.xlane.xlu2 %5708 }
0x2984   : > { %v5712_v34 = vsub.f32 %v5700_v9, %v5709_v12  ;;  %v7718_v9 = vld [vmem:[%s10853_s26 + $0x1d0] sm:$0xff] }
0x2986   : > { %v8136_v56 = vpop.eup %8135  ;;  %v5717_v51 = vmul.f32 1.442695, %v5712_v34 }
0x2987   : > { %v5722_v39 = vsel %vm949_vm15, %v8136_v56, 0.0 }
0x2988   : > { %8137 = vpow2.f32 %v5717_v51  ;;  %5723 = vadd.xlane.f32.xlu2 %v5722_v39 }
0x298e   : > { %v8138_v17 = vpop.eup %8137 }
0x298f   : > { %v5725_v21 = vsel %vm956_vm0, %v8138_v17, 0.0 }
0x2990   : > { %5726 = vadd.xlane.f32.xlu0 %v5725_v21 }
0x29f2   : > { %v5721_v47 = vpop.xlane.xlu0 %5720 }
0x29f3   : > { %8139 = vrcp.f32 %v5721_v47  ;;  %v5739_v48 = vand.u32 2147483648, %v5721_v47  ;;  %v5737_v38 = vand.u32 2147483647, %v5721_v47  ;;  %vm5733_vm4 = vweird.f32 %v5721_v47 }
0x29f5   : > { %v5740_v30 = vor.u32 1.1754944e-38, %v5739_v48  ;;  %vm5738_vm6 = vcmp.eq.f32.partialorder %v5737_v38, 8.507059e+37 }
0x29f9   : > { %v8140_v22 = vpop.eup %8139 }
0x29fa   : > { %v5729_v24 = vmul.f32 %v8140_v22, %v5721_v47  ;;  %vm5734_vm3 = vweird.f32 %v8140_v22 }
0x29fb   : > { %v5724_v26 = vpop.xlane.xlu2 %5723  ;;  %vm5735_vm5 = vmor %vm5733_vm4, %vm5734_vm3 }
0x29fc   : > { %8141 = vrcp.f32 %v5724_v26  ;;  %v5730_v20 = vsub.f32 1.0, %v5729_v24  ;;  %v5754_v14 = vand.u32 2147483648, %v5724_v26  ;;  %v5752_v58 = vand.u32 2147483647, %v5724_v26 }
0x29fd   : > { %vm5748_vm8 = vweird.f32 %v5724_v26 }
0x29fe   : > { %v5731_v25 = vmul.f32 %v8140_v22, %v5730_v20  ;;  %v5755_v63 = vor.u32 1.1754944e-38, %v5754_v14  ;;  %vm5753_vm10 = vcmp.eq.f32.partialorder %v5752_v58, 8.507059e+37 }
0x2a00   : > { %v5732_v29 = vadd.f32 %v8140_v22, %v5731_v25 }
0x2a02   : > { %v8142_v46 = vpop.eup %8141  ;;  %v5736_v44 = vsel %vm5735_vm5, %v8140_v22, %v5732_v29 }
0x2a03   : > { %v5744_v4 = vmul.f32 %v8142_v46, %v5724_v26  ;;  %v5727_v62 = vpop.xlane.xlu0 %5726  ;;  %v5741_v50 = vsel %vm5738_vm6, %v5740_v30, %v5736_v44  ;;  %vm5749_vm7 = vweird.f32 %v8142_v46 }
0x2a04   : > { %8143 = vrcp.f32 %v5727_v62  ;;  %v5742_v19 = vmul.f32 %v8134_v10, %v5741_v50  ;;  %vm5750_vm9 = vmor %vm5748_vm8, %vm5749_vm7  ;;  %v5769_v2 = vand.u32 2147483648, %v5727_v62  ;;  %v5767_v13 = vand.u32 2147483647, %v5727_v62 }
0x2a05   : > { %v5745_v49 = vsub.f32 1.0, %v5744_v4  ;;  %vm5763_vm12 = vweird.f32 %v5727_v62  ;;  %v5847_v10 = vadd.f32 %v7905_v55, %v5846_v37 }
0x2a06   : > { %7671 = vmatmul.msk.f32.vlgmr.msrb.gmra.mxu0 %vm949_vm15, %v5742_v19  ;;  %v5770_v1 = vor.u32 1.1754944e-38, %v5769_v2  ;;  %vm5768_vm4 = vcmp.eq.f32.partialorder %v5767_v13, 8.507059e+37 }
0x2a07   : > { %v5746_v57 = vmul.f32 %v8142_v46, %v5745_v49  ;;  %6175 = vmatpush.msrb.mxu0 %v7719_v23 }
0x2a09   : > { %v5747_v60 = vadd.f32 %v8142_v46, %v5746_v57  ;;  %6176 = vmatpush.msrb.mxu0 %v7718_v9 }
0x2a0a   : > { %v8144_v8 = vpop.eup %8143 }
0x2a0b   : > { %v5759_v27 = vmul.f32 %v8144_v8, %v5727_v62  ;;  %v5751_v59 = vsel %vm5750_vm9, %v8142_v46, %v5747_v60  ;;  %vm5764_vm11 = vweird.f32 %v8144_v8  ;;  %6177 = vmatpush.msrb.mxu0 %v7717_v52 }
0x2a0c   : > { %v5756_v0 = vsel %vm5753_vm10, %v5755_v63, %v5751_v59  ;;  %vm5765_vm3 = vmor %vm5763_vm12, %vm5764_vm11  ;;  %v7727_v63 = vld [vmem:[%s10852_s4 + $0x1d8] sm:$0xff]  ;;  %v7726_v59 = vld [vmem:[%s10852_s4 + $0x1d0] sm:$0xff] }
0x2a0d   : > { %v5760_v53 = vsub.f32 1.0, %v5759_v27  ;;  %v5757_v41 = vmul.f32 %v8136_v56, %v5756_v0  ;;  %6178 = vmatpush.msrb.mxu0 %v7716_v61  ;;  %6211 = vmatpush.msra.mxu3 %v7727_v63  ;;  %v7725_v0 = vld [vmem:[%s10852_s4 + $0x1c8] sm:$0xff] }
0x2a0f   : > { %v5761_v31 = vmul.f32 %v8144_v8, %v5760_v53  ;;  %7672 = vmatmul.msk.f32.gmra.mxu0 %vm949_vm15, %v5757_v41  ;;  %6212 = vmatpush.msra.mxu3 %v7726_v59  ;;  %v7724_v53 = vld [vmem:[%s10852_s4 + $0x1c0] sm:$0xff] }
0x2a11   : > { %v5762_v42 = vadd.f32 %v8144_v8, %v5761_v31  ;;  %6213 = vmatpush.msra.mxu3 %v7725_v0  ;;  %v7909_v0 = vld [vmem:[%s10855_s6 + $0xe] ss:$0 sm:$0xff] }
0x2a13   : > { %v5766_v43 = vsel %vm5765_vm3, %v8144_v8, %v5762_v42  ;;  %6214 = vmatpush.msra.mxu3 %v7724_v53 }
0x2a14   : > { %v5771_v35 = vsel %vm5768_vm4, %v5770_v1, %v5766_v43 }
0x2a15   : > { %v5772_v33 = vmul.f32 %v8138_v17, %v5771_v35 }
0x2a17   : > { %7673 = vmatmul.msk.f32.gmra.mxu0 %vm949_vm15, %v5772_v33 }
0x2a1f   : > { %7702 = vmatmul.msk.f32.vlgmr.msra.gmra.mxu0 %vm901_vm13, %v5841_v18 }
0x2a27   : > { %7703 = vmatmul.msk.f32.gmra.mxu0 %vm901_vm13, %v5844_v6 }
0x2a2f   : > { %7704 = vmatmul.msk.f32.gmra.mxu0 %vm901_vm13, %v5847_v10 }
0x2a37   : > { %7721 = vmatmul.msk.f32.vlgmr.msrb.gmra.mxu0 %vm707_vm1, %v10269_v16 }
0x2a3f   : > { %7722 = vmatmul.msk.f32.gmra.mxu0 %vm707_vm1, %v10275_v7 }
0x2a47   : > { %7723 = vmatmul.msk.f32.gmra.mxu0 %vm707_vm1, %v10293_v15 }
0x2a83   : > { %v5802_v11 = vpop.f32.mrf.mxu0 }
0x2a84   : > { %7713 = vmatmul.msk.f32.vlgmr.msra.gmra.mxu1 %vm901_vm13, %v5802_v11 }
0x2a8c   : > { %v5805_v12 = vpop.f32.mrf.mxu0 }
0x2a8d   : > { %7714 = vmatmul.msk.f32.gmra.mxu1 %vm901_vm13, %v5805_v12 }
0x2a94   : > { %v5808_v34 = vpop.f32.mrf.mxu0 }
0x2a95   : > { %7715 = vmatmul.msk.f32.gmra.mxu1 %vm901_vm13, %v5808_v34 }
0x2a9c   : > { %v5956_v56 = vpop.f32.mrf.mxu0 }
0x2a9d   : > { %v5965_v51 = vmul.f32 0.35355338, %v5956_v56 }
0x2a9f   : > { %v5968_v39 = vadd.f32 %v5965_v51, %v10388_v36 }
0x2aa1   : > { %v5971_v17 = vsel %vm949_vm15, %v5968_v39, -inf }
0x2aa2   : > { %5972 = vmax.xlane.f32.xlu2 %v5971_v17 }
0x2aa4   : > { %v5959_v21 = vpop.f32.mrf.mxu0 }
0x2aa5   : > { %v5966_v47 = vmul.f32 0.35355338, %v5959_v21 }
0x2aa7   : > { %v5969_v22 = vadd.f32 %v5966_v47, %v10388_v36 }
0x2aa9   : > { %v5974_v24 = vsel %vm949_vm15, %v5969_v22, -inf }
0x2aaa   : > { %5975 = vmax.xlane.f32.xlu1 %v5974_v24 }
0x2aac   : > { %v5962_v26 = vpop.f32.mrf.mxu0 }
0x2aad   : > { %v5967_v20 = vmul.f32 0.35355338, %v5962_v26 }
0x2aaf   : > { %v5970_v48 = vadd.f32 %v5967_v20, %v10388_v36 }
0x2ab1   : > { %v5977_v25 = vsel %vm956_vm0, %v5970_v48, -inf }
0x2ab2   : > { %5978 = vmax.xlane.f32.xlu0 %v5977_v25  ;;  %v7709_v25 = vld [vmem:[%s10808_s9 + $0x68] sm:$0xff] }
0x2ab3   : > { %6107 = vmatpush.msra.mxu2 %v7709_v25 }
0x2b15   : > { %v5973_v38 = vpop.xlane.xlu2 %5972 }
0x2b16   : > { %v5980_v29 = vsub.f32 %v5968_v39, %v5973_v38  ;;  %v7735_v38 = vld [vmem:[%s10854_s5 + $0x1d8] sm:$0xff] }
0x2b17   : > { %6247 = vmatpush.msrb.mxu2 %v7735_v38 }
0x2b18   : > { %v5983_v46 = vmul.f32 1.442695, %v5980_v29  ;;  %v7734_v29 = vld [vmem:[%s10854_s5 + $0x1d0] sm:$0xff] }
0x2b19   : > { %6248 = vmatpush.msrb.mxu2 %v7734_v29 }
0x2b1a   : > { %8145 = vpow2.f32 %v5983_v46  ;;  %v7733_v46 = vld [vmem:[%s10854_s5 + $0x1c8] sm:$0xff] }
0x2b1b   : > { %6249 = vmatpush.msrb.mxu2 %v7733_v46  ;;  %v7913_v46 = vld [vmem:[%s10806_s7 + $0xf] ss:$0 sm:$0xff] }
0x2b1d   : > { %v5976_v30 = vpop.xlane.xlu1 %5975 }
0x2b1e   : > { %v5981_v44 = vsub.f32 %v5969_v22, %v5976_v30  ;;  %v7732_v30 = vld [vmem:[%s10854_s5 + $0x1c0] sm:$0xff] }
0x2b1f   : > { %6250 = vmatpush.msrb.mxu2 %v7732_v30 }
0x2b20   : > { %v8146_v4 = vpop.eup %8145  ;;  %v5985_v62 = vmul.f32 1.442695, %v5981_v44 }
0x2b21   : > { %v5989_v50 = vsel %vm949_vm15, %v8146_v4, 0.0 }
0x2b22   : > { %8147 = vpow2.f32 %v5985_v62  ;;  %5990 = vadd.xlane.f32.xlu2 %v5989_v50  ;;  %v7757_v62 = vld [vmem:[%s10853_s26 + $0x1f8] sm:$0xff]  ;;  %v7756_v50 = vld [vmem:[%s10853_s26 + $0x1f0] sm:$0xff] }
0x2b25   : > { %v5979_v19 = vpop.xlane.xlu0 %5978 }
0x2b26   : > { %v5982_v49 = vsub.f32 %v5970_v48, %v5979_v19  ;;  %v7755_v19 = vld [vmem:[%s10853_s26 + $0x1e8] sm:$0xff] }
0x2b28   : > { %v8148_v14 = vpop.eup %8147  ;;  %v5987_v57 = vmul.f32 1.442695, %v5982_v49  ;;  %v7754_v49 = vld [vmem:[%s10853_s26 + $0x1e0] sm:$0xff] }
0x2b29   : > { %v5992_v58 = vsel %vm949_vm15, %v8148_v14, 0.0 }
0x2b2a   : > { %8149 = vpow2.f32 %v5987_v57  ;;  %5993 = vadd.xlane.f32.xlu0 %v5992_v58 }
0x2b30   : > { %v10444_v60 = vpop.eup %8149 }
0x2b31   : > { %v5995_v8 = vsel %vm956_vm0, %v10444_v60, 0.0 }
0x2b32   : > { %5996 = vadd.xlane.f32.xlu2 %v5995_v8 }
0x2b95   : > { %v5991_v27 = vpop.xlane.xlu2 %5990 }
0x2b96   : > { %8151 = vrcp.f32 %v5991_v27  ;;  %v6009_v23 = vand.u32 2147483648, %v5991_v27  ;;  %v6007_v42 = vand.u32 2147483647, %v5991_v27  ;;  %vm6003_vm6 = vweird.f32 %v5991_v27 }
0x2b98   : > { %v6010_v43 = vor.u32 1.1754944e-38, %v6009_v23  ;;  %vm6008_vm8 = vcmp.eq.f32.partialorder %v6007_v42, 8.507059e+37 }
0x2b9c   : > { %v8152_v41 = vpop.eup %8151 }
0x2b9d   : > { %v5999_v2 = vmul.f32 %v8152_v41, %v5991_v27  ;;  %v5994_v31 = vpop.xlane.xlu0 %5993  ;;  %vm6004_vm5 = vweird.f32 %v8152_v41  ;;  %v6180_v27 = vpop.f32.mrf.mxu0 }
0x2b9e   : > { %8153 = vrcp.f32 %v5994_v31  ;;  %vm6005_vm7 = vmor %vm6003_vm6, %vm6004_vm5  ;;  %v6024_v5 = vand.u32 2147483648, %v5994_v31  ;;  %v6022_v37 = vand.u32 2147483647, %v5994_v31  ;;  %vm6018_vm10 = vweird.f32 %v5994_v31 }
0x2b9f   : > { %v6000_v13 = vsub.f32 1.0, %v5999_v2  ;;  %v6181_v2 = vadd.f32 %v7909_v0, %v6180_v27 }
0x2ba0   : > { %v6025_v11 = vor.u32 1.1754944e-38, %v6024_v5  ;;  %vm6023_vm12 = vcmp.eq.f32.partialorder %v6022_v37, 8.507059e+37  ;;  %v7911_v37 = vld [vmem:[%s10807_s8 + $0xe] ss:$0 sm:$0xff] }
0x2ba1   : > { %v6001_v9 = vmul.f32 %v8152_v41, %v6000_v13  ;;  %v7763_v13 = vld [vmem:[%s10852_s4 + $0x1e8] sm:$0xff] }
0x2ba3   : > { %v6002_v52 = vadd.f32 %v8152_v41, %v6001_v9  ;;  %v7762_v9 = vld [vmem:[%s10852_s4 + $0x1e0] sm:$0xff] }
0x2ba4   : > { %v8154_v1 = vpop.eup %8153 }
0x2ba5   : > { %v6006_v61 = vsel %vm6005_vm7, %v8152_v41, %v6002_v52  ;;  %v6014_v35 = vmul.f32 %v8154_v1, %v5994_v31  ;;  %v5997_v33 = vpop.xlane.xlu2 %5996  ;;  %vm6019_vm9 = vweird.f32 %v8154_v1  ;;  %v7765_v41 = vld [vmem:[%s10852_s4 + $0x1f8] sm:$0xff]  ;;  %v7764_v31 = vld [vmem:[%s10852_s4 + $0x1f0] sm:$0xff]  ;;  %v6183_v23 = vpop.f32.mrf.mxu0 }
0x2ba6   : > { %v6011_v45 = vsel %vm6008_vm8, %v6010_v43, %v6006_v61  ;;  %8155 = vrcp.f32 %v5997_v33  ;;  %vm6020_vm11 = vmor %vm6018_vm10, %vm6019_vm9  ;;  %v6039_v17 = vand.u32 2147483648, %v5997_v33  ;;  %v6037_v47 = vand.u32 2147483647, %v5997_v33  ;;  %v10542_v43 = vpop.f32.mrf.mxu1 }
0x2ba7   : > { %v6012_v55 = vmul.f32 %v8146_v4, %v6011_v45  ;;  %v6015_v18 = vsub.f32 1.0, %v6014_v35  ;;  %vm6033_vm4 = vweird.f32 %v5997_v33  ;;  %v6184_v42 = vadd.f32 %v7909_v0, %v6183_v23  ;;  %v7772_v23 = vld [vmem:[%s10854_s5 + $0x1f0] sm:$0xff] }
0x2ba8   : > { %v6040_v24 = vor.u32 1.1754944e-38, %v6039_v17  ;;  %vm6038_vm6 = vcmp.eq.f32.partialorder %v6037_v47, 8.507059e+37  ;;  %v7750_v47 = vld [vmem:[%s10808_s9 + $0x70] sm:$0xff] }
0x2ba9   : > { %v6016_v6 = vmul.f32 %v8154_v1, %v6015_v18  ;;  %7706 = vmatmul.msk.f32.vlgmr.msrb.gmra.mxu3 %vm949_vm15, %v6012_v55 }
0x2baa   : > { %6447 = vmatpush.msrb.mxu3 %v7750_v47 }
0x2bab   : > { %v6017_v10 = vadd.f32 %v8154_v1, %v6016_v6 }
0x2bac   : > { %v8156_v32 = vpop.eup %8155 }
0x2bad   : > { %v6029_v12 = vmul.f32 %v8156_v32, %v5997_v33  ;;  %v6021_v34 = vsel %vm6020_vm11, %v8154_v1, %v6017_v10  ;;  %vm6034_vm3 = vweird.f32 %v8156_v32  ;;  %v6186_v52 = vpop.f32.mrf.mxu0 }
0x2bae   : > { %v6026_v56 = vsel %vm6023_vm12, %v6025_v11, %v6021_v34  ;;  %vm6035_vm5 = vmor %vm6033_vm4, %vm6034_vm3  ;;  %v6187_v1 = vadd.f32 %v7909_v0, %v6186_v52  ;;  %v10546_v35 = vpop.f32.mrf.mxu1 }
0x2baf   : > { %v6030_v51 = vsub.f32 1.0, %v6029_v12  ;;  %v6027_v39 = vmul.f32 %v8148_v14, %v6026_v56 }
0x2bb1   : > { %v6031_v21 = vmul.f32 %v8156_v32, %v6030_v51  ;;  %7707 = vmatmul.msk.f32.gmra.mxu3 %vm949_vm15, %v6027_v39 }
0x2bb3   : > { %v6032_v22 = vadd.f32 %v8156_v32, %v6031_v21 }
0x2bb5   : > { %v6036_v26 = vsel %vm6035_vm5, %v8156_v32, %v6032_v22 }
0x2bb6   : > { %v6041_v20 = vsel %vm6038_vm6, %v6040_v24, %v6036_v26  ;;  %v6150_v45 = vpop.f32.mrf.mxu1 }
0x2bb7   : > { %v6042_v48 = vmul.f32 %v10444_v60, %v6041_v20  ;;  %v7910_v60 = vld [vmem:[%s10806_s7 + $0xe] ss:$0 sm:$0xff] }
0x2bb9   : > { %7708 = vmatmul.msk.f32.gmra.mxu3 %vm949_vm15, %v6042_v48 }
0x2bc1   : > { %7729 = vmatmul.msk.f32.vlgmr.msra.gmra.mxu3 %vm707_vm1, %v10269_v16 }
0x2bc9   : > { %7730 = vmatmul.msk.f32.gmra.mxu3 %vm707_vm1, %v10275_v7 }
0x2bd1   : > { %7731 = vmatmul.msk.f32.gmra.mxu3 %vm707_vm1, %v10293_v15 }
0x2c2c   : > { %v6072_v44 = vpop.f32.mrf.mxu3 }
0x2c2d   : > { %7710 = vmatmul.msk.f32.vlgmr.msra.gmra.mxu2 %vm901_vm13, %v6072_v44 }
0x2c2e   : > { %6483 = vmatpush.msra.mxu2 %v7757_v62 }
0x2c30   : > { %6484 = vmatpush.msra.mxu2 %v7756_v50 }
0x2c32   : > { %6485 = vmatpush.msra.mxu2 %v7755_v19 }
0x2c34   : > { %v6075_v4 = vpop.f32.mrf.mxu3  ;;  %6486 = vmatpush.msra.mxu2 %v7754_v49 }
0x2c35   : > { %7711 = vmatmul.msk.f32.gmra.mxu2 %vm901_vm13, %v6075_v4 }
0x2c3c   : > { %v6078_v14 = vpop.f32.mrf.mxu3 }
0x2c3d   : > { %7712 = vmatmul.msk.f32.gmra.mxu2 %vm901_vm13, %v6078_v14 }
0x2c44   : > { %v6216_v57 = vpop.f32.mrf.mxu3 }
0x2c45   : > { %7737 = vmatmul.msk.f32.vlgmr.msrb.gmra.mxu2 %vm707_vm1, %v10269_v16  ;;  %v6217_v53 = vadd.f32 %v7910_v60, %v6216_v57 }
0x2c4c   : > { %v6219_v58 = vpop.f32.mrf.mxu3 }
0x2c4d   : > { %7738 = vmatmul.msk.f32.gmra.mxu2 %vm707_vm1, %v10275_v7  ;;  %v6220_v59 = vadd.f32 %v7910_v60, %v6219_v58 }
0x2c54   : > { %v6222_v8 = vpop.f32.mrf.mxu3 }
0x2c55   : > { %v6223_v63 = vadd.f32 %v7910_v60, %v6222_v8  ;;  %7739 = vmatmul.msk.f32.gmra.mxu2 %vm707_vm1, %v10293_v15 }
0x2c57   : > { %7740 = vmatpush.xpose.msk.msrb.mxu1 %vm901_vm13, %v6223_v63 }
0x2c5b   : > { %7741 = vmatpush.xpose.msk.msrb.mxu1 %vm901_vm13, %v6220_v59 }
0x2c5d   : > { %7759 = vmatmul.msk.f32.vlgmr.msra.gmra.mxu2 %vm707_vm1, %v10269_v16 }
0x2c5f   : > { %7742 = vmatpush.xpose.msk.msrb.mxu1 %vm901_vm13, %v6217_v53 }
0x2c62   : > { %7743 = vmatmul.msk.f32.vlgmr.msrb.gmra.mxu1 %vm901_vm13, %v6181_v2 }
0x2c63   : > { %6519 = vmatpush.msra.mxu1 %v7765_v41 }
0x2c65   : > { %6520 = vmatpush.msra.mxu1 %v7764_v31  ;;  %7760 = vmatmul.msk.f32.gmra.mxu2 %vm707_vm1, %v10275_v7 }
0x2c67   : > { %6521 = vmatpush.msra.mxu1 %v7763_v13  ;;  %v7773_v13 = vld [vmem:[%s10854_s5 + $0x1f8] sm:$0xff] }
0x2c69   : > { %6522 = vmatpush.msra.mxu1 %v7762_v9  ;;  %v7771_v9 = vld [vmem:[%s10854_s5 + $0x1e8] sm:$0xff] }
0x2c6a   : > { %7744 = vmatmul.msk.f32.gmra.mxu1 %vm901_vm13, %v6184_v42 }
0x2c6d   : > { %7761 = vmatmul.msk.f32.gmra.mxu2 %vm707_vm1, %v10293_v15 }
0x2c72   : > { %7745 = vmatmul.msk.f32.gmra.mxu1 %vm901_vm13, %v6187_v1 }
0x2c7a   : > { %7767 = vmatmul.msk.f32.vlgmr.msra.gmra.mxu1 %vm707_vm1, %v10269_v16 }
0x2c82   : > { %7768 = vmatmul.msk.f32.gmra.mxu1 %vm707_vm1, %v10275_v7 }
0x2c8a   : > { %7769 = vmatmul.msk.f32.gmra.mxu1 %vm707_vm1, %v10293_v15 }
0x2cb0   : > { %v10544_v61 = vpop.f32.mrf.mxu2 }
0x2cb8   : > { %v10548_v33 = vpop.f32.mrf.mxu2 }
0x2cc0   : > { %v6115_v55 = vpop.f32.mrf.mxu2 }
0x2cc1   : > { %v10550_v18 = vadd.f32 %v6150_v45, %v6115_v55  ;;  %v7770_v45 = vld [vmem:[%s10854_s5 + $0x1e0] sm:$0xff] }
0x2cc8   : > { %v6252_v5 = vpop.f32.mrf.mxu2 }
0x2cc9   : > { %v6253_v12 = vadd.f32 %v7911_v37, %v6252_v5 }
0x2cd0   : > { %v6255_v6 = vpop.f32.mrf.mxu2 }
0x2cd1   : > { %v6256_v11 = vadd.f32 %v7911_v37, %v6255_v6 }
0x2cd8   : > { %v6258_v10 = vpop.f32.mrf.mxu2 }
0x2cd9   : > { %v6259_v32 = vadd.f32 %v7911_v37, %v6258_v10 }
0x2cdb   : > { %7746 = vmatpush.msk.msra.mxu0 %vm1032_vm14, %v6259_v32 }
0x2cdd   : > { %6409 = vmatpush.msra.mxu0 %v6256_v11 }
0x2cdf   : > { %v6296_v34 = vpop.f32.mrf.mxu1  ;;  %6410 = vmatpush.msra.mxu0 %v6253_v12 }
0x2ce0   : > { %v6305_v56 = vmul.f32 0.35355338, %v6296_v34 }
0x2ce1   : > { %6555 = vmatpush.msrb.mxu0 %v7773_v13 }
0x2ce2   : > { %v6308_v51 = vadd.f32 %v6305_v56, %v10388_v36 }
0x2ce3   : > { %6556 = vmatpush.msrb.mxu0 %v7772_v23 }
0x2ce4   : > { %v6311_v39 = vsel %vm949_vm15, %v6308_v51, -inf }
0x2ce5   : > { %6312 = vmax.xlane.f32.xlu0 %v6311_v39  ;;  %6557 = vmatpush.msrb.mxu0 %v7771_v9  ;;  %v6145_v9 = vadd.f32 %v10542_v43, %v10544_v61 }
0x2ce7   : > { %v6299_v17 = vpop.f32.mrf.mxu1  ;;  %6558 = vmatpush.msrb.mxu0 %v7770_v45 }
0x2ce8   : > { %v6306_v21 = vmul.f32 0.35355338, %v6299_v17 }
0x2cea   : > { %v6309_v22 = vadd.f32 %v6306_v21, %v10388_v36 }
0x2cec   : > { %v6314_v24 = vsel %vm949_vm15, %v6309_v22, -inf }
0x2ced   : > { %6315 = vmax.xlane.f32.xlu2 %v6314_v24 }
0x2cef   : > { %v6302_v26 = vpop.f32.mrf.mxu1 }
0x2cf0   : > { %v6307_v20 = vmul.f32 0.35355338, %v6302_v26 }
0x2cf2   : > { %v6310_v48 = vadd.f32 %v6307_v20, %v10388_v36 }
0x2cf4   : > { %v6317_v25 = vsel %vm956_vm0, %v6310_v48, -inf }
0x2cf5   : > { %6318 = vmax.xlane.f32.xlu0 %v6317_v25 }
0x2cf7   : > { %v6524_v38 = vpop.f32.mrf.mxu1 }
0x2cf8   : > { %v6525_v62 = vadd.f32 %v7913_v46, %v6524_v38 }
0x2cff   : > { %v6527_v29 = vpop.f32.mrf.mxu1 }
0x2d00   : > { %v6528_v4 = vadd.f32 %v7913_v46, %v6527_v29 }
0x2d07   : > { %v6530_v30 = vpop.f32.mrf.mxu1 }
0x2d08   : > { %v6531_v44 = vadd.f32 %v7913_v46, %v6530_v30 }
0x2d0a   : > { %7778 = vmatpush.xpose.msk.msra.mxu3 %vm901_vm13, %v6531_v44 }
0x2d0e   : > { %7779 = vmatpush.xpose.msk.msra.mxu3 %vm901_vm13, %v6528_v4 }
0x2d12   : > { %7780 = vmatpush.xpose.msk.msra.mxu3 %vm901_vm13, %v6525_v62 }
0x2d58   : > { %v6313_v50 = vpop.xlane.xlu0 %6312 }
0x2d59   : > { %v6320_v19 = vsub.f32 %v6308_v51, %v6313_v50 }
0x2d5b   : > { %v6323_v49 = vmul.f32 1.442695, %v6320_v19 }
0x2d5d   : > { %8157 = vpow2.f32 %v6323_v49 }
0x2d60   : > { %v6316_v14 = vpop.xlane.xlu2 %6315 }
0x2d61   : > { %v6321_v57 = vsub.f32 %v6309_v22, %v6316_v14 }
0x2d63   : > { %v8158_v58 = vpop.eup %8157  ;;  %v6325_v60 = vmul.f32 1.442695, %v6321_v57 }
0x2d64   : > { %v6329_v8 = vsel %vm949_vm15, %v8158_v58, 0.0 }
0x2d65   : > { %8159 = vpow2.f32 %v6325_v60  ;;  %6330 = vadd.xlane.f32.xlu2 %v6329_v8  ;;  %v6488_v60 = vpop.f32.mrf.mxu2 }
0x2d68   : > { %v6319_v63 = vpop.xlane.xlu0 %6318 }
0x2d69   : > { %v6322_v27 = vsub.f32 %v6310_v48, %v6319_v63 }
0x2d6b   : > { %v8160_v59 = vpop.eup %8159  ;;  %v6327_v0 = vmul.f32 1.442695, %v6322_v27 }
0x2d6c   : > { %v6332_v53 = vsel %vm949_vm15, %v8160_v59, 0.0 }
0x2d6d   : > { %8161 = vpow2.f32 %v6327_v0  ;;  %6333 = vadd.xlane.f32.xlu0 %v6332_v53 }
0x2d73   : > { %v10573_v41 = vpop.eup %8161 }
0x2d74   : > { %v6335_v2 = vsel %vm956_vm0, %v10573_v41, 0.0 }
0x2d75   : > { %6336 = vadd.xlane.f32.xlu2 %v6335_v2 }
0x2dd8   : > { %v6331_v31 = vpop.xlane.xlu2 %6330 }
0x2dd9   : > { %8163 = vrcp.f32 %v6331_v31  ;;  %v6349_v5 = vand.u32 2147483648, %v6331_v31  ;;  %v6347_v37 = vand.u32 2147483647, %v6331_v31  ;;  %vm6343_vm8 = vweird.f32 %v6331_v31 }
0x2ddb   : > { %v6350_v11 = vor.u32 1.1754944e-38, %v6349_v5  ;;  %vm6348_vm10 = vcmp.eq.f32.partialorder %v6347_v37, 8.507059e+37 }
0x2ddf   : > { %v8164_v42 = vpop.eup %8163 }
0x2de0   : > { %v6339_v52 = vmul.f32 %v8164_v42, %v6331_v31  ;;  %v6334_v1 = vpop.xlane.xlu0 %6333  ;;  %vm6344_vm7 = vweird.f32 %v8164_v42 }
0x2de1   : > { %8165 = vrcp.f32 %v6334_v1  ;;  %vm6345_vm9 = vmor %vm6343_vm8, %vm6344_vm7  ;;  %v6364_v21 = vand.u32 2147483648, %v6334_v1  ;;  %v6362_v22 = vand.u32 2147483647, %v6334_v1  ;;  %vm6358_vm12 = vweird.f32 %v6334_v1 }
0x2de2   : > { %v6340_v55 = vsub.f32 1.0, %v6339_v52 }
0x2de3   : > { %v6365_v20 = vor.u32 1.1754944e-38, %v6364_v21  ;;  %vm6363_vm4 = vcmp.eq.f32.partialorder %v6362_v22, 8.507059e+37 }
0x2de4   : > { %v6341_v6 = vmul.f32 %v8164_v42, %v6340_v55 }
0x2de6   : > { %v6342_v10 = vadd.f32 %v8164_v42, %v6341_v6 }
0x2de7   : > { %v8166_v32 = vpop.eup %8165 }
0x2de8   : > { %v6346_v12 = vsel %vm6345_vm9, %v8164_v42, %v6342_v10  ;;  %v6354_v34 = vmul.f32 %v8166_v32, %v6334_v1  ;;  %v6337_v56 = vpop.xlane.xlu2 %6336  ;;  %vm6359_vm11 = vweird.f32 %v8166_v32  ;;  %v6148_v1 = vadd.f32 %v10546_v35, %v10548_v33 }
0x2de9   : > { %v6351_v51 = vsel %vm6348_vm10, %v6350_v11, %v6346_v12  ;;  %8167 = vrcp.f32 %v6337_v56  ;;  %vm6360_vm3 = vmor %vm6358_vm12, %vm6359_vm11  ;;  %v6379_v30 = vand.u32 2147483648, %v6337_v56  ;;  %v6377_v4 = vand.u32 2147483647, %v6337_v56 }
0x2dea   : > { %v6352_v39 = vmul.f32 %v8158_v58, %v6351_v51  ;;  %v6355_v17 = vsub.f32 1.0, %v6354_v34  ;;  %vm6373_vm6 = vweird.f32 %v6337_v56 }
0x2deb   : > { %v6380_v50 = vor.u32 1.1754944e-38, %v6379_v30  ;;  %vm6378_vm8 = vcmp.eq.f32.partialorder %v6377_v4, 8.507059e+37 }
0x2dec   : > { %v6356_v47 = vmul.f32 %v8166_v32, %v6355_v17  ;;  %7747 = vmatmul.msk.f32.vlgmr.msra.gmra.mxu0 %vm949_vm15, %v6352_v39 }
0x2dee   : > { %v6357_v24 = vadd.f32 %v8166_v32, %v6356_v47 }
0x2def   : > { %v8168_v26 = vpop.eup %8167 }
0x2df0   : > { %v6369_v48 = vmul.f32 %v8168_v26, %v6337_v56  ;;  %v6361_v25 = vsel %vm6360_vm3, %v8166_v32, %v6357_v24  ;;  %vm6374_vm5 = vweird.f32 %v8168_v26 }
0x2df1   : > { %v6366_v38 = vsel %vm6363_vm4, %v6365_v20, %v6361_v25  ;;  %vm6375_vm7 = vmor %vm6373_vm6, %vm6374_vm5 }
0x2df2   : > { %v6370_v29 = vsub.f32 1.0, %v6369_v48  ;;  %v6367_v46 = vmul.f32 %v8160_v59, %v6366_v38 }
0x2df4   : > { %v6371_v44 = vmul.f32 %v8168_v26, %v6370_v29  ;;  %7748 = vmatmul.msk.f32.gmra.mxu0 %vm949_vm15, %v6367_v46 }
0x2df6   : > { %v6372_v62 = vadd.f32 %v8168_v26, %v6371_v44  ;;  %v7788_v44 = vld [vmem:[%s10808_s9 + $0x78] sm:$0xff] }
0x2df7   : > { %6755 = vmatpush.msrb.mxu1 %v7788_v44 }
0x2df8   : > { %v6376_v19 = vsel %vm6375_vm7, %v8168_v26, %v6372_v62 }
0x2df9   : > { %v6381_v49 = vsel %vm6378_vm8, %v6380_v50, %v6376_v19 }
0x2dfa   : > { %v6382_v14 = vmul.f32 %v10573_v41, %v6381_v49  ;;  %v7914_v41 = vld [vmem:[%s10807_s8 + $0xf] ss:$0 sm:$0xff] }
0x2dfc   : > { %7749 = vmatmul.msk.f32.gmra.mxu0 %vm949_vm15, %v6382_v14 }
0x2e04   : > { %7775 = vmatmul.msk.f32.vlgmr.msrb.gmra.mxu0 %vm707_vm1, %v10269_v16  ;;  %v7912_v16 = vld [vmem:[%s10855_s6 + $0xf] ss:$0 sm:$0xff] }
0x2e05   : > { %v6489_v63 = vadd.f32 %v7912_v16, %v6488_v60 }
0x2e0c   : > { %7776 = vmatmul.msk.f32.gmra.mxu0 %vm707_vm1, %v10275_v7  ;;  %v6491_v7 = vpop.f32.mrf.mxu2 }
0x2e14   : > { %7777 = vmatmul.msk.f32.gmra.mxu0 %vm707_vm1, %v10293_v15  ;;  %v6492_v15 = vadd.f32 %v7912_v16, %v6491_v7  ;;  %v6494_v0 = vpop.f32.mrf.mxu2 }
0x2e15   : > { %v6495_v53 = vadd.f32 %v7912_v16, %v6494_v0 }
0x2e69   : > { %v6412_v57 = vpop.f32.mrf.mxu0 }
0x2e6a   : > { %7751 = vmatmul.msk.f32.vlgmr.msrb.gmra.mxu3 %vm901_vm13, %v6412_v57 }
0x2e71   : > { %v6415_v58 = vpop.f32.mrf.mxu0 }
0x2e72   : > { %7752 = vmatmul.msk.f32.gmra.mxu3 %vm901_vm13, %v6415_v58 }
0x2e79   : > { %v6418_v8 = vpop.f32.mrf.mxu0 }
0x2e7a   : > { %7753 = vmatmul.msk.f32.gmra.mxu3 %vm901_vm13, %v6418_v8 }
0x2e81   : > { %v6560_v27 = vpop.f32.mrf.mxu0 }
0x2e82   : > { %7781 = vmatmul.msk.f32.vlgmr.msra.gmra.mxu3 %vm901_vm13, %v6489_v63  ;;  %v6561_v23 = vadd.f32 %v7914_v41, %v6560_v27 }
0x2e89   : > { %v6563_v59 = vpop.f32.mrf.mxu0 }
0x2e8a   : > { %7782 = vmatmul.msk.f32.gmra.mxu3 %vm901_vm13, %v6492_v15  ;;  %v6564_v13 = vadd.f32 %v7914_v41, %v6563_v59 }
0x2e91   : > { %v6566_v2 = vpop.f32.mrf.mxu0 }
0x2e92   : > { %v6567_v31 = vadd.f32 %v7914_v41, %v6566_v2  ;;  %7783 = vmatmul.msk.f32.gmra.mxu3 %vm901_vm13, %v6495_v53 }
0x2e94   : > { %7784 = vmatpush.msk.msrb.mxu2 %vm1032_vm14, %v6567_v31 }
0x2e96   : > { %6717 = vmatpush.msrb.mxu2 %v6564_v13 }
0x2e98   : > { %6718 = vmatpush.msrb.mxu2 %v6561_v23 }
0x2eed   : > { %v6449_v42 = vpop.f32.mrf.mxu3 }
0x2eee   : > { %v10614_v52 = vadd.f32 %v6449_v42, %v6145_v9 }
0x2ef5   : > { %v6452_v45 = vpop.f32.mrf.mxu3 }
0x2ef6   : > { %v10618_v55 = vadd.f32 %v6452_v45, %v6148_v1 }
0x2efd   : > { %v6455_v5 = vpop.f32.mrf.mxu3 }
0x2efe   : > { %v10621_v6 = vadd.f32 %v6455_v5, %v10550_v18 }
0x2f05   : > { %v6604_v37 = vpop.f32.mrf.mxu3 }
0x2f06   : > { %v6613_v10 = vmul.f32 0.35355338, %v6604_v37 }
0x2f08   : > { %v6616_v32 = vadd.f32 %v6613_v10, %v10388_v36 }
0x2f0a   : > { %v6619_v11 = vsel %vm949_vm15, %v6616_v32, -inf }
0x2f0b   : > { %6620 = vmax.xlane.f32.xlu0 %v6619_v11 }
0x2f0d   : > { %v6607_v43 = vpop.f32.mrf.mxu3 }
0x2f0e   : > { %v6614_v61 = vmul.f32 0.35355338, %v6607_v43 }
0x2f10   : > { %v6617_v12 = vadd.f32 %v6614_v61, %v10388_v36 }
0x2f12   : > { %v6622_v35 = vsel %vm949_vm15, %v6617_v12, -inf }
0x2f13   : > { %6623 = vmax.xlane.f32.xlu2 %v6622_v35 }
0x2f15   : > { %v6610_v33 = vpop.f32.mrf.mxu3 }
0x2f16   : > { %v6615_v34 = vmul.f32 0.35355338, %v6610_v33 }
0x2f18   : > { %v6618_v56 = vadd.f32 %v6615_v34, %v10388_v36 }
0x2f1a   : > { %v6625_v18 = vsel %vm956_vm0, %v6618_v56, -inf }
0x2f1b   : > { %6626 = vmax.xlane.f32.xlu0 %v6625_v18 }
0x2f7e   : > { %v6621_v51 = vpop.xlane.xlu0 %6620 }
0x2f7f   : > { %v6628_v39 = vsub.f32 %v6616_v32, %v6621_v51  ;;  %v10645_v51 = vld [vmem:[%s10811_s12 + $0x18] sm:$0x7f] }
0x2f81   : > { %v6631_v17 = vmul.f32 1.442695, %v6628_v39  ;;  %v6772_v39 = vperm.slane %v10645_v51, 2 }
0x2f83   : > { %8169 = vpow2.f32 %v6631_v17 }
0x2f86   : > { %v6624_v21 = vpop.xlane.xlu2 %6623 }
0x2f87   : > { %v6629_v47 = vsub.f32 %v6617_v12, %v6624_v21 }
0x2f89   : > { %v8170_v22 = vpop.eup %8169  ;;  %v6633_v24 = vmul.f32 1.442695, %v6629_v47 }
0x2f8a   : > { %v6637_v26 = vsel %vm949_vm15, %v8170_v22, 0.0 }
0x2f8b   : > { %8171 = vpow2.f32 %v6633_v24  ;;  %6638 = vadd.xlane.f32.xlu1 %v6637_v26 }
0x2f8e   : > { %v6627_v20 = vpop.xlane.xlu0 %6626 }
0x2f8f   : > { %v6630_v48 = vsub.f32 %v6618_v56, %v6627_v20 }
0x2f91   : > { %v8172_v25 = vpop.eup %8171  ;;  %v6635_v38 = vmul.f32 1.442695, %v6630_v48 }
0x2f92   : > { %v6640_v36 = vsel %vm949_vm15, %v8172_v25, 0.0 }
0x2f93   : > { %8173 = vpow2.f32 %v6635_v38  ;;  %6641 = vadd.xlane.f32.xlu1 %v6640_v36 }
0x2f99   : > { %v8174_v29 = vpop.eup %8173 }
0x2f9a   : > { %v6643_v46 = vsel %vm956_vm0, %v8174_v29, 0.0 }
0x2f9b   : > { %6644 = vadd.xlane.f32.xlu2 %v6643_v46 }
0x2ffe   : > { %v6639_v30 = vpop.xlane.xlu1 %6638 }
0x2fff   : > { %8175 = vrcp.f32 %v6639_v30  ;;  %v6657_v49 = vand.u32 2147483648, %v6639_v30  ;;  %v6655_v57 = vand.u32 2147483647, %v6639_v30  ;;  %vm6651_vm9 = vweird.f32 %v6639_v30 }
0x3001   : > { %v6658_v8 = vor.u32 1.1754944e-38, %v6657_v49  ;;  %vm6656_vm10 = vcmp.eq.f32.partialorder %v6655_v57, 8.507059e+37 }
0x3005   : > { %v8176_v4 = vpop.eup %8175 }
0x3006   : > { %v6647_v62 = vmul.f32 %v8176_v4, %v6639_v30  ;;  %v6642_v50 = vpop.xlane.xlu1 %6641  ;;  %vm6652_vm14 = vweird.f32 %v8176_v4 }
0x3007   : > { %8177 = vrcp.f32 %v6642_v50  ;;  %vm6653_vm0 = vmor %vm6651_vm9, %vm6652_vm14  ;;  %v6672_v0 = vand.u32 2147483648, %v6642_v50  ;;  %v6670_v41 = vand.u32 2147483647, %v6642_v50  ;;  %vm6666_vm12 = vweird.f32 %v6642_v50 }
0x3008   : > { %v6648_v19 = vsub.f32 1.0, %v6647_v62 }
0x3009   : > { %v6673_v13 = vor.u32 1.1754944e-38, %v6672_v0  ;;  %vm6671_vm4 = vcmp.eq.f32.partialorder %v6670_v41, 8.507059e+37 }
0x300a   : > { %v6649_v14 = vmul.f32 %v8176_v4, %v6648_v19 }
0x300c   : > { %v6650_v58 = vadd.f32 %v8176_v4, %v6649_v14 }
0x300d   : > { %v8178_v60 = vpop.eup %8177 }
0x300e   : > { %v6654_v16 = vsel %vm6653_vm0, %v8176_v4, %v6650_v58  ;;  %v6662_v63 = vmul.f32 %v8178_v60, %v6642_v50  ;;  %v6645_v27 = vpop.xlane.xlu2 %6644  ;;  %vm6667_vm11 = vweird.f32 %v8178_v60  ;;  %v7795_v58 = vld [vmem:[%s10809_s10 + $0x78] sm:$0xff] }
0x300f   : > { %v6659_v7 = vsel %vm6656_vm10, %v6658_v8, %v6654_v16  ;;  %8179 = vrcp.f32 %v6645_v27  ;;  %vm6668_vm3 = vmor %vm6666_vm12, %vm6667_vm11  ;;  %v6687_v5 = vand.u32 2147483648, %v6645_v27  ;;  %v6685_v10 = vand.u32 2147483647, %v6645_v27  ;;  %6877 = vmatpush.msra.mxu0 %v7795_v58  ;;  %v7793_v8 = vld [vmem:[%s10809_s10 + $0x68] sm:$0xff]  ;;  %v7792_v16 = vld [vmem:[%s10809_s10 + $0x60] sm:$0xff] }
0x3010   : > { %v6660_v15 = vmul.f32 %v8170_v22, %v6659_v7  ;;  %v6663_v59 = vsub.f32 1.0, %v6662_v63  ;;  %vm6681_vm6 = vweird.f32 %v6645_v27  ;;  %v6855_v58 = vperm.slane %v10645_v51, 6 }
0x3011   : > { %v6688_v11 = vor.u32 1.1754944e-38, %v6687_v5  ;;  %vm6686_vm8 = vcmp.eq.f32.partialorder %v6685_v10, 8.507059e+37 }
0x3012   : > { %v6664_v53 = vmul.f32 %v8178_v60, %v6663_v59  ;;  %7785 = vmatmul.msk.f32.vlgmr.msrb.gmra.mxu2 %vm949_vm15, %v6660_v15 }
0x3014   : > { %v6665_v2 = vadd.f32 %v8178_v60, %v6664_v53 }
0x3015   : > { %v8180_v31 = vpop.eup %8179 }
0x3016   : > { %v6677_v23 = vmul.f32 %v8180_v31, %v6645_v27  ;;  %v6669_v9 = vsel %vm6668_vm3, %v8178_v60, %v6665_v2  ;;  %vm6682_vm5 = vweird.f32 %v8180_v31  ;;  %v7794_v60 = vld [vmem:[%s10809_s10 + $0x70] sm:$0xff]  ;;  %v7814_v2 = vld [vmem:[%s10810_s11 + $0x1f8] sm:$0xff] }
0x3017   : > { %v6674_v42 = vsel %vm6671_vm4, %v6673_v13, %v6669_v9  ;;  %vm6683_vm7 = vmor %vm6681_vm6, %vm6682_vm5  ;;  %6878 = vmatpush.msra.mxu0 %v7794_v60  ;;  %6935 = vmatpush.msrb.mxu3 %v7814_v2 }
0x3018   : > { %v6678_v1 = vsub.f32 1.0, %v6677_v23  ;;  %v6675_v45 = vmul.f32 %v8172_v25, %v6674_v42  ;;  %v7812_v23 = vld [vmem:[%s10810_s11 + $0x1e8] sm:$0xff] }
0x3019   : > { %6879 = vmatpush.msra.mxu0 %v7793_v8 }
0x301a   : > { %v6679_v37 = vmul.f32 %v8180_v31, %v6678_v1  ;;  %7786 = vmatmul.msk.f32.gmra.mxu2 %vm949_vm15, %v6675_v45  ;;  %v7811_v45 = vld [vmem:[%s10810_s11 + $0x1e0] sm:$0xff] }
0x301b   : > { %6880 = vmatpush.msra.mxu0 %v7792_v16 }
0x301c   : > { %v6680_v32 = vadd.f32 %v8180_v31, %v6679_v37 }
0x301e   : > { %v6684_v43 = vsel %vm6683_vm7, %v8180_v31, %v6680_v32  ;;  %v7813_v31 = vld [vmem:[%s10810_s11 + $0x1f0] sm:$0xff] }
0x301f   : > { %v6689_v61 = vsel %vm6686_vm8, %v6688_v11, %v6684_v43  ;;  %6936 = vmatpush.msrb.mxu3 %v7813_v31  ;;  %v6842_v43 = vperm.slane %v10645_v51, 3 }
0x3020   : > { %v6690_v12 = vmul.f32 %v8174_v29, %v6689_v61 }
0x3021   : > { %6937 = vmatpush.msrb.mxu3 %v7812_v23 }
0x3022   : > { %7787 = vmatmul.msk.f32.gmra.mxu2 %vm949_vm15, %v6690_v12 }
0x3023   : > { %6938 = vmatpush.msrb.mxu3 %v7811_v45 }
0x3095   : > { %v6720_v35 = vpop.f32.mrf.mxu2 }
0x3096   : > { %7789 = vmatmul.msk.f32.vlgmr.msrb.gmra.mxu1 %vm901_vm13, %v6720_v35  ;;  %v6846_v35 = vperm.slane %v10645_v51, 4 }
0x309d   : > { %v6723_v33 = vpop.f32.mrf.mxu2 }
0x309e   : > { %7790 = vmatmul.msk.f32.gmra.mxu1 %vm901_vm13, %v6723_v33 }
0x30a5   : > { %v6726_v34 = vpop.f32.mrf.mxu2 }
0x30a6   : > { %7791 = vmatmul.msk.f32.gmra.mxu1 %vm901_vm13, %v6726_v34 }
0x3113   : > { %v6757_v56 = vpop.f32.mrf.mxu1 }
0x3114   : > { %v6766_v18 = vadd.f32 %v6757_v56, %v10614_v52 }
0x3116   : > { %v6769_v17 = vadd.f32 %v6766_v18, %v10171_v40 }
0x3118   : > { %v10649_v21 = vadd.f32 %v6772_v39, %v6769_v17 }
0x311a   : > { %v6776_v47 = vsel %vm707_vm1, %v10649_v21, 0.0 }
0x311b   : > { %v6760_v22 = vpop.f32.mrf.mxu1  ;;  %6777 = vadd.xlane.f32.xlu0 %v6776_v47 }
0x311c   : > { %v6767_v24 = vadd.f32 %v6760_v22, %v10618_v55 }
0x311e   : > { %v6770_v52 = vadd.f32 %v6767_v24, %v10176_v3 }
0x3120   : > { %v6774_v26 = vadd.f32 %v6772_v39, %v6770_v52 }
0x3122   : > { %v6779_v20 = vsel %vm707_vm1, %v6774_v26, 0.0 }
0x3123   : > { %6780 = vadd.xlane.f32.xlu2 %v6779_v20  ;;  %v6763_v48 = vpop.f32.mrf.mxu1 }
0x3124   : > { %v6768_v25 = vadd.f32 %v6763_v48, %v10621_v6 }
0x3126   : > { %v6771_v40 = vadd.f32 %v6768_v25, %v10181_v28 }
0x3128   : > { %v6775_v38 = vadd.f32 %v6772_v39, %v6771_v40 }
0x312a   : > { %v6782_v36 = vsel %vm714_vm2, %v6775_v38, 0.0 }
0x312b   : > { %6783 = vadd.xlane.f32.xlu0 %v6782_v36 }
0x318e   : > { %v6778_v29 = vpop.xlane.xlu0 %6777 }
0x318f   : > { %v6785_v46 = vmul.f32 %v6778_v29, %v8518_v54 }
0x3191   : > { %v6788_v55 = vsub.f32 %v10649_v21, %v6785_v46 }
0x3193   : > { %v6791_v30 = vmul.f32 %v6788_v55, %v6788_v55 }
0x3195   : > { %v6794_v3 = vsel %vm707_vm1, %v6791_v30, 0.0  ;;  %v7810_v30 = vld [vmem:[%s10810_s11 + $0x1d8] sm:$0xff] }
0x3196   : > { %v6781_v44 = vpop.xlane.xlu2 %6780  ;;  %6795 = vadd.xlane.f32.xlu1 %v6794_v3  ;;  %6939 = vmatpush.msrb.mxu3 %v7810_v30  ;;  %v7809_v3 = vld [vmem:[%s10810_s11 + $0x1d0] sm:$0xff] }
0x3197   : > { %v6786_v4 = vmul.f32 %v6781_v44, %v8518_v54  ;;  %v7808_v44 = vld [vmem:[%s10810_s11 + $0x1c8] sm:$0xff] }
0x3198   : > { %6940 = vmatpush.msrb.mxu3 %v7809_v3 }
0x3199   : > { %v10663_v62 = vsub.f32 %v6774_v26, %v6786_v4  ;;  %v7807_v4 = vld [vmem:[%s10810_s11 + $0x1c0] sm:$0xff] }
0x319a   : > { %6941 = vmatpush.msrb.mxu3 %v7808_v44 }
0x319b   : > { %v6792_v28 = vmul.f32 %v10663_v62, %v10663_v62 }
0x319c   : > { %6942 = vmatpush.msrb.mxu3 %v7807_v4 }
0x319d   : > { %v6797_v6 = vsel %vm707_vm1, %v6792_v28, 0.0  ;;  %v7805_v28 = vld [vmem:[%s10810_s11 + $0x1b0] sm:$0xff] }
0x319e   : > { %6798 = vadd.xlane.f32.xlu1 %v6797_v6  ;;  %v6784_v50 = vpop.xlane.xlu0 %6783  ;;  %v7804_v6 = vld [vmem:[%s10810_s11 + $0x1a8] sm:$0xff] }
0x319f   : > { %v6787_v19 = vmul.f32 %v6784_v50, %v8518_v54  ;;  %v7803_v50 = vld [vmem:[%s10810_s11 + $0x1a0] sm:$0xff] }
0x31a1   : > { %v10669_v49 = vsub.f32 %v6775_v38, %v6787_v19  ;;  %v7802_v19 = vld [vmem:[%s10810_s11 + $0x198] sm:$0xff] }
0x31a3   : > { %v6793_v14 = vmul.f32 %v10669_v49, %v10669_v49 }
0x31a5   : > { %v6800_v57 = vsel %vm714_vm2, %v6793_v14, 0.0  ;;  %v7800_v14 = vld [vmem:[%s10810_s11 + $0x188] sm:$0xff] }
0x31a6   : > { %6801 = vadd.xlane.f32.xlu2 %v6800_v57  ;;  %v7799_v57 = vld [vmem:[%s10810_s11 + $0x180] sm:$0xff] }
0x3209   : > { %v6796_v63 = vpop.xlane.xlu1 %6795 }
0x320a   : > { %v6803_v27 = vmul.f32 %v6796_v63, %v8518_v54 }
0x320c   : > { %v6806_v7 = vadd.f32 1e-05, %v6803_v27 }
0x320e   : > { %8181 = vrsqrt.f32 %v6806_v7  ;;  %vm6815_vm15 = vweird.f32 %v6806_v7 }
0x3211   : > { %v6799_v15 = vpop.xlane.xlu1 %6798 }
0x3212   : > { %v6804_v59 = vmul.f32 %v6799_v15, %v8518_v54 }
0x3214   : > { %v8182_v0 = vpop.eup %8181  ;;  %v6807_v53 = vadd.f32 1e-05, %v6804_v59 }
0x3215   : > { %v6810_v41 = vmul.f32 %v8182_v0, %v6806_v7  ;;  %vm6816_vm13 = vweird.f32 %v8182_v0 }
0x3216   : > { %8183 = vrsqrt.f32 %v6807_v53  ;;  %vm6817_vm14 = vmor %vm6815_vm15, %vm6816_vm13  ;;  %vm6825_vm0 = vweird.f32 %v6807_v53 }
0x3217   : > { %v6811_v13 = vmul.f32 %v8182_v0, %v6810_v41 }
0x3219   : > { %v6812_v9 = vmul.f32 0.5, %v6811_v13  ;;  %v6802_v42 = vpop.xlane.xlu2 %6801 }
0x321a   : > { %v6805_v1 = vmul.f32 %v6802_v42, %v8518_v54 }
0x321b   : > { %v6813_v5 = vsub.f32 1.5, %v6812_v9 }
0x321c   : > { %v8184_v37 = vpop.eup %8183  ;;  %v6808_v10 = vadd.f32 1e-05, %v6805_v1 }
0x321d   : > { %v6814_v32 = vmul.f32 %v8182_v0, %v6813_v5  ;;  %v6820_v11 = vmul.f32 %v8184_v37, %v6807_v53  ;;  %vm6826_vm9 = vweird.f32 %v8184_v37 }
0x321e   : > { %8185 = vrsqrt.f32 %v6808_v10  ;;  %vm6827_vm10 = vmor %vm6825_vm0, %vm6826_vm9  ;;  %vm6835_vm12 = vweird.f32 %v6808_v10 }
0x321f   : > { %v6818_v61 = vsel %vm6817_vm14, %v8182_v0, %v6814_v32  ;;  %v6821_v12 = vmul.f32 %v8184_v37, %v6820_v11 }
0x3220   : > { %v6839_v33 = vmul.f32 %v6818_v61, %v6788_v55 }
0x3221   : > { %v6822_v34 = vmul.f32 0.5, %v6821_v12 }
0x3222   : > { %v6843_v56 = vmul.f32 %v6842_v43, %v6839_v33 }
0x3223   : > { %v6823_v18 = vsub.f32 1.5, %v6822_v34 }
0x3224   : > { %v8186_v39 = vpop.eup %8185  ;;  %v6847_v17 = vadd.f32 %v6846_v35, %v6843_v56 }
0x3225   : > { %v6824_v47 = vmul.f32 %v8184_v37, %v6823_v18  ;;  %v6830_v22 = vmul.f32 %v8186_v39, %v6808_v10  ;;  %vm6836_vm11 = vweird.f32 %v8186_v39 }
0x3226   : > { %7796 = vmatmul.msk.f32.vlgmr.msra.gmra.mxu0 %vm707_vm1, %v6847_v17  ;;  %vm6837_vm3 = vmor %vm6835_vm12, %vm6836_vm11  ;;  %v6960_v17 = vperm.slane %v10645_v51, 5  ;;  %v6993_v51 = vld [vmem:[%s10815_s16 + $0x18] sm:$0xff] }
0x3227   : > { %v6828_v24 = vsel %vm6827_vm10, %v8184_v37, %v6824_v47  ;;  %v6831_v52 = vmul.f32 %v8186_v39, %v6830_v22  ;;  %7011 = vmatpush.msra.mxu2 %v6993_v51 }
0x3228   : > { %v6840_v26 = vmul.f32 %v6828_v24, %v10663_v62  ;;  %v7806_v62 = vld [vmem:[%s10810_s11 + $0x1b8] sm:$0xff] }
0x3229   : > { %v6832_v20 = vmul.f32 0.5, %v6831_v52  ;;  %6943 = vmatpush.msrb.mxu3 %v7806_v62 }
0x322a   : > { %v6844_v48 = vmul.f32 %v6842_v43, %v6840_v26 }
0x322b   : > { %v6833_v25 = vsub.f32 1.5, %v6832_v20  ;;  %6944 = vmatpush.msrb.mxu3 %v7805_v28 }
0x322c   : > { %v6848_v40 = vadd.f32 %v6846_v35, %v6844_v48 }
0x322d   : > { %v6834_v38 = vmul.f32 %v8186_v39, %v6833_v25  ;;  %6945 = vmatpush.msrb.mxu3 %v7804_v6 }
0x322e   : > { %7797 = vmatmul.msk.f32.gmra.mxu0 %vm707_vm1, %v6848_v40 }
0x322f   : > { %v6838_v36 = vsel %vm6837_vm3, %v8186_v39, %v6834_v38  ;;  %6946 = vmatpush.msrb.mxu3 %v7803_v50  ;;  %v6962_v50 = vld [vmem:[%s10856_s21] sm:$0x7]  ;;  %s8215_s21 = scalar_lea.hbm %s8214_s22, 1 }
0x3230   : > { %v6841_v29 = vmul.f32 %v6838_v36, %v10669_v49  ;;  %v7801_v49 = vld [vmem:[%s10810_s11 + $0x190] sm:$0xff]  ;;  %p8216_p11 = scmp.ne.s32.totalorder %s8214_s22, %s8215_s21  ;;  %p8221_p1 = scmp.lt.s32.totalorder %s8219_s1, %s8215_s21 }
0x3231   : > { %6947 = vmatpush.msrb.mxu3 %v7802_v19 }
0x3232   : > { %v6845_v46 = vmul.f32 %v6842_v43, %v6841_v29  ;;  %v6991_v29 = vld [vmem:[%s10815_s16 + $0x8] sm:$0xff]  ;;  %p8217_p12 = pnand %p8216_p11, %p8404_p5  ;;  %p8222_p2 = por %p8221_p1, %p8220_p0 }
0x3233   : > { %6948 = vmatpush.msrb.mxu3 %v7801_v49 }
0x3234   : > { %v6849_v55 = vadd.f32 %v6846_v35, %v6845_v46  ;;  %v6990_v46 = vld [vmem:[%s10815_s16] sm:$0xff]  ;;  %p8218_p13 = pneg %p8217_p12 }
0x3235   : > { %6949 = vmatpush.msrb.mxu3 %v7800_v14  ;;  %v6987_v14 = vrot.slane %v6962_v50, 1 }
0x3236   : > { %7798 = vmatmul.msk.f32.gmra.mxu0 %vm707_vm1, %v6849_v55  ;;  %p8223_p3 = pnand %p8222_p2, %p8218_p13 }
0x3237   : > { %6950 = vmatpush.msrb.mxu3 %v7799_v57 }
0x32a3   : > { %v6882_v60 = vpop.f32.mrf.mxu0 }
0x32a4   : > { %v6883_v8 = vadd.f32 %v6882_v60, %v6855_v58  ;;  %v6994_v60 = vrot.slane %v6962_v50, 2 }
0x32a6   : > { %v6894_v16 = vmul.f32 0.044715, %v6883_v8  ;;  %v6891_v45 = vmul.f32 0.5, %v6883_v8 }
0x32a8   : > { %v6897_v63 = vmul.f32 %v6894_v16, %v6883_v8 }
0x32aa   : > { %v6900_v27 = vmul.f32 %v6897_v63, %v6883_v8 }
0x32ab   : > { %v6885_v7 = vpop.f32.mrf.mxu0 }
0x32ac   : > { %v6903_v15 = vadd.f32 %v6900_v27, %v6883_v8  ;;  %v6886_v59 = vadd.f32 %v6885_v7, %v6855_v58 }
0x32ae   : > { %v6906_v0 = vmul.f32 0.7978846, %v6903_v15  ;;  %v6895_v53 = vmul.f32 0.044715, %v6886_v59  ;;  %v6892_v12 = vmul.f32 0.5, %v6886_v59 }
0x32b0   : > { %8187 = vtanh.f32 %v6906_v0  ;;  %v6898_v41 = vmul.f32 %v6895_v53, %v6886_v59 }
0x32b2   : > { %v6901_v2 = vmul.f32 %v6898_v41, %v6886_v59 }
0x32b3   : > { %v6888_v31 = vpop.f32.mrf.mxu0 }
0x32b4   : > { %v6889_v13 = vadd.f32 %v6888_v31, %v6855_v58  ;;  %v6904_v23 = vadd.f32 %v6901_v2, %v6886_v59 }
0x32b6   : > { %v8188_v9 = vpop.eup %8187  ;;  %v6896_v42 = vmul.f32 0.044715, %v6889_v13  ;;  %v6907_v1 = vmul.f32 0.7978846, %v6904_v23  ;;  %v6893_v56 = vmul.f32 0.5, %v6889_v13 }
0x32b7   : > { %v6912_v5 = vadd.f32 1.0, %v8188_v9 }
0x32b8   : > { %8189 = vtanh.f32 %v6907_v1  ;;  %v6899_v37 = vmul.f32 %v6896_v42, %v6889_v13 }
0x32b9   : > { %v6915_v10 = vmul.f32 %v6912_v5, %v6891_v45 }
0x32ba   : > { %v6902_v32 = vmul.f32 %v6899_v37, %v6889_v13 }
0x32bb   : > { %6951 = vmatmul.f32.vlgmr.msrb.gmra.mxu3 %v6915_v10 }
0x32bc   : > { %v6905_v11 = vadd.f32 %v6902_v32, %v6889_v13 }
0x32be   : > { %v8190_v43 = vpop.eup %8189  ;;  %v6908_v61 = vmul.f32 0.7978846, %v6905_v11 }
0x32bf   : > { %v6913_v35 = vadd.f32 1.0, %v8190_v43 }
0x32c0   : > { %8191 = vtanh.f32 %v6908_v61 }
0x32c1   : > { %v6916_v33 = vmul.f32 %v6913_v35, %v6892_v12 }
0x32c3   : > { %6954 = vmatmul.f32.gmra.mxu3 %v6916_v33 }
0x32c6   : > { %v8192_v34 = vpop.eup %8191 }
0x32c7   : > { %v6914_v18 = vadd.f32 1.0, %v8192_v34 }
0x32c9   : > { %v6917_v39 = vmul.f32 %v6914_v18, %v6893_v56 }
0x32cb   : > { %6956 = vmatmul.f32.gmra.mxu3 %v6917_v39 }
0x333e   : > { %v6952_v47 = vpop.f32.mrf.mxu3 }
0x333f   : > { %v6959_v22 = vadd.f32 %v6952_v47, %v10649_v21  ;;  %v6992_v21 = vld [vmem:[%s10815_s16 + $0x10] sm:$0xff] }
0x3340   : > { %7012 = vmatpush.msra.mxu2 %v6992_v21 }
0x3341   : > { %v6961_v24 = vadd.f32 %v6960_v17, %v6959_v22 }
0x3342   : > { %7013 = vmatpush.msra.mxu2 %v6991_v29 }
0x3343   : > { %v6963_v52 = vsel %vm714_vm2, %v6961_v24, 0.0 }
0x3344   : > { %6964 = vadd.xlane.f32.xlu0 %v6963_v52  ;;  %7014 = vmatpush.msra.mxu2 %v6990_v46 }
0x3346   : > { %v6955_v26 = vpop.f32.mrf.mxu3 }
0x334e   : > { %v6957_v20 = vpop.f32.mrf.mxu3 }
0x33b7   : > { %v6965_v48 = vpop.xlane.xlu0 %6964 }
0x33b8   : > { %v6966_v25 = vmul.f32 %v6965_v48, %v8518_v54 }
0x33ba   : > { %v6967_v40 = vsub.f32 %v6961_v24, %v6966_v25 }
0x33bc   : > { %v6968_v38 = vmul.f32 %v6967_v40, %v6967_v40 }
0x33be   : > { %v6969_v36 = vsel %vm714_vm2, %v6968_v38, 0.0 }
0x33bf   : > { %6970 = vadd.xlane.f32.xlu1 %v6969_v36 }
0x3432   : > { %v6971_v55 = vpop.xlane.xlu1 %6970 }
0x3433   : > { %v6972_v30 = vmul.f32 %v6971_v55, %v8518_v54 }
0x3435   : > { %v6973_v3 = vadd.f32 1e-06, %v6972_v30 }
0x3437   : > { %8193 = vrsqrt.f32 %v6973_v3  ;;  %vm6980_vm4 = vweird.f32 %v6973_v3 }
0x343d   : > { %v8194_v44 = vpop.eup %8193 }
0x343e   : > { %v6975_v4 = vmul.f32 %v8194_v44, %v6973_v3  ;;  %vm6981_vm2 = vweird.f32 %v8194_v44 }
0x343f   : > { %vm6982_vm5 = vmor %vm6980_vm4, %vm6981_vm2 }
0x3440   : > { %v6976_v62 = vmul.f32 %v8194_v44, %v6975_v4 }
0x3442   : > { %v6977_v28 = vmul.f32 0.5, %v6976_v62 }
0x3444   : > { %v6978_v6 = vsub.f32 1.5, %v6977_v28 }
0x3446   : > { %v6979_v19 = vmul.f32 %v8194_v44, %v6978_v6 }
0x3448   : > { %v6983_v49 = vsel %vm6982_vm5, %v8194_v44, %v6979_v19 }
0x3449   : > { %v6984_v54 = vmul.f32 %v6983_v49, %v6967_v40 }
0x344b   : > { %v6985_v57 = vmul.f32 %v6984_v54, %v6962_v50 }
0x344d   : > { %v6989_v58 = vadd.f32 %v6987_v14, %v6985_v57 }
0x344f   : > { %7815 = vmatmul.msk.f32.vlgmr.msra.gmra.mxu2 %vm707_vm1, %v6989_v58 }
0x34d2   : > { %v7016_v8 = vpop.f32.mrf.mxu2 }
0x34d3   : > { %v7017_v16 = vadd.f32 %v7016_v8, %v6994_v60 }
0x34d5   : > { %7019 = vst [vmem:[%s595_s25] sm:$0x1] %v7017_v16 }
0x34d6   : > { %8226 = shalt.err (!%p8223_p3)
}
0x34d7   : > { %7823 = dma.vmem_to_hbm [thread:$0]  (%p8404_p5), %s7036_s2, 16, %s7038_s0, %s7021_s28  }
0x34d8 PF: > { %s10859_s20 = sld [smem:[#allocation7_spill]] }
0x34d9   : > { %s10860_s3 = sld [smem:[#allocation5_spill]] }
0x34de   : > { %p7829_p4 = scmp.ge.s32.totalorder %s10859_s20, 2 }
0x34df   : > { %s7052_s6 = sand.u32 1, %s10860_s3  }
0x34e0   : > { %p7826_p7 = pnand %p7829_p4, %p8408_p6  ;;  %s7053_s17 = scalar_lea.sflag [#allocation3], %s7052_s6 }
0x34e2   : > { %p7827_p8 = pneg %p7826_p7 }
0x34e4   : > { %8244 = dma.done.wait (%p7827_p8), %s7053_s17, 16  }
0x34e5   : > { %8246 = vsyncadd (%p7827_p8), %s7053_s17, 4294967280  ;;  %s10862_s21 = sld [smem:[#allocation8_spill]]  ;;  %s10865_s0 = smov %s8253_s30 }
0x34e6   : > { %s10863_s4 = sld [smem:[#allocation6_spill]] }
0x34e7   : > { %s10864_s20 = sld [smem:[#allocation9_spill]] }
0x34eb   : > { %p30_p9 = scmp.ge.s32.totalorder %s10862_s21, 4  }
0x34ec   : > { %s10866_s30 = smov %s10863_s4 }
0x34ed   :  { %32 = sbr.rel (!%p30_p9) target bundleno = 13 (0xd), region = 256 }
0x34f2   :  { %7065 = vsyncpa [#allocation3], 1 }
0x34f3   :  { %7067 = vsyncpa [#allocation3 + $0x1], 1 }

</bundles_post_ra>
